<compile_context>
chip_gen: v7x
topology: tpu7x:2x2x1
jax: 0.10.0
libtpu: 0.0.40
codegen_flags: <defaults>
</compile_context>

<pallas_src>
import jax
import jax.numpy as jnp
from jax.experimental import pallas as pl
from jax.experimental.pallas import tpu as pltpu

NUM_CLASSES = 11            # len(classes) == len(mods) for RadioML 2016.10a
H, W = 2, 128
W_PAD1 = W + 4              # 132  (pad_1 output width)
W_OUT1 = W_PAD1 - 3 + 1     # 130  (conv_1 output width)
W_OUT2 = (W_OUT1 + 4) - 3 + 1   # 132  (conv_2 output width)
W_SCR = 136                 # sublane-aligned padded width (multiple of 8, >= 134)
C1 = 256                    # conv_1 out channels
C2 = 80                     # conv_2 out channels
K_FEAT = C2 * W_OUT2        # 10560 linear_1 in-features (torch.flatten size)
K_PAD = C2 * W_SCR          # 10880 = 85 * 128 (lane-aligned K, 4 zero w-rows)


# ---------------------------------------------------------------------------
# Kernel 1: conv_1 + ReLU + pad_2 + conv_2 + ReLU  (single invocation)
# ---------------------------------------------------------------------------
def _conv_fused_kernel(xt_ref, w1_ref, b1_ref, w2_ref, b2_ref, out_ref, y1p_ref):
    """xt:(136,2)f32 transposed pad_1 input   w1:(3,256)f32 [kw, oc]
       b1:(1,256)f32   w2:(6,256,80)bf16 [kh*3+kw, ic, oc]   b2:(1,80)f32
       out:(136,80)bf16 (rows 132..135 zero)  y1p:(136,256)bf16 VMEM scratch."""
    xt = xt_ref[...]
    w1 = w1_ref[...]
    b1 = b1_ref[...]

    # Zero ONLY the pad rows of the scratch, once, with aligned 8-row stores.
    # Rows 2..131 are fully overwritten with valid data every h iteration below,
    # so rows 0-1 and 132-135 stay zero across both iterations (pad_2 invariant).
    y1p_ref[pl.ds(0, 8), :] = jnp.zeros((8, C1), jnp.bfloat16)
    y1p_ref[pl.ds(128, 8), :] = jnp.zeros((8, C1), jnp.bfloat16)

    acc = jnp.zeros((W_OUT2, C2), jnp.float32)
    for h in range(H):                                   # static unroll (H == 2)
        # conv_1 row h as 3 VPU broadcast FMAs (no MXU push, no im2col).
        y1h = (xt[0:W_OUT1, h:h + 1] * w1[0:1, :]
               + xt[1:1 + W_OUT1, h:h + 1] * w1[1:2, :]
               + xt[2:2 + W_OUT1, h:h + 1] * w1[2:3, :]
               + b1)
        y1h = jnp.maximum(y1h, 0.0)                      # (130, 256) f32
        # pad_2: valid rows live at sublane offset 2 of the 136-row bf16 scratch.
        y1p_ref[pl.ds(2, W_OUT1), :] = y1h.astype(jnp.bfloat16)
        ybuf = y1p_ref[...]                              # (136, 256) bf16, aligned
        # conv_2 kernel-row h: matmul the full ALIGNED scratch against each width
        # tap and shift the narrow (.,80) result (static slices), instead of
        # slicing the 256-lane input at unaligned sublane offsets.
        for kw in range(3):
            full = jnp.dot(ybuf, w2_ref[h * 3 + kw],
                           preferred_element_type=jnp.float32)   # (136, 80) f32
            acc = acc + full[kw:kw + W_OUT2, :]

    y2 = jnp.maximum(acc + b2_ref[...], 0.0)             # (132, 80) f32
    out_ref[pl.ds(0, W_OUT2), :] = y2.astype(jnp.bfloat16)
    out_ref[pl.ds(W_OUT2, W_SCR - W_OUT2), :] = jnp.zeros(
        (W_SCR - W_OUT2, C2), jnp.bfloat16)              # K padding rows = 0


def _conv_fused(xt, w1m, b1, w2t, b2):
    return pl.pallas_call(
        _conv_fused_kernel,
        out_shape=jax.ShapeDtypeStruct((W_SCR, C2), jnp.bfloat16),
        grid=(1,),
        in_specs=[
            pl.BlockSpec((W_SCR, H), lambda i: (0, 0)),
            pl.BlockSpec((3, C1), lambda i: (0, 0)),
            pl.BlockSpec((1, C1), lambda i: (0, 0)),
            pl.BlockSpec((6, C1, C2), lambda i: (0, 0, 0)),
            pl.BlockSpec((1, C2), lambda i: (0, 0)),
        ],
        out_specs=pl.BlockSpec((W_SCR, C2), lambda i: (0, 0)),
        scratch_shapes=[pltpu.VMEM((W_SCR, C1), jnp.bfloat16)],
        compiler_params=pltpu.CompilerParams(dimension_semantics=("arbitrary",)),
    )(xt, w1m, b1, w2t, b2)


# ---------------------------------------------------------------------------
# Kernel 2: linear_1 + ReLU + linear_2 + softmax  (single full-K block)
# ---------------------------------------------------------------------------
def _head_fused_kernel(x_ref, w1_ref, b1_ref, w2_ref, b2_ref, out_ref):
    """x:(1,10880)bf16  w1:(10880,256)bf16  b1:(1,256)f32
       w2:(256,11)f32   b2:(1,11)f32        out:(1,11)f32."""
    y3 = jnp.dot(x_ref[...], w1_ref[...], preferred_element_type=jnp.float32)
    y3 = jnp.maximum(y3 + b1_ref[...], 0.0)                         # (1, 256) f32
    logits = jnp.dot(y3, w2_ref[...],
                     preferred_element_type=jnp.float32) + b2_ref[...]
    m = jnp.max(logits, axis=-1, keepdims=True)
    e = jnp.exp(logits - m)
    # Exact division: the approx reciprocal violated the |sum-1| < 1e-4 check.
    out_ref[...] = e / jnp.sum(e, axis=-1, keepdims=True)


def _head_fused(flat, wl1p, bl1, wl2p, bl2):
    return pl.pallas_call(
        _head_fused_kernel,
        out_shape=jax.ShapeDtypeStruct((1, NUM_CLASSES), jnp.float32),
        grid=(1,),
        in_specs=[
            pl.BlockSpec((1, K_PAD), lambda i: (0, 0)),
            pl.BlockSpec((K_PAD, C1), lambda i: (0, 0)),
            pl.BlockSpec((1, C1), lambda i: (0, 0)),
            pl.BlockSpec((C1, NUM_CLASSES), lambda i: (0, 0)),
            pl.BlockSpec((1, NUM_CLASSES), lambda i: (0, 0)),
        ],
        out_specs=pl.BlockSpec((1, NUM_CLASSES), lambda i: (0, 0)),
        compiler_params=pltpu.CompilerParams(
            dimension_semantics=("arbitrary",),
            vmem_limit_bytes=32 * 1024 * 1024),
    )(flat, wl1p, bl1, wl2p, bl2)


# ---------------------------------------------------------------------------
# Parameters (deterministic synthetic init; shapes match the PyTorch module)
# ---------------------------------------------------------------------------
def init_params(key):
    ks = jax.random.split(key, 8)
    s = 0.02
    return {
        "w1": jax.random.normal(ks[0], (C1, 1, 1, 3), jnp.float32) * s,
        "b1": jax.random.normal(ks[1], (C1,), jnp.float32) * s,
        "w2": jax.random.normal(ks[2], (C2, C1, 2, 3), jnp.float32) * s,
        "b2": jax.random.normal(ks[3], (C2,), jnp.float32) * s,
        "wl1": jax.random.normal(ks[4], (C1, K_FEAT), jnp.float32) * s,
        "bl1": jax.random.normal(ks[5], (C1,), jnp.float32) * s,
        "wl2": jax.random.normal(ks[6], (NUM_CLASSES, C1), jnp.float32) * s,
        "bl2": jax.random.normal(ks[7], (NUM_CLASSES,), jnp.float32) * s,
    }


def prepare_params(p):
    """One-time weight re-layouts / bf16 casts (hoisted out of the hot path)."""
    w1m = p["w1"].reshape(C1, 3).T                                    # (3, 256) [kw, oc]
    # conv_2 taps: [kh*3+kw, ic, oc], bf16 for native MXU operands.
    w2t = jnp.transpose(p["w2"], (2, 3, 1, 0)).reshape(6, C1, C2).astype(jnp.bfloat16)
    # torch.flatten index = oc*132 + w; kernel 1 emits (w, oc) flattened w-major
    # with 4 zero pad w-rows (w = 132..135), so permute linear_1's columns to the
    # same order and append 320 zero rows -> K = 10880 (multiple of 128).
    wl1p = jnp.transpose(p["wl1"].reshape(C1, C2, W_OUT2), (2, 1, 0))  # (132,80,256)
    wl1p = wl1p.reshape(K_FEAT, C1)
    wl1p = jnp.pad(wl1p, ((0, K_PAD - K_FEAT), (0, 0))).astype(jnp.bfloat16)
    return {
        "w1m": w1m,
        "b1": p["b1"].reshape(1, C1),
        "w2t": w2t,
        "b2": p["b2"].reshape(1, C2),
        "wl1p": wl1p,                                                  # (10880, 256) bf16
        "bl1": p["bl1"].reshape(1, C1),
        "wl2p": p["wl2"].T,                                            # (256, 11)
        "bl2": p["bl2"].reshape(1, NUM_CLASSES),
    }


# ---------------------------------------------------------------------------
# Forward pass (jitted; all heavy work in the two Pallas kernels)
# ---------------------------------------------------------------------------
def my_net_forward(x, p):
    # x: (1, 1, 2, 128) NCHW float32 (module hard-codes this shape).
    x2 = x.reshape(H, W)
    xp = jnp.pad(x2, ((0, 0), (2, 2)))                   # pad_1 -> (2, 132)
    # Transposed, sublane-padded input for the in-kernel VPU conv_1 (no im2col).
    xt = jnp.pad(xp.T, ((0, W_SCR - W_PAD1), (0, 0)))    # (136, 2), rows 132..135 zero

    y2p = _conv_fused(xt, p["w1m"], p["b1"], p["w2t"], p["b2"])       # (136, 80) bf16

    # torch.flatten of (1,80,1,132) is handled by pre-permuting linear_1's weight
    # columns to the kernel-1 (w, oc) w-major order (incl. zero pad rows), so this
    # is a plain contiguous reshape of a small bf16 HBM array.
    flat = y2p.reshape(1, K_PAD)                                       # (1, 10880) bf16

    probs = _head_fused(flat, p["wl1p"], p["bl1"], p["wl2p"], p["bl2"])
    return probs[0]                                                    # (NUM_CLASSES,)

# TODO(synk): nn.Dropout train-mode RNG masking not implemented (eval-mode identity used).


if __name__ == "__main__":
    key = jax.random.PRNGKey(0)
    pkey, xkey = jax.random.split(key)
    params = prepare_params(init_params(pkey))
    x = jax.random.normal(xkey, (1, 1, H, W), jnp.float32)

    fwd = jax.jit(my_net_forward)
    out = jax.block_until_ready(fwd(x, params))

    assert out.shape == (NUM_CLASSES,)
    assert bool(jnp.all(jnp.isfinite(out)))
    assert abs(float(jnp.sum(out)) - 1.0) < 1e-4  # softmax sanity (exact division)
    print("KERNEL_OK")
</pallas_src>

<mosaic_0001>
module attributes {stable_mosaic.version = 11 : i64} {
  func.func @_conv_fused_kernel(%arg0: i32, %arg1: memref<136x2xf32, #tpu.memory_space<vmem>>, %arg2: memref<3x256xf32, #tpu.memory_space<vmem>>, %arg3: memref<1x256xf32, #tpu.memory_space<vmem>>, %arg4: memref<6x256x80xbf16, #tpu.memory_space<vmem>>, %arg5: memref<1x80xf32, #tpu.memory_space<vmem>>, %arg6: memref<136x80xbf16, #tpu.memory_space<vmem>>, %arg7: memref<136x256xbf16, #tpu.memory_space<vmem>>) attributes {dimension_semantics = [#tpu.dimension_semantics<arbitrary>], iteration_bounds = array<i64: 1>, scalar_prefetch = 0 : i64, scratch_operands = 1 : i64, tpu.core_type = #tpu.core_type<tc>, window_params = [{pipeline_mode = #tpu.pipeline_mode<synchronous>, transform_indices = @transform_0, window_bounds = array<i64: 136, 2>}, {pipeline_mode = #tpu.pipeline_mode<synchronous>, transform_indices = @transform_1, window_bounds = array<i64: 3, 256>}, {pipeline_mode = #tpu.pipeline_mode<synchronous>, transform_indices = @transform_2, window_bounds = array<i64: 1, 256>}, {pipeline_mode = #tpu.pipeline_mode<synchronous>, transform_indices = @transform_3, window_bounds = array<i64: 6, 256, 80>}, {pipeline_mode = #tpu.pipeline_mode<synchronous>, transform_indices = @transform_4, window_bounds = array<i64: 1, 80>}, {pipeline_mode = #tpu.pipeline_mode<synchronous>, transform_indices = @transform_5, window_bounds = array<i64: 136, 80>}]} {
    %c0 = arith.constant 0 : index
    %c0_0 = arith.constant 0 : index
    %0 = vector.load %arg1[%c0, %c0_0] : memref<136x2xf32, #tpu.memory_space<vmem>>, vector<136x2xf32>
    %c0_1 = arith.constant 0 : index
    %c0_2 = arith.constant 0 : index
    %1 = vector.load %arg2[%c0_1, %c0_2] : memref<3x256xf32, #tpu.memory_space<vmem>>, vector<3x256xf32>
    %c0_3 = arith.constant 0 : index
    %c0_4 = arith.constant 0 : index
    %2 = vector.load %arg3[%c0_3, %c0_4] : memref<1x256xf32, #tpu.memory_space<vmem>>, vector<1x256xf32>
    %cst = arith.constant 0.000000e+00 : bf16
    %3 = vector.broadcast %cst : bf16 to vector<8x256xbf16>
    %c0_5 = arith.constant 0 : index
    %c0_6 = arith.constant 0 : index
    %4 = vector.load %arg7[%c0_5, %c0_6] : memref<136x256xbf16, #tpu.memory_space<vmem>>, vector<8x256xbf16>
    tpu.vector_store %arg7[%c0_5, %c0_6], %3 {strides = array<i32>} : memref<136x256xbf16, #tpu.memory_space<vmem>>, vector<8x256xbf16>,
    %cst_7 = arith.constant 0.000000e+00 : bf16
    %5 = vector.broadcast %cst_7 : bf16 to vector<8x256xbf16>
    %c128 = arith.constant 128 : index
    %c0_8 = arith.constant 0 : index
    %6 = vector.load %arg7[%c128, %c0_8] : memref<136x256xbf16, #tpu.memory_space<vmem>>, vector<8x256xbf16>
    tpu.vector_store %arg7[%c128, %c0_8], %5 {strides = array<i32>} : memref<136x256xbf16, #tpu.memory_space<vmem>>, vector<8x256xbf16>,
    %cst_9 = arith.constant 0.000000e+00 : f32
    %7 = vector.broadcast %cst_9 : f32 to vector<132x80xf32>
    %8 = vector.extract_strided_slice %0 {offsets = [0, 0], sizes = [130, 1], strides = [1, 1]} : vector<136x2xf32> to vector<130x1xf32>
    %9 = vector.extract_strided_slice %1 {offsets = [0, 0], sizes = [1, 256], strides = [1, 1]} : vector<3x256xf32> to vector<1x256xf32>
    %10 = vector.broadcast %8 : vector<130x1xf32> to vector<130x256xf32>
    %11 = vector.broadcast %9 : vector<1x256xf32> to vector<130x256xf32>
    %12 = arith.mulf %10, %11 : vector<130x256xf32>
    %13 = vector.extract_strided_slice %0 {offsets = [1, 0], sizes = [130, 1], strides = [1, 1]} : vector<136x2xf32> to vector<130x1xf32>
    %14 = vector.extract_strided_slice %1 {offsets = [1, 0], sizes = [1, 256], strides = [1, 1]} : vector<3x256xf32> to vector<1x256xf32>
    %15 = vector.broadcast %13 : vector<130x1xf32> to vector<130x256xf32>
    %16 = vector.broadcast %14 : vector<1x256xf32> to vector<130x256xf32>
    %17 = arith.mulf %15, %16 : vector<130x256xf32>
    %18 = arith.addf %12, %17 : vector<130x256xf32>
    %19 = vector.extract_strided_slice %0 {offsets = [2, 0], sizes = [130, 1], strides = [1, 1]} : vector<136x2xf32> to vector<130x1xf32>
    %20 = vector.extract_strided_slice %1 {offsets = [2, 0], sizes = [1, 256], strides = [1, 1]} : vector<3x256xf32> to vector<1x256xf32>
    %21 = vector.broadcast %19 : vector<130x1xf32> to vector<130x256xf32>
    %22 = vector.broadcast %20 : vector<1x256xf32> to vector<130x256xf32>
    %23 = arith.mulf %21, %22 : vector<130x256xf32>
    %24 = arith.addf %18, %23 : vector<130x256xf32>
    %25 = vector.broadcast %2 : vector<1x256xf32> to vector<130x256xf32>
    %26 = arith.addf %24, %25 : vector<130x256xf32>
    %cst_10 = arith.constant 0.000000e+00 : f32
    %27 = vector.broadcast %cst_10 : f32 to vector<130x256xf32>
    %28 = arith.maximumf %26, %27 : vector<130x256xf32>
    %29 = arith.truncf %28 : vector<130x256xf32> to vector<130x256xbf16>
    %c2 = arith.constant 2 : index
    %c0_11 = arith.constant 0 : index
    %30 = vector.load %arg7[%c2, %c0_11] : memref<136x256xbf16, #tpu.memory_space<vmem>>, vector<130x256xbf16>
    tpu.vector_store %arg7[%c2, %c0_11], %29 {strides = array<i32>} : memref<136x256xbf16, #tpu.memory_space<vmem>>, vector<130x256xbf16>,
    %c0_12 = arith.constant 0 : index
    %c0_13 = arith.constant 0 : index
    %31 = vector.load %arg7[%c0_12, %c0_13] : memref<136x256xbf16, #tpu.memory_space<vmem>>, vector<136x256xbf16>
    %c0_14 = arith.constant 0 : index
    %c0_15 = arith.constant 0 : index
    %c0_16 = arith.constant 0 : index
    %32 = vector.load %arg4[%c0_14, %c0_15, %c0_16] : memref<6x256x80xbf16, #tpu.memory_space<vmem>>, vector<1x256x80xbf16>
    %33 = vector.shape_cast %32 : vector<1x256x80xbf16> to vector<256x80xbf16>
    %cst_17 = arith.constant dense<0.000000e+00> : vector<136x80xf32>
    %34 = tpu.matmul %31, %33, %cst_17 {dimension_numbers = #tpu.dot_dimension_numbers<[1], [0], [0], [1], [0, 0, 1, 1], [], []>} : vector<136x256xbf16>, vector<256x80xbf16>, vector<136x80xf32> -> vector<136x80xf32>
    %35 = vector.extract_strided_slice %34 {offsets = [0, 0], sizes = [132, 80], strides = [1, 1]} : vector<136x80xf32> to vector<132x80xf32>
    %36 = arith.addf %7, %35 : vector<132x80xf32>
    %c1 = arith.constant 1 : index
    %c0_18 = arith.constant 0 : index
    %c0_19 = arith.constant 0 : index
    %37 = vector.load %arg4[%c1, %c0_18, %c0_19] : memref<6x256x80xbf16, #tpu.memory_space<vmem>>, vector<1x256x80xbf16>
    %38 = vector.shape_cast %37 : vector<1x256x80xbf16> to vector<256x80xbf16>
    %cst_20 = arith.constant dense<0.000000e+00> : vector<136x80xf32>
    %39 = tpu.matmul %31, %38, %cst_20 {dimension_numbers = #tpu.dot_dimension_numbers<[1], [0], [0], [1], [0, 0, 1, 1], [], []>} : vector<136x256xbf16>, vector<256x80xbf16>, vector<136x80xf32> -> vector<136x80xf32>
    %40 = vector.extract_strided_slice %39 {offsets = [1, 0], sizes = [132, 80], strides = [1, 1]} : vector<136x80xf32> to vector<132x80xf32>
    %41 = arith.addf %36, %40 : vector<132x80xf32>
    %c2_21 = arith.constant 2 : index
    %c0_22 = arith.constant 0 : index
    %c0_23 = arith.constant 0 : index
    %42 = vector.load %arg4[%c2_21, %c0_22, %c0_23] : memref<6x256x80xbf16, #tpu.memory_space<vmem>>, vector<1x256x80xbf16>
    %43 = vector.shape_cast %42 : vector<1x256x80xbf16> to vector<256x80xbf16>
    %cst_24 = arith.constant dense<0.000000e+00> : vector<136x80xf32>
    %44 = tpu.matmul %31, %43, %cst_24 {dimension_numbers = #tpu.dot_dimension_numbers<[1], [0], [0], [1], [0, 0, 1, 1], [], []>} : vector<136x256xbf16>, vector<256x80xbf16>, vector<136x80xf32> -> vector<136x80xf32>
    %45 = vector.extract_strided_slice %44 {offsets = [2, 0], sizes = [132, 80], strides = [1, 1]} : vector<136x80xf32> to vector<132x80xf32>
    %46 = arith.addf %41, %45 : vector<132x80xf32>
    %47 = vector.extract_strided_slice %0 {offsets = [0, 1], sizes = [130, 1], strides = [1, 1]} : vector<136x2xf32> to vector<130x1xf32>
    %48 = vector.extract_strided_slice %1 {offsets = [0, 0], sizes = [1, 256], strides = [1, 1]} : vector<3x256xf32> to vector<1x256xf32>
    %49 = vector.broadcast %47 : vector<130x1xf32> to vector<130x256xf32>
    %50 = vector.broadcast %48 : vector<1x256xf32> to vector<130x256xf32>
    %51 = arith.mulf %49, %50 : vector<130x256xf32>
    %52 = vector.extract_strided_slice %0 {offsets = [1, 1], sizes = [130, 1], strides = [1, 1]} : vector<136x2xf32> to vector<130x1xf32>
    %53 = vector.extract_strided_slice %1 {offsets = [1, 0], sizes = [1, 256], strides = [1, 1]} : vector<3x256xf32> to vector<1x256xf32>
    %54 = vector.broadcast %52 : vector<130x1xf32> to vector<130x256xf32>
    %55 = vector.broadcast %53 : vector<1x256xf32> to vector<130x256xf32>
    %56 = arith.mulf %54, %55 : vector<130x256xf32>
    %57 = arith.addf %51, %56 : vector<130x256xf32>
    %58 = vector.extract_strided_slice %0 {offsets = [2, 1], sizes = [130, 1], strides = [1, 1]} : vector<136x2xf32> to vector<130x1xf32>
    %59 = vector.extract_strided_slice %1 {offsets = [2, 0], sizes = [1, 256], strides = [1, 1]} : vector<3x256xf32> to vector<1x256xf32>
    %60 = vector.broadcast %58 : vector<130x1xf32> to vector<130x256xf32>
    %61 = vector.broadcast %59 : vector<1x256xf32> to vector<130x256xf32>
    %62 = arith.mulf %60, %61 : vector<130x256xf32>
    %63 = arith.addf %57, %62 : vector<130x256xf32>
    %64 = vector.broadcast %2 : vector<1x256xf32> to vector<130x256xf32>
    %65 = arith.addf %63, %64 : vector<130x256xf32>
    %cst_25 = arith.constant 0.000000e+00 : f32
    %66 = vector.broadcast %cst_25 : f32 to vector<130x256xf32>
    %67 = arith.maximumf %65, %66 : vector<130x256xf32>
    %68 = arith.truncf %67 : vector<130x256xf32> to vector<130x256xbf16>
    %c2_26 = arith.constant 2 : index
    %c0_27 = arith.constant 0 : index
    %69 = vector.load %arg7[%c2_26, %c0_27] : memref<136x256xbf16, #tpu.memory_space<vmem>>, vector<130x256xbf16>
    tpu.vector_store %arg7[%c2_26, %c0_27], %68 {strides = array<i32>} : memref<136x256xbf16, #tpu.memory_space<vmem>>, vector<130x256xbf16>,
    %c0_28 = arith.constant 0 : index
    %c0_29 = arith.constant 0 : index
    %70 = vector.load %arg7[%c0_28, %c0_29] : memref<136x256xbf16, #tpu.memory_space<vmem>>, vector<136x256xbf16>
    %c3 = arith.constant 3 : index
    %c0_30 = arith.constant 0 : index
    %c0_31 = arith.constant 0 : index
    %71 = vector.load %arg4[%c3, %c0_30, %c0_31] : memref<6x256x80xbf16, #tpu.memory_space<vmem>>, vector<1x256x80xbf16>
    %72 = vector.shape_cast %71 : vector<1x256x80xbf16> to vector<256x80xbf16>
    %cst_32 = arith.constant dense<0.000000e+00> : vector<136x80xf32>
    %73 = tpu.matmul %70, %72, %cst_32 {dimension_numbers = #tpu.dot_dimension_numbers<[1], [0], [0], [1], [0, 0, 1, 1], [], []>} : vector<136x256xbf16>, vector<256x80xbf16>, vector<136x80xf32> -> vector<136x80xf32>
    %74 = vector.extract_strided_slice %73 {offsets = [0, 0], sizes = [132, 80], strides = [1, 1]} : vector<136x80xf32> to vector<132x80xf32>
    %75 = arith.addf %46, %74 : vector<132x80xf32>
    %c4 = arith.constant 4 : index
    %c0_33 = arith.constant 0 : index
    %c0_34 = arith.constant 0 : index
    %76 = vector.load %arg4[%c4, %c0_33, %c0_34] : memref<6x256x80xbf16, #tpu.memory_space<vmem>>, vector<1x256x80xbf16>
    %77 = vector.shape_cast %76 : vector<1x256x80xbf16> to vector<256x80xbf16>
    %cst_35 = arith.constant dense<0.000000e+00> : vector<136x80xf32>
    %78 = tpu.matmul %70, %77, %cst_35 {dimension_numbers = #tpu.dot_dimension_numbers<[1], [0], [0], [1], [0, 0, 1, 1], [], []>} : vector<136x256xbf16>, vector<256x80xbf16>, vector<136x80xf32> -> vector<136x80xf32>
    %79 = vector.extract_strided_slice %78 {offsets = [1, 0], sizes = [132, 80], strides = [1, 1]} : vector<136x80xf32> to vector<132x80xf32>
    %80 = arith.addf %75, %79 : vector<132x80xf32>
    %c5 = arith.constant 5 : index
    %c0_36 = arith.constant 0 : index
    %c0_37 = arith.constant 0 : index
    %81 = vector.load %arg4[%c5, %c0_36, %c0_37] : memref<6x256x80xbf16, #tpu.memory_space<vmem>>, vector<1x256x80xbf16>
    %82 = vector.shape_cast %81 : vector<1x256x80xbf16> to vector<256x80xbf16>
    %cst_38 = arith.constant dense<0.000000e+00> : vector<136x80xf32>
    %83 = tpu.matmul %70, %82, %cst_38 {dimension_numbers = #tpu.dot_dimension_numbers<[1], [0], [0], [1], [0, 0, 1, 1], [], []>} : vector<136x256xbf16>, vector<256x80xbf16>, vector<136x80xf32> -> vector<136x80xf32>
    %84 = vector.extract_strided_slice %83 {offsets = [2, 0], sizes = [132, 80], strides = [1, 1]} : vector<136x80xf32> to vector<132x80xf32>
    %85 = arith.addf %80, %84 : vector<132x80xf32>
    %c0_39 = arith.constant 0 : index
    %c0_40 = arith.constant 0 : index
    %86 = vector.load %arg5[%c0_39, %c0_40] : memref<1x80xf32, #tpu.memory_space<vmem>>, vector<1x80xf32>
    %87 = vector.broadcast %86 : vector<1x80xf32> to vector<132x80xf32>
    %88 = arith.addf %85, %87 : vector<132x80xf32>
    %cst_41 = arith.constant 0.000000e+00 : f32
    %89 = vector.broadcast %cst_41 : f32 to vector<132x80xf32>
    %90 = arith.maximumf %88, %89 : vector<132x80xf32>
    %91 = arith.truncf %90 : vector<132x80xf32> to vector<132x80xbf16>
    %c0_42 = arith.constant 0 : index
    %c0_43 = arith.constant 0 : index
    %92 = vector.load %arg6[%c0_42, %c0_43] : memref<136x80xbf16, #tpu.memory_space<vmem>>, vector<132x80xbf16>
    tpu.vector_store %arg6[%c0_42, %c0_43], %91 {strides = array<i32>} : memref<136x80xbf16, #tpu.memory_space<vmem>>, vector<132x80xbf16>,
    %cst_44 = arith.constant 0.000000e+00 : bf16
    %93 = vector.broadcast %cst_44 : bf16 to vector<4x80xbf16>
    %c132 = arith.constant 132 : index
    %c0_45 = arith.constant 0 : index
    %94 = vector.load %arg6[%c132, %c0_45] : memref<136x80xbf16, #tpu.memory_space<vmem>>, vector<4x80xbf16>
    tpu.vector_store %arg6[%c132, %c0_45], %93 {strides = array<i32>} : memref<136x80xbf16, #tpu.memory_space<vmem>>, vector<4x80xbf16>,
    return
  }
  func.func @transform_0(%arg0: i32) -> (i32, i32) {
    %c0_i32 = arith.constant 0 : i32
    %c0_i32_0 = arith.constant 0 : i32
    %c0_i32_1 = arith.constant 0 : i32
    return %c0_i32, %c0_i32_0 : i32, i32
  }
  func.func @transform_1(%arg0: i32) -> (i32, i32) {
    %c0_i32 = arith.constant 0 : i32
    %c0_i32_0 = arith.constant 0 : i32
    %c0_i32_1 = arith.constant 0 : i32
    return %c0_i32, %c0_i32_0 : i32, i32
  }
  func.func @transform_2(%arg0: i32) -> (i32, i32) {
    %c0_i32 = arith.constant 0 : i32
    %c0_i32_0 = arith.constant 0 : i32
    %c0_i32_1 = arith.constant 0 : i32
    return %c0_i32, %c0_i32_0 : i32, i32
  }
  func.func @transform_3(%arg0: i32) -> (i32, i32, i32) {
    %c0_i32 = arith.constant 0 : i32
    %c0_i32_0 = arith.constant 0 : i32
    %c0_i32_1 = arith.constant 0 : i32
    %c0_i32_2 = arith.constant 0 : i32
    return %c0_i32, %c0_i32_0, %c0_i32_1 : i32, i32, i32
  }
  func.func @transform_4(%arg0: i32) -> (i32, i32) {
    %c0_i32 = arith.constant 0 : i32
    %c0_i32_0 = arith.constant 0 : i32
    %c0_i32_1 = arith.constant 0 : i32
    return %c0_i32, %c0_i32_0 : i32, i32
  }
  func.func @transform_5(%arg0: i32) -> (i32, i32) {
    %c0_i32 = arith.constant 0 : i32
    %c0_i32_0 = arith.constant 0 : i32
    %c0_i32_1 = arith.constant 0 : i32
    return %c0_i32, %c0_i32_0 : i32, i32
  }
}

module attributes {stable_mosaic.version = 11 : i64} {
  func.func @_head_fused_kernel(%arg0: i32, %arg1: memref<1x10880xbf16, #tpu.memory_space<vmem>>, %arg2: memref<10880x256xbf16, #tpu.memory_space<vmem>>, %arg3: memref<1x256xf32, #tpu.memory_space<vmem>>, %arg4: memref<256x11xf32, #tpu.memory_space<vmem>>, %arg5: memref<1x11xf32, #tpu.memory_space<vmem>>, %arg6: memref<1x11xf32, #tpu.memory_space<vmem>>) attributes {dimension_semantics = [#tpu.dimension_semantics<arbitrary>], iteration_bounds = array<i64: 1>, scalar_prefetch = 0 : i64, scratch_operands = 0 : i64, tpu.core_type = #tpu.core_type<tc>, window_params = [{pipeline_mode = #tpu.pipeline_mode<synchronous>, transform_indices = @transform_0, window_bounds = array<i64: 1, 10880>}, {pipeline_mode = #tpu.pipeline_mode<synchronous>, transform_indices = @transform_1, window_bounds = array<i64: 10880, 256>}, {pipeline_mode = #tpu.pipeline_mode<synchronous>, transform_indices = @transform_2, window_bounds = array<i64: 1, 256>}, {pipeline_mode = #tpu.pipeline_mode<synchronous>, transform_indices = @transform_3, window_bounds = array<i64: 256, 11>}, {pipeline_mode = #tpu.pipeline_mode<synchronous>, transform_indices = @transform_4, window_bounds = array<i64: 1, 11>}, {pipeline_mode = #tpu.pipeline_mode<synchronous>, transform_indices = @transform_5, window_bounds = array<i64: 1, 11>}]} {
    %c0 = arith.constant 0 : index
    %c0_0 = arith.constant 0 : index
    %0 = vector.load %arg1[%c0, %c0_0] : memref<1x10880xbf16, #tpu.memory_space<vmem>>, vector<1x10880xbf16>
    %c0_1 = arith.constant 0 : index
    %c0_2 = arith.constant 0 : index
    %1 = vector.load %arg2[%c0_1, %c0_2] : memref<10880x256xbf16, #tpu.memory_space<vmem>>, vector<10880x256xbf16>
    %cst = arith.constant dense<0.000000e+00> : vector<1x256xf32>
    %2 = tpu.matmul %0, %1, %cst {dimension_numbers = #tpu.dot_dimension_numbers<[1], [0], [0], [1], [0, 0, 1, 1], [], []>} : vector<1x10880xbf16>, vector<10880x256xbf16>, vector<1x256xf32> -> vector<1x256xf32>
    %c0_3 = arith.constant 0 : index
    %c0_4 = arith.constant 0 : index
    %3 = vector.load %arg3[%c0_3, %c0_4] : memref<1x256xf32, #tpu.memory_space<vmem>>, vector<1x256xf32>
    %4 = arith.addf %2, %3 : vector<1x256xf32>
    %cst_5 = arith.constant 0.000000e+00 : f32
    %5 = vector.broadcast %cst_5 : f32 to vector<1x256xf32>
    %6 = arith.maximumf %4, %5 : vector<1x256xf32>
    %c0_6 = arith.constant 0 : index
    %c0_7 = arith.constant 0 : index
    %7 = vector.load %arg4[%c0_6, %c0_7] : memref<256x11xf32, #tpu.memory_space<vmem>>, vector<256x11xf32>
    %cst_8 = arith.constant dense<0.000000e+00> : vector<1x11xf32>
    %8 = tpu.matmul %6, %7, %cst_8 {dimension_numbers = #tpu.dot_dimension_numbers<[1], [0], [0], [1], [0, 0, 1, 1], [], []>} : vector<1x256xf32>, vector<256x11xf32>, vector<1x11xf32> -> vector<1x11xf32>
    %c0_9 = arith.constant 0 : index
    %c0_10 = arith.constant 0 : index
    %9 = vector.load %arg5[%c0_9, %c0_10] : memref<1x11xf32, #tpu.memory_space<vmem>>, vector<1x11xf32>
    %10 = arith.addf %8, %9 : vector<1x11xf32>
    %cst_11 = arith.constant dense<0xFF800000> : vector<1xf32>
    %11 = vector.multi_reduction <maximumf>, %10, %cst_11 [1] : vector<1x11xf32> to vector<1xf32>
    %12 = vector.shape_cast %11 : vector<1xf32> to vector<1x1xf32>
    %13 = vector.broadcast %12 : vector<1x1xf32> to vector<1x11xf32>
    %14 = arith.subf %10, %13 : vector<1x11xf32>
    %15 = math.exp %14 : vector<1x11xf32>
    %cst_12 = arith.constant dense<0.000000e+00> : vector<1xf32>
    %16 = vector.multi_reduction <add>, %15, %cst_12 [1] : vector<1x11xf32> to vector<1xf32>
    %17 = vector.shape_cast %16 : vector<1xf32> to vector<1x1xf32>
    %18 = vector.broadcast %17 : vector<1x1xf32> to vector<1x11xf32>
    %19 = arith.divf %15, %18 : vector<1x11xf32>
    %c0_13 = arith.constant 0 : index
    %c0_14 = arith.constant 0 : index
    %20 = vector.load %arg6[%c0_13, %c0_14] : memref<1x11xf32, #tpu.memory_space<vmem>>, vector<1x11xf32>
    tpu.vector_store %arg6[%c0_13, %c0_14], %19 {strides = array<i32>} : memref<1x11xf32, #tpu.memory_space<vmem>>, vector<1x11xf32>,
    return
  }
  func.func @transform_0(%arg0: i32) -> (i32, i32) {
    %c0_i32 = arith.constant 0 : i32
    %c0_i32_0 = arith.constant 0 : i32
    %c0_i32_1 = arith.constant 0 : i32
    return %c0_i32, %c0_i32_0 : i32, i32
  }
  func.func @transform_1(%arg0: i32) -> (i32, i32) {
    %c0_i32 = arith.constant 0 : i32
    %c0_i32_0 = arith.constant 0 : i32
    %c0_i32_1 = arith.constant 0 : i32
    return %c0_i32, %c0_i32_0 : i32, i32
  }
  func.func @transform_2(%arg0: i32) -> (i32, i32) {
    %c0_i32 = arith.constant 0 : i32
    %c0_i32_0 = arith.constant 0 : i32
    %c0_i32_1 = arith.constant 0 : i32
    return %c0_i32, %c0_i32_0 : i32, i32
  }
  func.func @transform_3(%arg0: i32) -> (i32, i32) {
    %c0_i32 = arith.constant 0 : i32
    %c0_i32_0 = arith.constant 0 : i32
    %c0_i32_1 = arith.constant 0 : i32
    return %c0_i32, %c0_i32_0 : i32, i32
  }
  func.func @transform_4(%arg0: i32) -> (i32, i32) {
    %c0_i32 = arith.constant 0 : i32
    %c0_i32_0 = arith.constant 0 : i32
    %c0_i32_1 = arith.constant 0 : i32
    return %c0_i32, %c0_i32_0 : i32, i32
  }
  func.func @transform_5(%arg0: i32) -> (i32, i32) {
    %c0_i32 = arith.constant 0 : i32
    %c0_i32_0 = arith.constant 0 : i32
    %c0_i32_1 = arith.constant 0 : i32
    return %c0_i32, %c0_i32_0 : i32, i32
  }
}

</mosaic_0001>

<bundles_post_ra>
// kernel: my_net_forward.2
= control target key start
LH: loop header
LB: loop body
LE: loop exit
PB: predicated region body
PF: predicated region fallthrough
CT: control target
= control target key end

     0   :  { %10 = vsyncpa [#allocation4], 0  ;;  %s6665_s0 = inlined_call_operand.vmem [shape: f32[136,2], index: 0, kind: input, shape index: {}]   ;;  %s6666_s1 = inlined_call_operand.hbm [shape: f32[3,256], index: 1, kind: input, shape index: {}]   ;;  %s6667_s2 = inlined_call_operand.hbm [shape: f32[1,256], index: 2, kind: input, shape index: {}]   ;;  %s6668_s3 = inlined_call_operand.vmem [shape: bf16[6,256,80], index: 3, kind: input, shape index: {}]   ;;  %s6669_s4 = inlined_call_operand.hbm [shape: f32[1,80], index: 4, kind: input, shape index: {}]   ;;  %s6670_s5 = inlined_call_operand.vmem [shape: bf16[136,80], index: 5, kind: output, shape index: {}]  }
   0x1   :  { %11 = vsyncpa [#allocation6], 0  ;;  %s4764_s18 = smov [#allocation5]   ;;  %s4765_s20 = smov [#allocation3]  }
   0x2   :  { %s30_s19 = sshll.u32 %s4764_s18, 4  ;;  %s20_s21 = sshll.u32 %s4765_s20, 4  ;;  %s31_s19 = int_to_ptr.vmem [resolvable:$true] %s30_s19  ;;  %s21_s21 = int_to_ptr.vmem [resolvable:$true] %s20_s21 }
   0x3   :  { %s4694_s24 = scalar_lea.hbm %s6667_s2, 32 }
   0x4   :  { %p4695_p0 = scmp.ne.s32.totalorder %s6667_s2, %s4694_s24  ;;  %p4698_p1 = scmp.lt.u32.totalorder %s4694_s24, %s6667_s2 }
   0x6   :  { %p4700_p2 = pnand %p4698_p1, %p4695_p0 }
   0x8   :  { %4703 = shalt.err (!%p4700_p2)
}
   0x9   :  { %s4704_s29 = scalar_lea.vmem %s31_s19, 32  ;;  %p4709_p4 = scmp.lt.s32.totalorder %s31_s19, %s31_s19 }
   0xa   :  { %p4705_p3 = scmp.ne.s32.totalorder %s31_s19, %s4704_s29  ;;  %p4710_p5 = scmp.lt.s32.totalorder %s4704_s29, %s4704_s29 }
   0xc   :  { %p4711_p6 = por %p4710_p5, %p4709_p4 }
   0xe   :  { %p4712_p7 = pnand %p4711_p6, %p4705_p3 }
  0x10   :  { %4715 = shalt.err (!%p4712_p7)
}
  0x11   :  { %33 = dma.hbm_to_vmem [thread:$0]  %s6667_s2, 32, %s31_s19, [#allocation6]  }
  0x12   :  { %s4716_s9 = scalar_lea.hbm %s6666_s1, 128 }
  0x13   :  { %p4717_p8 = scmp.ne.s32.totalorder %s6666_s1, %s4716_s9  ;;  %p4720_p9 = scmp.lt.u32.totalorder %s4716_s9, %s6666_s1 }
  0x15   :  { %p4722_p10 = pnand %p4720_p9, %p4717_p8 }
  0x17   :  { %4725 = shalt.err (!%p4722_p10)
}
  0x18   :  { %s4726_s14 = scalar_lea.vmem %s21_s21, 128  ;;  %p4731_p12 = scmp.lt.s32.totalorder %s21_s21, %s21_s21 }
  0x19   :  { %p4727_p11 = scmp.ne.s32.totalorder %s21_s21, %s4726_s14  ;;  %p4732_p13 = scmp.lt.s32.totalorder %s4726_s14, %s4726_s14 }
  0x1b   :  { %p4733_p0 = por %p4732_p13, %p4731_p12 }
  0x1d   :  { %p4734_p1 = pnand %p4733_p0, %p4727_p11 }
  0x1f   :  { %4737 = shalt.err (!%p4734_p1)
}
  0x20   :  { %23 = dma.hbm_to_vmem [thread:$0]  %s6666_s1, 128, %s21_s21, [#allocation4]  }
  0x21   :  { %s4766_s16 = smov [#allocation7]   ;;  %s4738_s20 = scalar_lea.hbm %s6669_s4, 16 }
  0x22   :  { %s42_s17 = sshll.u32 %s4766_s16, 4  ;;  %p4739_p2 = scmp.ne.s32.totalorder %s6669_s4, %s4738_s20  ;;  %s43_s17 = int_to_ptr.vmem [resolvable:$true] %s42_s17 }
  0x23   :  { %p4742_p3 = scmp.lt.u32.totalorder %s4738_s20, %s6669_s4 }
  0x25   :  { %p4744_p4 = pnand %p4742_p3, %p4739_p2 }
  0x27   :  { %4747 = shalt.err (!%p4744_p4)
}
  0x28   :  { %s4748_s26 = scalar_lea.vmem %s43_s17, 16  ;;  %s4752_s1 = scalar_lea.vmem %s43_s17, 32 }
  0x29   :  { %p4749_p5 = scmp.ne.s32.totalorder %s43_s17, %s4748_s26  ;;  %p4753_p6 = scmp.lt.s32.totalorder %s43_s17, %s43_s17 }
  0x2a   :  { %p4754_p7 = scmp.lt.s32.totalorder %s4752_s1, %s4748_s26 }
  0x2c   :  { %p4755_p8 = por %p4754_p7, %p4753_p6 }
  0x2e   :  { %p4756_p9 = pnand %p4755_p8, %p4749_p5 }
  0x30   :  { %4759 = shalt.err (!%p4756_p9)
}
  0x31   :  { %45 = dma.hbm_to_vmem [thread:$0]  %s6669_s4, 16, %s43_s17, [#allocation6]  }
  0x32   :  { %4760 = dma.done.wait [#allocation4], 128  }
  0x33   :  { %4761 = vsyncadd [#allocation4], 4294967168 }
  0x34   :  { %4762 = dma.done.wait [#allocation6], 48  }
  0x35   :  { %4763 = vsyncadd [#allocation6], 4294967248  ;;  %vm3757_vm0 = vcmask 650242   ;;  %v4767_v0 = vmov 0   ;;  %v58_v1 = vld [vmem:[%s6665_s0 + $0x10] sm:$0xff]  ;;  %v56_v2 = vld [vmem:[%s6665_s0] sm:$0xff]  ;;  %v163_v53 = vlaneseq }
  0x36   :  { %4586 = vset.pattern.permute.xlu1 %v4767_v0  ;;  %75 = vst [vmem:[#allocation2] sm:$0xff] %v4767_v0  ;;  %76 = vst [vmem:[#allocation2 + $0x80] sm:$0xff] %v4767_v0  ;;  %4585 = vset.pattern.permute.xlu0 %v4767_v0  ;;  %v4847_v3 = vld [vmem:[%s6665_s0 + $0x18] sm:$0xff]  ;;  %v57_v4 = vld [vmem:[%s6665_s0 + $0x8] sm:$0xff]  ;;  %v4768_v29 = vmov 1   ;;  %vm301_vm1 = vcmask 1046528  }
  0x37   :  { %3758 = vst.msk [vmem:[%s6670_s5 + $0x40] sm:$0xc] %vm3757_vm0, %v4767_v0  ;;  %89 = vperm.xlu1 %4586, %v58_v1   ;;  %79 = vperm.xlu0 %4585, %v56_v2   ;;  %v4856_v5 = vld [vmem:[%s6665_s0 + $0x28] sm:$0xff]  ;;  %v60_v6 = vld [vmem:[%s6665_s0 + $0x20] sm:$0xff]  ;;  %v63_v9 = vld [vmem:[%s6665_s0 + $0x38] sm:$0xff]  ;;  %v164_v54 = vshrl.u32 %v163_v53, 7 }
  0x38   :  { %v4589_v7 = vld [vmem:[%s6668_s3 + $0x40] sm:$0xff]   ;;  %v62_v11 = vld [vmem:[%s6665_s0 + $0x30] sm:$0xff]  ;;  %v4593_v13 = vld [vmem:[%s6668_s3 + $0x48] sm:$0xff]   ;;  %vm522_vm2 = vcmask 1045504   ;;  %vm823_vm3 = vcmask 1040384   ;;  %vm824_vm4 = vcmask 1044484  }
  0x39   :  { %v4590_v8 = vld [vmem:[%s6668_s3] sm:$0xff]   ;;  %4160 = vmatprep.subr.bf16.mxu0 %v4589_v7  ;;  %v65_v14 = vld [vmem:[%s6665_s0 + $0x48] sm:$0xff]  ;;  %v67_v18 = vld [vmem:[%s6665_s0 + $0x58] sm:$0xff]  ;;  %v165_v55 = vsub.s32 0, %v164_v54  ;;  %v169_v56 = vsub.s32 4, %v164_v54  ;;  %v217_v57 = vsub.s32 1, %v164_v54 }
  0x3a   :  { %v4591_v10 = vld [vmem:[%s6668_s3 + $0xc0] sm:$0xff]   ;;  %4161 = vmatpush3.bf16.msra.mxu0 %v4590_v8  ;;  %v4594_v16 = vld [vmem:[%s6668_s3 + $0x8] sm:$0xff]   ;;  %v66_v19 = vld [vmem:[%s6665_s0 + $0x50] sm:$0xff]  ;;  %v221_v58 = vsub.s32 5, %v164_v54  ;;  %v438_v60 = vsub.s32 2, %v164_v54  ;;  %v442_v61 = vsub.s32 6, %v164_v54 }
  0x3b   :  { %94 = vperm.xlu1 %4586, %v4847_v3   ;;  %84 = vperm.xlu0 %4585, %v57_v4   ;;  %v4592_v12 = vld [vmem:[%s6668_s3 + $0x80] sm:$0xff]   ;;  %v4595_v17 = vld [vmem:[%s6668_s3 + $0xc8] sm:$0xff]   ;;  %v71_v23 = vld [vmem:[%s6665_s0 + $0x78] sm:$0xff]  ;;  %vm3738_vm6 = vcmask 650240   ;;  %vm3755_vm7 = vcmask 648192  }
  0x3c   :  { %4230 = vmatprep.subr.bf16.mxu1 %v4591_v10  ;;  %v64_v15 = vld [vmem:[%s6665_s0 + $0x40] sm:$0xff]  ;;  %4162 = vmatprep.subr.bf16.mxu0 %v4593_v13  ;;  %v69_v20 = vld [vmem:[%s6665_s0 + $0x68] sm:$0xff]  ;;  %v70_v24 = vld [vmem:[%s6665_s0 + $0x70] sm:$0xff] }
  0x3d   :  { %4231 = vmatpush3.bf16.msra.mxu1 %v4592_v12  ;;  %v68_v21 = vld [vmem:[%s6665_s0 + $0x60] sm:$0xff]  ;;  %v4596_v22 = vld [vmem:[%s6668_s3 + $0x88] sm:$0xff]   ;;  %v4597_v25 = vld [vmem:[%s6668_s3 + $0x50] sm:$0xff]  }
  0x3e   :  { %4163 = vmatpush3.bf16.msra.mxu0 %v4594_v16  ;;  %4232 = vmatprep.subr.bf16.mxu1 %v4595_v17  ;;  %v4599_v26 = vld [vmem:[%s6668_s3 + $0xd0] sm:$0xff]   ;;  %v72_v28 = vld [vmem:[%s6665_s0 + $0x80] sm:$0xff]  ;;  %v4601_v31 = vld [vmem:[%s6668_s3 + $0x58] sm:$0xff]  }
  0x3f   :  { %104 = vperm.xlu1 %4586, %v4856_v5   ;;  %99 = vperm.xlu0 %4585, %v60_v6   ;;  %v4598_v27 = vld [vmem:[%s6668_s3 + $0x10] sm:$0xff]   ;;  %v4603_v32 = vld [vmem:[%s6668_s3 + $0xd8] sm:$0xff]   ;;  %v4605_v35 = vld [vmem:[%s6668_s3 + $0x60] sm:$0xff]  }
  0x40   :  { %4164 = vmatprep.subr.bf16.mxu0 %v4597_v25  ;;  %v4600_v30 = vld [vmem:[%s6668_s3 + $0x90] sm:$0xff]   ;;  %v4602_v33 = vld [vmem:[%s6668_s3 + $0x18] sm:$0xff]   ;;  %v4607_v36 = vld [vmem:[%s6668_s3 + $0xe0] sm:$0xff]  }
  0x41   :  { %4233 = vmatpush3.bf16.msra.mxu1 %v4596_v22  ;;  %v4604_v34 = vld [vmem:[%s6668_s3 + $0x98] sm:$0xff]   ;;  %v4606_v37 = vld [vmem:[%s6668_s3 + $0x20] sm:$0xff]   ;;  %v4609_v39 = vld [vmem:[%s6668_s3 + $0x68] sm:$0xff]  }
  0x42   :  { %4234 = vmatprep.subr.bf16.mxu1 %v4599_v26  ;;  %4165 = vmatpush3.bf16.msra.mxu0 %v4598_v27  ;;  %v4608_v38 = vld [vmem:[%s6668_s3 + $0xa0] sm:$0xff]   ;;  %v4611_v40 = vld [vmem:[%s6668_s3 + $0xe8] sm:$0xff]   ;;  %v4613_v43 = vld [vmem:[%s6668_s3 + $0x70] sm:$0xff]  }
  0x43   :  { %114 = vperm.xlu1 %4586, %v63_v9   ;;  %109 = vperm.xlu0 %4585, %v62_v11   ;;  %v4610_v41 = vld [vmem:[%s6668_s3 + $0x28] sm:$0xff]   ;;  %v4615_v44 = vld [vmem:[%s6668_s3 + $0xf0] sm:$0xff]   ;;  %v4617_v47 = vld [vmem:[%s6668_s3 + $0x78] sm:$0xff]  }
  0x44   :  { %4166 = vmatprep.subr.bf16.mxu0 %v4601_v31  ;;  %v4612_v42 = vld [vmem:[%s6668_s3 + $0xa8] sm:$0xff]   ;;  %v4614_v45 = vld [vmem:[%s6668_s3 + $0x30] sm:$0xff]   ;;  %v4619_v48 = vld [vmem:[%s6668_s3 + $0xf8] sm:$0xff]  }
  0x45   :  { %4235 = vmatpush3.bf16.msra.mxu1 %v4600_v30  ;;  %v4616_v46 = vld [vmem:[%s6668_s3 + $0xb0] sm:$0xff]   ;;  %v4618_v49 = vld [vmem:[%s6668_s3 + $0x38] sm:$0xff]   ;;  %v4621_v51 = vld [vmem:[%s6668_s3 + $0x140] sm:$0xff]  }
  0x46   :  { %4236 = vmatprep.subr.bf16.mxu1 %v4603_v32  ;;  %4167 = vmatpush3.bf16.msra.mxu0 %v4602_v33  ;;  %v4620_v50 = vld [vmem:[%s6668_s3 + $0xb8] sm:$0xff]   ;;  %v4623_v52 = vld [vmem:[%s6668_s3 + $0x1c0] sm:$0xff]   ;;  %v73_v59 = vld [vmem:[#allocation3] sm:$0x77] }
  0x47   :  { %124 = vperm.xlu1 %4586, %v65_v14   ;;  %119 = vperm.xlu0 %4585, %v64_v15   ;;  %v166_v62 = vrot.slane %v73_v59, %v165_v55  ;;  %v170_v63 = vrot.slane %v73_v59, %v169_v56  ;;  %v218_v0 = vrot.slane %v73_v59, %v217_v57  ;;  %vm5119_vm5 = vmor %vm823_vm3, %vm824_vm4 }
  0x48   :  { %4168 = vmatprep.subr.bf16.mxu0 %v4605_v35 }
  0x49   :  { %4237 = vmatpush3.bf16.msra.mxu1 %v4604_v34  ;;  %v5003_v7 = vrot.slane %v218_v0, %v217_v57 }
  0x4a   :  { %4238 = vmatprep.subr.bf16.mxu1 %v4607_v36  ;;  %4169 = vmatpush3.bf16.msra.mxu0 %v4606_v37 }
  0x4b   :  { %134 = vperm.xlu1 %4586, %v67_v18   ;;  %129 = vperm.xlu0 %4585, %v66_v19  }
  0x4c   :  { %4170 = vmatprep.subr.bf16.mxu0 %v4609_v39 }
  0x4d   :  { %4239 = vmatpush3.bf16.msra.mxu1 %v4608_v38 }
  0x4e   :  { %4240 = vmatprep.subr.bf16.mxu1 %v4611_v40  ;;  %4171 = vmatpush3.bf16.msra.mxu0 %v4610_v41 }
  0x4f   :  { %144 = vperm.xlu1 %4586, %v69_v20   ;;  %139 = vperm.xlu0 %4585, %v68_v21  }
  0x50   :  { %4172 = vmatprep.subr.bf16.mxu0 %v4613_v43 }
  0x51   :  { %4241 = vmatpush3.bf16.msra.mxu1 %v4612_v42 }
  0x52   :  { %4242 = vmatprep.subr.bf16.mxu1 %v4615_v44  ;;  %4173 = vmatpush3.bf16.msra.mxu0 %v4614_v45 }
  0x53   :  { %154 = vperm.xlu1 %4586, %v71_v23   ;;  %149 = vperm.xlu0 %4585, %v70_v24  }
  0x54   :  { %4174 = vmatprep.subr.bf16.mxu0 %v4617_v47 }
  0x55   :  { %4243 = vmatpush3.bf16.msra.mxu1 %v4616_v46 }
  0x56   :  { %4244 = vmatprep.subr.bf16.mxu1 %v4619_v48  ;;  %4175 = vmatpush3.bf16.msra.mxu0 %v4618_v49 }
  0x57   :  { %159 = vperm.xlu0 %4585, %v72_v28   ;;  %4587 = vset.pattern.permute.xlu1 %v4768_v29 }
  0x58   :  { %1897 = vperm.xlu1 %4587, %v56_v2   ;;  %4300 = vmatprep.subr.bf16.mxu0 %v4621_v51  ;;  %v439_v2 = vrot.slane %v73_v59, %v438_v60 }
  0x59   :  { %4245 = vmatpush3.bf16.msra.mxu1 %v4620_v50 }
  0x5a   :  { %4370 = vmatprep.subr.bf16.mxu1 %v4623_v52 }
  0x5b   :  { %4588 = vset.pattern.permute.xlu0 %v4768_v29 }
  0x5c   :  { %1905 = vperm.xlu1 %4587, %v58_v1   ;;  %1901 = vperm.xlu0 %4588, %v57_v4   ;;  %v222_v1 = vrot.slane %v73_v59, %v221_v58  ;;  %v74_v4 = vld [vmem:[#allocation5] sm:$0x3] }
  0x5d   :  { %v5015_v16 = vrot.slane %v74_v4, %v217_v57 }
  0x5e   :  { %v5005_v8 = vrot.slane %v222_v1, %v217_v57 }
  0x60   :  { %1909 = vperm.xlu1 %4587, %v4847_v3   ;;  %1913 = vperm.xlu0 %4588, %v60_v6   ;;  %v443_v3 = vrot.slane %v73_v59, %v442_v61  ;;  %v5001_v6 = vrot.slane %v170_v63, %v165_v55 }
  0x62   :  { %v5009_v10 = vrot.slane %v443_v3, %v438_v60 }
  0x64   :  { %1917 = vperm.xlu1 %4587, %v4856_v5   ;;  %1921 = vperm.xlu0 %4588, %v62_v11   ;;  %v4999_v5 = vrot.slane %v166_v62, %v165_v55 }
  0x68   :  { %1925 = vperm.xlu1 %4587, %v63_v9   ;;  %1929 = vperm.xlu0 %4588, %v64_v15   ;;  %v5007_v9 = vrot.slane %v439_v2, %v438_v60  ;;  %v5013_v15 = vrot.slane %v74_v4, %v165_v55 }
  0x6c   :  { %1933 = vperm.xlu1 %4587, %v65_v14   ;;  %1937 = vperm.xlu0 %4588, %v66_v19  }
  0x70   :  { %1941 = vperm.xlu1 %4587, %v67_v18   ;;  %1945 = vperm.xlu0 %4588, %v68_v21  }
  0x74   :  { %1949 = vperm.xlu1 %4587, %v69_v20   ;;  %1953 = vperm.xlu0 %4588, %v70_v24  }
  0x78   :  { %1957 = vperm.xlu1 %4587, %v71_v23   ;;  %1961 = vperm.xlu0 %4588, %v72_v28  }
  0xb6   :  { %v90_v11 = vpop.permute.xlu1 %89  ;;  %v80_v12 = vpop.permute.xlu0 %79 }
  0xb7   :  { %v237_v13 = vmul.f32 %v5003_v7, %v90_v11  ;;  %v238_v14 = vmul.f32 %v5005_v8, %v90_v11  ;;  %v185_v17 = vmul.f32 %v4999_v5, %v90_v11  ;;  %v186_v18 = vmul.f32 %v5001_v6, %v90_v11 }
  0xb8   :  { %v5020_v19 = vmul.f32 %v5007_v9, %v90_v11  ;;  %v5023_v20 = vmul.f32 %v5009_v10, %v90_v11  ;;  %v181_v21 = vmul.f32 %v4999_v5, %v80_v12  ;;  %v182_v22 = vmul.f32 %v5001_v6, %v80_v12 }
  0xb9   :  { %v233_v23 = vmul.f32 %v5003_v7, %v80_v12  ;;  %v234_v24 = vmul.f32 %v5005_v8, %v80_v12  ;;  %v308_v25 = vrot.slane %v237_v13, 1  ;;  %v310_v26 = vrot.slane %v238_v14, 1 }
  0xba   :  { %v454_v27 = vmul.f32 %v5007_v9, %v80_v12  ;;  %v455_v28 = vmul.f32 %v5009_v10, %v80_v12  ;;  %v85_v29 = vpop.permute.xlu0 %84  ;;  %v529_v30 = vrot.slane %v5020_v19, 2  ;;  %v531_v31 = vrot.slane %v5023_v20, 2  ;;  %v95_v34 = vpop.permute.xlu1 %94 }
  0xbb   :  { %v302_v32 = vrot.slane %v233_v23, 1  ;;  %v305_v33 = vrot.slane %v234_v24, 1  ;;  %v5034_v37 = vmul.f32 %v5003_v7, %v95_v34  ;;  %v5037_v38 = vmul.f32 %v5005_v8, %v95_v34 }
  0xbc   :  { %v523_v35 = vrot.slane %v454_v27, 2  ;;  %v526_v36 = vrot.slane %v455_v28, 2  ;;  %v5040_v39 = vmul.f32 %v5007_v9, %v95_v34  ;;  %v5043_v40 = vmul.f32 %v5009_v10, %v95_v34 }
  0xbd   :  { %v183_v41 = vmul.f32 %v4999_v5, %v85_v29  ;;  %v184_v42 = vmul.f32 %v5001_v6, %v85_v29  ;;  %v312_v43 = vrot.slane %v5034_v37, 1  ;;  %v314_v44 = vrot.slane %v5037_v38, 1 }
  0xbe   :  { %v235_v45 = vmul.f32 %v5003_v7, %v85_v29  ;;  %v236_v46 = vmul.f32 %v5005_v8, %v85_v29  ;;  %v533_v47 = vrot.slane %v5040_v39, 2  ;;  %v535_v48 = vrot.slane %v5043_v40, 2 }
  0xbf   :  { %v456_v49 = vmul.f32 %v5007_v9, %v85_v29  ;;  %v457_v50 = vmul.f32 %v5009_v10, %v85_v29  ;;  %v313_v51 = vsel %vm301_vm1, %v308_v25, %v312_v43  ;;  %v315_v52 = vsel %vm301_vm1, %v310_v26, %v314_v44 }
  0xc0   :  { %v303_v53 = vrot.slane %v235_v45, 1  ;;  %v306_v54 = vrot.slane %v236_v46, 1  ;;  %v406_v55 = vadd.f32 %v313_v51, %v185_v17  ;;  %v407_v56 = vadd.f32 %v315_v52, %v186_v18  ;;  %v105_v18 = vpop.permute.xlu1 %104  ;;  %v100_v46 = vpop.permute.xlu0 %99 }
  0xc1   :  { %v534_v57 = vsel %vm522_vm2, %v529_v30, %v533_v47  ;;  %v536_v58 = vsel %vm522_vm2, %v531_v31, %v535_v48  ;;  %v524_v11 = vrot.slane %v456_v49, 2  ;;  %v527_v12 = vrot.slane %v457_v50, 2 }
  0xc2   :  { %v304_v59 = vsel %vm301_vm1, %v302_v32, %v303_v53  ;;  %v307_v60 = vsel %vm301_vm1, %v305_v33, %v306_v54  ;;  %v309_v61 = vsel %vm301_vm1, %v303_v53, %v308_v25  ;;  %v311_v62 = vsel %vm301_vm1, %v306_v54, %v310_v26 }
  0xc3   :  { %v627_v63 = vadd.f32 %v534_v57, %v406_v55  ;;  %v628_v0 = vadd.f32 %v536_v58, %v407_v56  ;;  %v402_v1 = vadd.f32 %v304_v59, %v181_v21  ;;  %v403_v2 = vadd.f32 %v307_v60, %v182_v22 }
  0xc4   :  { %v404_v3 = vadd.f32 %v309_v61, %v183_v41  ;;  %v405_v4 = vadd.f32 %v311_v62, %v184_v42  ;;  %v5072_v13 = vmul.f32 %v4999_v5, %v95_v34  ;;  %v525_v19 = vsel %vm522_vm2, %v523_v35, %v524_v11 }
  0xc5   :  { %v672_v14 = vadd.f32 %v5013_v15, %v627_v63  ;;  %v673_v17 = vadd.f32 %v5015_v16, %v628_v0  ;;  %v528_v20 = vsel %vm522_vm2, %v526_v36, %v527_v12  ;;  %v530_v21 = vsel %vm522_vm2, %v524_v11, %v529_v30  ;;  %v115_v0 = vpop.permute.xlu1 %114  ;;  %v4658_v11 = vld [vmem:[%s6668_s3 + $0x200] sm:$0xff]  }
  0xc6   :  { %v532_v22 = vsel %vm522_vm2, %v527_v12, %v531_v31  ;;  %v623_v25 = vadd.f32 %v525_v19, %v402_v1  ;;  %v624_v26 = vadd.f32 %v528_v20, %v403_v2  ;;  %v625_v27 = vadd.f32 %v530_v21, %v404_v3 }
  0xc7   :  { %v706_v23 = vmax.f32 %v672_v14, 0.0  ;;  %v707_v24 = vmax.f32 %v673_v17, 0.0  ;;  %v626_v28 = vadd.f32 %v532_v22, %v405_v4  ;;  %v5081_v29 = vmul.f32 %v5003_v7, %v105_v18 }
  0xc8   :  { %v5084_v32 = vmul.f32 %v5005_v8, %v105_v18  ;;  %v668_v35 = vadd.f32 %v5013_v15, %v623_v25  ;;  %v669_v30 = vadd.f32 %v5015_v16, %v624_v26  ;;  %v5091_v31 = vmul.f32 %v5007_v9, %v105_v18 }
  0xc9   :  { %v5086_v33 = vpack.c.bf16 %v707_v24, %v706_v23  ;;  %v188_v36 = vmul.f32 %v5001_v6, %v95_v34  ;;  %v670_v41 = vadd.f32 %v5013_v15, %v625_v27  ;;  %v671_v42 = vadd.f32 %v5015_v16, %v626_v28 }
  0xca   :  { %v5097_v45 = vmul.f32 %v4999_v5, %v105_v18  ;;  %v702_v50 = vmax.f32 %v668_v35, 0.0  ;;  %v703_v51 = vmax.f32 %v669_v30, 0.0  ;;  %v5101_v52 = vmul.f32 %v5009_v10, %v105_v18 }
  0xcb   :  { %v831_v49 = vrot.slane %v5086_v33, 7  ;;  %v704_v53 = vmax.f32 %v670_v41, 0.0  ;;  %v705_v54 = vmax.f32 %v671_v42, 0.0  ;;  %v5104_v55 = vmul.f32 %v5001_v6, %v105_v18 }
  0xcc   :  { %v320_v34 = vrot.slane %v5081_v29, 1  ;;  %v4109_v56 = vpack.c.bf16 %v703_v51, %v702_v50  ;;  %v322_v57 = vrot.slane %v5084_v32, 1  ;;  %v541_v58 = vrot.slane %v5091_v31, 2  ;;  %v110_v50 = vpop.permute.xlu0 %109 }
  0xcd   :  { %v189_v59 = vmul.f32 %v4999_v5, %v100_v46  ;;  %v4110_v60 = vpack.c.bf16 %v705_v54, %v704_v53  ;;  %v241_v61 = vmul.f32 %v5003_v7, %v100_v46  ;;  %v242_v62 = vmul.f32 %v5005_v8, %v100_v46 }
  0xce   :  { %v462_v63 = vmul.f32 %v5007_v9, %v100_v46  ;;  %v5113_v1 = vrot.slane %v831_v49, 4  ;;  %v826_v2 = vrot.slane %v4109_v56, 7  ;;  %v543_v3 = vrot.slane %v5101_v52, 2 }
  0xcf   :  { %v463_v4 = vmul.f32 %v5009_v10, %v100_v46  ;;  %v828_v12 = vrot.slane %v4110_v60, 7  ;;  %v316_v14 = vrot.slane %v241_v61, 1  ;;  %v318_v17 = vrot.slane %v242_v62, 1 }
  0xd0   :  { %v537_v18 = vrot.slane %v462_v63, 2  ;;  %v827_v19 = vrot.slane %v826_v2, 4  ;;  %892 = vst [vmem:[#allocation2] sm:$0xee] %v826_v2  ;;  %v190_v20 = vmul.f32 %v5001_v6, %v100_v46  ;;  %v5125_v22 = vmul.f32 %v5003_v7, %v115_v0 }
  0xd1   :  { %v539_v21 = vrot.slane %v463_v4, 2  ;;  %v830_v23 = vrot.slane %v828_v12, 4  ;;  %v317_v24 = vsel %vm301_vm1, %v312_v43, %v316_v14  ;;  %v319_v25 = vsel %vm301_vm1, %v314_v44, %v318_v17 }
  0xd2   :  { %v321_v26 = vsel %vm301_vm1, %v316_v14, %v320_v34  ;;  %v5138_v27 = vsel %vm5119_vm5, %v827_v19, %v828_v12  ;;  %v323_v28 = vsel %vm301_vm1, %v318_v17, %v322_v57  ;;  %v408_v37 = vadd.f32 %v317_v24, %v5072_v13 }
  0xd3   :  { %v409_v33 = vadd.f32 %v319_v25, %v188_v36  ;;  %v410_v43 = vadd.f32 %v321_v26, %v189_v59  ;;  %v411_v35 = vadd.f32 %v323_v28, %v190_v20  ;;  %v538_v38 = vsel %vm522_vm2, %v533_v47, %v537_v18  ;;  %v125_v20 = vpop.permute.xlu1 %124 }
  0xd4   :  { %v5148_v44 = vmul.f32 %v5005_v8, %v115_v0  ;;  %v540_v30 = vsel %vm522_vm2, %v535_v48, %v539_v21  ;;  %v542_v41 = vsel %vm522_vm2, %v537_v18, %v541_v58  ;;  %v544_v13 = vsel %vm522_vm2, %v539_v21, %v543_v3 }
  0xd5   :  { %v629_v36 = vadd.f32 %v538_v38, %v408_v37  ;;  %v630_v42 = vadd.f32 %v540_v30, %v409_v33  ;;  %v631_v39 = vadd.f32 %v542_v41, %v410_v43  ;;  %v632_v46 = vadd.f32 %v544_v13, %v411_v35 }
  0xd6   :  { %v5160_v47 = vmul.f32 %v4999_v5, %v115_v0  ;;  %v5164_v40 = vsel %vm5119_vm5, %v830_v23, %v831_v49  ;;  %v5168_v51 = vmul.f32 %v5001_v6, %v115_v0  ;;  %v5171_v53 = vmul.f32 %v5007_v9, %v115_v0 }
  0xd7   :  { %v674_v48 = vadd.f32 %v5013_v15, %v629_v36  ;;  %v675_v54 = vadd.f32 %v5015_v16, %v630_v42  ;;  %v676_v56 = vadd.f32 %v5013_v15, %v631_v39  ;;  %v677_v59 = vadd.f32 %v5015_v16, %v632_v46 }
  0xd8   :  { %v5177_v60 = vmul.f32 %v5009_v10, %v115_v0  ;;  %v328_v49 = vrot.slane %v5125_v22, 1  ;;  %v330_v62 = vrot.slane %v5148_v44, 1  ;;  %v193_v63 = vmul.f32 %v4999_v5, %v110_v50 }
  0xd9   :  { %v708_v61 = vmax.f32 %v674_v48, 0.0  ;;  %v709_v2 = vmax.f32 %v675_v54, 0.0  ;;  %v710_v4 = vmax.f32 %v676_v56, 0.0  ;;  %v711_v12 = vmax.f32 %v677_v59, 0.0 }
  0xda   :  { %v245_v14 = vmul.f32 %v5003_v7, %v110_v50  ;;  %v549_v17 = vrot.slane %v5171_v53, 2  ;;  %v246_v18 = vmul.f32 %v5005_v8, %v110_v50  ;;  %v466_v19 = vmul.f32 %v5007_v9, %v110_v50 }
  0xdb   :  { %v467_v0 = vmul.f32 %v5009_v10, %v110_v50  ;;  %v4112_v21 = vpack.c.bf16 %v709_v2, %v708_v61  ;;  %v4113_v23 = vpack.c.bf16 %v711_v12, %v710_v4  ;;  %v551_v24 = vrot.slane %v5177_v60, 2  ;;  %v120_v4 = vpop.permute.xlu0 %119 }
  0xdc   :  { %v324_v25 = vrot.slane %v245_v14, 1  ;;  %v194_v26 = vmul.f32 %v5001_v6, %v110_v50  ;;  %v326_v28 = vrot.slane %v246_v18, 1  ;;  %v545_v37 = vrot.slane %v466_v19, 2 }
  0xdd   :  { %v547_v33 = vrot.slane %v467_v0, 2  ;;  %v834_v43 = vrot.slane %v4112_v21, 7  ;;  %v5196_v30 = vmul.f32 %v4999_v5, %v125_v20  ;;  %v5207_v46 = vmul.f32 %v5001_v6, %v125_v20 }
  0xde   :  { %v325_v35 = vsel %vm301_vm1, %v320_v34, %v324_v25  ;;  %v329_v38 = vsel %vm301_vm1, %v324_v25, %v328_v49  ;;  %v327_v41 = vsel %vm301_vm1, %v322_v57, %v326_v28  ;;  %v331_v13 = vsel %vm301_vm1, %v326_v28, %v330_v62 }
  0xdf   :  { %v412_v36 = vadd.f32 %v325_v35, %v5097_v45  ;;  %v414_v29 = vadd.f32 %v329_v38, %v193_v63  ;;  %v836_v42 = vrot.slane %v834_v43, 4  ;;  %v837_v34 = vrot.slane %v4113_v23, 7  ;;  %v135_v38 = vpop.permute.xlu1 %134 }
  0xe0   :  { %v413_v39 = vadd.f32 %v327_v41, %v5104_v55  ;;  %v415_v50 = vadd.f32 %v331_v13, %v194_v26  ;;  %v546_v32 = vsel %vm522_vm2, %v541_v58, %v545_v37  ;;  %v548_v57 = vsel %vm522_vm2, %v543_v3, %v547_v33 }
  0xe1   :  { %v5216_v48 = vmul.f32 %v5003_v7, %v125_v20  ;;  %v550_v45 = vsel %vm522_vm2, %v545_v37, %v549_v17  ;;  %v552_v55 = vsel %vm522_vm2, %v547_v33, %v551_v24  ;;  %v633_v54 = vadd.f32 %v546_v32, %v412_v36 }
  0xe2   :  { %v634_v56 = vadd.f32 %v548_v57, %v413_v39  ;;  %v5227_v31 = vsel %vm5119_vm5, %v5113_v1, %v834_v43  ;;  %v635_v52 = vadd.f32 %v550_v45, %v414_v29  ;;  %v636_v58 = vadd.f32 %v552_v55, %v415_v50 }
  0xe3   :  { %v5230_v3 = vmul.f32 %v5005_v8, %v125_v20  ;;  %v5234_v59 = vsel %vm5119_vm5, %v836_v42, %v837_v34  ;;  %v839_v61 = vrot.slane %v837_v34, 4  ;;  %v678_v63 = vadd.f32 %v5013_v15, %v633_v54 }
  0xe4   :  { %v679_v2 = vadd.f32 %v5015_v16, %v634_v56  ;;  %v680_v12 = vadd.f32 %v5013_v15, %v635_v52  ;;  %v681_v1 = vadd.f32 %v5015_v16, %v636_v58  ;;  %v5241_v14 = vmul.f32 %v5007_v9, %v125_v20 }
  0xe5   :  { %v5244_v18 = vmul.f32 %v5009_v10, %v125_v20  ;;  %v712_v19 = vmax.f32 %v678_v63, 0.0  ;;  %v336_v21 = vrot.slane %v5216_v48, 1  ;;  %v338_v23 = vrot.slane %v5230_v3, 1 }
  0xe6   :  { %v713_v0 = vmax.f32 %v679_v2, 0.0  ;;  %v714_v25 = vmax.f32 %v680_v12, 0.0  ;;  %v715_v26 = vmax.f32 %v681_v1, 0.0  ;;  %v197_v28 = vmul.f32 %v4999_v5, %v120_v4 }
  0xe7   :  { %v249_v37 = vmul.f32 %v5003_v7, %v120_v4  ;;  %v250_v43 = vmul.f32 %v5005_v8, %v120_v4  ;;  %v470_v35 = vmul.f32 %v5007_v9, %v120_v4  ;;  %v471_v20 = vmul.f32 %v5009_v10, %v120_v4 }
  0xe8   :  { %v4114_v33 = vpack.c.bf16 %v713_v0, %v712_v19  ;;  %v4115_v41 = vpack.c.bf16 %v715_v26, %v714_v25  ;;  %v557_v13 = vrot.slane %v5241_v14, 2  ;;  %v559_v36 = vrot.slane %v5244_v18, 2 }
  0xe9   :  { %v332_v29 = vrot.slane %v249_v37, 1  ;;  %v334_v34 = vrot.slane %v250_v43, 1  ;;  %v553_v39 = vrot.slane %v470_v35, 2  ;;  %v555_v50 = vrot.slane %v471_v20, 2  ;;  %v130_v37 = vpop.permute.xlu0 %129 }
  0xea   :  { %v840_v42 = vrot.slane %v4114_v33, 7  ;;  %v198_v32 = vmul.f32 %v5001_v6, %v120_v4  ;;  %v5263_v55 = vmul.f32 %v4999_v5, %v135_v38  ;;  %v843_v56 = vrot.slane %v4115_v41, 7 }
  0xeb   :  { %v333_v57 = vsel %vm301_vm1, %v328_v49, %v332_v29  ;;  %v337_v45 = vsel %vm301_vm1, %v332_v29, %v336_v21  ;;  %v335_v52 = vsel %vm301_vm1, %v330_v62, %v334_v34  ;;  %v339_v58 = vsel %vm301_vm1, %v334_v34, %v338_v23 }
  0xec   :  { %v842_v54 = vrot.slane %v840_v42, 4  ;;  %v416_v22 = vadd.f32 %v333_v57, %v5160_v47  ;;  %v417_v49 = vadd.f32 %v335_v52, %v5168_v51  ;;  %v418_v63 = vadd.f32 %v337_v45, %v197_v28 }
  0xed   :  { %v5274_v2 = vmul.f32 %v5003_v7, %v135_v38  ;;  %v419_v12 = vadd.f32 %v339_v58, %v198_v32  ;;  %v554_v44 = vsel %vm522_vm2, %v549_v17, %v553_v39  ;;  %v556_v62 = vsel %vm522_vm2, %v551_v24, %v555_v50 }
  0xee   :  { %v844_v4 = vsel %vm5119_vm5, %v842_v54, %v843_v56  ;;  %v558_v47 = vsel %vm522_vm2, %v553_v39, %v557_v13  ;;  %v560_v51 = vsel %vm522_vm2, %v555_v50, %v559_v36  ;;  %v637_v1 = vadd.f32 %v554_v44, %v416_v22 }
  0xef   :  { %898 = vst [vmem:[#allocation2 + $0x30] sm:$0xff] %v844_v4  ;;  %v638_v19 = vadd.f32 %v556_v62, %v417_v49  ;;  %v639_v0 = vadd.f32 %v558_v47, %v418_v63  ;;  %v640_v25 = vadd.f32 %v560_v51, %v419_v12  ;;  %v5291_v53 = vmul.f32 %v5001_v6, %v135_v38 }
  0xf0   :  { %v5294_v60 = vmul.f32 %v5005_v8, %v135_v38  ;;  %v682_v17 = vadd.f32 %v5013_v15, %v637_v1  ;;  %v5299_v26 = vmul.f32 %v5007_v9, %v135_v38  ;;  %v5302_v28 = vmul.f32 %v5009_v10, %v135_v38 }
  0xf1   :  { %v683_v24 = vadd.f32 %v5015_v16, %v638_v19  ;;  %v5306_v33 = vsel %vm5119_vm5, %v839_v61, %v840_v42  ;;  %v845_v43 = vrot.slane %v843_v56, 4  ;;  %v5309_v35 = vadd.f32 %v5013_v15, %v639_v0  ;;  %v145_v56 = vpop.permute.xlu1 %144 }
  0xf2   :  { %v5312_v20 = vadd.f32 %v5015_v16, %v640_v25  ;;  %v716_v41 = vmax.f32 %v682_v17, 0.0  ;;  %v344_v34 = vrot.slane %v5274_v2, 1  ;;  %v346_v39 = vrot.slane %v5294_v60, 1 }
  0xf3   :  { %v717_v29 = vmax.f32 %v683_v24, 0.0  ;;  %v565_v38 = vrot.slane %v5299_v26, 2  ;;  %v567_v50 = vrot.slane %v5302_v28, 2  ;;  %v201_v61 = vmul.f32 %v4999_v5, %v130_v37 }
  0xf4   :  { %v253_v42 = vmul.f32 %v5003_v7, %v130_v37  ;;  %v254_v57 = vmul.f32 %v5005_v8, %v130_v37  ;;  %v474_v45 = vmul.f32 %v5007_v9, %v130_v37  ;;  %v475_v54 = vmul.f32 %v5009_v10, %v130_v37 }
  0xf5   :  { %v5320_v32 = vpack.c.bf16 %v717_v29, %v716_v41  ;;  %v202_v22 = vmul.f32 %v5001_v6, %v130_v37  ;;  %v5336_v51 = vmul.f32 %v5003_v7, %v145_v56  ;;  %v5339_v1 = vmul.f32 %v5005_v8, %v145_v56 }
  0xf6   :  { %v340_v49 = vrot.slane %v253_v42, 1  ;;  %v342_v4 = vrot.slane %v254_v57, 1  ;;  %v561_v12 = vrot.slane %v474_v45, 2  ;;  %v563_v44 = vrot.slane %v475_v54, 2 }
  0xf7   :  { %v846_v63 = vrot.slane %v5320_v32, 7  ;;  %v5368_v14 = vmul.f32 %v4999_v5, %v145_v56  ;;  %v5378_v42 = vmul.f32 %v5009_v10, %v145_v56  ;;  %v4629_v32 = vld [vmem:[%s6668_s3 + $0x150] sm:$0xff]  }
  0xf8   :  { %v341_v62 = vsel %vm301_vm1, %v336_v21, %v340_v49  ;;  %v345_v47 = vsel %vm301_vm1, %v340_v49, %v344_v34  ;;  %v343_v48 = vsel %vm301_vm1, %v338_v23, %v342_v4  ;;  %v347_v21 = vsel %vm301_vm1, %v342_v4, %v346_v39 }
  0xf9   :  { %v5345_v19 = vsel %vm5119_vm5, %v845_v43, %v846_v63  ;;  %v420_v0 = vadd.f32 %v341_v62, %v5196_v30  ;;  %v421_v25 = vadd.f32 %v343_v48, %v5207_v46  ;;  %v422_v17 = vadd.f32 %v345_v47, %v201_v61 }
  0xfa   :  { %v423_v24 = vadd.f32 %v347_v21, %v202_v22  ;;  %v562_v37 = vsel %vm522_vm2, %v557_v13, %v561_v12  ;;  %v564_v3 = vsel %vm522_vm2, %v559_v36, %v563_v44  ;;  %v566_v23 = vsel %vm522_vm2, %v561_v12, %v565_v38  ;;  %v140_v13 = vpop.permute.xlu0 %139 }
  0xfb   :  { %v568_v30 = vsel %vm522_vm2, %v563_v44, %v567_v50  ;;  %v641_v43 = vadd.f32 %v562_v37, %v420_v0  ;;  %v642_v46 = vadd.f32 %v564_v3, %v421_v25  ;;  %v643_v41 = vadd.f32 %v566_v23, %v422_v17 }
  0xfc   :  { %v644_v29 = vadd.f32 %v568_v30, %v423_v24  ;;  %v5372_v36 = vmul.f32 %v5001_v6, %v145_v56  ;;  %v5375_v61 = vmul.f32 %v5007_v9, %v145_v56  ;;  %v352_v22 = vrot.slane %v5336_v51, 1  ;;  %v155_v24 = vpop.permute.xlu1 %154 }
  0xfd   :  { %v686_v18 = vadd.f32 %v5013_v15, %v641_v43  ;;  %v687_v57 = vadd.f32 %v5015_v16, %v642_v46  ;;  %v5382_v45 = vadd.f32 %v5013_v15, %v643_v41  ;;  %v354_v4 = vrot.slane %v5339_v1, 1 }
  0xfe   :  { %v5385_v54 = vadd.f32 %v5015_v16, %v644_v29  ;;  %v205_v12 = vmul.f32 %v4999_v5, %v140_v13  ;;  %v257_v44 = vmul.f32 %v5003_v7, %v140_v13  ;;  %v573_v56 = vrot.slane %v5375_v61, 2 }
  0xff   :  { %v720_v49 = vmax.f32 %v686_v18, 0.0  ;;  %v721_v62 = vmax.f32 %v687_v57, 0.0  ;;  %v206_v47 = vmul.f32 %v5001_v6, %v140_v13  ;;  %v258_v48 = vmul.f32 %v5005_v8, %v140_v13 }
 0x100   :  { %v575_v21 = vrot.slane %v5378_v42, 2  ;;  %v348_v0 = vrot.slane %v257_v44, 1  ;;  %v478_v25 = vmul.f32 %v5007_v9, %v140_v13  ;;  %v479_v17 = vmul.f32 %v5009_v10, %v140_v13 }
 0x101   :  { %v5399_v23 = vpack.c.bf16 %v721_v62, %v720_v49  ;;  %v350_v30 = vrot.slane %v258_v48, 1  ;;  %v5415_v2 = vmul.f32 %v5003_v7, %v155_v24  ;;  %v264_v26 = vmul.f32 %v5005_v8, %v155_v24 }
 0x102   :  { %v349_v43 = vsel %vm301_vm1, %v344_v34, %v348_v0  ;;  %v353_v46 = vsel %vm301_vm1, %v348_v0, %v352_v22  ;;  %v569_v41 = vrot.slane %v478_v25, 2  ;;  %v571_v29 = vrot.slane %v479_v17, 2  ;;  %v150_v34 = vpop.permute.xlu0 %149 }
 0x103   :  { %v351_v13 = vsel %vm301_vm1, %v346_v39, %v350_v30  ;;  %v355_v18 = vsel %vm301_vm1, %v350_v30, %v354_v4  ;;  %v424_v57 = vadd.f32 %v349_v43, %v5263_v55  ;;  %v426_v44 = vadd.f32 %v353_v46, %v205_v12 }
 0x104   :  { %v425_v49 = vadd.f32 %v351_v13, %v5291_v53  ;;  %v427_v62 = vadd.f32 %v355_v18, %v206_v47  ;;  %v570_v60 = vsel %vm522_vm2, %v565_v38, %v569_v41  ;;  %v572_v39 = vsel %vm522_vm2, %v567_v50, %v571_v29 }
 0x105   :  { %v574_v55 = vsel %vm522_vm2, %v569_v41, %v573_v56  ;;  %v576_v48 = vsel %vm522_vm2, %v571_v29, %v575_v21  ;;  %v645_v0 = vadd.f32 %v570_v60, %v424_v57  ;;  %v211_v28 = vmul.f32 %v4999_v5, %v155_v24 }
 0x106   :  { %v646_v53 = vadd.f32 %v572_v39, %v425_v49  ;;  %v647_v12 = vadd.f32 %v574_v55, %v426_v44  ;;  %v648_v47 = vadd.f32 %v576_v48, %v427_v62  ;;  %v5436_v50 = vmul.f32 %v5007_v9, %v155_v24  ;;  %v160_v57 = vpop.permute.xlu0 %159 }
 0x107   :  { %v5432_v38 = vadd.f32 %v5013_v15, %v645_v0  ;;  %v5439_v25 = vmul.f32 %v5009_v10, %v155_v24  ;;  %v212_v43 = vmul.f32 %v5001_v6, %v155_v24  ;;  %v360_v46 = vrot.slane %v5415_v2, 1 }
 0x108   :  { %v5443_v30 = vadd.f32 %v5015_v16, %v646_v53  ;;  %v5448_v41 = vadd.f32 %v5013_v15, %v647_v12  ;;  %v5451_v29 = vadd.f32 %v5015_v16, %v648_v47  ;;  %v362_v18 = vrot.slane %v264_v26, 1 }
 0x109   :  { %v581_v49 = vrot.slane %v5436_v50, 2  ;;  %v583_v44 = vrot.slane %v5439_v25, 2  ;;  %v209_v62 = vmul.f32 %v4999_v5, %v150_v34  ;;  %v210_v24 = vmul.f32 %v5001_v6, %v150_v34 }
 0x10a   :  { %v261_v2 = vmul.f32 %v5003_v7, %v150_v34  ;;  %v262_v60 = vmul.f32 %v5005_v8, %v150_v34  ;;  %v482_v39 = vmul.f32 %v5007_v9, %v150_v34  ;;  %v483_v55 = vmul.f32 %v5009_v10, %v150_v34 }
 0x10b   :  { %v213_v48 = vmul.f32 %v4999_v5, %v160_v57  ;;  %v214_v0 = vmul.f32 %v5001_v6, %v160_v57  ;;  %v265_v53 = vmul.f32 %v5003_v7, %v160_v57  ;;  %v266_v12 = vmul.f32 %v5005_v8, %v160_v57 }
 0x10c   :  { %v356_v47 = vrot.slane %v261_v2, 1  ;;  %v358_v26 = vrot.slane %v262_v60, 1  ;;  %v577_v50 = vrot.slane %v482_v39, 2  ;;  %v579_v25 = vrot.slane %v483_v55, 2 }
 0x10d   :  { %v364_v13 = vrot.slane %v265_v53, 1  ;;  %v366_v3 = vrot.slane %v266_v12, 1  ;;  %v486_v37 = vmul.f32 %v5007_v9, %v160_v57  ;;  %v487_v58 = vmul.f32 %v5009_v10, %v160_v57 }
 0x10e   :  { %v357_v34 = vsel %vm301_vm1, %v352_v22, %v356_v47  ;;  %v359_v52 = vsel %vm301_vm1, %v354_v4, %v358_v26  ;;  %v361_v17 = vsel %vm301_vm1, %v356_v47, %v360_v46  ;;  %v363_v2 = vsel %vm301_vm1, %v358_v26, %v362_v18 }
 0x10f   :  { %v428_v60 = vadd.f32 %v357_v34, %v5368_v14  ;;  %v429_v39 = vadd.f32 %v359_v52, %v5372_v36  ;;  %v430_v55 = vadd.f32 %v361_v17, %v209_v62  ;;  %v431_v53 = vadd.f32 %v363_v2, %v210_v24  ;;  %v909_v34 = vld [vmem:[#allocation2] sm:$0xff] }
 0x110   :  { %v578_v51 = vsel %vm522_vm2, %v573_v56, %v577_v50  ;;  %v580_v1 = vsel %vm522_vm2, %v575_v21, %v579_v25  ;;  %v582_v22 = vsel %vm522_vm2, %v577_v50, %v581_v49  ;;  %v584_v4 = vsel %vm522_vm2, %v579_v25, %v583_v44 }
 0x111   :  { %v649_v57 = vadd.f32 %v578_v51, %v428_v60  ;;  %v650_v12 = vadd.f32 %v580_v1, %v429_v39  ;;  %v651_v47 = vadd.f32 %v582_v22, %v430_v55  ;;  %v652_v14 = vadd.f32 %v584_v4, %v431_v53  ;;  %v4622_v55 = vld [vmem:[%s6668_s3 + $0x100] sm:$0xff]   ;;  %v1902_v1 = vpop.permute.xlu0 %1901 }
 0x112   :  { %v365_v52 = vsel %vm301_vm1, %v360_v46, %v364_v13  ;;  %v367_v36 = vsel %vm301_vm1, %v362_v18, %v366_v3  ;;  %v434_v17 = vadd.f32 %v364_v13, %v213_v48  ;;  %v435_v61 = vadd.f32 %v366_v3, %v214_v0  ;;  %v1898_v48 = vpop.permute.xlu1 %1897 }
 0x113   :  { %v5491_v21 = vadd.f32 %v5013_v15, %v649_v57  ;;  %v5494_v62 = vadd.f32 %v5015_v16, %v650_v12  ;;  %v432_v24 = vadd.f32 %v365_v52, %v211_v28  ;;  %v433_v26 = vadd.f32 %v367_v36, %v212_v43  ;;  %v4625_v12 = vld [vmem:[%s6668_s3 + $0x148] sm:$0xff]  }
 0x114   :  { %v585_v50 = vrot.slane %v486_v37, 2  ;;  %v587_v25 = vrot.slane %v487_v58, 2  ;;  %v5498_v13 = vadd.f32 %v5013_v15, %v651_v47  ;;  %v5501_v3 = vadd.f32 %v5015_v16, %v652_v14  ;;  %v4627_v47 = vld [vmem:[%s6668_s3 + $0x1c8] sm:$0xff]  }
 0x115   :  { %v5507_v60 = vcombine.high %v909_v34, %v5138_v27  ;;  %v5510_v39 = vcombine.low %v909_v34, %v5138_v27  ;;  %v5524_v51 = vcombine.high %v5164_v40, %v5227_v31  ;;  %v4624_v27 = vld [vmem:[%s6668_s3 + $0x180] sm:$0xff]   ;;  %v5539_v57 = vmul.f32 %v1898_v48, %v4999_v5 }
 0x116   :  { %6685 = vst [vmem:[#allocation10_spill] sm:$0xff] %v5498_v13  ;;  %6686 = vst [vmem:[#allocation11_spill] sm:$0xff] %v5501_v3  ;;  %v586_v0 = vsel %vm522_vm2, %v581_v49, %v585_v50  ;;  %v588_v2 = vsel %vm522_vm2, %v583_v44, %v587_v25  ;;  %v655_v28 = vadd.f32 %v585_v50, %v434_v17  ;;  %v1906_v50 = vpop.permute.xlu1 %1905  ;;  %v5572_v34 = vrot.slane %v846_v63, 4 }
 0x117   :  { %v656_v43 = vadd.f32 %v587_v25, %v435_v61  ;;  %v653_v37 = vadd.f32 %v586_v0, %v432_v24  ;;  %v654_v58 = vadd.f32 %v588_v2, %v433_v26  ;;  %6687 = vst [vmem:[#allocation12_spill] sm:$0xff] %v5507_v60  ;;  %6688 = vst [vmem:[#allocation13_spill] sm:$0xff] %v5510_v39  ;;  %1173 = vmatprep.mubr.bf16.mxu0 %v5507_v60  ;;  %v4626_v25 = vld [vmem:[%s6668_s3 + $0x108] sm:$0xff]  }
 0x118   :  { %v5517_v49 = vadd.f32 %v5013_v15, %v655_v28  ;;  %6689 = vst [vmem:[#allocation14_spill] sm:$0xff] %v5524_v51  ;;  %1423 = vmatprep.mubr.bf16.mxu1 %v5507_v60  ;;  %1174 = vmatmul.mubr.bf16.vlgmr.msra.gmra.mrb[0].mxu0 %v5510_v39  ;;  %v5551_v52 = vmul.f32 %v1898_v48, %v5001_v6 }
 0x119   :  { %v5520_v44 = vadd.f32 %v5015_v16, %v656_v43  ;;  %v5531_v22 = vadd.f32 %v5013_v15, %v653_v37  ;;  %v5534_v4 = vadd.f32 %v5015_v16, %v654_v58  ;;  %1424 = vmatmul.mubr.bf16.vlgmr.msra.gmra.mrb[0].mxu1 %v5510_v39  ;;  %v5554_v36 = vmul.f32 %v1898_v48, %v5003_v7  ;;  %v4628_v43 = vld [vmem:[%s6668_s3 + $0x188] sm:$0xff]  }
 0x11a   :  { %v5557_v17 = vmul.f32 %v1898_v48, %v5005_v8  ;;  %4301 = vmatpush3.bf16.msra.mxu0 %v4622_v55  ;;  %1181 = vmatprep.mubr.bf16.mxu0 %v5524_v51  ;;  %v5562_v24 = vmul.f32 %v1898_v48, %v5007_v9  ;;  %v5565_v26 = vmul.f32 %v1898_v48, %v5009_v10  ;;  %v1910_v56 = vpop.permute.xlu1 %1909 }
 0x11b   :  { %6690 = vst [vmem:[#allocation15_spill] sm:$0xff] %v5531_v22  ;;  %6691 = vst [vmem:[#allocation16_spill] sm:$0xff] %v5534_v4  ;;  %1431 = vmatprep.mubr.bf16.mxu1 %v5524_v51  ;;  %4371 = vmatpush3.bf16.msra.mxu1 %v4624_v27  ;;  %v2066_v48 = vrot.slane %v5554_v36, 1  ;;  %v5588_v58 = vmul.f32 %v1906_v50, %v4999_v5  ;;  %v5591_v55 = vmul.f32 %v1906_v50, %v5003_v7  ;;  %v4631_v27 = vld [vmem:[%s6668_s3 + $0x1d0] sm:$0xff]  }
 0x11c   :  { %v2069_v63 = vrot.slane %v5557_v17, 1  ;;  %4302 = vmatprep.subr.bf16.mxu0 %v4625_v12  ;;  %4372 = vmatprep.subr.bf16.mxu1 %v4627_v47  ;;  %v2271_v36 = vrot.slane %v5565_v26, 2  ;;  %v5598_v2 = vmul.f32 %v1906_v50, %v5005_v8  ;;  %v5601_v17 = vmul.f32 %v1906_v50, %v5007_v9 }
 0x11d   :  { %v5604_v0 = vmul.f32 %v1906_v50, %v5009_v10  ;;  %v5607_v14 = vmul.f32 %v1906_v50, %v5001_v6  ;;  %v5612_v47 = vcombine.low %v5164_v40, %v5227_v31  ;;  %v5616_v26 = vcombine.high %v5234_v59, %v5306_v33  ;;  %v4630_v40 = vld [vmem:[%s6668_s3 + $0x110] sm:$0xff]  }
 0x11e   :  { %4303 = vmatpush3.bf16.msra.mxu0 %v4626_v25  ;;  %v1966_v28 = vmul.f32 %v1902_v1, %v4999_v5  ;;  %v1967_v50 = vmul.f32 %v1902_v1, %v5001_v6  ;;  %v4632_v31 = vld [vmem:[%s6668_s3 + $0x190] sm:$0xff]   ;;  %v2000_v25 = vmul.f32 %v1902_v1, %v5003_v7  ;;  %v2001_v61 = vmul.f32 %v1902_v1, %v5005_v8 }
 0x11f   :  { %6692 = vst [vmem:[#allocation17_spill] sm:$0xff] %v5612_v47  ;;  %6693 = vst [vmem:[#allocation18_spill] sm:$0xff] %v5616_v26  ;;  %4373 = vmatpush3.bf16.msra.mxu1 %v4628_v43  ;;  %4304 = vmatprep.subr.bf16.mxu0 %v4629_v32  ;;  %v2202_v46 = vmul.f32 %v1902_v1, %v5007_v9  ;;  %v2203_v42 = vmul.f32 %v1902_v1, %v5009_v10  ;;  %v4633_v43 = vld [vmem:[%s6668_s3 + $0x158] sm:$0xff]   ;;  %v2276_v32 = vrot.slane %v5604_v0, 2 }
 0x120   :  { %4374 = vmatprep.subr.bf16.mxu1 %v4631_v27  ;;  %1182 = vmatmul.mubr.bf16.gmra.mrb[4].mxu0 %v5612_v47  ;;  %v5639_v18 = vmul.f32 %v1910_v56, %v4999_v5  ;;  %v5642_v37 = vmul.f32 %v1910_v56, %v5001_v6  ;;  %v5645_v1 = vmul.f32 %v1910_v56, %v5003_v7  ;;  %v4635_v27 = vld [vmem:[%s6668_s3 + $0x1d8] sm:$0xff]   ;;  %v2067_v0 = vrot.slane %v2000_v25, 1 }
 0x121   :  { %1432 = vmatmul.mubr.bf16.gmra.mrb[4].mxu1 %v5612_v47  ;;  %1189 = vmatprep.mubr.bf16.mxu0 %v5616_v26  ;;  %v2070_v53 = vrot.slane %v2001_v61, 1  ;;  %v2269_v12 = vrot.slane %v2202_v46, 2  ;;  %v2272_v47 = vrot.slane %v2203_v42, 2  ;;  %v5653_v51 = vmul.f32 %v1910_v56, %v5005_v8  ;;  %v4634_v25 = vld [vmem:[%s6668_s3 + $0x118] sm:$0xff]  }
 0x122   :  { %1439 = vmatprep.mubr.bf16.mxu1 %v5616_v26  ;;  %v5657_v60 = vmul.f32 %v1910_v56, %v5007_v9  ;;  %v5660_v4 = vmul.f32 %v1910_v56, %v5009_v10  ;;  %4305 = vmatpush3.bf16.msra.mxu0 %v4630_v40  ;;  %v2068_v46 = vsel %vm301_vm1, %v2066_v48, %v2067_v0  ;;  %v6694_v61 = vrot.slane %v5591_v55, 1  ;;  %v4636_v56 = vld [vmem:[%s6668_s3 + $0x198] sm:$0xff]   ;;  %v4637_v40 = vld [vmem:[%s6668_s3 + $0x160] sm:$0xff]  }
 0x123   :  { %4375 = vmatpush3.bf16.msra.mxu1 %v4632_v31  ;;  %v2071_v42 = vsel %vm301_vm1, %v2069_v63, %v2070_v53  ;;  %v6695_v26 = vrot.slane %v5598_v2, 1  ;;  %4306 = vmatprep.subr.bf16.mxu0 %v4633_v43  ;;  %v2166_v48 = vadd.f32 %v2068_v46, %v5539_v57  ;;  %v2277_v57 = vsel %vm522_vm2, %v2272_v47, %v2276_v32 }
 0x124   :  { %v2073_v39 = vsel %vm301_vm1, %v2067_v0, %v6694_v61  ;;  %v2167_v63 = vadd.f32 %v2071_v42, %v5551_v52  ;;  %4376 = vmatprep.subr.bf16.mxu1 %v4635_v27  ;;  %v2273_v0 = vsel %vm522_vm2, %v2271_v36, %v2272_v47  ;;  %v6697_v61 = vrot.slane %v5601_v17, 2 }
 0x125   :  { %v2075_v22 = vsel %vm301_vm1, %v2070_v53, %v6695_v26  ;;  %v2168_v31 = vadd.f32 %v2073_v39, %v1966_v28  ;;  %v4639_v53 = vld [vmem:[%s6668_s3 + $0x1e0] sm:$0xff]   ;;  %v6696_v26 = vrot.slane %v5562_v24, 2  ;;  %v6698_v24 = vrot.slane %v5645_v1, 1 }
 0x126   :  { %v2169_v3 = vadd.f32 %v2075_v22, %v1967_v50  ;;  %v2275_v13 = vsel %vm522_vm2, %v2269_v12, %v6697_v61  ;;  %v2369_v39 = vadd.f32 %v2273_v0, %v2167_v63  ;;  %4307 = vmatpush3.bf16.msra.mxu0 %v4634_v25  ;;  %v4638_v50 = vld [vmem:[%s6668_s3 + $0x120] sm:$0xff]   ;;  %v6699_v27 = vrot.slane %v5591_v55, 1 }
 0x127   :  { %v2270_v43 = vsel %vm522_vm2, %v6696_v26, %v2269_v12  ;;  %v2370_v22 = vadd.f32 %v2275_v13, %v2168_v31  ;;  %v2078_v46 = vrot.slane %v5653_v51, 1  ;;  %v2278_v12 = vrot.slane %v5657_v60, 2  ;;  %4377 = vmatpush3.bf16.msra.mxu1 %v4636_v56  ;;  %4308 = vmatprep.subr.bf16.mxu0 %v4637_v40  ;;  %v4640_v13 = vld [vmem:[%s6668_s3 + $0x1a0] sm:$0xff]   ;;  %v4641_v51 = vld [vmem:[%s6668_s3 + $0x168] sm:$0xff]  }
 0x128   :  { %v2368_v52 = vadd.f32 %v2270_v43, %v2166_v48  ;;  %v2371_v28 = vadd.f32 %v2277_v57, %v2169_v3  ;;  %v2077_v36 = vsel %vm301_vm1, %v6699_v27, %v6698_v24  ;;  %v2280_v47 = vrot.slane %v5660_v4, 2  ;;  %4378 = vmatprep.subr.bf16.mxu1 %v4639_v53  ;;  %v4643_v26 = vld [vmem:[%s6668_s3 + $0x1e8] sm:$0xff]   ;;  %v1914_v57 = vpop.permute.xlu0 %1913  ;;  %v4651_v4 = vld [vmem:[%s6668_s3 + $0x138] sm:$0xff]  }
 0x129   :  { %v2403_v25 = vadd.f32 %v2369_v39, %v5015_v16  ;;  %v2404_v55 = vadd.f32 %v2370_v22, %v5013_v15  ;;  %v6700_v56 = vrot.slane %v5598_v2, 1  ;;  %v2170_v48 = vadd.f32 %v2077_v36, %v5588_v58  ;;  %v4642_v58 = vld [vmem:[%s6668_s3 + $0x128] sm:$0xff]  }
 0x12a   :  { %v2402_v3 = vadd.f32 %v2368_v52, %v5013_v15  ;;  %v2405_v42 = vadd.f32 %v2371_v28, %v5015_v16  ;;  %v6701_v63 = vmov %v6697_v61  ;;  %v2281_v53 = vsel %vm522_vm2, %v2276_v32, %v2280_v47  ;;  %4309 = vmatpush3.bf16.msra.mxu0 %v4638_v50  ;;  %v4644_v28 = vld [vmem:[%s6668_s3 + $0x1a8] sm:$0xff]   ;;  %v4645_v50 = vld [vmem:[%s6668_s3 + $0x170] sm:$0xff]  }
 0x12b   :  { %v2079_v40 = vsel %vm301_vm1, %v6700_v56, %v2078_v46  ;;  %v2279_v31 = vsel %vm522_vm2, %v6701_v63, %v2278_v12  ;;  %v2437_v2 = vmax.f32 %v2403_v25, 0.0  ;;  %v2438_v0 = vmax.f32 %v2404_v55, 0.0  ;;  %4379 = vmatpush3.bf16.msra.mxu1 %v4640_v13  ;;  %4310 = vmatprep.subr.bf16.mxu0 %v4641_v51  ;;  %v4647_v13 = vld [vmem:[%s6668_s3 + $0x1f0] sm:$0xff]  }
 0x12c   :  { %v2436_v43 = vmax.f32 %v2402_v3, 0.0  ;;  %v2439_v61 = vmax.f32 %v2405_v42, 0.0  ;;  %v2171_v17 = vadd.f32 %v2079_v40, %v5607_v14  ;;  %v2372_v52 = vadd.f32 %v2279_v31, %v2170_v48  ;;  %4380 = vmatprep.subr.bf16.mxu1 %v4643_v26  ;;  %v4646_v63 = vld [vmem:[%s6668_s3 + $0x130] sm:$0xff]  }
 0x12d   :  { %v5733_v39 = vmul.f32 %v1914_v57, %v4999_v5  ;;  %v6702_v32 = vrot.slane %v5399_v23, 7  ;;  %v5746_v14 = vmul.f32 %v1914_v57, %v5003_v7  ;;  %v5749_v36 = vmul.f32 %v1914_v57, %v5005_v8  ;;  %v4648_v26 = vld [vmem:[%s6668_s3 + $0x1b0] sm:$0xff]  }
 0x12e   :  { %v4126_v24 = vpack.c.bf16 %v2437_v2, %v2436_v43  ;;  %v4127_v27 = vpack.c.bf16 %v2439_v61, %v2438_v0  ;;  %v2373_v3 = vadd.f32 %v2281_v53, %v2171_v17  ;;  %v2406_v25 = vadd.f32 %v2372_v52, %v5013_v15  ;;  %4311 = vmatpush3.bf16.msra.mxu0 %v4642_v58 }
 0x12f   :  { %v5737_v22 = vrot.slane %v6702_v32, 4  ;;  %v5756_v55 = vmul.f32 %v1914_v57, %v5007_v9  ;;  %v5759_v42 = vmul.f32 %v1914_v57, %v5009_v10  ;;  %v2080_v48 = vrot.slane %v5746_v14, 1  ;;  %4381 = vmatpush3.bf16.msra.mxu1 %v4644_v28  ;;  %4312 = vmatprep.subr.bf16.mxu0 %v4645_v50  ;;  %v4650_v32 = vld [vmem:[%s6668_s3 + $0x178] sm:$0xff]   ;;  %v1922_v14 = vpop.permute.xlu0 %1921 }
 0x130   :  { %v2557_v56 = vrot.slane %v4126_v24, 7  ;;  %v2559_v40 = vrot.slane %v4127_v27, 7  ;;  %v2082_v51 = vrot.slane %v5749_v36, 1  ;;  %v2407_v31 = vadd.f32 %v2373_v3, %v5015_v16  ;;  %4382 = vmatprep.subr.bf16.mxu1 %v4647_v13  ;;  %v1918_v24 = vpop.permute.xlu1 %1917  ;;  %v4652_v27 = vld [vmem:[%s6668_s3 + $0x1f8] sm:$0xff]  }
 0x131   :  { %v2440_v53 = vmax.f32 %v2406_v25, 0.0  ;;  %v2282_v43 = vrot.slane %v5756_v55, 2  ;;  %v2284_v2 = vrot.slane %v5759_v42, 2  ;;  %v1973_v61 = vmul.f32 %v1914_v57, %v5001_v6  ;;  %v5803_v55 = vld [vmem:[#allocation2 + $0x30] sm:$0xff] }
 0x132   :  { %v2558_v0 = vrot.slane %v2557_v56, 4  ;;  %2623 = vst [vmem:[#allocation2] sm:$0xee] %v2557_v56  ;;  %v6703_v58 = vrot.slane %v5645_v1, 1  ;;  %v2083_v52 = vsel %vm301_vm1, %v2078_v46, %v2082_v51  ;;  %v2441_v28 = vmax.f32 %v2407_v31, 0.0  ;;  %4313 = vmatpush3.bf16.msra.mxu0 %v4646_v63 }
 0x133   :  { %v2173_v57 = vadd.f32 %v2083_v52, %v5642_v37  ;;  %v2283_v1 = vsel %vm522_vm2, %v2278_v12, %v2282_v43  ;;  %v2561_v13 = vrot.slane %v2559_v40, 4  ;;  %v2285_v3 = vsel %vm522_vm2, %v2280_v47, %v2284_v2  ;;  %4383 = vmatpush3.bf16.msra.mxu1 %v4648_v26  ;;  %v4653_v47 = vld [vmem:[%s6668_s3 + $0x1b8] sm:$0xff]   ;;  %4314 = vmatprep.subr.bf16.mxu0 %v4650_v32 }
 0x134   :  { %v2081_v17 = vsel %vm301_vm1, %v6703_v58, %v2080_v48  ;;  %v2560_v46 = vsel %vm5119_vm5, %v2558_v0, %v2559_v40  ;;  %v4128_v60 = vpack.c.bf16 %v2441_v28, %v2440_v53  ;;  %v5801_v25 = vmul.f32 %v1918_v24, %v5003_v7  ;;  %4384 = vmatprep.subr.bf16.mxu1 %v4652_v27 }
 0x135   :  { %v2172_v50 = vadd.f32 %v2081_v17, %v5639_v18  ;;  %v5798_v18 = vmul.f32 %v1918_v24, %v4999_v5  ;;  %2624 = vst [vmem:[#allocation2 + $0x8] sm:$0xff] %v2560_v46  ;;  %v2375_v12 = vadd.f32 %v2285_v3, %v2173_v57  ;;  %v2009_v42 = vmul.f32 %v1918_v24, %v5005_v8 }
 0x136   :  { %v2210_v56 = vmul.f32 %v1918_v24, %v5007_v9  ;;  %v5814_v40 = vmul.f32 %v1918_v24, %v5009_v10  ;;  %v5818_v63 = vcombine.low %v5234_v59, %v5306_v33  ;;  %v2562_v31 = vrot.slane %v4128_v60, 7  ;;  %v4657_v33 = vld [vmem:[%s6668_s3 + $0x240] sm:$0xff]   ;;  %4315 = vmatpush3.bf16.msra.mxu0 %v4651_v4 }
 0x137   :  { %v2374_v37 = vadd.f32 %v2283_v1, %v2172_v50  ;;  %v2409_v26 = vadd.f32 %v2375_v12, %v5015_v16  ;;  %v2084_v0 = vrot.slane %v5801_v25, 1  ;;  %v2086_v58 = vrot.slane %v2009_v42, 1  ;;  %4385 = vmatpush3.bf16.msra.mxu1 %v4653_v47  ;;  %v4661_v1 = vld [vmem:[%s6668_s3 + $0x2c0] sm:$0xff]   ;;  %4440 = vmatprep.subr.bf16.mxu0 %v4657_v33 }
 0x138   :  { %v2286_v17 = vrot.slane %v2210_v56, 2  ;;  %v2288_v52 = vrot.slane %v5814_v40, 2  ;;  %1190 = vmatmul.mubr.bf16.gmra.mrb[8].mxu0 %v5818_v63  ;;  %1440 = vmatmul.mubr.bf16.gmra.mrb[8].mxu1 %v5818_v63  ;;  %v5828_v59 = vcombine.high %v5803_v55, %v5345_v19  ;;  %v2563_v32 = vsel %vm5119_vm5, %v2561_v13, %v2562_v31  ;;  %v1926_v40 = vpop.permute.xlu1 %1925 }
 0x139   :  { %v2408_v53 = vadd.f32 %v2374_v37, %v5013_v15  ;;  %v2443_v50 = vmax.f32 %v2409_v26, 0.0  ;;  %v1975_v57 = vmul.f32 %v1918_v24, %v5001_v6  ;;  %2625 = vst [vmem:[#allocation2 + $0x10] sm:$0xff] %v2563_v32  ;;  %v2085_v27 = vsel %vm301_vm1, %v2080_v48, %v2084_v0  ;;  %4510 = vmatprep.subr.bf16.mxu1 %v4661_v1 }
 0x13a   :  { %v2087_v46 = vsel %vm301_vm1, %v2082_v51, %v2086_v58  ;;  %v2287_v13 = vsel %vm522_vm2, %v2282_v43, %v2286_v17  ;;  %v2289_v3 = vsel %vm522_vm2, %v2284_v2, %v2288_v52  ;;  %1197 = vmatprep.mubr.bf16.mxu0 %v5828_v59  ;;  %v2564_v24 = vrot.slane %v2562_v31, 4  ;;  %1447 = vmatprep.mubr.bf16.mxu1 %v5828_v59 }
 0x13b   :  { %v2442_v28 = vmax.f32 %v2408_v53, 0.0  ;;  %v2174_v37 = vadd.f32 %v2085_v27, %v5733_v39  ;;  %v2175_v12 = vadd.f32 %v2087_v46, %v1973_v61  ;;  %v1976_v48 = vmul.f32 %v1922_v14, %v4999_v5 }
 0x13c   :  { %v2010_v36 = vmul.f32 %v1922_v14, %v5003_v7  ;;  %v2011_v51 = vmul.f32 %v1922_v14, %v5005_v8  ;;  %v2212_v43 = vmul.f32 %v1922_v14, %v5007_v9  ;;  %v2213_v47 = vmul.f32 %v1922_v14, %v5009_v10 }
 0x13d   :  { %v4129_v60 = vpack.c.bf16 %v2443_v50, %v2442_v28  ;;  %v2376_v25 = vadd.f32 %v2287_v13, %v2174_v37  ;;  %v2377_v4 = vadd.f32 %v2289_v3, %v2175_v12  ;;  %v1977_v39 = vmul.f32 %v1922_v14, %v5001_v6 }
 0x13e   :  { %v2088_v61 = vrot.slane %v2010_v36, 1  ;;  %v2090_v42 = vrot.slane %v2011_v51, 1  ;;  %v2290_v56 = vrot.slane %v2212_v43, 2  ;;  %v5861_v33 = vmul.f32 %v1926_v40, %v4999_v5 }
 0x13f   :  { %v2565_v2 = vrot.slane %v4129_v60, 7  ;;  %v2410_v53 = vadd.f32 %v2376_v25, %v5013_v15  ;;  %v2411_v26 = vadd.f32 %v2377_v4, %v5015_v16  ;;  %v2292_v1 = vrot.slane %v2213_v47, 2  ;;  %v1930_v4 = vpop.permute.xlu0 %1929 }
 0x140   :  { %v2089_v32 = vsel %vm301_vm1, %v2084_v0, %v2088_v61  ;;  %v2091_v28 = vsel %vm301_vm1, %v2086_v58, %v2090_v42  ;;  %v2291_v50 = vsel %vm522_vm2, %v2286_v17, %v2290_v56  ;;  %v2012_v37 = vmul.f32 %v1926_v40, %v5003_v7 }
 0x141   :  { %v2566_v31 = vsel %vm5119_vm5, %v2564_v24, %v2565_v2  ;;  %v2444_v27 = vmax.f32 %v2410_v53, 0.0  ;;  %v2445_v46 = vmax.f32 %v2411_v26, 0.0  ;;  %v2176_v13 = vadd.f32 %v2089_v32, %v5798_v18 }
 0x142   :  { %2626 = vst [vmem:[#allocation2 + $0x18] sm:$0xff] %v2566_v31  ;;  %v2177_v3 = vadd.f32 %v2091_v28, %v1975_v57  ;;  %v2567_v24 = vrot.slane %v2565_v2, 4  ;;  %v2293_v60 = vsel %vm522_vm2, %v2288_v52, %v2292_v1  ;;  %v2013_v12 = vmul.f32 %v1926_v40, %v5005_v8 }
 0x143   :  { %v4130_v14 = vpack.c.bf16 %v2445_v46, %v2444_v27  ;;  %v2378_v36 = vadd.f32 %v2291_v50, %v2176_v13  ;;  %v2214_v58 = vmul.f32 %v1926_v40, %v5007_v9  ;;  %v1979_v17 = vmul.f32 %v1926_v40, %v5001_v6 }
 0x144   :  { %v2379_v0 = vadd.f32 %v2293_v60, %v2177_v3  ;;  %v2092_v51 = vrot.slane %v2012_v37, 1  ;;  %v2094_v43 = vrot.slane %v2013_v12, 1  ;;  %v2215_v25 = vmul.f32 %v1926_v40, %v5009_v10 }
 0x145   :  { %v2568_v18 = vrot.slane %v4130_v14, 7  ;;  %v2412_v57 = vadd.f32 %v2378_v36, %v5013_v15  ;;  %v2294_v2 = vrot.slane %v2214_v58, 2  ;;  %v1980_v26 = vmul.f32 %v1930_v4, %v4999_v5 }
 0x146   :  { %v2413_v52 = vadd.f32 %v2379_v0, %v5015_v16  ;;  %v2093_v47 = vsel %vm301_vm1, %v2088_v61, %v2092_v51  ;;  %v2095_v31 = vsel %vm301_vm1, %v2090_v42, %v2094_v43  ;;  %v2296_v53 = vrot.slane %v2215_v25, 2 }
 0x147   :  { %v2569_v32 = vsel %vm5119_vm5, %v2567_v24, %v2568_v18  ;;  %v2570_v28 = vrot.slane %v2568_v18, 4  ;;  %v2446_v50 = vmax.f32 %v2412_v57, 0.0  ;;  %v2178_v27 = vadd.f32 %v2093_v47, %v1976_v48 }
 0x148   :  { %v2447_v40 = vmax.f32 %v2413_v52, 0.0  ;;  %2627 = vst [vmem:[#allocation2 + $0x20] sm:$0xff] %v2569_v32  ;;  %v2179_v46 = vadd.f32 %v2095_v31, %v1977_v39  ;;  %v2295_v13 = vsel %vm522_vm2, %v2290_v56, %v2294_v2  ;;  %v2297_v3 = vsel %vm522_vm2, %v2292_v1, %v2296_v53  ;;  %v1934_v56 = vpop.permute.xlu1 %1933 }
 0x149   :  { %v2014_v61 = vmul.f32 %v1930_v4, %v5003_v7  ;;  %v2015_v42 = vmul.f32 %v1930_v4, %v5005_v8  ;;  %v2216_v37 = vmul.f32 %v1930_v4, %v5007_v9  ;;  %v2380_v12 = vadd.f32 %v2295_v13, %v2178_v27 }
 0x14a   :  { %v4131_v60 = vpack.c.bf16 %v2447_v40, %v2446_v50  ;;  %v2381_v14 = vadd.f32 %v2297_v3, %v2179_v46  ;;  %v1981_v24 = vmul.f32 %v1930_v4, %v5001_v6  ;;  %v2217_v36 = vmul.f32 %v1930_v4, %v5009_v10 }
 0x14b   :  { %v2096_v48 = vrot.slane %v2014_v61, 1  ;;  %v2098_v39 = vrot.slane %v2015_v42, 1  ;;  %v2298_v58 = vrot.slane %v2216_v37, 2  ;;  %v2414_v1 = vadd.f32 %v2380_v12, %v5013_v15 }
 0x14c   :  { %v2571_v0 = vrot.slane %v4131_v60, 7  ;;  %v2415_v25 = vadd.f32 %v2381_v14, %v5015_v16  ;;  %v2300_v18 = vrot.slane %v2217_v36, 2  ;;  %v5890_v57 = vmul.f32 %v1934_v56, %v4999_v5 }
 0x14d   :  { %v2097_v4 = vsel %vm301_vm1, %v2092_v51, %v2096_v48  ;;  %v2099_v31 = vsel %vm301_vm1, %v2094_v43, %v2098_v39  ;;  %v2448_v32 = vmax.f32 %v2414_v1, 0.0  ;;  %v2299_v46 = vsel %vm522_vm2, %v2294_v2, %v2298_v58 }
 0x14e   :  { %v5894_v52 = vsel %vm5119_vm5, %v2570_v28, %v2571_v0  ;;  %v2573_v47 = vrot.slane %v2571_v0, 4  ;;  %v2449_v50 = vmax.f32 %v2415_v25, 0.0  ;;  %v2180_v40 = vadd.f32 %v2097_v4, %v5861_v33 }
 0x14f   :  { %v2181_v27 = vadd.f32 %v2099_v31, %v1979_v17  ;;  %v2301_v13 = vsel %vm522_vm2, %v2296_v53, %v2300_v18  ;;  %v2016_v3 = vmul.f32 %v1934_v56, %v5003_v7  ;;  %v2017_v60 = vmul.f32 %v1934_v56, %v5005_v8 }
 0x150   :  { %v4132_v28 = vpack.c.bf16 %v2449_v50, %v2448_v32  ;;  %v2382_v61 = vadd.f32 %v2299_v46, %v2180_v40  ;;  %v2218_v51 = vmul.f32 %v1934_v56, %v5007_v9  ;;  %v2219_v12 = vmul.f32 %v1934_v56, %v5009_v10 }
 0x151   :  { %v2383_v42 = vadd.f32 %v2301_v13, %v2181_v27  ;;  %v2100_v37 = vrot.slane %v2016_v3, 1  ;;  %v2102_v43 = vrot.slane %v2017_v60, 1  ;;  %v5907_v33 = vcombine.low %v5803_v55, %v5345_v19 }
 0x152   :  { %v2574_v17 = vrot.slane %v4132_v28, 7  ;;  %v2416_v2 = vadd.f32 %v2382_v61, %v5013_v15  ;;  %v2302_v14 = vrot.slane %v2218_v51, 2  ;;  %v2304_v1 = vrot.slane %v2219_v12, 2 }
 0x153   :  { %v2417_v53 = vadd.f32 %v2383_v42, %v5015_v16  ;;  %v2101_v36 = vsel %vm301_vm1, %v2096_v48, %v2100_v37  ;;  %v2103_v0 = vsel %vm301_vm1, %v2098_v39, %v2102_v43  ;;  %1198 = vmatmul.mubr.bf16.gmra.mrb[12].mxu0 %v5907_v33  ;;  %1448 = vmatmul.mubr.bf16.gmra.mrb[12].mxu1 %v5907_v33  ;;  %v6704_v25 = vmax.f32 %v5309_v35, 0.0  ;;  %v1938_v35 = vpop.permute.xlu0 %1937 }
 0x154   :  { %v6705_v19 = vmax.f32 %v5312_v20, 0.0  ;;  %v5921_v4 = vsel %vm5119_vm5, %v2573_v47, %v2574_v17  ;;  %v2450_v31 = vmax.f32 %v2416_v2, 0.0  ;;  %v1983_v48 = vmul.f32 %v1934_v56, %v5001_v6 }
 0x155   :  { %v2451_v32 = vmax.f32 %v2417_v53, 0.0  ;;  %2629 = vst [vmem:[#allocation2 + $0x30] sm:$0xff] %v5921_v4  ;;  %v2182_v39 = vadd.f32 %v2101_v36, %v1980_v26  ;;  %v2183_v50 = vadd.f32 %v2103_v0, %v1981_v24  ;;  %v2303_v40 = vsel %vm522_vm2, %v2298_v58, %v2302_v14 }
 0x156   :  { %v4117_v55 = vpack.c.bf16 %v6705_v19, %v6704_v25  ;;  %v2305_v27 = vsel %vm522_vm2, %v2300_v18, %v2304_v1  ;;  %v2576_v46 = vrot.slane %v2574_v17, 4  ;;  %v1984_v3 = vmul.f32 %v1938_v35, %v4999_v5 }
 0x157   :  { %v4133_v13 = vpack.c.bf16 %v2451_v32, %v2450_v31  ;;  %v2384_v47 = vadd.f32 %v2303_v40, %v2182_v39  ;;  %v2385_v60 = vadd.f32 %v2305_v27, %v2183_v50  ;;  %v2018_v28 = vmul.f32 %v1938_v35, %v5003_v7  ;;  %v1942_v50 = vpop.permute.xlu1 %1941 }
 0x158   :  { %v849_v20 = vrot.slane %v4117_v55, 7  ;;  %v2019_v56 = vmul.f32 %v1938_v35, %v5005_v8  ;;  %v1985_v26 = vmul.f32 %v1938_v35, %v5001_v6  ;;  %v2220_v24 = vmul.f32 %v1938_v35, %v5007_v9 }
 0x159   :  { %v2577_v42 = vrot.slane %v4133_v13, 7  ;;  %v2418_v58 = vadd.f32 %v2384_v47, %v5013_v15  ;;  %v2419_v18 = vadd.f32 %v2385_v60, %v5015_v16  ;;  %v2104_v51 = vrot.slane %v2018_v28, 1 }
 0x15a   :  { %v851_v61 = vrot.slane %v849_v20, 4  ;;  %v2106_v12 = vrot.slane %v2019_v56, 1  ;;  %v5937_v17 = vsel %vm5119_vm5, %v5572_v34, %v849_v20  ;;  %v6706_v2 = vrot.slane %v5399_v23, 7  ;;  %v1946_v56 = vpop.permute.xlu0 %1945 }
 0x15b   :  { %v5947_v36 = vsel %vm5119_vm5, %v2576_v46, %v2577_v42  ;;  %v2221_v0 = vmul.f32 %v1938_v35, %v5009_v10  ;;  %v2452_v25 = vmax.f32 %v2418_v58, 0.0  ;;  %v2453_v19 = vmax.f32 %v2419_v18, 0.0 }
 0x15c   :  { %v5943_v53 = vsel %vm5119_vm5, %v851_v61, %v6706_v2  ;;  %v2105_v34 = vsel %vm301_vm1, %v2100_v37, %v2104_v51  ;;  %v2107_v23 = vsel %vm301_vm1, %v2102_v43, %v2106_v12  ;;  %v2306_v32 = vrot.slane %v2220_v24, 2 }
 0x15d   :  { %v5952_v55 = vcombine.high %v5937_v17, %v5943_v53  ;;  %v2184_v31 = vadd.f32 %v2105_v34, %v5890_v57  ;;  %v2308_v39 = vrot.slane %v2221_v0, 2  ;;  %v4134_v40 = vpack.c.bf16 %v2453_v19, %v2452_v25 }
 0x15e   :  { %v2579_v27 = vrot.slane %v2577_v42, 4  ;;  %v2185_v35 = vadd.f32 %v2107_v23, %v1983_v48  ;;  %v1986_v46 = vmul.f32 %v1942_v50, %v4999_v5  ;;  %v2307_v20 = vsel %vm522_vm2, %v2302_v14, %v2306_v32 }
 0x15f   :  { %6707 = vst [vmem:[#allocation19_spill] sm:$0xff] %v5952_v55  ;;  %1205 = vmatprep.mubr.bf16.mxu0 %v5952_v55  ;;  %1455 = vmatprep.mubr.bf16.mxu1 %v5952_v55  ;;  %v2309_v37 = vsel %vm522_vm2, %v2304_v1, %v2308_v39  ;;  %v1987_v43 = vmul.f32 %v1942_v50, %v5001_v6  ;;  %v2580_v13 = vrot.slane %v4134_v40, 7 }
 0x160   :  { %v2020_v57 = vmul.f32 %v1942_v50, %v5003_v7  ;;  %v2386_v47 = vadd.f32 %v2307_v20, %v2184_v31  ;;  %v2387_v60 = vadd.f32 %v2309_v37, %v2185_v35  ;;  %v2021_v28 = vmul.f32 %v1942_v50, %v5005_v8 }
 0x161   :  { %v2222_v42 = vmul.f32 %v1942_v50, %v5007_v9  ;;  %v2223_v48 = vmul.f32 %v1942_v50, %v5009_v10  ;;  %v1988_v24 = vmul.f32 %v1946_v56, %v4999_v5  ;;  %v5970_v14 = vsel %vm5119_vm5, %v2579_v27, %v2580_v13 }
 0x162   :  { %v2108_v61 = vrot.slane %v2020_v57, 1  ;;  %v5972_v1 = vrot.slane %v2580_v13, 4  ;;  %v2420_v58 = vadd.f32 %v2386_v47, %v5013_v15  ;;  %v2421_v18 = vadd.f32 %v2387_v60, %v5015_v16  ;;  %v1950_v47 = vpop.permute.xlu1 %1949 }
 0x163   :  { %v2110_v0 = vrot.slane %v2021_v28, 1  ;;  %v2310_v25 = vrot.slane %v2222_v42, 2  ;;  %v2312_v19 = vrot.slane %v2223_v48, 2  ;;  %v1989_v50 = vmul.f32 %v1946_v56, %v5001_v6 }
 0x164   :  { %v2109_v2 = vsel %vm301_vm1, %v2104_v51, %v2108_v61  ;;  %v2454_v34 = vmax.f32 %v2420_v58, 0.0  ;;  %v2455_v23 = vmax.f32 %v2421_v18, 0.0  ;;  %v2022_v20 = vmul.f32 %v1946_v56, %v5003_v7 }
 0x165   :  { %v2186_v31 = vadd.f32 %v2109_v2, %v1984_v3  ;;  %v2111_v40 = vsel %vm301_vm1, %v2106_v12, %v2110_v0  ;;  %v2311_v27 = vsel %vm522_vm2, %v2306_v32, %v2310_v25  ;;  %v2313_v35 = vsel %vm522_vm2, %v2308_v39, %v2312_v19 }
 0x166   :  { %v2187_v37 = vadd.f32 %v2111_v40, %v1985_v26  ;;  %v2023_v51 = vmul.f32 %v1946_v56, %v5005_v8  ;;  %v2224_v13 = vmul.f32 %v1946_v56, %v5007_v9  ;;  %v2112_v60 = vrot.slane %v2022_v20, 1 }
 0x167   :  { %v2388_v57 = vadd.f32 %v2311_v27, %v2186_v31  ;;  %v2225_v3 = vmul.f32 %v1946_v56, %v5009_v10  ;;  %v5986_v28 = vmul.f32 %v1950_v47, %v4999_v5  ;;  %v5989_v12 = vmul.f32 %v1950_v47, %v5001_v6 }
 0x168   :  { %v2389_v32 = vadd.f32 %v2313_v35, %v2187_v37  ;;  %v2114_v42 = vrot.slane %v2023_v51, 1  ;;  %v2314_v26 = vrot.slane %v2224_v13, 2  ;;  %v2113_v48 = vsel %vm301_vm1, %v2108_v61, %v2112_v60 }
 0x169   :  { %v2422_v39 = vadd.f32 %v2388_v57, %v5013_v15  ;;  %v2316_v58 = vrot.slane %v2225_v3, 2  ;;  %v5994_v18 = vmul.f32 %v1950_v47, %v5003_v7  ;;  %v5997_v2 = vmul.f32 %v1950_v47, %v5005_v8 }
 0x16a   :  { %v2423_v56 = vadd.f32 %v2389_v32, %v5015_v16  ;;  %v2115_v40 = vsel %vm301_vm1, %v2110_v0, %v2114_v42  ;;  %v2188_v27 = vadd.f32 %v2113_v48, %v1986_v46  ;;  %v2315_v20 = vsel %vm522_vm2, %v2310_v25, %v2314_v26 }
 0x16b   :  { %v2456_v31 = vmax.f32 %v2422_v39, 0.0  ;;  %v2189_v35 = vadd.f32 %v2115_v40, %v1987_v43  ;;  %v2317_v37 = vsel %vm522_vm2, %v2312_v19, %v2316_v58  ;;  %v2116_v61 = vrot.slane %v5994_v18, 1 }
 0x16c   :  { %v2457_v57 = vmax.f32 %v2423_v56, 0.0  ;;  %v2390_v51 = vadd.f32 %v2315_v20, %v2188_v27  ;;  %v2118_v13 = vrot.slane %v5997_v2, 1  ;;  %v6006_v3 = vmul.f32 %v1950_v47, %v5007_v9 }
 0x16d   :  { %v2391_v55 = vadd.f32 %v2317_v37, %v2189_v35  ;;  %v2117_v0 = vsel %vm301_vm1, %v2112_v60, %v2116_v61  ;;  %v6012_v46 = vmul.f32 %v1950_v47, %v5009_v10  ;;  %v6016_v43 = vcombine.low %v5937_v17, %v5943_v53 }
 0x16e   :  { %v2424_v25 = vadd.f32 %v2390_v51, %v5013_v15  ;;  %v2119_v19 = vsel %vm301_vm1, %v2114_v42, %v2118_v13  ;;  %v2190_v32 = vadd.f32 %v2117_v0, %v1988_v24  ;;  %v2318_v39 = vrot.slane %v6006_v3, 2 }
 0x16f   :  { %v2425_v48 = vadd.f32 %v2391_v55, %v5015_v16  ;;  %v2191_v56 = vadd.f32 %v2119_v19, %v1989_v50  ;;  %v2320_v60 = vrot.slane %v6012_v46, 2  ;;  %1206 = vmatmul.mubr.bf16.gmra.mrb[16].mxu0 %v6016_v43  ;;  %1456 = vmatmul.mubr.bf16.gmra.mrb[16].mxu1 %v6016_v43  ;;  %v6708_v17 = vmax.f32 %v5382_v45, 0.0 }
 0x170   :  { %v6709_v53 = vmax.f32 %v5385_v54, 0.0  ;;  %v2458_v40 = vmax.f32 %v2424_v25, 0.0  ;;  %v2319_v42 = vsel %vm522_vm2, %v2314_v26, %v2318_v39  ;;  %v6710_v24 = vmax.f32 %v5432_v38, 0.0 }
 0x171   :  { %v6711_v27 = vmax.f32 %v5443_v30, 0.0  ;;  %v4135_v50 = vpack.c.bf16 %v2455_v23, %v2454_v34  ;;  %v2459_v35 = vmax.f32 %v2425_v48, 0.0  ;;  %v2321_v20 = vsel %vm522_vm2, %v2316_v58, %v2320_v60 }
 0x172   :  { %v4119_v47 = vpack.c.bf16 %v6709_v53, %v6708_v17  ;;  %v2392_v37 = vadd.f32 %v2319_v42, %v2190_v32  ;;  %v2393_v3 = vadd.f32 %v2321_v20, %v2191_v56  ;;  %v4136_v45 = vpack.c.bf16 %v2457_v57, %v2456_v31  ;;  %v1954_v57 = vpop.permute.xlu0 %1953 }
 0x173   :  { %v4120_v55 = vpack.c.bf16 %v6711_v27, %v6710_v24  ;;  %v2583_v46 = vrot.slane %v4135_v50, 7  ;;  %v6045_v26 = vpack.c.bf16 %v2459_v35, %v2458_v40  ;;  %v1992_v32 = vmul.f32 %v1954_v57, %v4999_v5  ;;  %v1958_v24 = vpop.permute.xlu1 %1957 }
 0x174   :  { %v855_v51 = vrot.slane %v4119_v47, 7  ;;  %v6038_v54 = vadd.f32 %v2392_v37, %v5013_v15  ;;  %v6048_v34 = vadd.f32 %v2393_v3, %v5015_v16  ;;  %v2586_v31 = vrot.slane %v4136_v45, 7 }
 0x175   :  { %v858_v0 = vrot.slane %v4120_v55, 7  ;;  %v6053_v23 = vsel %vm5119_vm5, %v5972_v1, %v2583_v46  ;;  %v2585_v58 = vrot.slane %v2583_v46, 4  ;;  %v6681_v19 = vrot.slane %v6045_v26, 7 }
 0x176   :  { %v6043_v38 = vsel %vm5119_vm5, %v5737_v22, %v855_v51  ;;  %v857_v30 = vrot.slane %v855_v51, 4  ;;  %v2588_v17 = vrot.slane %v2586_v31, 4  ;;  %v1993_v53 = vmul.f32 %v1954_v57, %v5001_v6 }
 0x177   :  { %v6069_v1 = vsel %vm5119_vm5, %v2585_v58, %v2586_v31  ;;  %v2026_v47 = vmul.f32 %v1954_v57, %v5003_v7  ;;  %v2027_v40 = vmul.f32 %v1954_v57, %v5005_v8  ;;  %v2228_v42 = vmul.f32 %v1954_v57, %v5007_v9 }
 0x178   :  { %v6058_v22 = vsel %vm5119_vm5, %v857_v30, %v858_v0  ;;  %v6080_v27 = vsel %vm5119_vm5, %v2588_v17, %v6681_v19  ;;  %v2229_v55 = vmul.f32 %v1954_v57, %v5009_v10  ;;  %v1994_v50 = vmul.f32 %v1958_v24, %v4999_v5  ;;  %v1962_v19 = vpop.permute.xlu0 %1961 }
 0x179   :  { %v6065_v56 = vcombine.high %v6043_v38, %v6058_v22  ;;  %v6085_v35 = vrot.slane %v858_v0, 4  ;;  %v2120_v20 = vrot.slane %v2026_v47, 1  ;;  %v2122_v37 = vrot.slane %v2027_v40, 1 }
 0x17a   :  { %v2322_v51 = vrot.slane %v2228_v42, 2  ;;  %v1995_v3 = vmul.f32 %v1958_v24, %v5001_v6  ;;  %v2324_v45 = vrot.slane %v2229_v55, 2  ;;  %v2028_v46 = vmul.f32 %v1958_v24, %v5003_v7 }
 0x17b   :  { %6712 = vst [vmem:[#allocation20_spill] sm:$0xff] %v6065_v56  ;;  %1213 = vmatprep.mubr.bf16.mxu0 %v6065_v56  ;;  %1463 = vmatprep.mubr.bf16.mxu1 %v6065_v56  ;;  %v2029_v30 = vmul.f32 %v1958_v24, %v5005_v8  ;;  %v2230_v58 = vmul.f32 %v1958_v24, %v5007_v9 }
 0x17c   :  { %v2121_v31 = vsel %vm301_vm1, %v2116_v61, %v2120_v20  ;;  %v2123_v0 = vsel %vm301_vm1, %v2118_v13, %v2122_v37  ;;  %v2323_v57 = vsel %vm522_vm2, %v2318_v39, %v2322_v51  ;;  %v2231_v17 = vmul.f32 %v1958_v24, %v5009_v10 }
 0x17d   :  { %v2192_v47 = vadd.f32 %v2121_v31, %v5986_v28  ;;  %v2193_v40 = vadd.f32 %v2123_v0, %v5989_v12  ;;  %v2325_v42 = vsel %vm522_vm2, %v2320_v60, %v2324_v45  ;;  %v2124_v55 = vrot.slane %v2028_v46, 1 }
 0x17e   :  { %v2126_v48 = vrot.slane %v2029_v30, 1  ;;  %v2326_v18 = vrot.slane %v2230_v58, 2  ;;  %v2328_v25 = vrot.slane %v2231_v17, 2  ;;  %v1996_v61 = vmul.f32 %v1962_v19, %v4999_v5 }
 0x17f   :  { %v2394_v2 = vadd.f32 %v2323_v57, %v2192_v47  ;;  %v2395_v56 = vadd.f32 %v2325_v42, %v2193_v40  ;;  %v2125_v13 = vsel %vm301_vm1, %v2120_v20, %v2124_v55  ;;  %v1997_v39 = vmul.f32 %v1962_v19, %v5001_v6 }
 0x180   :  { %v2127_v24 = vsel %vm301_vm1, %v2122_v37, %v2126_v48  ;;  %v2194_v28 = vadd.f32 %v2125_v13, %v1992_v32  ;;  %v2327_v12 = vsel %vm522_vm2, %v2322_v51, %v2326_v18  ;;  %v2329_v60 = vsel %vm522_vm2, %v2324_v45, %v2328_v25 }
 0x181   :  { %v2428_v46 = vadd.f32 %v2394_v2, %v5013_v15  ;;  %v2429_v30 = vadd.f32 %v2395_v56, %v5015_v16  ;;  %v2195_v58 = vadd.f32 %v2127_v24, %v1993_v53  ;;  %v2030_v5 = vmul.f32 %v1962_v19, %v5003_v7 }
 0x182   :  { %v2396_v31 = vadd.f32 %v2327_v12, %v2194_v28  ;;  %v2031_v0 = vmul.f32 %v1962_v19, %v5005_v8  ;;  %v2232_v20 = vmul.f32 %v1962_v19, %v5007_v9  ;;  %v2233_v6 = vmul.f32 %v1962_v19, %v5009_v10 }
 0x183   :  { %v2462_v37 = vmax.f32 %v2428_v46, 0.0  ;;  %v2463_v32 = vmax.f32 %v2429_v30, 0.0  ;;  %v2397_v57 = vadd.f32 %v2329_v60, %v2195_v58  ;;  %v2128_v51 = vrot.slane %v2030_v5, 1 }
 0x184   :  { %v2430_v45 = vadd.f32 %v2396_v31, %v5013_v15  ;;  %v2130_v17 = vrot.slane %v2031_v0, 1  ;;  %v2330_v47 = vrot.slane %v2232_v20, 2  ;;  %v2332_v40 = vrot.slane %v2233_v6, 2 }
 0x185   :  { %v2431_v56 = vadd.f32 %v2397_v57, %v5015_v16  ;;  %v2129_v7 = vsel %vm301_vm1, %v2124_v55, %v2128_v51  ;;  %v2198_v53 = vadd.f32 %v2128_v51, %v1996_v61  ;;  %v6119_v8 = vcombine.low %v6043_v38, %v6058_v22 }
 0x186   :  { %v2464_v9 = vmax.f32 %v2430_v45, 0.0  ;;  %v2131_v10 = vsel %vm301_vm1, %v2126_v48, %v2130_v17  ;;  %v2196_v19 = vadd.f32 %v2129_v7, %v1994_v50  ;;  %v2199_v42 = vadd.f32 %v2130_v17, %v1997_v39 }
 0x187   :  { %v2465_v2 = vmax.f32 %v2431_v56, 0.0  ;;  %v2197_v13 = vadd.f32 %v2131_v10, %v1995_v3  ;;  %v2331_v24 = vsel %vm522_vm2, %v2326_v18, %v2330_v47  ;;  %v2333_v28 = vsel %vm522_vm2, %v2328_v25, %v2332_v40  ;;  %1214 = vmatmul.mubr.bf16.gmra.mrb[20].mxu0 %v6119_v8  ;;  %1464 = vmatmul.mubr.bf16.gmra.mrb[20].mxu1 %v6119_v8 }
 0x188   :  { %v2398_v55 = vadd.f32 %v2331_v24, %v2196_v19  ;;  %v2400_v61 = vadd.f32 %v2330_v47, %v2198_v53  ;;  %v2401_v12 = vadd.f32 %v2332_v40, %v2199_v42  ;;  %v6713_v38 = vmax.f32 %v5448_v41, 0.0  ;;  %v6722_v40 = vld [vmem:[#allocation10_spill] sm:$0xff]  ;;  %v6728_v53 = vld [vmem:[#allocation16_spill] sm:$0xff] }
 0x189   :  { %v6714_v22 = vmax.f32 %v5451_v29, 0.0  ;;  %v6715_v50 = vmax.f32 %v5517_v49, 0.0  ;;  %v6716_v3 = vmax.f32 %v5520_v44, 0.0  ;;  %v2399_v18 = vadd.f32 %v2333_v28, %v2197_v13 }
 0x18a   :  { %v6717_v25 = vmax.f32 %v5491_v21, 0.0  ;;  %v6718_v60 = vmax.f32 %v5494_v62, 0.0  ;;  %v6719_v30 = vmax.f32 %v6038_v54, 0.0  ;;  %v6720_v58 = vmax.f32 %v6048_v34, 0.0 }
 0x18b   :  { %v4121_v48 = vpack.c.bf16 %v6714_v22, %v6713_v38  ;;  %v4125_v39 = vpack.c.bf16 %v6716_v3, %v6715_v50  ;;  %v2432_v41 = vadd.f32 %v2398_v55, %v5013_v15  ;;  %v2434_v29 = vadd.f32 %v2400_v61, %v5013_v15 }
 0x18c   :  { %v4122_v46 = vpack.c.bf16 %v6718_v60, %v6717_v25  ;;  %v4138_v5 = vpack.c.bf16 %v6720_v58, %v6719_v30  ;;  %v2435_v49 = vadd.f32 %v2401_v12, %v5015_v16  ;;  %v2433_v44 = vadd.f32 %v2399_v18, %v5015_v16  ;;  %v6724_v16 = vld [vmem:[#allocation11_spill] sm:$0xff] }
 0x18d   :  { %v861_v31 = vrot.slane %v4121_v48, 7  ;;  %v4139_v20 = vpack.c.bf16 %v2463_v32, %v2462_v37  ;;  %v6721_v21 = vrot.slane %v6045_v26, 7  ;;  %v4140_v6 = vpack.c.bf16 %v2465_v2, %v2464_v9  ;;  %v6726_v32 = vld [vmem:[#allocation15_spill] sm:$0xff] }
 0x18e   :  { %v864_v0 = vrot.slane %v4122_v46, 7  ;;  %v2466_v57 = vmax.f32 %v2432_v41, 0.0  ;;  %v2468_v54 = vmax.f32 %v2434_v29, 0.0  ;;  %v2467_v51 = vmax.f32 %v2433_v44, 0.0 }
 0x18f   :  { %v2591_v62 = vrot.slane %v6721_v21, 4  ;;  %v862_v34 = vsel %vm5119_vm5, %v6085_v35, %v861_v31  ;;  %v863_v45 = vrot.slane %v861_v31, 4  ;;  %v2592_v15 = vrot.slane %v4138_v5, 7 }
 0x190   :  { %v2595_v17 = vrot.slane %v4139_v20, 7  ;;  %v2469_v47 = vmax.f32 %v2435_v49, 0.0  ;;  %v6723_v56 = vmax.f32 %v6722_v40, 0.0  ;;  %v6725_v7 = vmax.f32 %v6724_v16, 0.0  ;;  %v6731_v40 = vld [vmem:[#allocation13_spill] sm:$0xff]  ;;  %v6732_v16 = vld [vmem:[#allocation14_spill] sm:$0xff] }
 0x191   :  { %v6727_v26 = vmax.f32 %v6726_v32, 0.0  ;;  %v6729_v9 = vmax.f32 %v6728_v53, 0.0  ;;  %v866_v19 = vrot.slane %v864_v0, 4  ;;  %v4141_v42 = vpack.c.bf16 %v2467_v51, %v2466_v57  ;;  %v6730_v51 = vld [vmem:[#allocation12_spill] sm:$0xff]  ;;  %v4668_v32 = vld [vmem:[%s6668_s3 + $0x250] sm:$0xff]  }
 0x192   :  { %v4123_v37 = vpack.c.bf16 %v6725_v7, %v6723_v56  ;;  %v865_v35 = vsel %vm5119_vm5, %v863_v45, %v864_v0  ;;  %v2593_v2 = vsel %vm5119_vm5, %v2591_v62, %v2592_v15  ;;  %v2594_v13 = vrot.slane %v2592_v15, 4  ;;  %v6240_v45 = vld [vmem:[#allocation2] ss:$8 sps:$4 sm:$0xff]   ;;  %v6253_v56 = vld [vmem:[#allocation2 + $0x14] ss:$8 sps:$4 sm:$0xff]  }
 0x193   :  { %v4124_v10 = vpack.c.bf16 %v6729_v9, %v6727_v26  ;;  %v6163_v24 = vcombine.high %v862_v34, %v865_v35  ;;  %v6165_v28 = vcombine.low %v862_v34, %v865_v35  ;;  %v2597_v38 = vrot.slane %v2595_v17, 4  ;;  %v4662_v15 = vld [vmem:[%s6668_s3 + $0x280] sm:$0xff]   ;;  %v4665_v7 = vld [vmem:[%s6668_s3 + $0x208] sm:$0xff]   ;;  %v4670_v26 = vld [vmem:[%s6668_s3 + $0x2d0] sm:$0xff]  }
 0x194   :  { %v867_v55 = vrot.slane %v4123_v37, 7  ;;  %v2596_v61 = vsel %vm5119_vm5, %v2594_v13, %v2595_v17  ;;  %v2598_v22 = vrot.slane %v4140_v6, 7  ;;  %v4142_v48 = vpack.c.bf16 %v2469_v47, %v2468_v54  ;;  %v4664_v17 = vld [vmem:[%s6668_s3 + $0x248] sm:$0xff]   ;;  %v2644_v53 = vld [vmem:[#allocation2 + $0x20] sm:$0xff]  ;;  %v6269_v9 = vld [vmem:[#allocation2 + $0x10] ss:$8 sps:$4 sm:$0xff]  }
 0x195   :  { %v870_v12 = vrot.slane %v4124_v10, 7  ;;  %1221 = vmatprep.mubr.bf16.mxu0 %v6163_v24  ;;  %1471 = vmatprep.mubr.bf16.mxu1 %v6163_v24  ;;  %v2601_v18 = vrot.slane %v4141_v42, 7  ;;  %v873_v25 = vrot.slane %v4125_v39, 7  ;;  %v6181_v5 = vcombine.high %v5921_v4, %v5947_v36  ;;  %v4666_v47 = vld [vmem:[%s6668_s3 + $0x2c8] sm:$0xff]   ;;  %v4669_v10 = vld [vmem:[%s6668_s3 + $0x210] sm:$0xff]   ;;  %v4672_v35 = vld [vmem:[%s6668_s3 + $0x258] sm:$0xff]  }
 0x196   :  { %v868_v50 = vsel %vm5119_vm5, %v866_v19, %v867_v55  ;;  %v869_v3 = vrot.slane %v867_v55, 4  ;;  %1222 = vmatmul.mubr.bf16.gmra.mrb[24].mxu0 %v6165_v28  ;;  %1472 = vmatmul.mubr.bf16.gmra.mrb[24].mxu1 %v6165_v28  ;;  %v2599_v60 = vsel %vm5119_vm5, %v2597_v38, %v2598_v22  ;;  %v2600_v46 = vrot.slane %v2598_v22, 4  ;;  %v4667_v37 = vld [vmem:[%s6668_s3 + $0x288] sm:$0xff]   ;;  %v4671_v19 = vld [vmem:[%s6668_s3 + $0x290] sm:$0xff]   ;;  %v4676_v38 = vld [vmem:[%s6668_s3 + $0x260] sm:$0xff]  }
 0x197   :  { %v872_v30 = vrot.slane %v870_v12, 4  ;;  %v6185_v41 = vcombine.low %v5921_v4, %v5947_v36  ;;  %v2604_v44 = vrot.slane %v4142_v48, 7  ;;  %v6197_v0 = vcombine.high %v5970_v14, %v6053_v23  ;;  %v6733_v13 = vld [vmem:[#allocation17_spill] sm:$0xff]  ;;  %v6734_v55 = vld [vmem:[#allocation18_spill] sm:$0xff]  ;;  %v4678_v22 = vld [vmem:[%s6668_s3 + $0x2e0] sm:$0xff]  }
 0x198   :  { %v871_v58 = vsel %vm5119_vm5, %v869_v3, %v870_v12  ;;  %v2602_v29 = vsel %vm5119_vm5, %v2600_v46, %v2601_v18  ;;  %v6201_v4 = vcombine.low %v5970_v14, %v6053_v23  ;;  %v6205_v36 = vcombine.high %v6069_v1, %v6080_v27  ;;  %v4675_v12 = vld [vmem:[%s6668_s3 + $0x298] sm:$0xff]   ;;  %v4679_v3 = vld [vmem:[%s6668_s3 + $0x2a0] sm:$0xff]   ;;  %v4685_v46 = vld [vmem:[%s6668_s3 + $0x230] sm:$0xff]  }
 0x199   :  { %v6187_v39 = vcombine.high %v868_v50, %v871_v58  ;;  %v6191_v49 = vcombine.low %v868_v50, %v871_v58  ;;  %v874_v31 = vsel %vm5119_vm5, %v872_v30, %v873_v25  ;;  %v2603_v20 = vrot.slane %v2601_v18, 4  ;;  %v4677_v50 = vld [vmem:[%s6668_s3 + $0x220] sm:$0xff]   ;;  %v4680_v18 = vld [vmem:[%s6668_s3 + $0x268] sm:$0xff]   ;;  %v4687_v30 = vld [vmem:[%s6668_s3 + $0x2b0] sm:$0xff]  }
 0x19a   :  { %908 = vst [vmem:[#allocation2 + $0x80] sm:$0x33] %v874_v31  ;;  %v6211_v21 = vcombine.low %v6069_v1, %v6080_v27  ;;  %v6213_v62 = vcombine.high %v2593_v2, %v2596_v61  ;;  %v6215_v6 = vcombine.low %v2593_v2, %v2596_v61  ;;  %v6217_v57 = vcombine.high %v2599_v60, %v2602_v29  ;;  %v6229_v1 = vld [vmem:[#allocation2 + $0x4] ss:$8 sps:$4 sm:$0xff]   ;;  %v4674_v2 = vld [vmem:[%s6668_s3 + $0x2d8] sm:$0xff]  }
 0x19b   :  { %1229 = vmatprep.mubr.bf16.mxu0 %v6187_v39  ;;  %1479 = vmatprep.mubr.bf16.mxu1 %v6187_v39  ;;  %v6219_v14 = vcombine.low %v2599_v60, %v2602_v29  ;;  %v2605_v23 = vsel %vm5119_vm5, %v2603_v20, %v2604_v44  ;;  %v6278_v42 = vcombine.high %v2644_v53, %v5894_v52  ;;  %v4673_v61 = vld [vmem:[%s6668_s3 + $0x218] sm:$0xff]   ;;  %v4681_v25 = vld [vmem:[%s6668_s3 + $0x228] sm:$0xff]  }
 0x19c   :  { %v6303_v48 = vcombine.low %v2644_v53, %v5894_v52  ;;  %v4682_v52 = vld [vmem:[%s6668_s3 + $0x2e8] sm:$0xff]   ;;  %v4689_v58 = vld [vmem:[%s6668_s3 + $0x278] sm:$0xff]  }
 0x19d   :  { %v4683_v60 = vld [vmem:[%s6668_s3 + $0x2a8] sm:$0xff]   ;;  %v4692_v29 = vld [vmem:[%s6668_s3 + $0x2f8] sm:$0xff]  }
 0x19e   :  { %1230 = vmatmul.mubr.bf16.gmra.mrb[28].mxu0 %v6191_v49  ;;  %1480 = vmatmul.mubr.bf16.gmra.mrb[28].mxu1 %v6191_v49  ;;  %v6735_v31 = vld [vmem:[#allocation19_spill] sm:$0xff] }
 0x19f   :  { %v4690_v44 = vld [vmem:[%s6668_s3 + $0x238] sm:$0xff]  }
 0x1a0   :  { %v4693_v20 = vld [vmem:[%s6668_s3 + $0x2b8] sm:$0xff]  }
 0x1a1   :  { %v925_v54 = vld [vmem:[#allocation2 + $0x80] sm:$0xff] }
 0x1a2   :  { %v6225_v34 = vcombine.high %v925_v54, %v925_v54  ;;  %2639 = vst [vmem:[#allocation2 + $0x80] sm:$0x33] %v2605_v23  ;;  %v6231_v27 = vcombine.low %v925_v54, %v925_v54 }
 0x1a4   :  { %1237 = vmatprep.mubr.bf16.mxu0 %v6225_v34  ;;  %1487 = vmatprep.mubr.bf16.mxu1 %v6225_v34 }
 0x1a6   :  { %1238 = vmatmul.mubr.bf16.gmra.mrb[32].mxu0 %v6231_v27  ;;  %1488 = vmatmul.mubr.bf16.gmra.mrb[32].mxu1 %v6231_v27 }
 0x1a7   :  { %1740 = vmatprep.mubr.bf16.mxu0 %v6730_v51  ;;  %2905 = vmatprep.mubr.bf16.mxu1 %v6229_v1 }
 0x1ae   :  { %1741 = vmatmul.mubr.bf16.vlgmr.msra.gmra.mrb[36].mxu0 %v6731_v40  ;;  %2906 = vmatmul.mubr.bf16.vlgmr.msra.gmra.mrb[36].mxu1 %v6240_v45 }
 0x1af   :  { %4441 = vmatpush3.bf16.msra.mxu0 %v4658_v11  ;;  %1748 = vmatprep.mubr.bf16.mxu0 %v6732_v16 }
 0x1b0   :  { %2913 = vmatprep.mubr.bf16.mxu1 %v6253_v56  ;;  %4511 = vmatpush3.bf16.msra.mxu1 %v4662_v15 }
 0x1b1   :  { %4442 = vmatprep.subr.bf16.mxu0 %v4664_v17  ;;  %4512 = vmatprep.subr.bf16.mxu1 %v4666_v47 }
 0x1b3   :  { %4443 = vmatpush3.bf16.msra.mxu0 %v4665_v7 }
 0x1b4   :  { %4513 = vmatpush3.bf16.msra.mxu1 %v4667_v37  ;;  %4444 = vmatprep.subr.bf16.mxu0 %v4668_v32 }
 0x1b5   :  { %4514 = vmatprep.subr.bf16.mxu1 %v4670_v26 }
 0x1b6   :  { %1749 = vmatmul.mubr.bf16.gmra.mrb[40].mxu0 %v6733_v13  ;;  %2914 = vmatmul.mubr.bf16.gmra.mrb[40].mxu1 %v6269_v9 }
 0x1b7   :  { %1756 = vmatprep.mubr.bf16.mxu0 %v6734_v55  ;;  %2921 = vmatprep.mubr.bf16.mxu1 %v6278_v42 }
 0x1b8   :  { %4445 = vmatpush3.bf16.msra.mxu0 %v4669_v10  ;;  %4515 = vmatpush3.bf16.msra.mxu1 %v4671_v19 }
 0x1b9   :  { %4446 = vmatprep.subr.bf16.mxu0 %v4672_v35  ;;  %4516 = vmatprep.subr.bf16.mxu1 %v4674_v2 }
 0x1bc   :  { %4447 = vmatpush3.bf16.msra.mxu0 %v4673_v61  ;;  %4517 = vmatpush3.bf16.msra.mxu1 %v4675_v12 }
 0x1bd   :  { %4448 = vmatprep.subr.bf16.mxu0 %v4676_v38  ;;  %4518 = vmatprep.subr.bf16.mxu1 %v4678_v22 }
 0x1be   :  { %1757 = vmatmul.mubr.bf16.gmra.mrb[44].mxu0 %v5818_v63  ;;  %2922 = vmatmul.mubr.bf16.gmra.mrb[44].mxu1 %v6303_v48  ;;  %v4684_v63 = vld [vmem:[%s6668_s3 + $0x270] sm:$0xff]  }
 0x1bf   :  { %1764 = vmatprep.mubr.bf16.mxu0 %v5828_v59  ;;  %2929 = vmatprep.mubr.bf16.mxu1 %v6181_v5  ;;  %v4686_v59 = vld [vmem:[%s6668_s3 + $0x2f0] sm:$0xff]  }
 0x1c0   :  { %4449 = vmatpush3.bf16.msra.mxu0 %v4677_v50  ;;  %4519 = vmatpush3.bf16.msra.mxu1 %v4679_v3 }
 0x1c1   :  { %4450 = vmatprep.subr.bf16.mxu0 %v4680_v18  ;;  %4520 = vmatprep.subr.bf16.mxu1 %v4682_v52 }
 0x1c4   :  { %4451 = vmatpush3.bf16.msra.mxu0 %v4681_v25  ;;  %4521 = vmatpush3.bf16.msra.mxu1 %v4683_v60 }
 0x1c5   :  { %4452 = vmatprep.subr.bf16.mxu0 %v4684_v63  ;;  %4522 = vmatprep.subr.bf16.mxu1 %v4686_v59 }
 0x1c6   :  { %1765 = vmatmul.mubr.bf16.gmra.mrb[48].mxu0 %v5907_v33  ;;  %2930 = vmatmul.mubr.bf16.gmra.mrb[48].mxu1 %v6185_v41  ;;  %v6736_v33 = vld [vmem:[#allocation20_spill] sm:$0xff] }
 0x1c7   :  { %1772 = vmatprep.mubr.bf16.mxu0 %v6735_v31  ;;  %2937 = vmatprep.mubr.bf16.mxu1 %v6197_v0 }
 0x1c8   :  { %4453 = vmatpush3.bf16.msra.mxu0 %v4685_v46  ;;  %4523 = vmatpush3.bf16.msra.mxu1 %v4687_v30 }
 0x1c9   :  { %4454 = vmatprep.subr.bf16.mxu0 %v4689_v58  ;;  %4524 = vmatprep.subr.bf16.mxu1 %v4692_v29 }
 0x1cc   :  { %4455 = vmatpush3.bf16.msra.mxu0 %v4690_v44  ;;  %4525 = vmatpush3.bf16.msra.mxu1 %v4693_v20 }
 0x1ce   :  { %1773 = vmatmul.mubr.bf16.gmra.mrb[52].mxu0 %v6016_v43  ;;  %2938 = vmatmul.mubr.bf16.gmra.mrb[52].mxu1 %v6201_v4  ;;  %v2656_v43 = vld [vmem:[#allocation2 + $0x80] sm:$0xff] }
 0x1cf   :  { %1780 = vmatprep.mubr.bf16.mxu0 %v6736_v33  ;;  %2945 = vmatprep.mubr.bf16.mxu1 %v6205_v36  ;;  %v6367_v23 = vcombine.high %v2656_v43, %v2656_v43 }
 0x1d6   :  { %1781 = vmatmul.mubr.bf16.gmra.mrb[56].mxu0 %v6119_v8  ;;  %2946 = vmatmul.mubr.bf16.gmra.mrb[56].mxu1 %v6211_v21  ;;  %v6373_v8 = vcombine.low %v2656_v43, %v2656_v43 }
 0x1d7   :  { %1788 = vmatprep.mubr.bf16.mxu0 %v6163_v24  ;;  %2953 = vmatprep.mubr.bf16.mxu1 %v6213_v62 }
 0x1de   :  { %1789 = vmatmul.mubr.bf16.gmra.mrb[60].mxu0 %v6165_v28  ;;  %2954 = vmatmul.mubr.bf16.gmra.mrb[60].mxu1 %v6215_v6 }
 0x1df   :  { %1796 = vmatprep.mubr.bf16.mxu0 %v6187_v39  ;;  %2961 = vmatprep.mubr.bf16.mxu1 %v6217_v57 }
 0x1e6   :  { %1797 = vmatmul.mubr.bf16.gmra.mrb[64].mxu0 %v6191_v49  ;;  %2962 = vmatmul.mubr.bf16.gmra.mrb[64].mxu1 %v6219_v14 }
 0x1e7   :  { %1804 = vmatprep.mubr.bf16.mxu0 %v6225_v34  ;;  %2969 = vmatprep.mubr.bf16.mxu1 %v6367_v23 }
 0x1eb   :  { %v4176_v24 = vpop.f32.mrb[0].mxu0 }
 0x1ec   :  { %v4246_v28 = vpop.f32.mrb[0].mxu1  ;;  %v4177_v39 = vpop.f32.mrb[1].mxu0 }
 0x1ed   :  { %v4247_v49 = vpop.f32.mrb[1].mxu1  ;;  %v4178_v54 = vadd.f32 %v4177_v39, %v4176_v24  ;;  %v4179_v11 = vpop.f32.mrb[2].mxu0 }
 0x1ee   :  { %1805 = vmatmul.mubr.bf16.gmra.mrb[68].mxu0 %v6231_v27  ;;  %2970 = vmatmul.mubr.bf16.gmra.mrb[68].mxu1 %v6373_v8  ;;  %v4248_v51 = vadd.f32 %v4247_v49, %v4246_v28  ;;  %v4249_v34 = vpop.f32.mrb[2].mxu1  ;;  %v4180_v15 = vpop.f32.mrb[3].mxu0 }
 0x1ef   :  { %3155 = vmatprep.mubr.bf16.mxu0 %v6229_v1  ;;  %3472 = vmatprep.mubr.bf16.mxu1 %v6229_v1  ;;  %v4250_v17 = vpop.f32.mrb[3].mxu1  ;;  %v4181_v27 = vadd.f32 %v4180_v15, %v4179_v11 }
 0x1f0   :  { %v4251_v47 = vadd.f32 %v4250_v17, %v4249_v34  ;;  %v1512_v1 = vrot.slane %v4248_v51, 1 }
 0x1f2   :  { %v1513_v40 = vrot.slane %v4251_v47, 1 }
 0x1f3   :  { %v4182_v7 = vpop.f32.mrb[4].mxu0 }
 0x1f4   :  { %v1514_v16 = vsel %vm301_vm1, %v1512_v1, %v1513_v40  ;;  %v4252_v37 = vpop.f32.mrb[4].mxu1  ;;  %v4183_v26 = vpop.f32.mrb[5].mxu0 }
 0x1f5   :  { %v6384_v32 = vadd.f32 %v4178_v54, %v1514_v16  ;;  %v4253_v53 = vpop.f32.mrb[5].mxu1  ;;  %v4184_v10 = vadd.f32 %v4183_v26, %v4182_v7  ;;  %v4185_v35 = vpop.f32.mrb[6].mxu0 }
 0x1f6   :  { %3156 = vmatmul.mubr.bf16.vlgmr.msra.gmra.mrb[72].mxu0 %v6240_v45  ;;  %3473 = vmatmul.mubr.bf16.vlgmr.msra.gmra.mrb[72].mxu1 %v6240_v45  ;;  %v4254_v19 = vadd.f32 %v4253_v53, %v4252_v37  ;;  %v4255_v45 = vpop.f32.mrb[6].mxu1  ;;  %v4186_v2 = vpop.f32.mrb[7].mxu0 }
 0x1f7   :  { %3163 = vmatprep.mubr.bf16.mxu0 %v6253_v56  ;;  %3480 = vmatprep.mubr.bf16.mxu1 %v6253_v56  ;;  %v4256_v13 = vpop.f32.mrb[7].mxu1  ;;  %v4187_v55 = vadd.f32 %v4186_v2, %v4185_v35 }
 0x1f8   :  { %v1515_v56 = vrot.slane %v4254_v19, 1  ;;  %v4257_v61 = vadd.f32 %v4256_v13, %v4255_v45 }
 0x1fa   :  { %v1516_v12 = vsel %vm301_vm1, %v1513_v40, %v1515_v56  ;;  %v1517_v38 = vrot.slane %v4257_v61, 1 }
 0x1fb   :  { %v6391_v22 = vadd.f32 %v4181_v27, %v1516_v12 }
 0x1fc   :  { %v1518_v50 = vsel %vm301_vm1, %v1515_v56, %v1517_v38 }
 0x1fd   :  { %v6394_v3 = vadd.f32 %v4184_v10, %v1518_v50 }
 0x1fe   :  { %3164 = vmatmul.mubr.bf16.gmra.mrb[76].mxu0 %v6269_v9  ;;  %3481 = vmatmul.mubr.bf16.gmra.mrb[76].mxu1 %v6269_v9 }
 0x1ff   :  { %3171 = vmatprep.mubr.bf16.mxu0 %v6278_v42  ;;  %3488 = vmatprep.mubr.bf16.mxu1 %v6278_v42 }
 0x206   :  { %3172 = vmatmul.mubr.bf16.gmra.mrb[80].mxu0 %v6303_v48  ;;  %3489 = vmatmul.mubr.bf16.gmra.mrb[80].mxu1 %v6303_v48 }
 0x207   :  { %3179 = vmatprep.mubr.bf16.mxu0 %v6181_v5  ;;  %3496 = vmatprep.mubr.bf16.mxu1 %v6181_v5 }
 0x20b   :  { %v4188_v9 = vpop.f32.mrb[8].mxu0  ;;  %v4258_v42 = vpop.f32.mrb[8].mxu1 }
 0x20c   :  { %v4189_v18 = vpop.f32.mrb[9].mxu0  ;;  %v4259_v52 = vpop.f32.mrb[9].mxu1 }
 0x20d   :  { %v4190_v25 = vadd.f32 %v4189_v18, %v4188_v9  ;;  %v4260_v60 = vadd.f32 %v4259_v52, %v4258_v42  ;;  %v4191_v63 = vpop.f32.mrb[10].mxu0  ;;  %v4261_v48 = vpop.f32.mrb[10].mxu1 }
 0x20e   :  { %3180 = vmatmul.mubr.bf16.gmra.mrb[84].mxu0 %v6185_v41  ;;  %3497 = vmatmul.mubr.bf16.gmra.mrb[84].mxu1 %v6185_v41  ;;  %v4192_v59 = vpop.f32.mrb[11].mxu0  ;;  %v4262_v46 = vpop.f32.mrb[11].mxu1 }
 0x20f   :  { %3187 = vmatprep.mubr.bf16.mxu0 %v6197_v0  ;;  %3504 = vmatprep.mubr.bf16.mxu1 %v6197_v0  ;;  %v1519_v30 = vrot.slane %v4260_v60, 1  ;;  %v4193_v5 = vadd.f32 %v4192_v59, %v4191_v63  ;;  %v4263_v58 = vadd.f32 %v4262_v46, %v4261_v48 }
 0x211   :  { %v1520_v41 = vsel %vm301_vm1, %v1517_v38, %v1519_v30  ;;  %v1521_v0 = vrot.slane %v4263_v58, 1 }
 0x212   :  { %v6409_v29 = vadd.f32 %v4187_v55, %v1520_v41 }
 0x213   :  { %v1522_v31 = vsel %vm301_vm1, %v1519_v30, %v1521_v0 }
 0x214   :  { %v6412_v44 = vadd.f32 %v4190_v25, %v1522_v31 }
 0x216   :  { %3188 = vmatmul.mubr.bf16.gmra.mrb[88].mxu0 %v6201_v4  ;;  %3505 = vmatmul.mubr.bf16.gmra.mrb[88].mxu1 %v6201_v4 }
 0x217   :  { %3195 = vmatprep.mubr.bf16.mxu0 %v6205_v36  ;;  %3512 = vmatprep.mubr.bf16.mxu1 %v6205_v36 }
 0x21e   :  { %3196 = vmatmul.mubr.bf16.gmra.mrb[92].mxu0 %v6211_v21  ;;  %3513 = vmatmul.mubr.bf16.gmra.mrb[92].mxu1 %v6211_v21 }
 0x21f   :  { %3203 = vmatprep.mubr.bf16.mxu0 %v6213_v62  ;;  %3520 = vmatprep.mubr.bf16.mxu1 %v6213_v62 }
 0x226   :  { %3204 = vmatmul.mubr.bf16.gmra.mrb[96].mxu0 %v6215_v6  ;;  %3521 = vmatmul.mubr.bf16.gmra.mrb[96].mxu1 %v6215_v6  ;;  %v4194_v4 = vpop.f32.mrb[12].mxu0  ;;  %v4264_v36 = vpop.f32.mrb[12].mxu1 }
 0x227   :  { %3211 = vmatprep.mubr.bf16.mxu0 %v6217_v57  ;;  %3528 = vmatprep.mubr.bf16.mxu1 %v6217_v57  ;;  %v4195_v20 = vpop.f32.mrb[13].mxu0  ;;  %v4265_v33 = vpop.f32.mrb[13].mxu1 }
 0x228   :  { %v4196_v43 = vadd.f32 %v4195_v20, %v4194_v4  ;;  %v4266_v24 = vadd.f32 %v4265_v33, %v4264_v36  ;;  %v4197_v28 = vpop.f32.mrb[14].mxu0  ;;  %v4267_v21 = vpop.f32.mrb[14].mxu1 }
 0x229   :  { %v4198_v62 = vpop.f32.mrb[15].mxu0  ;;  %v4268_v39 = vpop.f32.mrb[15].mxu1 }
 0x22a   :  { %v1523_v6 = vrot.slane %v4266_v24, 1  ;;  %v4199_v57 = vadd.f32 %v4198_v62, %v4197_v28  ;;  %v4269_v49 = vadd.f32 %v4268_v39, %v4267_v21 }
 0x22c   :  { %v1524_v54 = vsel %vm301_vm1, %v1521_v0, %v1523_v6  ;;  %v1525_v51 = vrot.slane %v4269_v49, 1 }
 0x22d   :  { %v6427_v11 = vadd.f32 %v4193_v5, %v1524_v54 }
 0x22e   :  { %3212 = vmatmul.mubr.bf16.gmra.mrb[100].mxu0 %v6219_v14  ;;  %3529 = vmatmul.mubr.bf16.gmra.mrb[100].mxu1 %v6219_v14  ;;  %v1526_v34 = vsel %vm301_vm1, %v1523_v6, %v1525_v51 }
 0x22f   :  { %3219 = vmatprep.mubr.bf16.mxu0 %v6367_v23  ;;  %3536 = vmatprep.mubr.bf16.mxu1 %v6367_v23  ;;  %v6430_v15 = vadd.f32 %v4196_v43, %v1526_v34 }
 0x236   :  { %3220 = vmatmul.mubr.bf16.gmra.mrb[104].mxu0 %v6373_v8  ;;  %3537 = vmatmul.mubr.bf16.gmra.mrb[104].mxu1 %v6373_v8 }
 0x242   :  { %v4200_v14 = vpop.f32.mrb[16].mxu0  ;;  %v4270_v17 = vpop.f32.mrb[16].mxu1 }
 0x243   :  { %v4201_v27 = vpop.f32.mrb[17].mxu0  ;;  %v4271_v23 = vpop.f32.mrb[17].mxu1 }
 0x244   :  { %v4202_v47 = vadd.f32 %v4201_v27, %v4200_v14  ;;  %v4272_v1 = vadd.f32 %v4271_v23, %v4270_v17  ;;  %v4203_v40 = vpop.f32.mrb[18].mxu0  ;;  %v4273_v16 = vpop.f32.mrb[18].mxu1 }
 0x245   :  { %v4204_v7 = vpop.f32.mrb[19].mxu0  ;;  %v4274_v37 = vpop.f32.mrb[19].mxu1 }
 0x246   :  { %v1527_v26 = vrot.slane %v4272_v1, 1  ;;  %v4205_v53 = vadd.f32 %v4204_v7, %v4203_v40  ;;  %v4275_v10 = vadd.f32 %v4274_v37, %v4273_v16 }
 0x248   :  { %v1528_v19 = vsel %vm301_vm1, %v1525_v51, %v1527_v26  ;;  %v1529_v35 = vrot.slane %v4275_v10, 1 }
 0x249   :  { %v6435_v45 = vadd.f32 %v4199_v57, %v1528_v19 }
 0x24a   :  { %v1530_v8 = vsel %vm301_vm1, %v1527_v26, %v1529_v35 }
 0x24b   :  { %v6438_v2 = vadd.f32 %v4202_v47, %v1530_v8 }
 0x25a   :  { %v4206_v13 = vpop.f32.mrb[20].mxu0  ;;  %v4276_v56 = vpop.f32.mrb[20].mxu1 }
 0x25b   :  { %v4207_v55 = vpop.f32.mrb[21].mxu0  ;;  %v4277_v61 = vpop.f32.mrb[21].mxu1 }
 0x25c   :  { %v4208_v12 = vadd.f32 %v4207_v55, %v4206_v13  ;;  %v4278_v38 = vadd.f32 %v4277_v61, %v4276_v56  ;;  %v4209_v50 = vpop.f32.mrb[22].mxu0  ;;  %v4279_v9 = vpop.f32.mrb[22].mxu1 }
 0x25d   :  { %v4210_v42 = vpop.f32.mrb[23].mxu0  ;;  %v4280_v18 = vpop.f32.mrb[23].mxu1 }
 0x25e   :  { %v1531_v52 = vrot.slane %v4278_v38, 1  ;;  %v4211_v25 = vadd.f32 %v4210_v42, %v4209_v50  ;;  %v4281_v60 = vadd.f32 %v4280_v18, %v4279_v9 }
 0x260   :  { %v1532_v63 = vsel %vm301_vm1, %v1529_v35, %v1531_v52  ;;  %v1533_v48 = vrot.slane %v4281_v60, 1 }
 0x261   :  { %v6441_v59 = vadd.f32 %v4205_v53, %v1532_v63 }
 0x262   :  { %v1534_v46 = vsel %vm301_vm1, %v1531_v52, %v1533_v48 }
 0x263   :  { %v6444_v30 = vadd.f32 %v4208_v12, %v1534_v46 }
 0x269   :  { %v4212_v5 = vpop.f32.mrb[24].mxu0  ;;  %v4282_v58 = vpop.f32.mrb[24].mxu1 }
 0x26a   :  { %v4213_v41 = vpop.f32.mrb[25].mxu0  ;;  %v4283_v0 = vpop.f32.mrb[25].mxu1 }
 0x26b   :  { %v4214_v31 = vadd.f32 %v4213_v41, %v4212_v5  ;;  %v4284_v4 = vadd.f32 %v4283_v0, %v4282_v58  ;;  %v4215_v36 = vpop.f32.mrb[26].mxu0  ;;  %v4285_v20 = vpop.f32.mrb[26].mxu1 }
 0x26c   :  { %v4216_v33 = vpop.f32.mrb[27].mxu0  ;;  %v4286_v43 = vpop.f32.mrb[27].mxu1 }
 0x26d   :  { %v1535_v24 = vrot.slane %v4284_v4, 1  ;;  %v4217_v28 = vadd.f32 %v4216_v33, %v4215_v36  ;;  %v4287_v21 = vadd.f32 %v4286_v43, %v4285_v20 }
 0x26f   :  { %v1536_v62 = vsel %vm301_vm1, %v1533_v48, %v1535_v24  ;;  %v1537_v39 = vrot.slane %v4287_v21, 1 }
 0x270   :  { %v6447_v6 = vadd.f32 %v4211_v25, %v1536_v62 }
 0x271   :  { %v1538_v57 = vsel %vm301_vm1, %v1535_v24, %v1537_v39  ;;  %v4218_v49 = vpop.f32.mrb[28].mxu0  ;;  %v4288_v54 = vpop.f32.mrb[28].mxu1 }
 0x272   :  { %v6450_v51 = vadd.f32 %v4214_v31, %v1538_v57  ;;  %v4219_v34 = vpop.f32.mrb[29].mxu0  ;;  %v4289_v14 = vpop.f32.mrb[29].mxu1 }
 0x273   :  { %v4220_v17 = vadd.f32 %v4219_v34, %v4218_v49  ;;  %v4290_v27 = vadd.f32 %v4289_v14, %v4288_v54  ;;  %v4221_v23 = vpop.f32.mrb[30].mxu0  ;;  %v4291_v47 = vpop.f32.mrb[30].mxu1 }
 0x274   :  { %v4222_v1 = vpop.f32.mrb[31].mxu0  ;;  %v4292_v40 = vpop.f32.mrb[31].mxu1 }
 0x275   :  { %v1539_v16 = vrot.slane %v4290_v27, 1  ;;  %v4223_v7 = vadd.f32 %v4222_v1, %v4221_v23  ;;  %v4293_v37 = vadd.f32 %v4292_v40, %v4291_v47 }
 0x277   :  { %v1540_v26 = vsel %vm301_vm1, %v1537_v39, %v1539_v16  ;;  %v1541_v53 = vrot.slane %v4293_v37, 1 }
 0x278   :  { %v6453_v10 = vadd.f32 %v4217_v28, %v1540_v26 }
 0x279   :  { %v1542_v19 = vsel %vm301_vm1, %v1539_v16, %v1541_v53  ;;  %v4224_v35 = vpop.f32.mrb[32].mxu0  ;;  %v4294_v8 = vpop.f32.mrb[32].mxu1 }
 0x27a   :  { %v6456_v13 = vadd.f32 %v4220_v17, %v1542_v19  ;;  %v4225_v56 = vpop.f32.mrb[33].mxu0  ;;  %v4295_v55 = vpop.f32.mrb[33].mxu1 }
 0x27b   :  { %v4226_v61 = vadd.f32 %v4225_v56, %v4224_v35  ;;  %v4296_v12 = vadd.f32 %v4295_v55, %v4294_v8  ;;  %v4227_v38 = vpop.f32.mrb[34].mxu0  ;;  %v4297_v50 = vpop.f32.mrb[34].mxu1 }
 0x27c   :  { %v4228_v9 = vpop.f32.mrb[35].mxu0  ;;  %v4298_v42 = vpop.f32.mrb[35].mxu1 }
 0x27d   :  { %v1543_v18 = vrot.slane %v4296_v12, 1 }
 0x27f   :  { %v1544_v52 = vsel %vm301_vm1, %v1541_v53, %v1543_v18  ;;  %v6459_v25 = vadd.f32 %v4226_v61, %v1543_v18 }
 0x280   :  { %v6461_v60 = vadd.f32 %v4223_v7, %v1544_v52 }
 0x281   :  { %v4316_v63 = vpop.f32.mrb[36].mxu0  ;;  %v4386_v48 = vpop.f32.mrb[36].mxu1 }
 0x282   :  { %v4317_v46 = vpop.f32.mrb[37].mxu0  ;;  %v4387_v5 = vpop.f32.mrb[37].mxu1 }
 0x283   :  { %v4318_v58 = vadd.f32 %v4317_v46, %v4316_v63  ;;  %v4388_v41 = vadd.f32 %v4387_v5, %v4386_v48  ;;  %v4319_v0 = vpop.f32.mrb[38].mxu0  ;;  %v4389_v31 = vpop.f32.mrb[38].mxu1 }
 0x284   :  { %v4320_v4 = vpop.f32.mrb[39].mxu0  ;;  %v4390_v36 = vpop.f32.mrb[39].mxu1 }
 0x285   :  { %v4321_v20 = vadd.f32 %v4320_v4, %v4319_v0  ;;  %v4391_v33 = vadd.f32 %v4390_v36, %v4389_v31  ;;  %v1829_v43 = vrot.slane %v4318_v58, 2 }
 0x287   :  { %v1830_v24 = vrot.slane %v4321_v20, 2 }
 0x289   :  { %v1831_v28 = vsel %vm522_vm2, %v1829_v43, %v1830_v24  ;;  %v4322_v21 = vpop.f32.mrb[40].mxu0  ;;  %v4392_v62 = vpop.f32.mrb[40].mxu1 }
 0x28a   :  { %v1879_v39 = vadd.f32 %v1831_v28, %v6384_v32  ;;  %v4323_v57 = vpop.f32.mrb[41].mxu0  ;;  %v4393_v49 = vpop.f32.mrb[41].mxu1 }
 0x28b   :  { %v4324_v54 = vadd.f32 %v4323_v57, %v4322_v21  ;;  %v4394_v34 = vadd.f32 %v4393_v49, %v4392_v62  ;;  %v4325_v14 = vpop.f32.mrb[42].mxu0  ;;  %v4395_v17 = vpop.f32.mrb[42].mxu1 }
 0x28c   :  { %v4326_v27 = vpop.f32.mrb[43].mxu0  ;;  %v4396_v23 = vpop.f32.mrb[43].mxu1  ;;  %v6465_v47 = vadd.f32 %v4388_v41, %v1879_v39 }
 0x28d   :  { %v1832_v1 = vrot.slane %v4324_v54, 2  ;;  %v4327_v40 = vadd.f32 %v4326_v27, %v4325_v14  ;;  %v4397_v16 = vadd.f32 %v4396_v23, %v4395_v17 }
 0x28f   :  { %v1833_v7 = vsel %vm522_vm2, %v1830_v24, %v1832_v1  ;;  %v1834_v37 = vrot.slane %v4327_v40, 2 }
 0x290   :  { %v1880_v26 = vadd.f32 %v1833_v7, %v6391_v22 }
 0x291   :  { %v1835_v32 = vsel %vm522_vm2, %v1832_v1, %v1834_v37  ;;  %v4328_v53 = vpop.f32.mrb[44].mxu0  ;;  %v4398_v19 = vpop.f32.mrb[44].mxu1 }
 0x292   :  { %v1881_v35 = vadd.f32 %v1835_v32, %v6394_v3  ;;  %v4329_v8 = vpop.f32.mrb[45].mxu0  ;;  %v4399_v56 = vpop.f32.mrb[45].mxu1  ;;  %v6471_v55 = vadd.f32 %v4391_v33, %v1880_v26 }
 0x293   :  { %v4330_v61 = vadd.f32 %v4329_v8, %v4328_v53  ;;  %v4400_v12 = vadd.f32 %v4399_v56, %v4398_v19  ;;  %v4331_v38 = vpop.f32.mrb[46].mxu0  ;;  %v4401_v50 = vpop.f32.mrb[46].mxu1 }
 0x294   :  { %v4332_v9 = vpop.f32.mrb[47].mxu0  ;;  %v4402_v42 = vpop.f32.mrb[47].mxu1  ;;  %v6473_v18 = vadd.f32 %v4394_v34, %v1881_v35 }
 0x295   :  { %v1836_v52 = vrot.slane %v4330_v61, 2  ;;  %v4333_v22 = vadd.f32 %v4332_v9, %v4331_v38  ;;  %v4403_v63 = vadd.f32 %v4402_v42, %v4401_v50 }
 0x297   :  { %v1837_v48 = vsel %vm522_vm2, %v1834_v37, %v1836_v52  ;;  %v1838_v46 = vrot.slane %v4333_v22, 2 }
 0x298   :  { %v1882_v3 = vadd.f32 %v1837_v48, %v6409_v29 }
 0x299   :  { %v1839_v5 = vsel %vm522_vm2, %v1836_v52, %v1838_v46  ;;  %v4334_v58 = vpop.f32.mrb[48].mxu0  ;;  %v4404_v41 = vpop.f32.mrb[48].mxu1 }
 0x29a   :  { %v1883_v0 = vadd.f32 %v1839_v5, %v6412_v44  ;;  %v4335_v31 = vpop.f32.mrb[49].mxu0  ;;  %v4405_v4 = vpop.f32.mrb[49].mxu1  ;;  %v6479_v36 = vadd.f32 %v4397_v16, %v1882_v3 }
 0x29b   :  { %v4336_v20 = vadd.f32 %v4335_v31, %v4334_v58  ;;  %v4406_v33 = vadd.f32 %v4405_v4, %v4404_v41  ;;  %v4337_v43 = vpop.f32.mrb[50].mxu0  ;;  %v4407_v24 = vpop.f32.mrb[50].mxu1 }
 0x29c   :  { %v4338_v28 = vpop.f32.mrb[51].mxu0  ;;  %v4408_v21 = vpop.f32.mrb[51].mxu1  ;;  %v6481_v62 = vadd.f32 %v4400_v12, %v1883_v0 }
 0x29d   :  { %v1840_v39 = vrot.slane %v4336_v20, 2  ;;  %v4339_v29 = vadd.f32 %v4338_v28, %v4337_v43  ;;  %v4409_v57 = vadd.f32 %v4408_v21, %v4407_v24 }
 0x29f   :  { %v1841_v49 = vsel %vm522_vm2, %v1838_v46, %v1840_v39  ;;  %v1842_v54 = vrot.slane %v4339_v29, 2 }
 0x2a0   :  { %v1884_v44 = vadd.f32 %v1841_v49, %v6427_v11 }
 0x2a1   :  { %v1843_v34 = vsel %vm522_vm2, %v1840_v39, %v1842_v54  ;;  %v4340_v14 = vpop.f32.mrb[52].mxu0  ;;  %v4410_v17 = vpop.f32.mrb[52].mxu1 }
 0x2a2   :  { %v1885_v27 = vadd.f32 %v1843_v34, %v6430_v15  ;;  %v4341_v23 = vpop.f32.mrb[53].mxu0  ;;  %v4411_v1 = vpop.f32.mrb[53].mxu1  ;;  %v6487_v40 = vadd.f32 %v4403_v63, %v1884_v44 }
 0x2a3   :  { %v4342_v16 = vadd.f32 %v4341_v23, %v4340_v14  ;;  %v4412_v7 = vadd.f32 %v4411_v1, %v4410_v17  ;;  %v4343_v37 = vpop.f32.mrb[54].mxu0  ;;  %v4413_v26 = vpop.f32.mrb[54].mxu1 }
 0x2a4   :  { %v4344_v32 = vpop.f32.mrb[55].mxu0  ;;  %v4414_v53 = vpop.f32.mrb[55].mxu1  ;;  %v6489_v19 = vadd.f32 %v4406_v33, %v1885_v27 }
 0x2a5   :  { %v1844_v35 = vrot.slane %v4342_v16, 2  ;;  %v4345_v11 = vadd.f32 %v4344_v32, %v4343_v37  ;;  %v4415_v8 = vadd.f32 %v4414_v53, %v4413_v26 }
 0x2a7   :  { %v1845_v56 = vsel %vm522_vm2, %v1842_v54, %v1844_v35  ;;  %v1846_v61 = vrot.slane %v4345_v11, 2 }
 0x2a8   :  { %v1886_v15 = vadd.f32 %v1845_v56, %v6435_v45 }
 0x2a9   :  { %v1847_v12 = vsel %vm522_vm2, %v1844_v35, %v1846_v61  ;;  %v4346_v38 = vpop.f32.mrb[56].mxu0  ;;  %v4416_v50 = vpop.f32.mrb[56].mxu1 }
 0x2aa   :  { %v1887_v9 = vadd.f32 %v1847_v12, %v6438_v2  ;;  %v4347_v42 = vpop.f32.mrb[57].mxu0  ;;  %v4417_v52 = vpop.f32.mrb[57].mxu1  ;;  %v6495_v22 = vadd.f32 %v4409_v57, %v1886_v15 }
 0x2ab   :  { %v4348_v63 = vadd.f32 %v4347_v42, %v4346_v38  ;;  %v4418_v48 = vadd.f32 %v4417_v52, %v4416_v50  ;;  %v4349_v46 = vpop.f32.mrb[58].mxu0  ;;  %v4419_v3 = vpop.f32.mrb[58].mxu1 }
 0x2ac   :  { %v4350_v5 = vpop.f32.mrb[59].mxu0  ;;  %v4420_v58 = vpop.f32.mrb[59].mxu1  ;;  %v6497_v41 = vadd.f32 %v4412_v7, %v1887_v9 }
 0x2ad   :  { %v1848_v0 = vrot.slane %v4348_v63, 2  ;;  %v4351_v45 = vadd.f32 %v4350_v5, %v4349_v46  ;;  %v4421_v31 = vadd.f32 %v4420_v58, %v4419_v3 }
 0x2af   :  { %v1849_v4 = vsel %vm522_vm2, %v1846_v61, %v1848_v0  ;;  %v1850_v20 = vrot.slane %v4351_v45, 2 }
 0x2b0   :  { %v1888_v2 = vadd.f32 %v1849_v4, %v6441_v59 }
 0x2b1   :  { %v1851_v33 = vsel %vm522_vm2, %v1848_v0, %v1850_v20  ;;  %v4352_v43 = vpop.f32.mrb[60].mxu0  ;;  %v4422_v24 = vpop.f32.mrb[60].mxu1 }
 0x2b2   :  { %v1889_v28 = vadd.f32 %v1851_v33, %v6444_v30  ;;  %v4353_v21 = vpop.f32.mrb[61].mxu0  ;;  %v4423_v39 = vpop.f32.mrb[61].mxu1  ;;  %v6503_v29 = vadd.f32 %v4415_v8, %v1888_v2 }
 0x2b3   :  { %v4354_v57 = vadd.f32 %v4353_v21, %v4352_v43  ;;  %v4424_v49 = vadd.f32 %v4423_v39, %v4422_v24  ;;  %v4355_v54 = vpop.f32.mrb[62].mxu0  ;;  %v4425_v44 = vpop.f32.mrb[62].mxu1 }
 0x2b4   :  { %v4356_v34 = vpop.f32.mrb[63].mxu0  ;;  %v4426_v14 = vpop.f32.mrb[63].mxu1  ;;  %v6505_v17 = vadd.f32 %v4418_v48, %v1889_v28 }
 0x2b5   :  { %v1852_v27 = vrot.slane %v4354_v57, 2  ;;  %v4357_v59 = vadd.f32 %v4356_v34, %v4355_v54  ;;  %v4427_v23 = vadd.f32 %v4426_v14, %v4425_v44 }
 0x2b7   :  { %v1853_v1 = vsel %vm522_vm2, %v1850_v20, %v1852_v27  ;;  %v1854_v16 = vrot.slane %v4357_v59, 2 }
 0x2b8   :  { %v1890_v30 = vadd.f32 %v1853_v1, %v6447_v6 }
 0x2b9   :  { %v1855_v7 = vsel %vm522_vm2, %v1852_v27, %v1854_v16  ;;  %v4358_v37 = vpop.f32.mrb[64].mxu0  ;;  %v4428_v26 = vpop.f32.mrb[64].mxu1 }
 0x2ba   :  { %v1891_v32 = vadd.f32 %v1855_v7, %v6450_v51  ;;  %v4359_v53 = vpop.f32.mrb[65].mxu0  ;;  %v4429_v35 = vpop.f32.mrb[65].mxu1  ;;  %v6511_v11 = vadd.f32 %v4421_v31, %v1890_v30 }
 0x2bb   :  { %v4360_v8 = vadd.f32 %v4359_v53, %v4358_v37  ;;  %v4430_v56 = vadd.f32 %v4429_v35, %v4428_v26  ;;  %v4361_v61 = vpop.f32.mrb[66].mxu0  ;;  %v4431_v15 = vpop.f32.mrb[66].mxu1 }
 0x2bc   :  { %v4362_v12 = vpop.f32.mrb[67].mxu0  ;;  %v4432_v38 = vpop.f32.mrb[67].mxu1  ;;  %v6513_v50 = vadd.f32 %v4424_v49, %v1891_v32 }
 0x2bd   :  { %v1856_v9 = vrot.slane %v4360_v8, 2  ;;  %v4363_v6 = vadd.f32 %v4362_v12, %v4361_v61  ;;  %v4433_v42 = vadd.f32 %v4432_v38, %v4431_v15  ;;  %v6533_v12 = vld [vmem:[#allocation7] ss:$0 sm:$0xff] }
 0x2bf   :  { %v1857_v52 = vsel %vm522_vm2, %v1854_v16, %v1856_v9  ;;  %v1858_v63 = vrot.slane %v4363_v6, 2 }
 0x2c0   :  { %v1892_v51 = vadd.f32 %v1857_v52, %v6453_v10 }
 0x2c1   :  { %v1859_v48 = vsel %vm522_vm2, %v1856_v9, %v1858_v63  ;;  %v4364_v46 = vpop.f32.mrb[68].mxu0  ;;  %v4434_v3 = vpop.f32.mrb[68].mxu1 }
 0x2c2   :  { %v1893_v5 = vadd.f32 %v1859_v48, %v6456_v13  ;;  %v4365_v58 = vpop.f32.mrb[69].mxu0  ;;  %v4435_v0 = vpop.f32.mrb[69].mxu1  ;;  %v6519_v45 = vadd.f32 %v4427_v23, %v1892_v51 }
 0x2c3   :  { %v4366_v31 = vadd.f32 %v4365_v58, %v4364_v46  ;;  %v4436_v4 = vadd.f32 %v4435_v0, %v4434_v3  ;;  %v4367_v20 = vpop.f32.mrb[70].mxu0  ;;  %v4437_v2 = vpop.f32.mrb[70].mxu1 }
 0x2c4   :  { %v4368_v33 = vpop.f32.mrb[71].mxu0  ;;  %v4438_v43 = vpop.f32.mrb[71].mxu1  ;;  %v6521_v24 = vadd.f32 %v4430_v56, %v1893_v5 }
 0x2c5   :  { %v1860_v28 = vrot.slane %v4366_v31, 2 }
 0x2c7   :  { %v1861_v10 = vsel %vm522_vm2, %v1858_v63, %v1860_v28  ;;  %v1895_v21 = vadd.f32 %v1860_v28, %v6459_v25 }
 0x2c8   :  { %v1894_v39 = vadd.f32 %v1861_v10, %v6461_v60 }
 0x2c9   :  { %v6526_v13 = vadd.f32 %v4436_v4, %v1895_v21  ;;  %v4456_v57 = vpop.f32.mrb[72].mxu0  ;;  %v4526_v49 = vpop.f32.mrb[72].mxu1 }
 0x2ca   :  { %v4457_v54 = vpop.f32.mrb[73].mxu0  ;;  %v4527_v44 = vpop.f32.mrb[73].mxu1  ;;  %v6528_v34 = vadd.f32 %v4433_v42, %v1894_v39 }
 0x2cb   :  { %v4458_v14 = vadd.f32 %v4457_v54, %v4456_v57  ;;  %v4528_v27 = vadd.f32 %v4527_v44, %v4526_v49  ;;  %v4459_v59 = vpop.f32.mrb[74].mxu0  ;;  %v4529_v23 = vpop.f32.mrb[74].mxu1 }
 0x2cc   :  { %v4460_v1 = vpop.f32.mrb[75].mxu0  ;;  %v4530_v16 = vpop.f32.mrb[75].mxu1 }
 0x2cd   :  { %v4461_v30 = vadd.f32 %v4460_v1, %v4459_v59  ;;  %v4531_v7 = vadd.f32 %v4530_v16, %v4529_v23  ;;  %v3244_v37 = vrot.slane %v4458_v14, 1  ;;  %v3561_v25 = vrot.slane %v4528_v27, 2 }
 0x2cf   :  { %v3245_v26 = vrot.slane %v4461_v30, 1  ;;  %v3562_v60 = vrot.slane %v4531_v7, 2 }
 0x2d1   :  { %v3246_v32 = vsel %vm301_vm1, %v3244_v37, %v3245_v26  ;;  %v3563_v53 = vsel %vm522_vm2, %v3561_v25, %v3562_v60  ;;  %v4462_v35 = vpop.f32.mrb[76].mxu0  ;;  %v4532_v8 = vpop.f32.mrb[76].mxu1 }
 0x2d2   :  { %v3294_v56 = vadd.f32 %v3246_v32, %v6465_v47  ;;  %v4463_v61 = vpop.f32.mrb[77].mxu0  ;;  %v4533_v15 = vpop.f32.mrb[77].mxu1 }
 0x2d3   :  { %v4464_v38 = vadd.f32 %v4463_v61, %v4462_v35  ;;  %v4534_v9 = vadd.f32 %v4533_v15, %v4532_v8  ;;  %v4465_v6 = vpop.f32.mrb[78].mxu0  ;;  %v4535_v42 = vpop.f32.mrb[78].mxu1 }
 0x2d4   :  { %v3611_v52 = vadd.f32 %v3563_v53, %v3294_v56  ;;  %v4466_v63 = vpop.f32.mrb[79].mxu0  ;;  %v4536_v51 = vpop.f32.mrb[79].mxu1 }
 0x2d5   :  { %v3247_v48 = vrot.slane %v4464_v38, 1  ;;  %v3564_v46 = vrot.slane %v4534_v9, 2  ;;  %v4467_v3 = vadd.f32 %v4466_v63, %v4465_v6  ;;  %v4537_v5 = vadd.f32 %v4536_v51, %v4535_v42 }
 0x2d6   :  { %v3635_v58 = vadd.f32 %v6533_v12, %v3611_v52 }
 0x2d7   :  { %v3248_v0 = vsel %vm301_vm1, %v3245_v26, %v3247_v48  ;;  %v3565_v47 = vsel %vm522_vm2, %v3562_v60, %v3564_v46  ;;  %v3249_v31 = vrot.slane %v4467_v3, 1  ;;  %v3566_v4 = vrot.slane %v4537_v5, 2 }
 0x2d8   :  { %v3652_v20 = vmax.f32 %v3635_v58, 0.0  ;;  %v3295_v2 = vadd.f32 %v3248_v0, %v6471_v55 }
 0x2d9   :  { %v3250_v33 = vsel %vm301_vm1, %v3247_v48, %v3249_v31  ;;  %v3567_v43 = vsel %vm522_vm2, %v3564_v46, %v3566_v4  ;;  %v4468_v28 = vpop.f32.mrb[80].mxu0  ;;  %v4538_v10 = vpop.f32.mrb[80].mxu1 }
 0x2da   :  { %v4143_v21 = vpack.c.bf16 %v3652_v20, %v3652_v20  ;;  %v3612_v39 = vadd.f32 %v3565_v47, %v3295_v2  ;;  %v3296_v57 = vadd.f32 %v3250_v33, %v6473_v18  ;;  %v4469_v49 = vpop.f32.mrb[81].mxu0  ;;  %v4539_v54 = vpop.f32.mrb[81].mxu1 }
 0x2db   :  { %v4470_v44 = vadd.f32 %v4469_v49, %v4468_v28  ;;  %v4540_v14 = vadd.f32 %v4539_v54, %v4538_v10  ;;  %v4471_v27 = vpop.f32.mrb[82].mxu0  ;;  %v4541_v59 = vpop.f32.mrb[82].mxu1 }
 0x2dc   :  { %3739 = vst.msk [vmem:[%s6670_s5] sm:$0xf] %vm3738_vm6, %v4143_v21  ;;  %v3636_v55 = vadd.f32 %v6533_v12, %v3612_v39  ;;  %v3613_v23 = vadd.f32 %v3567_v43, %v3296_v57  ;;  %v4472_v1 = vpop.f32.mrb[83].mxu0  ;;  %v4542_v16 = vpop.f32.mrb[83].mxu1 }
 0x2dd   :  { %v3251_v30 = vrot.slane %v4470_v44, 1  ;;  %v3568_v7 = vrot.slane %v4540_v14, 2  ;;  %v4473_v37 = vadd.f32 %v4472_v1, %v4471_v27  ;;  %v4543_v18 = vadd.f32 %v4542_v16, %v4541_v59 }
 0x2de   :  { %v3653_v25 = vmax.f32 %v3636_v55, 0.0  ;;  %v3637_v26 = vadd.f32 %v6533_v12, %v3613_v23 }
 0x2df   :  { %v3252_v60 = vsel %vm301_vm1, %v3249_v31, %v3251_v30  ;;  %v3569_v32 = vsel %vm522_vm2, %v3566_v4, %v3568_v7  ;;  %v3253_v53 = vrot.slane %v4473_v37, 1  ;;  %v3570_v35 = vrot.slane %v4543_v18, 2 }
 0x2e0   :  { %v4144_v8 = vpack.c.bf16 %v3653_v25, %v3653_v25  ;;  %v3654_v56 = vmax.f32 %v3637_v26, 0.0  ;;  %v3297_v61 = vadd.f32 %v3252_v60, %v6479_v36 }
 0x2e1   :  { %v3254_v15 = vsel %vm301_vm1, %v3251_v30, %v3253_v53  ;;  %v3571_v38 = vsel %vm522_vm2, %v3568_v7, %v3570_v35  ;;  %v4474_v9 = vpop.f32.mrb[84].mxu0  ;;  %v4544_v6 = vpop.f32.mrb[84].mxu1 }
 0x2e2   :  { %3740 = vst.msk [vmem:[%s6670_s5 + $0x4] sm:$0xf] %vm3738_vm6, %v4144_v8  ;;  %v4145_v42 = vpack.c.bf16 %v3654_v56, %v3654_v56  ;;  %v3614_v52 = vadd.f32 %v3569_v32, %v3297_v61  ;;  %v3298_v63 = vadd.f32 %v3254_v15, %v6481_v62  ;;  %v4475_v51 = vpop.f32.mrb[85].mxu0  ;;  %v4545_v48 = vpop.f32.mrb[85].mxu1 }
 0x2e3   :  { %v4476_v46 = vadd.f32 %v4475_v51, %v4474_v9  ;;  %v4546_v3 = vadd.f32 %v4545_v48, %v4544_v6  ;;  %v4477_v36 = vpop.f32.mrb[86].mxu0  ;;  %v4547_v5 = vpop.f32.mrb[86].mxu1 }
 0x2e4   :  { %3741 = vst.msk [vmem:[%s6670_s5 + $0x8] sm:$0xf] %vm3738_vm6, %v4145_v42  ;;  %v3638_v58 = vadd.f32 %v6533_v12, %v3614_v52  ;;  %v3615_v0 = vadd.f32 %v3571_v38, %v3298_v63  ;;  %v4478_v47 = vpop.f32.mrb[87].mxu0  ;;  %v4548_v31 = vpop.f32.mrb[87].mxu1 }
 0x2e5   :  { %v3255_v4 = vrot.slane %v4476_v46, 1  ;;  %v3572_v20 = vrot.slane %v4546_v3, 2  ;;  %v4479_v2 = vadd.f32 %v4478_v47, %v4477_v36  ;;  %v4549_v62 = vadd.f32 %v4548_v31, %v4547_v5 }
 0x2e6   :  { %v3655_v33 = vmax.f32 %v3638_v58, 0.0  ;;  %v3639_v43 = vadd.f32 %v6533_v12, %v3615_v0 }
 0x2e7   :  { %v3256_v28 = vsel %vm301_vm1, %v3253_v53, %v3255_v4  ;;  %v3573_v10 = vsel %vm522_vm2, %v3570_v35, %v3572_v20  ;;  %v3257_v21 = vrot.slane %v4479_v2, 1  ;;  %v3574_v39 = vrot.slane %v4549_v62, 2 }
 0x2e8   :  { %v4146_v57 = vpack.c.bf16 %v3655_v33, %v3655_v33  ;;  %v3656_v49 = vmax.f32 %v3639_v43, 0.0  ;;  %v3299_v54 = vadd.f32 %v3256_v28, %v6487_v40 }
 0x2e9   :  { %v3258_v44 = vsel %vm301_vm1, %v3255_v4, %v3257_v21  ;;  %v3575_v14 = vsel %vm522_vm2, %v3572_v20, %v3574_v39  ;;  %v4480_v27 = vpop.f32.mrb[88].mxu0  ;;  %v4550_v59 = vpop.f32.mrb[88].mxu1 }
 0x2ea   :  { %3742 = vst.msk [vmem:[%s6670_s5 + $0xc] sm:$0xf] %vm3738_vm6, %v4146_v57  ;;  %v4147_v55 = vpack.c.bf16 %v3656_v49, %v3656_v49  ;;  %v3616_v23 = vadd.f32 %v3573_v10, %v3299_v54  ;;  %v3300_v1 = vadd.f32 %v3258_v44, %v6489_v19  ;;  %v4481_v16 = vpop.f32.mrb[89].mxu0  ;;  %v4551_v30 = vpop.f32.mrb[89].mxu1 }
 0x2eb   :  { %v4482_v7 = vadd.f32 %v4481_v16, %v4480_v27  ;;  %v4552_v37 = vadd.f32 %v4551_v30, %v4550_v59  ;;  %v4483_v40 = vpop.f32.mrb[90].mxu0  ;;  %v4553_v18 = vpop.f32.mrb[90].mxu1 }
 0x2ec   :  { %3743 = vst.msk [vmem:[%s6670_s5 + $0x10] sm:$0xf] %vm3738_vm6, %v4147_v55  ;;  %v3640_v25 = vadd.f32 %v6533_v12, %v3616_v23  ;;  %v3617_v26 = vadd.f32 %v3575_v14, %v3300_v1  ;;  %v4484_v60 = vpop.f32.mrb[91].mxu0  ;;  %v4554_v32 = vpop.f32.mrb[91].mxu1 }
 0x2ed   :  { %v3259_v53 = vrot.slane %v4482_v7, 1  ;;  %v3576_v35 = vrot.slane %v4552_v37, 2  ;;  %v4485_v8 = vadd.f32 %v4484_v60, %v4483_v40  ;;  %v4555_v19 = vadd.f32 %v4554_v32, %v4553_v18 }
 0x2ee   :  { %v3657_v56 = vmax.f32 %v3640_v25, 0.0  ;;  %v3641_v61 = vadd.f32 %v6533_v12, %v3617_v26 }
 0x2ef   :  { %v3260_v15 = vsel %vm301_vm1, %v3257_v21, %v3259_v53  ;;  %v3577_v38 = vsel %vm522_vm2, %v3574_v39, %v3576_v35  ;;  %v3261_v9 = vrot.slane %v4485_v8, 1  ;;  %v3578_v6 = vrot.slane %v4555_v19, 2 }
 0x2f0   :  { %v4148_v42 = vpack.c.bf16 %v3657_v56, %v3657_v56  ;;  %v3658_v52 = vmax.f32 %v3641_v61, 0.0  ;;  %v3301_v63 = vadd.f32 %v3260_v15, %v6495_v22 }
 0x2f1   :  { %v3262_v51 = vsel %vm301_vm1, %v3259_v53, %v3261_v9  ;;  %v3579_v48 = vsel %vm522_vm2, %v3576_v35, %v3578_v6  ;;  %v4486_v46 = vpop.f32.mrb[92].mxu0  ;;  %v4556_v3 = vpop.f32.mrb[92].mxu1 }
 0x2f2   :  { %3744 = vst.msk [vmem:[%s6670_s5 + $0x14] sm:$0xf] %vm3738_vm6, %v4148_v42  ;;  %v4149_v36 = vpack.c.bf16 %v3658_v52, %v3658_v52  ;;  %v3618_v5 = vadd.f32 %v3577_v38, %v3301_v63  ;;  %v3302_v58 = vadd.f32 %v3262_v51, %v6497_v41  ;;  %v4487_v0 = vpop.f32.mrb[93].mxu0  ;;  %v4557_v47 = vpop.f32.mrb[93].mxu1 }
 0x2f3   :  { %v4488_v31 = vadd.f32 %v4487_v0, %v4486_v46  ;;  %v4558_v4 = vadd.f32 %v4557_v47, %v4556_v3  ;;  %v4489_v22 = vpop.f32.mrb[94].mxu0  ;;  %v4559_v20 = vpop.f32.mrb[94].mxu1 }
 0x2f4   :  { %3745 = vst.msk [vmem:[%s6670_s5 + $0x18] sm:$0xf] %vm3738_vm6, %v4149_v36  ;;  %v3642_v2 = vadd.f32 %v6533_v12, %v3618_v5  ;;  %v3619_v62 = vadd.f32 %v3579_v48, %v3302_v58  ;;  %v4490_v33 = vpop.f32.mrb[95].mxu0  ;;  %v4560_v43 = vpop.f32.mrb[95].mxu1 }
 0x2f5   :  { %v3263_v28 = vrot.slane %v4488_v31, 1  ;;  %v3580_v10 = vrot.slane %v4558_v4, 2  ;;  %v4491_v21 = vadd.f32 %v4490_v33, %v4489_v22  ;;  %v4561_v41 = vadd.f32 %v4560_v43, %v4559_v20 }
 0x2f6   :  { %v3659_v39 = vmax.f32 %v3642_v2, 0.0  ;;  %v3643_v57 = vadd.f32 %v6533_v12, %v3619_v62 }
 0x2f7   :  { %v3264_v49 = vsel %vm301_vm1, %v3261_v9, %v3263_v28  ;;  %v3581_v54 = vsel %vm522_vm2, %v3578_v6, %v3580_v10  ;;  %v3265_v44 = vrot.slane %v4491_v21, 1  ;;  %v3582_v14 = vrot.slane %v4561_v41, 2 }
 0x2f8   :  { %v4150_v27 = vpack.c.bf16 %v3659_v39, %v3659_v39  ;;  %v3660_v59 = vmax.f32 %v3643_v57, 0.0  ;;  %v3303_v55 = vadd.f32 %v3264_v49, %v6503_v29 }
 0x2f9   :  { %v3266_v23 = vsel %vm301_vm1, %v3263_v28, %v3265_v44  ;;  %v3583_v1 = vsel %vm522_vm2, %v3580_v10, %v3582_v14  ;;  %v4492_v16 = vpop.f32.mrb[96].mxu0  ;;  %v4562_v30 = vpop.f32.mrb[96].mxu1 }
 0x2fa   :  { %3746 = vst.msk [vmem:[%s6670_s5 + $0x1c] sm:$0xf] %vm3738_vm6, %v4150_v27  ;;  %v4151_v7 = vpack.c.bf16 %v3660_v59, %v3660_v59  ;;  %v3620_v37 = vadd.f32 %v3581_v54, %v3303_v55  ;;  %v3304_v40 = vadd.f32 %v3266_v23, %v6505_v17  ;;  %v4493_v18 = vpop.f32.mrb[97].mxu0  ;;  %v4563_v25 = vpop.f32.mrb[97].mxu1 }
 0x2fb   :  { %v4494_v26 = vadd.f32 %v4493_v18, %v4492_v16  ;;  %v4564_v60 = vadd.f32 %v4563_v25, %v4562_v30  ;;  %v4495_v29 = vpop.f32.mrb[98].mxu0  ;;  %v4565_v32 = vpop.f32.mrb[98].mxu1 }
 0x2fc   :  { %3747 = vst.msk [vmem:[%s6670_s5 + $0x20] sm:$0xf] %vm3738_vm6, %v4151_v7  ;;  %v3644_v53 = vadd.f32 %v6533_v12, %v3620_v37  ;;  %v3621_v35 = vadd.f32 %v3583_v1, %v3304_v40  ;;  %v4496_v8 = vpop.f32.mrb[99].mxu0  ;;  %v4566_v19 = vpop.f32.mrb[99].mxu1 }
 0x2fd   :  { %v3267_v56 = vrot.slane %v4494_v26, 1  ;;  %v3584_v61 = vrot.slane %v4564_v60, 2  ;;  %v4497_v15 = vadd.f32 %v4496_v8, %v4495_v29  ;;  %v4567_v17 = vadd.f32 %v4566_v19, %v4565_v32 }
 0x2fe   :  { %v3661_v38 = vmax.f32 %v3644_v53, 0.0  ;;  %v3645_v9 = vadd.f32 %v6533_v12, %v3621_v35 }
 0x2ff   :  { %v3268_v6 = vsel %vm301_vm1, %v3265_v44, %v3267_v56  ;;  %v3585_v42 = vsel %vm522_vm2, %v3582_v14, %v3584_v61  ;;  %v3269_v52 = vrot.slane %v4497_v15, 1  ;;  %v3586_v63 = vrot.slane %v4567_v17, 2 }
 0x300   :  { %v4152_v51 = vpack.c.bf16 %v3661_v38, %v3661_v38  ;;  %v3662_v48 = vmax.f32 %v3645_v9, 0.0  ;;  %v3305_v46 = vadd.f32 %v3268_v6, %v6511_v11 }
 0x301   :  { %v3270_v3 = vsel %vm301_vm1, %v3267_v56, %v3269_v52  ;;  %v3587_v36 = vsel %vm522_vm2, %v3584_v61, %v3586_v63  ;;  %v4498_v5 = vpop.f32.mrb[100].mxu0  ;;  %v4568_v58 = vpop.f32.mrb[100].mxu1 }
 0x302   :  { %3748 = vst.msk [vmem:[%s6670_s5 + $0x24] sm:$0xf] %vm3738_vm6, %v4152_v51  ;;  %v4153_v0 = vpack.c.bf16 %v3662_v48, %v3662_v48  ;;  %v3622_v47 = vadd.f32 %v3585_v42, %v3305_v46  ;;  %v3306_v31 = vadd.f32 %v3270_v3, %v6513_v50  ;;  %v4499_v4 = vpop.f32.mrb[101].mxu0  ;;  %v4569_v22 = vpop.f32.mrb[101].mxu1 }
 0x303   :  { %v4500_v20 = vadd.f32 %v4499_v4, %v4498_v5  ;;  %v4570_v2 = vadd.f32 %v4569_v22, %v4568_v58  ;;  %v4501_v11 = vpop.f32.mrb[102].mxu0  ;;  %v4571_v62 = vpop.f32.mrb[102].mxu1 }
 0x304   :  { %3749 = vst.msk [vmem:[%s6670_s5 + $0x28] sm:$0xf] %vm3738_vm6, %v4153_v0  ;;  %v3646_v33 = vadd.f32 %v6533_v12, %v3622_v47  ;;  %v3623_v43 = vadd.f32 %v3587_v36, %v3306_v31  ;;  %v4502_v28 = vpop.f32.mrb[103].mxu0  ;;  %v4572_v10 = vpop.f32.mrb[103].mxu1 }
 0x305   :  { %v3271_v21 = vrot.slane %v4500_v20, 1  ;;  %v3588_v41 = vrot.slane %v4570_v2, 2  ;;  %v4503_v39 = vadd.f32 %v4502_v28, %v4501_v11  ;;  %v4573_v50 = vadd.f32 %v4572_v10, %v4571_v62 }
 0x306   :  { %v3663_v57 = vmax.f32 %v3646_v33, 0.0  ;;  %v3647_v49 = vadd.f32 %v6533_v12, %v3623_v43 }
 0x307   :  { %v3272_v54 = vsel %vm301_vm1, %v3269_v52, %v3271_v21  ;;  %v3589_v44 = vsel %vm522_vm2, %v3586_v63, %v3588_v41  ;;  %v3273_v14 = vrot.slane %v4503_v39, 1  ;;  %v3590_v27 = vrot.slane %v4573_v50, 2 }
 0x308   :  { %v4154_v59 = vpack.c.bf16 %v3663_v57, %v3663_v57  ;;  %v3664_v55 = vmax.f32 %v3647_v49, 0.0  ;;  %v3307_v23 = vadd.f32 %v3272_v54, %v6519_v45 }
 0x309   :  { %v3274_v1 = vsel %vm301_vm1, %v3271_v21, %v3273_v14  ;;  %v3591_v16 = vsel %vm522_vm2, %v3588_v41, %v3590_v27  ;;  %v4504_v30 = vpop.f32.mrb[104].mxu0  ;;  %v4574_v7 = vpop.f32.mrb[104].mxu1 }
 0x30a   :  { %3750 = vst.msk [vmem:[%s6670_s5 + $0x2c] sm:$0xf] %vm3738_vm6, %v4154_v59  ;;  %v4155_v37 = vpack.c.bf16 %v3664_v55, %v3664_v55  ;;  %v3624_v40 = vadd.f32 %v3589_v44, %v3307_v23  ;;  %v3308_v18 = vadd.f32 %v3274_v1, %v6521_v24  ;;  %v4505_v25 = vpop.f32.mrb[105].mxu0  ;;  %v4575_v26 = vpop.f32.mrb[105].mxu1 }
 0x30b   :  { %v4506_v60 = vadd.f32 %v4505_v25, %v4504_v30  ;;  %v4576_v29 = vadd.f32 %v4575_v26, %v4574_v7  ;;  %v4507_v45 = vpop.f32.mrb[106].mxu0  ;;  %v4577_v32 = vpop.f32.mrb[106].mxu1 }
 0x30c   :  { %3751 = vst.msk [vmem:[%s6670_s5 + $0x30] sm:$0xf] %vm3738_vm6, %v4155_v37  ;;  %v3648_v53 = vadd.f32 %v6533_v12, %v3624_v40  ;;  %v3625_v35 = vadd.f32 %v3591_v16, %v3308_v18  ;;  %v4508_v8 = vpop.f32.mrb[107].mxu0  ;;  %v4578_v19 = vpop.f32.mrb[107].mxu1 }
 0x30d   :  { %v3275_v56 = vrot.slane %v4506_v60, 1  ;;  %v3592_v61 = vrot.slane %v4576_v29, 2 }
 0x30e   :  { %v3665_v15 = vmax.f32 %v3648_v53, 0.0  ;;  %v3649_v24 = vadd.f32 %v6533_v12, %v3625_v35 }
 0x30f   :  { %v3276_v17 = vsel %vm301_vm1, %v3273_v14, %v3275_v56  ;;  %v3310_v38 = vadd.f32 %v3275_v56, %v6526_v13  ;;  %v3593_v9 = vsel %vm522_vm2, %v3590_v27, %v3592_v61 }
 0x310   :  { %v4156_v6 = vpack.c.bf16 %v3665_v15, %v3665_v15  ;;  %v3666_v42 = vmax.f32 %v3649_v24, 0.0  ;;  %v3309_v52 = vadd.f32 %v3276_v17, %v6528_v34 }
 0x311   :  { %v3627_v63 = vadd.f32 %v3592_v61, %v3310_v38 }
 0x312   :  { %3752 = vst.msk [vmem:[%s6670_s5 + $0x34] sm:$0xf] %vm3738_vm6, %v4156_v6  ;;  %v4157_v51 = vpack.c.bf16 %v3666_v42, %v3666_v42  ;;  %v3626_v48 = vadd.f32 %v3593_v9, %v3309_v52 }
 0x313   :  { %v3651_v46 = vadd.f32 %v6533_v12, %v3627_v63 }
 0x314   :  { %3753 = vst.msk [vmem:[%s6670_s5 + $0x38] sm:$0xf] %vm3738_vm6, %v4157_v51  ;;  %v3650_v13 = vadd.f32 %v6533_v12, %v3626_v48 }
 0x315   :  { %v3668_v3 = vmax.f32 %v3651_v46, 0.0 }
 0x316   :  { %v3667_v36 = vmax.f32 %v3650_v13, 0.0 }
 0x317   :  { %v4159_v34 = vpack.c.bf16 %v3668_v3, %v3668_v3 }
 0x318   :  { %v4158_v5 = vpack.c.bf16 %v3667_v36, %v3667_v36 }
 0x319   :  { %3756 = vst.msk [vmem:[%s6670_s5 + $0x40] sm:$0x3] %vm3755_vm7, %v4159_v34 }
 0x31a   :  { %3754 = vst.msk [vmem:[%s6670_s5 + $0x3c] sm:$0xf] %vm3738_vm6, %v4158_v5 }
 0x31b   :  { %3763 = vsyncpa [#allocation4], 1 }
 0x31c   :  { %3764 = vsyncpa [#allocation6], 1 }

// kernel: my_net_forward.3
= control target key start
LH: loop header
LB: loop body
LE: loop exit
PB: predicated region body
PF: predicated region fallthrough
CT: control target
= control target key end

     0   :  { %10 = vsyncpa [#allocation3], 0  ;;  %s15165_s0 = inlined_call_operand.vmem [shape: bf16[1,10880], index: 0, kind: input, shape index: {}]   ;;  %s15166_s1 = inlined_call_operand.hbm [shape: bf16[10880,256], index: 1, kind: input, shape index: {}]   ;;  %s15167_s2 = inlined_call_operand.hbm [shape: f32[1,256], index: 2, kind: input, shape index: {}]   ;;  %s15168_s3 = inlined_call_operand.vmem [shape: f32[256,11], index: 3, kind: input, shape index: {}]   ;;  %s15169_s4 = inlined_call_operand.hbm [shape: f32[1,11], index: 4, kind: input, shape index: {}]   ;;  %s15170_s5 = inlined_call_operand.hbm [shape: f32[1,11], index: 5, kind: output, shape index: {}]  }
   0x1   :  { %11 = vsyncpa [#allocation6], 0 }
   0x2   :  { %12 = vsyncpa [#allocation4], 0  ;;  %s14522_s18 = smov [#allocation5]   ;;  %s14523_s20 = smov [#allocation2]  }
   0x3   :  { %s33_s19 = sshll.u32 %s14522_s18, 4  ;;  %s20_s21 = sshll.u32 %s14523_s20, 4  ;;  %s34_s19 = int_to_ptr.vmem [resolvable:$true] %s33_s19  ;;  %s14560_s21 = int_to_ptr.vmem [resolvable:$true] %s20_s21 }
   0x4   :  { %s14428_s24 = scalar_lea.hbm %s15167_s2, 32 }
   0x5   :  { %p14429_p0 = scmp.ne.s32.totalorder %s15167_s2, %s14428_s24  ;;  %p14432_p1 = scmp.lt.u32.totalorder %s14428_s24, %s15167_s2 }
   0x7   :  { %p14434_p2 = pnand %p14432_p1, %p14429_p0 }
   0x9   :  { %14437 = shalt.err (!%p14434_p2)
}
   0xa   :  { %s14438_s29 = scalar_lea.vmem %s34_s19, 32  ;;  %p14443_p4 = scmp.lt.s32.totalorder %s34_s19, %s34_s19 }
   0xb   :  { %p14439_p3 = scmp.ne.s32.totalorder %s34_s19, %s14438_s29  ;;  %p14444_p5 = scmp.lt.s32.totalorder %s14438_s29, %s14438_s29 }
   0xd   :  { %p14445_p6 = por %p14444_p5, %p14443_p4 }
   0xf   :  { %p14446_p7 = pnand %p14445_p6, %p14439_p3 }
  0x11   :  { %14449 = shalt.err (!%p14446_p7)
}
  0x12   :  { %36 = dma.hbm_to_vmem [thread:$0]  %s15167_s2, 32, %s34_s19, [#allocation6]  }
  0x13   :  { %s14450_s9 = scalar_lea.hbm %s15166_s1, 174080 }
  0x14   :  { %p14451_p8 = scmp.ne.s32.totalorder %s15166_s1, %s14450_s9  ;;  %p14454_p9 = scmp.lt.u32.totalorder %s14450_s9, %s15166_s1 }
  0x16   :  { %p14456_p10 = pnand %p14454_p9, %p14451_p8 }
  0x18   :  { %14459 = shalt.err (!%p14456_p10)
}
  0x19   :  { %s14460_s14 = scalar_lea.vmem %s14560_s21, 174080  ;;  %p14465_p12 = scmp.lt.s32.totalorder %s14560_s21, %s14560_s21 }
  0x1a   :  { %p14461_p11 = scmp.ne.s32.totalorder %s14560_s21, %s14460_s14  ;;  %p14466_p13 = scmp.lt.s32.totalorder %s14460_s14, %s14460_s14 }
  0x1c   :  { %p14467_p0 = por %p14466_p13, %p14465_p12 }
  0x1e   :  { %p14468_p1 = pnand %p14467_p0, %p14461_p11 }
  0x20   :  { %14471 = shalt.err (!%p14468_p1)
}
  0x21   :  { %s14524_s2 = smov 128   ;;  %s14525_s15 = smov 8  }
  0x22   :  { %26 = dma.hbm_to_vmem [thread:$0]  %s15166_s1, 174080, %s14560_s21, [#allocation3], %s14524_s2, %s14524_s2, %s14525_s15  }
  0x23   :  { %s14526_s18 = smov [#allocation7]   ;;  %s14472_s23 = scalar_lea.hbm %s15169_s4, 16 }
  0x24   :  { %s45_s19 = sshll.u32 %s14526_s18, 4  ;;  %p14473_p2 = scmp.ne.s32.totalorder %s15169_s4, %s14472_s23  ;;  %s46_s19 = int_to_ptr.vmem [resolvable:$true] %s45_s19 }
  0x25   :  { %p14476_p3 = scmp.lt.u32.totalorder %s14472_s23, %s15169_s4 }
  0x27   :  { %p14478_p4 = pnand %p14476_p3, %p14473_p2 }
  0x29   :  { %14481 = shalt.err (!%p14478_p4)
}
  0x2a   :  { %s14482_s28 = scalar_lea.vmem %s46_s19, 16  ;;  %s14486_s1 = scalar_lea.vmem %s46_s19, 32 }
  0x2b   :  { %p14483_p5 = scmp.ne.s32.totalorder %s46_s19, %s14482_s28  ;;  %p14487_p6 = scmp.lt.s32.totalorder %s46_s19, %s46_s19 }
  0x2c   :  { %p14488_p7 = scmp.lt.s32.totalorder %s14486_s1, %s14482_s28 }
  0x2e   :  { %p14489_p8 = por %p14488_p7, %p14487_p6 }
  0x30   :  { %p14490_p9 = pnand %p14489_p8, %p14483_p5 }
  0x32   :  { %14493 = shalt.err (!%p14490_p9)
}
  0x33   :  { %48 = dma.hbm_to_vmem [thread:$0]  %s15169_s4, 16, %s46_s19, [#allocation6]  }
  0x34   :  { %14516 = dma.done.wait [#allocation3], 174080  }
  0x35   :  { %14517 = vsyncadd [#allocation3], 4294793216 }
  0x36   :  { %14518 = dma.done.wait [#allocation6], 48  }
  0x37   :  { %14519 = vsyncadd [#allocation6], 4294967248  ;;  %v12367_v0 = vld [vmem:[#allocation2 + $0x4] ss:$8 sps:$4 sm:$0xff]   ;;  %v12371_v2 = vld [vmem:[#allocation2] ss:$8 sps:$4 sm:$0xff]   ;;  %v1446_v40 = vlaneseq }
  0x38   :  { %v12369_v1 = vld [vmem:[#allocation2 + $0x1504] ss:$8 sps:$4 sm:$0xff]   ;;  %8867 = vmatprep.subr.bf16.mxu1 %v12367_v0  ;;  %v12372_v3 = vld [vmem:[#allocation2 + $0x1500] ss:$8 sps:$4 sm:$0xff]   ;;  %v12373_v4 = vld [vmem:[#allocation2 + $0x14] ss:$8 sps:$4 sm:$0xff]  }
  0x39   :  { %9728 = vmatprep.subr.bf16.mxu0 %v12369_v1  ;;  %8868 = vmatpush1.bf16.msra.mxu1 %v12371_v2  ;;  %v12375_v5 = vld [vmem:[#allocation2 + $0x1514] ss:$8 sps:$4 sm:$0xff]   ;;  %v12377_v6 = vld [vmem:[#allocation2 + $0x10] ss:$8 sps:$4 sm:$0xff]   ;;  %v12379_v8 = vld [vmem:[#allocation2 + $0x24] ss:$8 sps:$4 sm:$0xff]  }
  0x3a   :  { %9729 = vmatpush1.bf16.msra.mxu0 %v12372_v3  ;;  %8869 = vmatprep.subr.bf16.mxu1 %v12373_v4  ;;  %v12378_v7 = vld [vmem:[#allocation2 + $0x1510] ss:$8 sps:$4 sm:$0xff]   ;;  %v12381_v9 = vld [vmem:[#allocation2 + $0x1524] ss:$8 sps:$4 sm:$0xff]   ;;  %v12383_v10 = vld [vmem:[#allocation2 + $0x20] ss:$8 sps:$4 sm:$0xff]  }
  0x3b   :  { %9730 = vmatprep.subr.bf16.mxu0 %v12375_v5  ;;  %v12384_v11 = vld [vmem:[#allocation2 + $0x1520] ss:$8 sps:$4 sm:$0xff]   ;;  %v12385_v12 = vld [vmem:[#allocation2 + $0x34] ss:$8 sps:$4 sm:$0xff]   ;;  %v12389_v14 = vld [vmem:[#allocation2 + $0x30] ss:$8 sps:$4 sm:$0xff]  }
  0x3c   :  { %v12387_v13 = vld [vmem:[#allocation2 + $0x1534] ss:$8 sps:$4 sm:$0xff]   ;;  %v12390_v15 = vld [vmem:[#allocation2 + $0x1530] ss:$8 sps:$4 sm:$0xff]   ;;  %v12391_v16 = vld [vmem:[#allocation2 + $0x44] ss:$8 sps:$4 sm:$0xff]  }
  0x3d   :  { %8870 = vmatpush1.bf16.msra.mxu1 %v12377_v6  ;;  %v12393_v17 = vld [vmem:[#allocation2 + $0x1544] ss:$8 sps:$4 sm:$0xff]   ;;  %v12395_v18 = vld [vmem:[#allocation2 + $0x40] ss:$8 sps:$4 sm:$0xff]   ;;  %v12397_v20 = vld [vmem:[#allocation2 + $0x54] ss:$8 sps:$4 sm:$0xff]  }
  0x3e   :  { %9731 = vmatpush1.bf16.msra.mxu0 %v12378_v7  ;;  %8871 = vmatprep.subr.bf16.mxu1 %v12379_v8  ;;  %v12396_v19 = vld [vmem:[#allocation2 + $0x1540] ss:$8 sps:$4 sm:$0xff]   ;;  %v12399_v21 = vld [vmem:[#allocation2 + $0x1554] ss:$8 sps:$4 sm:$0xff]   ;;  %v12401_v22 = vld [vmem:[#allocation2 + $0x50] ss:$8 sps:$4 sm:$0xff]  }
  0x3f   :  { %9732 = vmatprep.subr.bf16.mxu0 %v12381_v9  ;;  %v12402_v23 = vld [vmem:[#allocation2 + $0x1550] ss:$8 sps:$4 sm:$0xff]   ;;  %v12403_v24 = vld [vmem:[#allocation2 + $0x64] ss:$8 sps:$4 sm:$0xff]   ;;  %v12407_v26 = vld [vmem:[#allocation2 + $0x60] ss:$8 sps:$4 sm:$0xff]  }
  0x40   :  { %v12405_v25 = vld [vmem:[#allocation2 + $0x1564] ss:$8 sps:$4 sm:$0xff]   ;;  %v12408_v27 = vld [vmem:[#allocation2 + $0x1560] ss:$8 sps:$4 sm:$0xff]   ;;  %v12409_v28 = vld [vmem:[#allocation2 + $0x74] ss:$8 sps:$4 sm:$0xff]  }
  0x41   :  { %8872 = vmatpush1.bf16.msra.mxu1 %v12383_v10  ;;  %v12411_v29 = vld [vmem:[#allocation2 + $0x1574] ss:$8 sps:$4 sm:$0xff]   ;;  %v12413_v30 = vld [vmem:[#allocation2 + $0x70] ss:$8 sps:$4 sm:$0xff]   ;;  %v12415_v32 = vld [vmem:[#allocation2 + $0x84] ss:$8 sps:$4 sm:$0xff]  }
  0x42   :  { %9733 = vmatpush1.bf16.msra.mxu0 %v12384_v11  ;;  %8873 = vmatprep.subr.bf16.mxu1 %v12385_v12  ;;  %v12414_v31 = vld [vmem:[#allocation2 + $0x1570] ss:$8 sps:$4 sm:$0xff]   ;;  %v12417_v33 = vld [vmem:[#allocation2 + $0x1584] ss:$8 sps:$4 sm:$0xff]   ;;  %v12419_v34 = vld [vmem:[#allocation2 + $0x80] ss:$8 sps:$4 sm:$0xff]  }
  0x43   :  { %9734 = vmatprep.subr.bf16.mxu0 %v12387_v13  ;;  %v12420_v35 = vld [vmem:[#allocation2 + $0x1580] ss:$8 sps:$4 sm:$0xff]   ;;  %v12421_v36 = vld [vmem:[#allocation2 + $0x94] ss:$8 sps:$4 sm:$0xff]   ;;  %v14527_v38 = vmov 1966171168  }
  0x44   :  { %v12423_v37 = vld [vmem:[#allocation2 + $0x1594] ss:$8 sps:$4 sm:$0xff]   ;;  %v1444_v39 = vunpack.c.l.s4 %v14527_v38  ;;  %v12425_v41 = vld [vmem:[#allocation2 + $0x90] ss:$8 sps:$4 sm:$0xff]   ;;  %v12427_v43 = vld [vmem:[#allocation2 + $0xa4] ss:$8 sps:$4 sm:$0xff]  }
  0x45   :  { %8874 = vmatpush1.bf16.msra.mxu1 %v12389_v14  ;;  %v12426_v42 = vld [vmem:[#allocation2 + $0x1590] ss:$8 sps:$4 sm:$0xff]   ;;  %v12429_v44 = vld [vmem:[#allocation2 + $0x15a4] ss:$8 sps:$4 sm:$0xff]   ;;  %v14603_v46 = vshrl.u32 %v1446_v40, 7  ;;  %vm10735_vm0 = vcmask 81920  }
  0x46   :  { %9735 = vmatpush1.bf16.msra.mxu0 %v12390_v15  ;;  %8875 = vmatprep.subr.bf16.mxu1 %v12391_v16  ;;  %v1445_v45 = vunpack.c.0.s8 %v1444_v39  ;;  %v12431_v47 = vld [vmem:[#allocation2 + $0xa0] ss:$8 sps:$4 sm:$0xff]   ;;  %v12433_v49 = vld [vmem:[#allocation2 + $0xb4] ss:$8 sps:$4 sm:$0xff]   ;;  %v12437_v53 = vld [vmem:[#allocation2 + $0xb0] ss:$8 sps:$4 sm:$0xff]  }
  0x47   :  { %9736 = vmatprep.subr.bf16.mxu0 %v12393_v17  ;;  %v12432_v48 = vld [vmem:[#allocation2 + $0x15a0] ss:$8 sps:$4 sm:$0xff]   ;;  %v12435_v50 = vld [vmem:[#allocation2 + $0x15b4] ss:$8 sps:$4 sm:$0xff]   ;;  %v12438_v55 = vld [vmem:[#allocation2 + $0x15b0] ss:$8 sps:$4 sm:$0xff]  }
  0x48   :  { %v14606_v51 = vsub.s32 %v1445_v45, %v14603_v46  ;;  %v14611_v52 = vld [vmem:[%s15165_s0] sm:$0xff]  ;;  %v64_v56 = vld [vmem:[%s15165_s0 + $0x28] sm:$0xff]  ;;  %v12445_v1 = vld [vmem:[#allocation2 + $0xd4] ss:$8 sps:$4 sm:$0xff]  }
  0x49   :  { %8876 = vmatpush1.bf16.msra.mxu1 %v12395_v18  ;;  %v12439_v57 = vld [vmem:[#allocation2 + $0xc4] ss:$8 sps:$4 sm:$0xff]   ;;  %v12443_v63 = vld [vmem:[#allocation2 + $0xc0] ss:$8 sps:$4 sm:$0xff]   ;;  %v12447_v2 = vld [vmem:[#allocation2 + $0x15d4] ss:$8 sps:$4 sm:$0xff]   ;;  %v1687_v9 = vcombine.high %v64_v56, %v64_v56 }
  0x4a   :  { %9737 = vmatpush1.bf16.msra.mxu0 %v12396_v19  ;;  %8877 = vmatprep.subr.bf16.mxu1 %v12397_v20  ;;  %v1449_v54 = vrot.slane %v14611_v52, %v14606_v51  ;;  %v12441_v58 = vld [vmem:[#allocation2 + $0x15c4] ss:$8 sps:$4 sm:$0xff]   ;;  %v1694_v60 = vrot.slane %v64_v56, %v14606_v51  ;;  %v12444_v0 = vld [vmem:[#allocation2 + $0x15c0] ss:$8 sps:$4 sm:$0xff]   ;;  %v12449_v5 = vld [vmem:[#allocation2 + $0xd0] ss:$8 sps:$4 sm:$0xff]  }
  0x4b   :  { %9738 = vmatprep.subr.bf16.mxu0 %v12399_v21  ;;  %v12450_v6 = vld [vmem:[#allocation2 + $0x15d0] ss:$8 sps:$4 sm:$0xff]   ;;  %v12451_v7 = vld [vmem:[#allocation2 + $0xe4] ss:$8 sps:$4 sm:$0xff]   ;;  %v12455_v10 = vld [vmem:[#allocation2 + $0xe0] ss:$8 sps:$4 sm:$0xff]   ;;  %v14629_v14 = vrot.slane %v1687_v9, %v14606_v51 }
  0x4c   :  { %v1457_v59 = vcombine.high %v1449_v54, %v1449_v54  ;;  %v1702_v62 = vcombine.high %v1694_v60, %v1694_v60  ;;  %v12453_v8 = vld [vmem:[#allocation2 + $0x15e4] ss:$8 sps:$4 sm:$0xff]   ;;  %v12456_v11 = vld [vmem:[#allocation2 + $0x15e0] ss:$8 sps:$4 sm:$0xff]   ;;  %v12457_v12 = vld [vmem:[#allocation2 + $0xf4] ss:$8 sps:$4 sm:$0xff]   ;;  %v14632_v15 = vrot.slane %v1694_v60, %v14606_v51  ;;  %v14637_v21 = vrot.slane %v1449_v54, %v14606_v51 }
  0x4d   :  { %8878 = vmatpush1.bf16.msra.mxu1 %v12401_v22  ;;  %v12459_v13 = vld [vmem:[#allocation2 + $0x15f4] ss:$8 sps:$4 sm:$0xff]   ;;  %v12461_v16 = vld [vmem:[#allocation2 + $0xf0] ss:$8 sps:$4 sm:$0xff]   ;;  %v12466_v18 = vld [vmem:[#allocation2 + $0x104] ss:$8 sps:$4 sm:$0xff]   ;;  %v1703_v20 = vcombine.high %v14629_v14, %v14629_v14 }
  0x4e   :  { %9739 = vmatpush1.bf16.msra.mxu0 %v12402_v23  ;;  %8879 = vmatprep.subr.bf16.mxu1 %v12403_v24  ;;  %v14620_v61 = vrot.slane %v1457_v59, %v14606_v51  ;;  %v14623_v3 = vrot.slane %v1702_v62, %v14606_v51  ;;  %v12462_v17 = vld [vmem:[#allocation2 + $0x15f0] ss:$8 sps:$4 sm:$0xff]   ;;  %v12470_v19 = vld [vmem:[#allocation2 + $0x1604] ss:$8 sps:$4 sm:$0xff]   ;;  %v1732_v22 = vcombine.high %v14632_v15, %v14632_v15  ;;  %v12464_v23 = vld [vmem:[#allocation2 + $0x100] ss:$8 sps:$4 sm:$0xff]  }
  0x4f   :  { %9740 = vmatprep.subr.bf16.mxu0 %v12405_v25  ;;  %v12468_v24 = vld [vmem:[#allocation2 + $0x1600] ss:$8 sps:$4 sm:$0xff]   ;;  %v12473_v25 = vld [vmem:[#allocation2 + $0x114] ss:$8 sps:$4 sm:$0xff]   ;;  %v12486_v38 = vld [vmem:[#allocation2 + $0x1630] ss:$8 sps:$4 sm:$0xff]  }
  0x50   :  { %8899 = vmatprep.mubr.bf16.mxu1 %v14620_v61  ;;  %v1734_v4 = vcombine.high %v14623_v3, %v14623_v3  ;;  %v12491_v39 = vld [vmem:[#allocation2 + $0x144] ss:$8 sps:$4 sm:$0xff]   ;;  %v12495_v45 = vld [vmem:[#allocation2 + $0x150] ss:$8 sps:$4 sm:$0xff]   ;;  %v12509_v54 = vld [vmem:[#allocation2 + $0x174] ss:$8 sps:$4 sm:$0xff]  }
  0x51   :  { %8880 = vmatpush1.bf16.msra.mxu1 %v12407_v26  ;;  %v12476_v26 = vld [vmem:[#allocation2 + $0x1614] ss:$8 sps:$4 sm:$0xff]   ;;  %v12494_v40 = vld [vmem:[#allocation2 + $0x1644] ss:$8 sps:$4 sm:$0xff]   ;;  %v12507_v56 = vld [vmem:[#allocation2 + $0x170] ss:$8 sps:$4 sm:$0xff]  }
  0x52   :  { %9741 = vmatpush1.bf16.msra.mxu0 %v12408_v27  ;;  %8881 = vmatprep.subr.bf16.mxu1 %v12409_v28  ;;  %v1489_v27 = vcombine.high %v14620_v61, %v14620_v61  ;;  %v14644_v28 = vrot.slane %v1703_v20, %v14606_v51  ;;  %v12518_v59 = vld [vmem:[#allocation2 + $0x1684] ss:$8 sps:$4 sm:$0xff]   ;;  %v12513_v60 = vld [vmem:[#allocation2 + $0x180] ss:$8 sps:$4 sm:$0xff]   ;;  %v12521_v62 = vld [vmem:[#allocation2 + $0x194] ss:$8 sps:$4 sm:$0xff]  }
  0x53   :  { %9742 = vmatprep.subr.bf16.mxu0 %v12411_v29  ;;  %9760 = vmatprep.mubr.bf16.mxu0 %v1734_v4  ;;  %v12471_v29 = vld [vmem:[#allocation2 + $0x110] ss:$8 sps:$4 sm:$0xff]   ;;  %v12516_v61 = vld [vmem:[#allocation2 + $0x1680] ss:$8 sps:$4 sm:$0xff]   ;;  %v12530_v4 = vld [vmem:[#allocation2 + $0x16a4] ss:$8 sps:$4 sm:$0xff]  }
  0x54   :  { %v12531_v9 = vld [vmem:[#allocation2 + $0x1b0] ss:$8 sps:$4 sm:$0xff]  }
  0x55   :  { %8882 = vmatpush1.bf16.msra.mxu1 %v12413_v30  ;;  %v12474_v30 = vld [vmem:[#allocation2 + $0x1610] ss:$8 sps:$4 sm:$0xff]  }
  0x56   :  { %9743 = vmatpush1.bf16.msra.mxu0 %v12414_v31  ;;  %8883 = vmatprep.subr.bf16.mxu1 %v12415_v32  ;;  %v12479_v31 = vld [vmem:[#allocation2 + $0x124] ss:$8 sps:$4 sm:$0xff]   ;;  %v12546_v20 = vld [vmem:[#allocation2 + $0x16d0] ss:$8 sps:$4 sm:$0xff]  }
  0x57   :  { %9744 = vmatprep.subr.bf16.mxu0 %v12417_v33  ;;  %v12482_v32 = vld [vmem:[#allocation2 + $0x1624] ss:$8 sps:$4 sm:$0xff]   ;;  %v12477_v33 = vld [vmem:[#allocation2 + $0x120] ss:$8 sps:$4 sm:$0xff]  }
  0x59   :  { %8884 = vmatpush1.bf16.msra.mxu1 %v12419_v34  ;;  %v12480_v34 = vld [vmem:[#allocation2 + $0x1620] ss:$8 sps:$4 sm:$0xff]  }
  0x5a   :  { %9745 = vmatpush1.bf16.msra.mxu0 %v12420_v35  ;;  %8885 = vmatprep.subr.bf16.mxu1 %v12421_v36  ;;  %v12485_v35 = vld [vmem:[#allocation2 + $0x134] ss:$8 sps:$4 sm:$0xff]  }
  0x5b   :  { %9746 = vmatprep.subr.bf16.mxu0 %v12423_v37  ;;  %v12488_v36 = vld [vmem:[#allocation2 + $0x1634] ss:$8 sps:$4 sm:$0xff]   ;;  %v12483_v37 = vld [vmem:[#allocation2 + $0x130] ss:$8 sps:$4 sm:$0xff]  }
  0x5d   :  { %8886 = vmatpush1.bf16.msra.mxu1 %v12425_v41  ;;  %v12489_v41 = vld [vmem:[#allocation2 + $0x140] ss:$8 sps:$4 sm:$0xff]  }
  0x5e   :  { %9747 = vmatpush1.bf16.msra.mxu0 %v12426_v42  ;;  %8887 = vmatprep.subr.bf16.mxu1 %v12427_v43  ;;  %v12492_v42 = vld [vmem:[#allocation2 + $0x1640] ss:$8 sps:$4 sm:$0xff]   ;;  %v12497_v43 = vld [vmem:[#allocation2 + $0x154] ss:$8 sps:$4 sm:$0xff]  }
  0x5f   :  { %9748 = vmatprep.subr.bf16.mxu0 %v12429_v44  ;;  %v12500_v44 = vld [vmem:[#allocation2 + $0x1654] ss:$8 sps:$4 sm:$0xff]  }
  0x61   :  { %8888 = vmatpush1.bf16.msra.mxu1 %v12431_v47  ;;  %v12498_v47 = vld [vmem:[#allocation2 + $0x1650] ss:$8 sps:$4 sm:$0xff]  }
  0x62   :  { %9749 = vmatpush1.bf16.msra.mxu0 %v12432_v48  ;;  %8889 = vmatprep.subr.bf16.mxu1 %v12433_v49  ;;  %v12503_v48 = vld [vmem:[#allocation2 + $0x164] ss:$8 sps:$4 sm:$0xff]  }
  0x63   :  { %9750 = vmatprep.subr.bf16.mxu0 %v12435_v50  ;;  %v12506_v49 = vld [vmem:[#allocation2 + $0x1664] ss:$8 sps:$4 sm:$0xff]   ;;  %v12501_v50 = vld [vmem:[#allocation2 + $0x160] ss:$8 sps:$4 sm:$0xff]  }
  0x65   :  { %8890 = vmatpush1.bf16.msra.mxu1 %v12437_v53  ;;  %v12504_v53 = vld [vmem:[#allocation2 + $0x1660] ss:$8 sps:$4 sm:$0xff]  }
  0x66   :  { %9751 = vmatpush1.bf16.msra.mxu0 %v12438_v55  ;;  %8891 = vmatprep.subr.bf16.mxu1 %v12439_v57  ;;  %v12512_v55 = vld [vmem:[#allocation2 + $0x1674] ss:$8 sps:$4 sm:$0xff]   ;;  %v12510_v57 = vld [vmem:[#allocation2 + $0x1670] ss:$8 sps:$4 sm:$0xff]  }
  0x67   :  { %9752 = vmatprep.subr.bf16.mxu0 %v12441_v58  ;;  %v12515_v58 = vld [vmem:[#allocation2 + $0x184] ss:$8 sps:$4 sm:$0xff]  }
  0x69   :  { %8892 = vmatpush1.bf16.msra.mxu1 %v12443_v63  ;;  %v12524_v63 = vld [vmem:[#allocation2 + $0x1694] ss:$8 sps:$4 sm:$0xff]  }
  0x6a   :  { %9753 = vmatpush1.bf16.msra.mxu0 %v12444_v0  ;;  %8893 = vmatprep.subr.bf16.mxu1 %v12445_v1  ;;  %v12519_v0 = vld [vmem:[#allocation2 + $0x190] ss:$8 sps:$4 sm:$0xff]  }
  0x6b   :  { %9754 = vmatprep.subr.bf16.mxu0 %v12447_v2  ;;  %v12522_v1 = vld [vmem:[#allocation2 + $0x1690] ss:$8 sps:$4 sm:$0xff]   ;;  %v12527_v2 = vld [vmem:[#allocation2 + $0x1a4] ss:$8 sps:$4 sm:$0xff]  }
  0x6d   :  { %8894 = vmatpush1.bf16.msra.mxu1 %v12449_v5  ;;  %v12525_v5 = vld [vmem:[#allocation2 + $0x1a0] ss:$8 sps:$4 sm:$0xff]  }
  0x6e   :  { %9755 = vmatpush1.bf16.msra.mxu0 %v12450_v6  ;;  %8895 = vmatprep.subr.bf16.mxu1 %v12451_v7  ;;  %v12528_v6 = vld [vmem:[#allocation2 + $0x16a0] ss:$8 sps:$4 sm:$0xff]   ;;  %v12533_v7 = vld [vmem:[#allocation2 + $0x1b4] ss:$8 sps:$4 sm:$0xff]  }
  0x6f   :  { %9756 = vmatprep.subr.bf16.mxu0 %v12453_v8  ;;  %v12536_v8 = vld [vmem:[#allocation2 + $0x16b4] ss:$8 sps:$4 sm:$0xff]  }
  0x71   :  { %8896 = vmatpush1.bf16.msra.mxu1 %v12455_v10  ;;  %v12534_v10 = vld [vmem:[#allocation2 + $0x16b0] ss:$8 sps:$4 sm:$0xff]  }
  0x72   :  { %9757 = vmatpush1.bf16.msra.mxu0 %v12456_v11  ;;  %8897 = vmatprep.subr.bf16.mxu1 %v12457_v12  ;;  %v12539_v11 = vld [vmem:[#allocation2 + $0x1c4] ss:$8 sps:$4 sm:$0xff]  }
  0x73   :  { %9758 = vmatprep.subr.bf16.mxu0 %v12459_v13  ;;  %v12542_v12 = vld [vmem:[#allocation2 + $0x16c4] ss:$8 sps:$4 sm:$0xff]   ;;  %v12537_v13 = vld [vmem:[#allocation2 + $0x1c0] ss:$8 sps:$4 sm:$0xff]  }
  0x75   :  { %8898 = vmatpush1.bf16.msra.mxu1 %v12461_v16  ;;  %v12540_v16 = vld [vmem:[#allocation2 + $0x16c0] ss:$8 sps:$4 sm:$0xff]  }
  0x76   :  { %9759 = vmatpush1.bf16.msra.mxu0 %v12462_v17  ;;  %8908 = vmatprep.subr.bf16.mxu1 %v12466_v18  ;;  %v12545_v17 = vld [vmem:[#allocation2 + $0x1d4] ss:$8 sps:$4 sm:$0xff]  }
  0x77   :  { %9769 = vmatprep.subr.bf16.mxu0 %v12470_v19  ;;  %v12548_v18 = vld [vmem:[#allocation2 + $0x16d4] ss:$8 sps:$4 sm:$0xff]   ;;  %v12543_v19 = vld [vmem:[#allocation2 + $0x1d0] ss:$8 sps:$4 sm:$0xff]  }
  0x78   :  { %8900 = vmatmul.mubr.bf16.vlgmr.msra.gmra.mrb[0].mxu1 %v14637_v21 }
  0x79   :  { %9761 = vmatmul.mubr.bf16.vlgmr.msra.gmra.mrb[0].mxu0 %v1732_v22  ;;  %8909 = vmatpush1.bf16.msra.mxu1 %v12464_v23  ;;  %v12551_v22 = vld [vmem:[#allocation2 + $0x1e4] ss:$8 sps:$4 sm:$0xff]  }
  0x7a   :  { %9770 = vmatpush1.bf16.msra.mxu0 %v12468_v24  ;;  %8910 = vmatprep.subr.bf16.mxu1 %v12473_v25  ;;  %v12554_v23 = vld [vmem:[#allocation2 + $0x16e4] ss:$8 sps:$4 sm:$0xff]   ;;  %v1442_v24 = vcombine.high %v14611_v52, %v14611_v52  ;;  %v12549_v25 = vld [vmem:[#allocation2 + $0x1e0] ss:$8 sps:$4 sm:$0xff]  }
  0x7b   :  { %9771 = vmatprep.subr.bf16.mxu0 %v12476_v26  ;;  %8940 = vmatprep.mubr.bf16.mxu1 %v1489_v27  ;;  %v12552_v26 = vld [vmem:[#allocation2 + $0x16e0] ss:$8 sps:$4 sm:$0xff]   ;;  %v12557_v27 = vld [vmem:[#allocation2 + $0x1f4] ss:$8 sps:$4 sm:$0xff]  }
  0x7c   :  { %9801 = vmatprep.mubr.bf16.mxu0 %v14644_v28 }
  0x7d   :  { %8911 = vmatpush1.bf16.msra.mxu1 %v12471_v29  ;;  %v12560_v29 = vld [vmem:[#allocation2 + $0x16f4] ss:$8 sps:$4 sm:$0xff]  }
  0x7e   :  { %9772 = vmatpush1.bf16.msra.mxu0 %v12474_v30  ;;  %8912 = vmatprep.subr.bf16.mxu1 %v12479_v31  ;;  %v14651_v30 = vrot.slane %v1442_v24, %v14606_v51  ;;  %v12555_v31 = vld [vmem:[#allocation2 + $0x1f0] ss:$8 sps:$4 sm:$0xff]  }
  0x7f   :  { %9773 = vmatprep.subr.bf16.mxu0 %v12482_v32  ;;  %v12558_v32 = vld [vmem:[#allocation2 + $0x16f0] ss:$8 sps:$4 sm:$0xff]  }
  0x80   :  { %v1458_v52 = vcombine.high %v14651_v30, %v14651_v30  ;;  %v12630_v24 = vld [vmem:[#allocation2 + $0x17b0] ss:$8 sps:$4 sm:$0xff]  }
  0x81   :  { %8913 = vmatpush1.bf16.msra.mxu1 %v12477_v33  ;;  %v12563_v33 = vld [vmem:[#allocation2 + $0x204] ss:$8 sps:$4 sm:$0xff]  }
  0x82   :  { %9774 = vmatpush1.bf16.msra.mxu0 %v12480_v34  ;;  %8914 = vmatprep.subr.bf16.mxu1 %v12485_v35  ;;  %v12566_v34 = vld [vmem:[#allocation2 + $0x1704] ss:$8 sps:$4 sm:$0xff]   ;;  %v1487_v35 = vcombine.high %v14637_v21, %v14637_v21  ;;  %v12570_v21 = vld [vmem:[#allocation2 + $0x1710] ss:$8 sps:$4 sm:$0xff]  }
  0x83   :  { %9775 = vmatprep.subr.bf16.mxu0 %v12488_v36  ;;  %v14659_v36 = vrot.slane %v14629_v14, %v14606_v51  ;;  %v12567_v14 = vld [vmem:[#allocation2 + $0x210] ss:$8 sps:$4 sm:$0xff]  }
  0x85   :  { %8915 = vmatpush1.bf16.msra.mxu1 %v12483_v37  ;;  %v12561_v37 = vld [vmem:[#allocation2 + $0x200] ss:$8 sps:$4 sm:$0xff]  }
  0x86   :  { %9776 = vmatpush1.bf16.msra.mxu0 %v12486_v38  ;;  %8916 = vmatprep.subr.bf16.mxu1 %v12491_v39  ;;  %v12564_v38 = vld [vmem:[#allocation2 + $0x1700] ss:$8 sps:$4 sm:$0xff]   ;;  %v12569_v39 = vld [vmem:[#allocation2 + $0x214] ss:$8 sps:$4 sm:$0xff]  }
  0x87   :  { %9777 = vmatprep.subr.bf16.mxu0 %v12494_v40  ;;  %v12572_v40 = vld [vmem:[#allocation2 + $0x1714] ss:$8 sps:$4 sm:$0xff]  }
  0x89   :  { %8917 = vmatpush1.bf16.msra.mxu1 %v12489_v41  ;;  %v14662_v41 = vrot.slane %v1458_v52, %v14606_v51  ;;  %v12647_v52 = vld [vmem:[#allocation2 + $0x2e4] ss:$8 sps:$4 sm:$0xff]  }
  0x8a   :  { %9778 = vmatpush1.bf16.msra.mxu0 %v12492_v42  ;;  %8918 = vmatprep.subr.bf16.mxu1 %v12497_v43  ;;  %v1735_v42 = vcombine.high %v14644_v28, %v14644_v28  ;;  %v12575_v43 = vld [vmem:[#allocation2 + $0x224] ss:$8 sps:$4 sm:$0xff]   ;;  %v12581_v28 = vld [vmem:[#allocation2 + $0x234] ss:$8 sps:$4 sm:$0xff]  }
  0x8b   :  { %9779 = vmatprep.subr.bf16.mxu0 %v12500_v44  ;;  %v12578_v44 = vld [vmem:[#allocation2 + $0x1724] ss:$8 sps:$4 sm:$0xff]  }
  0x8d   :  { %8919 = vmatpush1.bf16.msra.mxu1 %v12495_v45  ;;  %v12573_v45 = vld [vmem:[#allocation2 + $0x220] ss:$8 sps:$4 sm:$0xff]  }
  0x8e   :  { %9780 = vmatpush1.bf16.msra.mxu0 %v12498_v47  ;;  %8920 = vmatprep.subr.bf16.mxu1 %v12503_v48  ;;  %v12576_v47 = vld [vmem:[#allocation2 + $0x1720] ss:$8 sps:$4 sm:$0xff]   ;;  %v12584_v48 = vld [vmem:[#allocation2 + $0x1734] ss:$8 sps:$4 sm:$0xff]  }
  0x8f   :  { %9781 = vmatprep.subr.bf16.mxu0 %v12506_v49  ;;  %v12579_v49 = vld [vmem:[#allocation2 + $0x230] ss:$8 sps:$4 sm:$0xff]  }
  0x91   :  { %8921 = vmatpush1.bf16.msra.mxu1 %v12501_v50  ;;  %v12582_v50 = vld [vmem:[#allocation2 + $0x1730] ss:$8 sps:$4 sm:$0xff]  }
  0x92   :  { %9782 = vmatpush1.bf16.msra.mxu0 %v12504_v53  ;;  %8922 = vmatprep.subr.bf16.mxu1 %v12509_v54  ;;  %v12587_v53 = vld [vmem:[#allocation2 + $0x244] ss:$8 sps:$4 sm:$0xff]  }
  0x93   :  { %9783 = vmatprep.subr.bf16.mxu0 %v12512_v55  ;;  %v12590_v54 = vld [vmem:[#allocation2 + $0x1744] ss:$8 sps:$4 sm:$0xff]   ;;  %v12585_v55 = vld [vmem:[#allocation2 + $0x240] ss:$8 sps:$4 sm:$0xff]  }
  0x95   :  { %8923 = vmatpush1.bf16.msra.mxu1 %v12507_v56  ;;  %v12588_v56 = vld [vmem:[#allocation2 + $0x1740] ss:$8 sps:$4 sm:$0xff]  }
  0x96   :  { %9784 = vmatpush1.bf16.msra.mxu0 %v12510_v57  ;;  %8924 = vmatprep.subr.bf16.mxu1 %v12515_v58  ;;  %v12593_v57 = vld [vmem:[#allocation2 + $0x254] ss:$8 sps:$4 sm:$0xff]  }
  0x97   :  { %9785 = vmatprep.subr.bf16.mxu0 %v12518_v59  ;;  %v12596_v58 = vld [vmem:[#allocation2 + $0x1754] ss:$8 sps:$4 sm:$0xff]   ;;  %v12591_v59 = vld [vmem:[#allocation2 + $0x250] ss:$8 sps:$4 sm:$0xff]  }
  0x99   :  { %8925 = vmatpush1.bf16.msra.mxu1 %v12513_v60  ;;  %v12594_v60 = vld [vmem:[#allocation2 + $0x1750] ss:$8 sps:$4 sm:$0xff]  }
  0x9a   :  { %9786 = vmatpush1.bf16.msra.mxu0 %v12516_v61  ;;  %8926 = vmatprep.subr.bf16.mxu1 %v12521_v62  ;;  %v12599_v61 = vld [vmem:[#allocation2 + $0x264] ss:$8 sps:$4 sm:$0xff]  }
  0x9b   :  { %9787 = vmatprep.subr.bf16.mxu0 %v12524_v63  ;;  %v12602_v62 = vld [vmem:[#allocation2 + $0x1764] ss:$8 sps:$4 sm:$0xff]   ;;  %v12597_v63 = vld [vmem:[#allocation2 + $0x260] ss:$8 sps:$4 sm:$0xff]  }
  0x9d   :  { %8927 = vmatpush1.bf16.msra.mxu1 %v12519_v0  ;;  %v12600_v0 = vld [vmem:[#allocation2 + $0x1760] ss:$8 sps:$4 sm:$0xff]  }
  0x9e   :  { %9788 = vmatpush1.bf16.msra.mxu0 %v12522_v1  ;;  %8928 = vmatprep.subr.bf16.mxu1 %v12527_v2  ;;  %v12605_v1 = vld [vmem:[#allocation2 + $0x274] ss:$8 sps:$4 sm:$0xff]  }
  0x9f   :  { %9789 = vmatprep.subr.bf16.mxu0 %v12530_v4  ;;  %v12608_v2 = vld [vmem:[#allocation2 + $0x1774] ss:$8 sps:$4 sm:$0xff]   ;;  %v12603_v4 = vld [vmem:[#allocation2 + $0x270] ss:$8 sps:$4 sm:$0xff]  }
  0xa1   :  { %8929 = vmatpush1.bf16.msra.mxu1 %v12525_v5  ;;  %v12606_v5 = vld [vmem:[#allocation2 + $0x1770] ss:$8 sps:$4 sm:$0xff]  }
  0xa2   :  { %9790 = vmatpush1.bf16.msra.mxu0 %v12528_v6  ;;  %8930 = vmatprep.subr.bf16.mxu1 %v12533_v7  ;;  %v12611_v6 = vld [vmem:[#allocation2 + $0x284] ss:$8 sps:$4 sm:$0xff]  }
  0xa3   :  { %9791 = vmatprep.subr.bf16.mxu0 %v12536_v8  ;;  %v12614_v7 = vld [vmem:[#allocation2 + $0x1784] ss:$8 sps:$4 sm:$0xff]   ;;  %v12609_v8 = vld [vmem:[#allocation2 + $0x280] ss:$8 sps:$4 sm:$0xff]  }
  0xa5   :  { %8931 = vmatpush1.bf16.msra.mxu1 %v12531_v9  ;;  %v12612_v9 = vld [vmem:[#allocation2 + $0x1780] ss:$8 sps:$4 sm:$0xff]  }
  0xa6   :  { %9792 = vmatpush1.bf16.msra.mxu0 %v12534_v10  ;;  %8932 = vmatprep.subr.bf16.mxu1 %v12539_v11  ;;  %v12617_v10 = vld [vmem:[#allocation2 + $0x294] ss:$8 sps:$4 sm:$0xff]  }
  0xa7   :  { %9793 = vmatprep.subr.bf16.mxu0 %v12542_v12  ;;  %v12620_v11 = vld [vmem:[#allocation2 + $0x1794] ss:$8 sps:$4 sm:$0xff]   ;;  %v12615_v12 = vld [vmem:[#allocation2 + $0x290] ss:$8 sps:$4 sm:$0xff]  }
  0xa9   :  { %8933 = vmatpush1.bf16.msra.mxu1 %v12537_v13  ;;  %v12618_v13 = vld [vmem:[#allocation2 + $0x1790] ss:$8 sps:$4 sm:$0xff]  }
  0xaa   :  { %9794 = vmatpush1.bf16.msra.mxu0 %v12540_v16  ;;  %8934 = vmatprep.subr.bf16.mxu1 %v12545_v17  ;;  %v12623_v16 = vld [vmem:[#allocation2 + $0x2a4] ss:$8 sps:$4 sm:$0xff]  }
  0xab   :  { %9795 = vmatprep.subr.bf16.mxu0 %v12548_v18  ;;  %v12626_v17 = vld [vmem:[#allocation2 + $0x17a4] ss:$8 sps:$4 sm:$0xff]   ;;  %v12621_v18 = vld [vmem:[#allocation2 + $0x2a0] ss:$8 sps:$4 sm:$0xff]  }
  0xad   :  { %8935 = vmatpush1.bf16.msra.mxu1 %v12543_v19  ;;  %v12624_v19 = vld [vmem:[#allocation2 + $0x17a0] ss:$8 sps:$4 sm:$0xff]  }
  0xae   :  { %9796 = vmatpush1.bf16.msra.mxu0 %v12546_v20  ;;  %8936 = vmatprep.subr.bf16.mxu1 %v12551_v22  ;;  %v12629_v20 = vld [vmem:[#allocation2 + $0x2b4] ss:$8 sps:$4 sm:$0xff]  }
  0xaf   :  { %9797 = vmatprep.subr.bf16.mxu0 %v12554_v23  ;;  %v12632_v22 = vld [vmem:[#allocation2 + $0x17b4] ss:$8 sps:$4 sm:$0xff]   ;;  %v12627_v23 = vld [vmem:[#allocation2 + $0x2b0] ss:$8 sps:$4 sm:$0xff]  }
  0xb1   :  { %8937 = vmatpush1.bf16.msra.mxu1 %v12549_v25  ;;  %v12635_v25 = vld [vmem:[#allocation2 + $0x2c4] ss:$8 sps:$4 sm:$0xff]  }
  0xb2   :  { %9798 = vmatpush1.bf16.msra.mxu0 %v12552_v26  ;;  %8938 = vmatprep.subr.bf16.mxu1 %v12557_v27  ;;  %v12638_v26 = vld [vmem:[#allocation2 + $0x17c4] ss:$8 sps:$4 sm:$0xff]   ;;  %v12633_v27 = vld [vmem:[#allocation2 + $0x2c0] ss:$8 sps:$4 sm:$0xff]  }
  0xb3   :  { %9799 = vmatprep.subr.bf16.mxu0 %v12560_v29  ;;  %v12636_v29 = vld [vmem:[#allocation2 + $0x17c0] ss:$8 sps:$4 sm:$0xff]  }
  0xb5   :  { %8939 = vmatpush1.bf16.msra.mxu1 %v12555_v31  ;;  %v12641_v31 = vld [vmem:[#allocation2 + $0x2d4] ss:$8 sps:$4 sm:$0xff]  }
  0xb6   :  { %9800 = vmatpush1.bf16.msra.mxu0 %v12558_v32  ;;  %8949 = vmatprep.subr.bf16.mxu1 %v12563_v33  ;;  %v12644_v32 = vld [vmem:[#allocation2 + $0x17d4] ss:$8 sps:$4 sm:$0xff]   ;;  %v12639_v33 = vld [vmem:[#allocation2 + $0x2d0] ss:$8 sps:$4 sm:$0xff]  }
  0xb7   :  { %9810 = vmatprep.subr.bf16.mxu0 %v12566_v34  ;;  %v12642_v34 = vld [vmem:[#allocation2 + $0x17d0] ss:$8 sps:$4 sm:$0xff]  }
  0xb8   :  { %8941 = vmatmul.mubr.bf16.vlgmr.msra.gmra.mrb[0].mxu1 %v1487_v35  ;;  %v12650_v35 = vld [vmem:[#allocation2 + $0x17e4] ss:$8 sps:$4 sm:$0xff]  }
  0xb9   :  { %9802 = vmatmul.mubr.bf16.vlgmr.msra.gmra.mrb[0].mxu0 %v14659_v36  ;;  %8950 = vmatpush1.bf16.msra.mxu1 %v12561_v37  ;;  %v12645_v37 = vld [vmem:[#allocation2 + $0x2e0] ss:$8 sps:$4 sm:$0xff]  }
  0xba   :  { %9811 = vmatpush1.bf16.msra.mxu0 %v12564_v38  ;;  %8951 = vmatprep.subr.bf16.mxu1 %v12569_v39  ;;  %v14671_v38 = vld [vmem:[%s15165_s0 + $0x30] sm:$0xff]  ;;  %v12648_v39 = vld [vmem:[#allocation2 + $0x17e0] ss:$8 sps:$4 sm:$0xff]  }
  0xbb   :  { %9812 = vmatprep.subr.bf16.mxu0 %v12572_v40  ;;  %8981 = vmatprep.mubr.bf16.mxu1 %v14662_v41  ;;  %v12653_v40 = vld [vmem:[#allocation2 + $0x2f4] ss:$8 sps:$4 sm:$0xff]  }
  0xbc   :  { %9842 = vmatprep.mubr.bf16.mxu0 %v1735_v42  ;;  %v12656_v42 = vld [vmem:[#allocation2 + $0x17f4] ss:$8 sps:$4 sm:$0xff]  }
  0xbd   :  { %8952 = vmatpush1.bf16.msra.mxu1 %v12567_v14  ;;  %v14675_v14 = vrot.slane %v14671_v38, %v14606_v51 }
  0xbe   :  { %9813 = vmatpush1.bf16.msra.mxu0 %v12570_v21  ;;  %8953 = vmatprep.subr.bf16.mxu1 %v12575_v43  ;;  %v12651_v21 = vld [vmem:[#allocation2 + $0x2f0] ss:$8 sps:$4 sm:$0xff]  }
  0xbf   :  { %9814 = vmatprep.subr.bf16.mxu0 %v12578_v44  ;;  %v12654_v43 = vld [vmem:[#allocation2 + $0x17f0] ss:$8 sps:$4 sm:$0xff]   ;;  %v12659_v44 = vld [vmem:[#allocation2 + $0x304] ss:$8 sps:$4 sm:$0xff]  }
  0xc1   :  { %8954 = vmatpush1.bf16.msra.mxu1 %v12573_v45  ;;  %v12662_v45 = vld [vmem:[#allocation2 + $0x1804] ss:$8 sps:$4 sm:$0xff]  }
  0xc2   :  { %9815 = vmatpush1.bf16.msra.mxu0 %v12576_v47  ;;  %8955 = vmatprep.subr.bf16.mxu1 %v12581_v28  ;;  %v1751_v47 = vcombine.high %v14675_v14, %v14675_v14  ;;  %v12657_v28 = vld [vmem:[#allocation2 + $0x300] ss:$8 sps:$4 sm:$0xff]  }
  0xc3   :  { %9816 = vmatprep.subr.bf16.mxu0 %v12584_v48  ;;  %v14681_v48 = vrot.slane %v14651_v30, %v14606_v51  ;;  %v12663_v30 = vld [vmem:[#allocation2 + $0x310] ss:$8 sps:$4 sm:$0xff]  }
  0xc5   :  { %8956 = vmatpush1.bf16.msra.mxu1 %v12579_v49  ;;  %v1733_v49 = vcombine.high %v14659_v36, %v14659_v36  ;;  %v12666_v36 = vld [vmem:[#allocation2 + $0x1810] ss:$8 sps:$4 sm:$0xff]  }
  0xc6   :  { %9817 = vmatpush1.bf16.msra.mxu0 %v12582_v50  ;;  %8957 = vmatprep.subr.bf16.mxu1 %v12587_v53  ;;  %v12660_v50 = vld [vmem:[#allocation2 + $0x1800] ss:$8 sps:$4 sm:$0xff]   ;;  %v12665_v53 = vld [vmem:[#allocation2 + $0x314] ss:$8 sps:$4 sm:$0xff]  }
  0xc7   :  { %9818 = vmatprep.subr.bf16.mxu0 %v12590_v54  ;;  %v12668_v54 = vld [vmem:[#allocation2 + $0x1814] ss:$8 sps:$4 sm:$0xff]  }
  0xc9   :  { %8958 = vmatpush1.bf16.msra.mxu1 %v12585_v55  ;;  %v1490_v55 = vcombine.high %v14662_v41, %v14662_v41  ;;  %v12672_v41 = vld [vmem:[#allocation2 + $0x1820] ss:$8 sps:$4 sm:$0xff]  }
  0xca   :  { %9819 = vmatpush1.bf16.msra.mxu0 %v12588_v56  ;;  %8959 = vmatprep.subr.bf16.mxu1 %v12593_v57  ;;  %v14688_v56 = vrot.slane %v1751_v47, %v14606_v51  ;;  %v12671_v57 = vld [vmem:[#allocation2 + $0x324] ss:$8 sps:$4 sm:$0xff]   ;;  %v12738_v47 = vld [vmem:[#allocation2 + $0x18d0] ss:$8 sps:$4 sm:$0xff]  }
  0xcb   :  { %9820 = vmatprep.subr.bf16.mxu0 %v12596_v58  ;;  %v12674_v58 = vld [vmem:[#allocation2 + $0x1824] ss:$8 sps:$4 sm:$0xff]  }
  0xcd   :  { %8960 = vmatpush1.bf16.msra.mxu1 %v12591_v59  ;;  %v12669_v59 = vld [vmem:[#allocation2 + $0x320] ss:$8 sps:$4 sm:$0xff]  }
  0xce   :  { %9821 = vmatpush1.bf16.msra.mxu0 %v12594_v60  ;;  %8961 = vmatprep.subr.bf16.mxu1 %v12599_v61  ;;  %v12677_v60 = vld [vmem:[#allocation2 + $0x334] ss:$8 sps:$4 sm:$0xff]  }
  0xcf   :  { %9822 = vmatprep.subr.bf16.mxu0 %v12602_v62  ;;  %v12680_v61 = vld [vmem:[#allocation2 + $0x1834] ss:$8 sps:$4 sm:$0xff]   ;;  %v12675_v62 = vld [vmem:[#allocation2 + $0x330] ss:$8 sps:$4 sm:$0xff]  }
  0xd1   :  { %8962 = vmatpush1.bf16.msra.mxu1 %v12597_v63  ;;  %v12678_v63 = vld [vmem:[#allocation2 + $0x1830] ss:$8 sps:$4 sm:$0xff]  }
  0xd2   :  { %9823 = vmatpush1.bf16.msra.mxu0 %v12600_v0  ;;  %8963 = vmatprep.subr.bf16.mxu1 %v12605_v1  ;;  %v12683_v0 = vld [vmem:[#allocation2 + $0x344] ss:$8 sps:$4 sm:$0xff]  }
  0xd3   :  { %9824 = vmatprep.subr.bf16.mxu0 %v12608_v2  ;;  %v12686_v1 = vld [vmem:[#allocation2 + $0x1844] ss:$8 sps:$4 sm:$0xff]   ;;  %v12681_v2 = vld [vmem:[#allocation2 + $0x340] ss:$8 sps:$4 sm:$0xff]  }
  0xd5   :  { %8964 = vmatpush1.bf16.msra.mxu1 %v12603_v4  ;;  %v12684_v4 = vld [vmem:[#allocation2 + $0x1840] ss:$8 sps:$4 sm:$0xff]  }
  0xd6   :  { %9825 = vmatpush1.bf16.msra.mxu0 %v12606_v5  ;;  %8965 = vmatprep.subr.bf16.mxu1 %v12611_v6  ;;  %v12689_v5 = vld [vmem:[#allocation2 + $0x354] ss:$8 sps:$4 sm:$0xff]  }
  0xd7   :  { %9826 = vmatprep.subr.bf16.mxu0 %v12614_v7  ;;  %v12692_v6 = vld [vmem:[#allocation2 + $0x1854] ss:$8 sps:$4 sm:$0xff]   ;;  %v12687_v7 = vld [vmem:[#allocation2 + $0x350] ss:$8 sps:$4 sm:$0xff]  }
  0xd9   :  { %8966 = vmatpush1.bf16.msra.mxu1 %v12609_v8  ;;  %v12690_v8 = vld [vmem:[#allocation2 + $0x1850] ss:$8 sps:$4 sm:$0xff]  }
  0xda   :  { %9827 = vmatpush1.bf16.msra.mxu0 %v12612_v9  ;;  %8967 = vmatprep.subr.bf16.mxu1 %v12617_v10  ;;  %v12695_v9 = vld [vmem:[#allocation2 + $0x364] ss:$8 sps:$4 sm:$0xff]  }
  0xdb   :  { %9828 = vmatprep.subr.bf16.mxu0 %v12620_v11  ;;  %v12698_v10 = vld [vmem:[#allocation2 + $0x1864] ss:$8 sps:$4 sm:$0xff]   ;;  %v12693_v11 = vld [vmem:[#allocation2 + $0x360] ss:$8 sps:$4 sm:$0xff]  }
  0xdd   :  { %8968 = vmatpush1.bf16.msra.mxu1 %v12615_v12  ;;  %v12696_v12 = vld [vmem:[#allocation2 + $0x1860] ss:$8 sps:$4 sm:$0xff]  }
  0xde   :  { %9829 = vmatpush1.bf16.msra.mxu0 %v12618_v13  ;;  %8969 = vmatprep.subr.bf16.mxu1 %v12623_v16  ;;  %v12701_v13 = vld [vmem:[#allocation2 + $0x374] ss:$8 sps:$4 sm:$0xff]  }
  0xdf   :  { %9830 = vmatprep.subr.bf16.mxu0 %v12626_v17  ;;  %v12704_v16 = vld [vmem:[#allocation2 + $0x1874] ss:$8 sps:$4 sm:$0xff]   ;;  %v12699_v17 = vld [vmem:[#allocation2 + $0x370] ss:$8 sps:$4 sm:$0xff]  }
  0xe1   :  { %8970 = vmatpush1.bf16.msra.mxu1 %v12621_v18  ;;  %v12702_v18 = vld [vmem:[#allocation2 + $0x1870] ss:$8 sps:$4 sm:$0xff]  }
  0xe2   :  { %9831 = vmatpush1.bf16.msra.mxu0 %v12624_v19  ;;  %8971 = vmatprep.subr.bf16.mxu1 %v12629_v20  ;;  %v12707_v19 = vld [vmem:[#allocation2 + $0x384] ss:$8 sps:$4 sm:$0xff]  }
  0xe3   :  { %9832 = vmatprep.subr.bf16.mxu0 %v12632_v22  ;;  %v12710_v20 = vld [vmem:[#allocation2 + $0x1884] ss:$8 sps:$4 sm:$0xff]   ;;  %v12705_v22 = vld [vmem:[#allocation2 + $0x380] ss:$8 sps:$4 sm:$0xff]  }
  0xe5   :  { %8972 = vmatpush1.bf16.msra.mxu1 %v12627_v23  ;;  %v12708_v23 = vld [vmem:[#allocation2 + $0x1880] ss:$8 sps:$4 sm:$0xff]  }
  0xe6   :  { %9833 = vmatpush1.bf16.msra.mxu0 %v12630_v24  ;;  %8973 = vmatprep.subr.bf16.mxu1 %v12635_v25  ;;  %v12713_v24 = vld [vmem:[#allocation2 + $0x394] ss:$8 sps:$4 sm:$0xff]  }
  0xe7   :  { %9834 = vmatprep.subr.bf16.mxu0 %v12638_v26  ;;  %v12716_v25 = vld [vmem:[#allocation2 + $0x1894] ss:$8 sps:$4 sm:$0xff]   ;;  %v12711_v26 = vld [vmem:[#allocation2 + $0x390] ss:$8 sps:$4 sm:$0xff]  }
  0xe9   :  { %8974 = vmatpush1.bf16.msra.mxu1 %v12633_v27  ;;  %v12714_v27 = vld [vmem:[#allocation2 + $0x1890] ss:$8 sps:$4 sm:$0xff]  }
  0xea   :  { %9835 = vmatpush1.bf16.msra.mxu0 %v12636_v29  ;;  %8975 = vmatprep.subr.bf16.mxu1 %v12641_v31  ;;  %v12719_v29 = vld [vmem:[#allocation2 + $0x3a4] ss:$8 sps:$4 sm:$0xff]  }
  0xeb   :  { %9836 = vmatprep.subr.bf16.mxu0 %v12644_v32  ;;  %v12722_v31 = vld [vmem:[#allocation2 + $0x18a4] ss:$8 sps:$4 sm:$0xff]   ;;  %v12717_v32 = vld [vmem:[#allocation2 + $0x3a0] ss:$8 sps:$4 sm:$0xff]  }
  0xed   :  { %8976 = vmatpush1.bf16.msra.mxu1 %v12639_v33  ;;  %v12720_v33 = vld [vmem:[#allocation2 + $0x18a0] ss:$8 sps:$4 sm:$0xff]  }
  0xee   :  { %9837 = vmatpush1.bf16.msra.mxu0 %v12642_v34  ;;  %8977 = vmatprep.subr.bf16.mxu1 %v12647_v52  ;;  %v12725_v34 = vld [vmem:[#allocation2 + $0x3b4] ss:$8 sps:$4 sm:$0xff]  }
  0xef   :  { %9838 = vmatprep.subr.bf16.mxu0 %v12650_v35  ;;  %v12728_v52 = vld [vmem:[#allocation2 + $0x18b4] ss:$8 sps:$4 sm:$0xff]   ;;  %v12723_v35 = vld [vmem:[#allocation2 + $0x3b0] ss:$8 sps:$4 sm:$0xff]  }
  0xf1   :  { %8978 = vmatpush1.bf16.msra.mxu1 %v12645_v37  ;;  %v12726_v37 = vld [vmem:[#allocation2 + $0x18b0] ss:$8 sps:$4 sm:$0xff]  }
  0xf2   :  { %9839 = vmatpush1.bf16.msra.mxu0 %v12648_v39  ;;  %8979 = vmatprep.subr.bf16.mxu1 %v12653_v40  ;;  %v12731_v39 = vld [vmem:[#allocation2 + $0x3c4] ss:$8 sps:$4 sm:$0xff]  }
  0xf3   :  { %9840 = vmatprep.subr.bf16.mxu0 %v12656_v42  ;;  %v12734_v40 = vld [vmem:[#allocation2 + $0x18c4] ss:$8 sps:$4 sm:$0xff]   ;;  %v12729_v42 = vld [vmem:[#allocation2 + $0x3c0] ss:$8 sps:$4 sm:$0xff]  }
  0xf5   :  { %8980 = vmatpush1.bf16.msra.mxu1 %v12651_v21  ;;  %v12732_v21 = vld [vmem:[#allocation2 + $0x18c0] ss:$8 sps:$4 sm:$0xff]  }
  0xf6   :  { %9841 = vmatpush1.bf16.msra.mxu0 %v12654_v43  ;;  %8990 = vmatprep.subr.bf16.mxu1 %v12659_v44  ;;  %v12737_v43 = vld [vmem:[#allocation2 + $0x3d4] ss:$8 sps:$4 sm:$0xff]  }
  0xf7   :  { %9851 = vmatprep.subr.bf16.mxu0 %v12662_v45  ;;  %v12740_v44 = vld [vmem:[#allocation2 + $0x18d4] ss:$8 sps:$4 sm:$0xff]   ;;  %v12735_v45 = vld [vmem:[#allocation2 + $0x3d0] ss:$8 sps:$4 sm:$0xff]  }
  0xf8   :  { %8982 = vmatmul.mubr.bf16.vlgmr.msra.gmra.mrb[0].mxu1 %v14681_v48 }
  0xf9   :  { %9843 = vmatmul.mubr.bf16.vlgmr.msra.gmra.mrb[0].mxu0 %v1733_v49  ;;  %8991 = vmatpush1.bf16.msra.mxu1 %v12657_v28  ;;  %v12743_v28 = vld [vmem:[#allocation2 + $0x3e4] ss:$8 sps:$4 sm:$0xff]  }
  0xfa   :  { %9852 = vmatpush1.bf16.msra.mxu0 %v12660_v50  ;;  %8992 = vmatprep.subr.bf16.mxu1 %v12665_v53  ;;  %v12746_v49 = vld [vmem:[#allocation2 + $0x18e4] ss:$8 sps:$4 sm:$0xff]   ;;  %v12741_v50 = vld [vmem:[#allocation2 + $0x3e0] ss:$8 sps:$4 sm:$0xff]  }
  0xfb   :  { %9853 = vmatprep.subr.bf16.mxu0 %v12668_v54  ;;  %9022 = vmatprep.mubr.bf16.mxu1 %v1490_v55  ;;  %v12744_v53 = vld [vmem:[#allocation2 + $0x18e0] ss:$8 sps:$4 sm:$0xff]   ;;  %v12749_v55 = vld [vmem:[#allocation2 + $0x3f4] ss:$8 sps:$4 sm:$0xff]  }
  0xfc   :  { %9883 = vmatprep.mubr.bf16.mxu0 %v14688_v56  ;;  %v14695_v54 = vld.sshfl [vmem:[%s15165_s0 + $0x8] sm:$0xff pattern:$0x75316420] }
  0xfd   :  { %8993 = vmatpush1.bf16.msra.mxu1 %v12663_v30  ;;  %v12752_v30 = vld [vmem:[#allocation2 + $0x18f4] ss:$8 sps:$4 sm:$0xff]  }
  0xfe   :  { %9854 = vmatpush1.bf16.msra.mxu0 %v12666_v36  ;;  %8994 = vmatprep.subr.bf16.mxu1 %v12671_v57  ;;  %v12747_v36 = vld [vmem:[#allocation2 + $0x3f0] ss:$8 sps:$4 sm:$0xff]  }
  0xff   :  { %9855 = vmatprep.subr.bf16.mxu0 %v12674_v58  ;;  %v12750_v57 = vld [vmem:[#allocation2 + $0x18f0] ss:$8 sps:$4 sm:$0xff]   ;;  %v12755_v58 = vld [vmem:[#allocation2 + $0x404] ss:$8 sps:$4 sm:$0xff]  }
 0x101   :  { %8995 = vmatpush1.bf16.msra.mxu1 %v12669_v59  ;;  %v12758_v59 = vld [vmem:[#allocation2 + $0x1904] ss:$8 sps:$4 sm:$0xff]  }
 0x102   :  { %9856 = vmatpush1.bf16.msra.mxu0 %v12672_v41  ;;  %8996 = vmatprep.subr.bf16.mxu1 %v12677_v60  ;;  %v1506_v41 = vcombine.high %v14695_v54, %v14695_v54  ;;  %v12753_v60 = vld [vmem:[#allocation2 + $0x400] ss:$8 sps:$4 sm:$0xff]  }
 0x103   :  { %9857 = vmatprep.subr.bf16.mxu0 %v12680_v61  ;;  %v12756_v61 = vld [vmem:[#allocation2 + $0x1900] ss:$8 sps:$4 sm:$0xff]  }
 0x105   :  { %8997 = vmatpush1.bf16.msra.mxu1 %v12675_v62  ;;  %v1488_v62 = vcombine.high %v14681_v48, %v14681_v48  ;;  %v12759_v48 = vld [vmem:[#allocation2 + $0x410] ss:$8 sps:$4 sm:$0xff]  }
 0x106   :  { %9858 = vmatpush1.bf16.msra.mxu0 %v12678_v63  ;;  %8998 = vmatprep.subr.bf16.mxu1 %v12683_v0  ;;  %v14703_v63 = vrot.slane %v14675_v14, %v14606_v51  ;;  %v12761_v0 = vld [vmem:[#allocation2 + $0x414] ss:$8 sps:$4 sm:$0xff]   ;;  %v12767_v14 = vld [vmem:[#allocation2 + $0x424] ss:$8 sps:$4 sm:$0xff]  }
 0x107   :  { %9859 = vmatprep.subr.bf16.mxu0 %v12686_v1  ;;  %v12764_v1 = vld [vmem:[#allocation2 + $0x1914] ss:$8 sps:$4 sm:$0xff]  }
 0x109   :  { %8999 = vmatpush1.bf16.msra.mxu1 %v12681_v2  ;;  %v14706_v2 = vrot.slane %v1506_v41, %v14606_v51  ;;  %v12834_v41 = vld [vmem:[#allocation2 + $0x19d0] ss:$8 sps:$4 sm:$0xff]  }
 0x10a   :  { %9860 = vmatpush1.bf16.msra.mxu0 %v12684_v4  ;;  %9000 = vmatprep.subr.bf16.mxu1 %v12689_v5  ;;  %v1783_v4 = vcombine.high %v14688_v56, %v14688_v56  ;;  %v12762_v5 = vld [vmem:[#allocation2 + $0x1910] ss:$8 sps:$4 sm:$0xff]   ;;  %v12773_v56 = vld [vmem:[#allocation2 + $0x434] ss:$8 sps:$4 sm:$0xff]  }
 0x10b   :  { %9861 = vmatprep.subr.bf16.mxu0 %v12692_v6  ;;  %v12770_v6 = vld [vmem:[#allocation2 + $0x1924] ss:$8 sps:$4 sm:$0xff]  }
 0x10d   :  { %9001 = vmatpush1.bf16.msra.mxu1 %v12687_v7  ;;  %v12765_v7 = vld [vmem:[#allocation2 + $0x420] ss:$8 sps:$4 sm:$0xff]  }
 0x10e   :  { %9862 = vmatpush1.bf16.msra.mxu0 %v12690_v8  ;;  %9002 = vmatprep.subr.bf16.mxu1 %v12695_v9  ;;  %v12768_v8 = vld [vmem:[#allocation2 + $0x1920] ss:$8 sps:$4 sm:$0xff]   ;;  %v12776_v9 = vld [vmem:[#allocation2 + $0x1934] ss:$8 sps:$4 sm:$0xff]  }
 0x10f   :  { %9863 = vmatprep.subr.bf16.mxu0 %v12698_v10  ;;  %v12771_v10 = vld [vmem:[#allocation2 + $0x430] ss:$8 sps:$4 sm:$0xff]  }
 0x111   :  { %9003 = vmatpush1.bf16.msra.mxu1 %v12693_v11  ;;  %v12774_v11 = vld [vmem:[#allocation2 + $0x1930] ss:$8 sps:$4 sm:$0xff]  }
 0x112   :  { %9864 = vmatpush1.bf16.msra.mxu0 %v12696_v12  ;;  %9004 = vmatprep.subr.bf16.mxu1 %v12701_v13  ;;  %v12779_v12 = vld [vmem:[#allocation2 + $0x444] ss:$8 sps:$4 sm:$0xff]  }
 0x113   :  { %9865 = vmatprep.subr.bf16.mxu0 %v12704_v16  ;;  %v12782_v13 = vld [vmem:[#allocation2 + $0x1944] ss:$8 sps:$4 sm:$0xff]   ;;  %v12777_v16 = vld [vmem:[#allocation2 + $0x440] ss:$8 sps:$4 sm:$0xff]  }
 0x115   :  { %9005 = vmatpush1.bf16.msra.mxu1 %v12699_v17  ;;  %v12780_v17 = vld [vmem:[#allocation2 + $0x1940] ss:$8 sps:$4 sm:$0xff]  }
 0x116   :  { %9866 = vmatpush1.bf16.msra.mxu0 %v12702_v18  ;;  %9006 = vmatprep.subr.bf16.mxu1 %v12707_v19  ;;  %v12785_v18 = vld [vmem:[#allocation2 + $0x454] ss:$8 sps:$4 sm:$0xff]  }
 0x117   :  { %9867 = vmatprep.subr.bf16.mxu0 %v12710_v20  ;;  %v12788_v19 = vld [vmem:[#allocation2 + $0x1954] ss:$8 sps:$4 sm:$0xff]   ;;  %v12783_v20 = vld [vmem:[#allocation2 + $0x450] ss:$8 sps:$4 sm:$0xff]  }
 0x119   :  { %9007 = vmatpush1.bf16.msra.mxu1 %v12705_v22  ;;  %v12786_v22 = vld [vmem:[#allocation2 + $0x1950] ss:$8 sps:$4 sm:$0xff]  }
 0x11a   :  { %9868 = vmatpush1.bf16.msra.mxu0 %v12708_v23  ;;  %9008 = vmatprep.subr.bf16.mxu1 %v12713_v24  ;;  %v12791_v23 = vld [vmem:[#allocation2 + $0x464] ss:$8 sps:$4 sm:$0xff]  }
 0x11b   :  { %9869 = vmatprep.subr.bf16.mxu0 %v12716_v25  ;;  %v12794_v24 = vld [vmem:[#allocation2 + $0x1964] ss:$8 sps:$4 sm:$0xff]   ;;  %v12789_v25 = vld [vmem:[#allocation2 + $0x460] ss:$8 sps:$4 sm:$0xff]  }
 0x11d   :  { %9009 = vmatpush1.bf16.msra.mxu1 %v12711_v26  ;;  %v12792_v26 = vld [vmem:[#allocation2 + $0x1960] ss:$8 sps:$4 sm:$0xff]  }
 0x11e   :  { %9870 = vmatpush1.bf16.msra.mxu0 %v12714_v27  ;;  %9010 = vmatprep.subr.bf16.mxu1 %v12719_v29  ;;  %v12797_v27 = vld [vmem:[#allocation2 + $0x474] ss:$8 sps:$4 sm:$0xff]  }
 0x11f   :  { %9871 = vmatprep.subr.bf16.mxu0 %v12722_v31  ;;  %v12800_v29 = vld [vmem:[#allocation2 + $0x1974] ss:$8 sps:$4 sm:$0xff]   ;;  %v12795_v31 = vld [vmem:[#allocation2 + $0x470] ss:$8 sps:$4 sm:$0xff]  }
 0x121   :  { %9011 = vmatpush1.bf16.msra.mxu1 %v12717_v32  ;;  %v12798_v32 = vld [vmem:[#allocation2 + $0x1970] ss:$8 sps:$4 sm:$0xff]  }
 0x122   :  { %9872 = vmatpush1.bf16.msra.mxu0 %v12720_v33  ;;  %9012 = vmatprep.subr.bf16.mxu1 %v12725_v34  ;;  %v12803_v33 = vld [vmem:[#allocation2 + $0x484] ss:$8 sps:$4 sm:$0xff]  }
 0x123   :  { %9873 = vmatprep.subr.bf16.mxu0 %v12728_v52  ;;  %v12806_v34 = vld [vmem:[#allocation2 + $0x1984] ss:$8 sps:$4 sm:$0xff]   ;;  %v12801_v52 = vld [vmem:[#allocation2 + $0x480] ss:$8 sps:$4 sm:$0xff]  }
 0x125   :  { %9013 = vmatpush1.bf16.msra.mxu1 %v12723_v35  ;;  %v12804_v35 = vld [vmem:[#allocation2 + $0x1980] ss:$8 sps:$4 sm:$0xff]  }
 0x126   :  { %9874 = vmatpush1.bf16.msra.mxu0 %v12726_v37  ;;  %9014 = vmatprep.subr.bf16.mxu1 %v12731_v39  ;;  %v12809_v37 = vld [vmem:[#allocation2 + $0x494] ss:$8 sps:$4 sm:$0xff]  }
 0x127   :  { %9875 = vmatprep.subr.bf16.mxu0 %v12734_v40  ;;  %v12812_v39 = vld [vmem:[#allocation2 + $0x1994] ss:$8 sps:$4 sm:$0xff]   ;;  %v12807_v40 = vld [vmem:[#allocation2 + $0x490] ss:$8 sps:$4 sm:$0xff]  }
 0x129   :  { %9015 = vmatpush1.bf16.msra.mxu1 %v12729_v42  ;;  %v12810_v42 = vld [vmem:[#allocation2 + $0x1990] ss:$8 sps:$4 sm:$0xff]  }
 0x12a   :  { %9876 = vmatpush1.bf16.msra.mxu0 %v12732_v21  ;;  %9016 = vmatprep.subr.bf16.mxu1 %v12737_v43  ;;  %v12815_v21 = vld [vmem:[#allocation2 + $0x4a4] ss:$8 sps:$4 sm:$0xff]  }
 0x12b   :  { %9877 = vmatprep.subr.bf16.mxu0 %v12740_v44  ;;  %v12818_v43 = vld [vmem:[#allocation2 + $0x19a4] ss:$8 sps:$4 sm:$0xff]   ;;  %v12813_v44 = vld [vmem:[#allocation2 + $0x4a0] ss:$8 sps:$4 sm:$0xff]  }
 0x12d   :  { %9017 = vmatpush1.bf16.msra.mxu1 %v12735_v45  ;;  %v12816_v45 = vld [vmem:[#allocation2 + $0x19a0] ss:$8 sps:$4 sm:$0xff]  }
 0x12e   :  { %9878 = vmatpush1.bf16.msra.mxu0 %v12738_v47  ;;  %9018 = vmatprep.subr.bf16.mxu1 %v12743_v28  ;;  %v12821_v47 = vld [vmem:[#allocation2 + $0x4b4] ss:$8 sps:$4 sm:$0xff]  }
 0x12f   :  { %9879 = vmatprep.subr.bf16.mxu0 %v12746_v49  ;;  %v12824_v28 = vld [vmem:[#allocation2 + $0x19b4] ss:$8 sps:$4 sm:$0xff]   ;;  %v12819_v49 = vld [vmem:[#allocation2 + $0x4b0] ss:$8 sps:$4 sm:$0xff]  }
 0x131   :  { %9019 = vmatpush1.bf16.msra.mxu1 %v12741_v50  ;;  %v12822_v50 = vld [vmem:[#allocation2 + $0x19b0] ss:$8 sps:$4 sm:$0xff]  }
 0x132   :  { %9880 = vmatpush1.bf16.msra.mxu0 %v12744_v53  ;;  %9020 = vmatprep.subr.bf16.mxu1 %v12749_v55  ;;  %v12827_v53 = vld [vmem:[#allocation2 + $0x4c4] ss:$8 sps:$4 sm:$0xff]  }
 0x133   :  { %9881 = vmatprep.subr.bf16.mxu0 %v12752_v30  ;;  %v12830_v55 = vld [vmem:[#allocation2 + $0x19c4] ss:$8 sps:$4 sm:$0xff]   ;;  %v12825_v30 = vld [vmem:[#allocation2 + $0x4c0] ss:$8 sps:$4 sm:$0xff]  }
 0x135   :  { %9021 = vmatpush1.bf16.msra.mxu1 %v12747_v36  ;;  %v12828_v36 = vld [vmem:[#allocation2 + $0x19c0] ss:$8 sps:$4 sm:$0xff]  }
 0x136   :  { %9882 = vmatpush1.bf16.msra.mxu0 %v12750_v57  ;;  %9031 = vmatprep.subr.bf16.mxu1 %v12755_v58  ;;  %v12833_v57 = vld [vmem:[#allocation2 + $0x4d4] ss:$8 sps:$4 sm:$0xff]  }
 0x137   :  { %9892 = vmatprep.subr.bf16.mxu0 %v12758_v59  ;;  %v12836_v58 = vld [vmem:[#allocation2 + $0x19d4] ss:$8 sps:$4 sm:$0xff]   ;;  %v12831_v59 = vld [vmem:[#allocation2 + $0x4d0] ss:$8 sps:$4 sm:$0xff]  }
 0x138   :  { %9023 = vmatmul.mubr.bf16.vlgmr.msra.gmra.mrb[0].mxu1 %v1488_v62  ;;  %v1736_v62 = vcombine.high %v14671_v38, %v14671_v38 }
 0x139   :  { %9884 = vmatmul.mubr.bf16.vlgmr.msra.gmra.mrb[0].mxu0 %v14703_v63  ;;  %9032 = vmatpush1.bf16.msra.mxu1 %v12753_v60  ;;  %v12839_v60 = vld [vmem:[#allocation2 + $0x4e4] ss:$8 sps:$4 sm:$0xff]  }
 0x13a   :  { %9893 = vmatpush1.bf16.msra.mxu0 %v12756_v61  ;;  %9033 = vmatprep.subr.bf16.mxu1 %v12761_v0  ;;  %v12842_v61 = vld [vmem:[#allocation2 + $0x19e4] ss:$8 sps:$4 sm:$0xff]   ;;  %v12837_v0 = vld [vmem:[#allocation2 + $0x4e0] ss:$8 sps:$4 sm:$0xff]  }
 0x13b   :  { %9894 = vmatprep.subr.bf16.mxu0 %v12764_v1  ;;  %9063 = vmatprep.mubr.bf16.mxu1 %v14706_v2  ;;  %v12840_v1 = vld [vmem:[#allocation2 + $0x19e0] ss:$8 sps:$4 sm:$0xff]  }
 0x13c   :  { %9924 = vmatprep.mubr.bf16.mxu0 %v1783_v4  ;;  %v12845_v4 = vld [vmem:[#allocation2 + $0x4f4] ss:$8 sps:$4 sm:$0xff]  }
 0x13d   :  { %9034 = vmatpush1.bf16.msra.mxu1 %v12759_v48  ;;  %v12848_v48 = vld [vmem:[#allocation2 + $0x19f4] ss:$8 sps:$4 sm:$0xff]  }
 0x13e   :  { %9895 = vmatpush1.bf16.msra.mxu0 %v12762_v5  ;;  %9035 = vmatprep.subr.bf16.mxu1 %v12767_v14  ;;  %v14715_v5 = vrot.slane %v1736_v62, %v14606_v51  ;;  %v12843_v14 = vld [vmem:[#allocation2 + $0x4f0] ss:$8 sps:$4 sm:$0xff]  }
 0x13f   :  { %9896 = vmatprep.subr.bf16.mxu0 %v12770_v6  ;;  %v12846_v6 = vld [vmem:[#allocation2 + $0x19f0] ss:$8 sps:$4 sm:$0xff]  }
 0x140   :  { %v1752_v38 = vcombine.high %v14715_v5, %v14715_v5  ;;  %v12918_v62 = vld [vmem:[#allocation2 + $0x1ab0] ss:$8 sps:$4 sm:$0xff]  }
 0x141   :  { %9036 = vmatpush1.bf16.msra.mxu1 %v12765_v7  ;;  %v12851_v7 = vld [vmem:[#allocation2 + $0x504] ss:$8 sps:$4 sm:$0xff]  }
 0x142   :  { %9897 = vmatpush1.bf16.msra.mxu0 %v12768_v8  ;;  %9037 = vmatprep.subr.bf16.mxu1 %v12773_v56  ;;  %v12854_v8 = vld [vmem:[#allocation2 + $0x1a04] ss:$8 sps:$4 sm:$0xff]   ;;  %v14721_v56 = vrot.slane %v14695_v54, %v14606_v51  ;;  %v12855_v54 = vld [vmem:[#allocation2 + $0x510] ss:$8 sps:$4 sm:$0xff]  }
 0x143   :  { %9898 = vmatprep.subr.bf16.mxu0 %v12776_v9  ;;  %v1781_v9 = vcombine.high %v14703_v63, %v14703_v63  ;;  %v12858_v63 = vld [vmem:[#allocation2 + $0x1a10] ss:$8 sps:$4 sm:$0xff]  }
 0x145   :  { %9038 = vmatpush1.bf16.msra.mxu1 %v12771_v10  ;;  %v12849_v10 = vld [vmem:[#allocation2 + $0x500] ss:$8 sps:$4 sm:$0xff]  }
 0x146   :  { %9899 = vmatpush1.bf16.msra.mxu0 %v12774_v11  ;;  %9039 = vmatprep.subr.bf16.mxu1 %v12779_v12  ;;  %v12852_v11 = vld [vmem:[#allocation2 + $0x1a00] ss:$8 sps:$4 sm:$0xff]   ;;  %v12857_v12 = vld [vmem:[#allocation2 + $0x514] ss:$8 sps:$4 sm:$0xff]  }
 0x147   :  { %9900 = vmatprep.subr.bf16.mxu0 %v12782_v13  ;;  %v12860_v13 = vld [vmem:[#allocation2 + $0x1a14] ss:$8 sps:$4 sm:$0xff]  }
 0x149   :  { %9040 = vmatpush1.bf16.msra.mxu1 %v12777_v16  ;;  %v1538_v16 = vcombine.high %v14706_v2, %v14706_v2  ;;  %v12861_v2 = vld [vmem:[#allocation2 + $0x520] ss:$8 sps:$4 sm:$0xff]  }
 0x14a   :  { %9901 = vmatpush1.bf16.msra.mxu0 %v12780_v17  ;;  %9041 = vmatprep.subr.bf16.mxu1 %v12785_v18  ;;  %v14728_v17 = vrot.slane %v1752_v38, %v14606_v51  ;;  %v12863_v18 = vld [vmem:[#allocation2 + $0x524] ss:$8 sps:$4 sm:$0xff]  }
 0x14b   :  { %9902 = vmatprep.subr.bf16.mxu0 %v12788_v19  ;;  %v12866_v19 = vld [vmem:[#allocation2 + $0x1a24] ss:$8 sps:$4 sm:$0xff]  }
 0x14c   :  { %v12935_v38 = vld [vmem:[#allocation2 + $0x5e4] ss:$8 sps:$4 sm:$0xff]  }
 0x14d   :  { %9042 = vmatpush1.bf16.msra.mxu1 %v12783_v20  ;;  %v12864_v20 = vld [vmem:[#allocation2 + $0x1a20] ss:$8 sps:$4 sm:$0xff]  }
 0x14e   :  { %9903 = vmatpush1.bf16.msra.mxu0 %v12786_v22  ;;  %9043 = vmatprep.subr.bf16.mxu1 %v12791_v23  ;;  %v12869_v22 = vld [vmem:[#allocation2 + $0x534] ss:$8 sps:$4 sm:$0xff]  }
 0x14f   :  { %9904 = vmatprep.subr.bf16.mxu0 %v12794_v24  ;;  %v12872_v23 = vld [vmem:[#allocation2 + $0x1a34] ss:$8 sps:$4 sm:$0xff]   ;;  %v12867_v24 = vld [vmem:[#allocation2 + $0x530] ss:$8 sps:$4 sm:$0xff]  }
 0x151   :  { %9044 = vmatpush1.bf16.msra.mxu1 %v12789_v25  ;;  %v12870_v25 = vld [vmem:[#allocation2 + $0x1a30] ss:$8 sps:$4 sm:$0xff]  }
 0x152   :  { %9905 = vmatpush1.bf16.msra.mxu0 %v12792_v26  ;;  %9045 = vmatprep.subr.bf16.mxu1 %v12797_v27  ;;  %v12875_v26 = vld [vmem:[#allocation2 + $0x544] ss:$8 sps:$4 sm:$0xff]  }
 0x153   :  { %9906 = vmatprep.subr.bf16.mxu0 %v12800_v29  ;;  %v12878_v27 = vld [vmem:[#allocation2 + $0x1a44] ss:$8 sps:$4 sm:$0xff]   ;;  %v12873_v29 = vld [vmem:[#allocation2 + $0x540] ss:$8 sps:$4 sm:$0xff]  }
 0x155   :  { %9046 = vmatpush1.bf16.msra.mxu1 %v12795_v31  ;;  %v12876_v31 = vld [vmem:[#allocation2 + $0x1a40] ss:$8 sps:$4 sm:$0xff]  }
 0x156   :  { %9907 = vmatpush1.bf16.msra.mxu0 %v12798_v32  ;;  %9047 = vmatprep.subr.bf16.mxu1 %v12803_v33  ;;  %v12881_v32 = vld [vmem:[#allocation2 + $0x554] ss:$8 sps:$4 sm:$0xff]  }
 0x157   :  { %9908 = vmatprep.subr.bf16.mxu0 %v12806_v34  ;;  %v12884_v33 = vld [vmem:[#allocation2 + $0x1a54] ss:$8 sps:$4 sm:$0xff]   ;;  %v12879_v34 = vld [vmem:[#allocation2 + $0x550] ss:$8 sps:$4 sm:$0xff]  }
 0x159   :  { %9048 = vmatpush1.bf16.msra.mxu1 %v12801_v52  ;;  %v12882_v52 = vld [vmem:[#allocation2 + $0x1a50] ss:$8 sps:$4 sm:$0xff]  }
 0x15a   :  { %9909 = vmatpush1.bf16.msra.mxu0 %v12804_v35  ;;  %9049 = vmatprep.subr.bf16.mxu1 %v12809_v37  ;;  %v12887_v35 = vld [vmem:[#allocation2 + $0x564] ss:$8 sps:$4 sm:$0xff]  }
 0x15b   :  { %9910 = vmatprep.subr.bf16.mxu0 %v12812_v39  ;;  %v12890_v37 = vld [vmem:[#allocation2 + $0x1a64] ss:$8 sps:$4 sm:$0xff]   ;;  %v12885_v39 = vld [vmem:[#allocation2 + $0x560] ss:$8 sps:$4 sm:$0xff]  }
 0x15d   :  { %9050 = vmatpush1.bf16.msra.mxu1 %v12807_v40  ;;  %v12888_v40 = vld [vmem:[#allocation2 + $0x1a60] ss:$8 sps:$4 sm:$0xff]  }
 0x15e   :  { %9911 = vmatpush1.bf16.msra.mxu0 %v12810_v42  ;;  %9051 = vmatprep.subr.bf16.mxu1 %v12815_v21  ;;  %v12893_v42 = vld [vmem:[#allocation2 + $0x574] ss:$8 sps:$4 sm:$0xff]  }
 0x15f   :  { %9912 = vmatprep.subr.bf16.mxu0 %v12818_v43  ;;  %v12896_v21 = vld [vmem:[#allocation2 + $0x1a74] ss:$8 sps:$4 sm:$0xff]   ;;  %v12891_v43 = vld [vmem:[#allocation2 + $0x570] ss:$8 sps:$4 sm:$0xff]  }
 0x161   :  { %9052 = vmatpush1.bf16.msra.mxu1 %v12813_v44  ;;  %v12894_v44 = vld [vmem:[#allocation2 + $0x1a70] ss:$8 sps:$4 sm:$0xff]  }
 0x162   :  { %9913 = vmatpush1.bf16.msra.mxu0 %v12816_v45  ;;  %9053 = vmatprep.subr.bf16.mxu1 %v12821_v47  ;;  %v12899_v45 = vld [vmem:[#allocation2 + $0x584] ss:$8 sps:$4 sm:$0xff]  }
 0x163   :  { %9914 = vmatprep.subr.bf16.mxu0 %v12824_v28  ;;  %v12902_v47 = vld [vmem:[#allocation2 + $0x1a84] ss:$8 sps:$4 sm:$0xff]   ;;  %v12897_v28 = vld [vmem:[#allocation2 + $0x580] ss:$8 sps:$4 sm:$0xff]  }
 0x165   :  { %9054 = vmatpush1.bf16.msra.mxu1 %v12819_v49  ;;  %v12900_v49 = vld [vmem:[#allocation2 + $0x1a80] ss:$8 sps:$4 sm:$0xff]  }
 0x166   :  { %9915 = vmatpush1.bf16.msra.mxu0 %v12822_v50  ;;  %9055 = vmatprep.subr.bf16.mxu1 %v12827_v53  ;;  %v12905_v50 = vld [vmem:[#allocation2 + $0x594] ss:$8 sps:$4 sm:$0xff]  }
 0x167   :  { %9916 = vmatprep.subr.bf16.mxu0 %v12830_v55  ;;  %v12908_v53 = vld [vmem:[#allocation2 + $0x1a94] ss:$8 sps:$4 sm:$0xff]   ;;  %v12903_v55 = vld [vmem:[#allocation2 + $0x590] ss:$8 sps:$4 sm:$0xff]  }
 0x169   :  { %9056 = vmatpush1.bf16.msra.mxu1 %v12825_v30  ;;  %v12906_v30 = vld [vmem:[#allocation2 + $0x1a90] ss:$8 sps:$4 sm:$0xff]  }
 0x16a   :  { %9917 = vmatpush1.bf16.msra.mxu0 %v12828_v36  ;;  %9057 = vmatprep.subr.bf16.mxu1 %v12833_v57  ;;  %v12911_v36 = vld [vmem:[#allocation2 + $0x5a4] ss:$8 sps:$4 sm:$0xff]  }
 0x16b   :  { %9918 = vmatprep.subr.bf16.mxu0 %v12836_v58  ;;  %v12914_v57 = vld [vmem:[#allocation2 + $0x1aa4] ss:$8 sps:$4 sm:$0xff]   ;;  %v12909_v58 = vld [vmem:[#allocation2 + $0x5a0] ss:$8 sps:$4 sm:$0xff]  }
 0x16d   :  { %9058 = vmatpush1.bf16.msra.mxu1 %v12831_v59  ;;  %v12912_v59 = vld [vmem:[#allocation2 + $0x1aa0] ss:$8 sps:$4 sm:$0xff]  }
 0x16e   :  { %9919 = vmatpush1.bf16.msra.mxu0 %v12834_v41  ;;  %9059 = vmatprep.subr.bf16.mxu1 %v12839_v60  ;;  %v12917_v41 = vld [vmem:[#allocation2 + $0x5b4] ss:$8 sps:$4 sm:$0xff]  }
 0x16f   :  { %9920 = vmatprep.subr.bf16.mxu0 %v12842_v61  ;;  %v12920_v60 = vld [vmem:[#allocation2 + $0x1ab4] ss:$8 sps:$4 sm:$0xff]   ;;  %v12915_v61 = vld [vmem:[#allocation2 + $0x5b0] ss:$8 sps:$4 sm:$0xff]  }
 0x171   :  { %9060 = vmatpush1.bf16.msra.mxu1 %v12837_v0  ;;  %v12923_v0 = vld [vmem:[#allocation2 + $0x5c4] ss:$8 sps:$4 sm:$0xff]  }
 0x172   :  { %9921 = vmatpush1.bf16.msra.mxu0 %v12840_v1  ;;  %9061 = vmatprep.subr.bf16.mxu1 %v12845_v4  ;;  %v12926_v1 = vld [vmem:[#allocation2 + $0x1ac4] ss:$8 sps:$4 sm:$0xff]   ;;  %v12921_v4 = vld [vmem:[#allocation2 + $0x5c0] ss:$8 sps:$4 sm:$0xff]  }
 0x173   :  { %9922 = vmatprep.subr.bf16.mxu0 %v12848_v48  ;;  %v12924_v48 = vld [vmem:[#allocation2 + $0x1ac0] ss:$8 sps:$4 sm:$0xff]  }
 0x175   :  { %9062 = vmatpush1.bf16.msra.mxu1 %v12843_v14  ;;  %v12929_v14 = vld [vmem:[#allocation2 + $0x5d4] ss:$8 sps:$4 sm:$0xff]  }
 0x176   :  { %9923 = vmatpush1.bf16.msra.mxu0 %v12846_v6  ;;  %9072 = vmatprep.subr.bf16.mxu1 %v12851_v7  ;;  %v12932_v6 = vld [vmem:[#allocation2 + $0x1ad4] ss:$8 sps:$4 sm:$0xff]   ;;  %v12927_v7 = vld [vmem:[#allocation2 + $0x5d0] ss:$8 sps:$4 sm:$0xff]  }
 0x177   :  { %9933 = vmatprep.subr.bf16.mxu0 %v12854_v8  ;;  %v12930_v8 = vld [vmem:[#allocation2 + $0x1ad0] ss:$8 sps:$4 sm:$0xff]  }
 0x178   :  { %9064 = vmatmul.mubr.bf16.vlgmr.msra.gmra.mrb[0].mxu1 %v14721_v56 }
 0x179   :  { %9925 = vmatmul.mubr.bf16.vlgmr.msra.gmra.mrb[0].mxu0 %v1781_v9  ;;  %9073 = vmatpush1.bf16.msra.mxu1 %v12849_v10  ;;  %v12938_v9 = vld [vmem:[#allocation2 + $0x1ae4] ss:$8 sps:$4 sm:$0xff]  }
 0x17a   :  { %9934 = vmatpush1.bf16.msra.mxu0 %v12852_v11  ;;  %9074 = vmatprep.subr.bf16.mxu1 %v12857_v12  ;;  %v14422_v10 = vld [vmem:[%s15165_s0 + $0x8] sm:$0xff] }
 0x17b   :  { %9935 = vmatprep.subr.bf16.mxu0 %v12860_v13  ;;  %9104 = vmatprep.mubr.bf16.mxu1 %v1538_v16  ;;  %v1491_v11 = vcombine.high %v14422_v10, %v14422_v10  ;;  %v12933_v12 = vld [vmem:[#allocation2 + $0x5e0] ss:$8 sps:$4 sm:$0xff]   ;;  %v12941_v16 = vld [vmem:[#allocation2 + $0x5f4] ss:$8 sps:$4 sm:$0xff]   ;;  %v13012_v10 = vld [vmem:[#allocation2 + $0x6b0] ss:$8 sps:$4 sm:$0xff]  }
 0x17c   :  { %9965 = vmatprep.mubr.bf16.mxu0 %v14728_v17  ;;  %v12936_v13 = vld [vmem:[#allocation2 + $0x1ae0] ss:$8 sps:$4 sm:$0xff]  }
 0x17d   :  { %9075 = vmatpush1.bf16.msra.mxu1 %v12855_v54  ;;  %v12944_v54 = vld [vmem:[#allocation2 + $0x1af4] ss:$8 sps:$4 sm:$0xff]  }
 0x17e   :  { %9936 = vmatpush1.bf16.msra.mxu0 %v12858_v63  ;;  %9076 = vmatprep.subr.bf16.mxu1 %v12863_v18  ;;  %v14736_v63 = vrot.slane %v1491_v11, %v14606_v51  ;;  %v12939_v18 = vld [vmem:[#allocation2 + $0x5f0] ss:$8 sps:$4 sm:$0xff]  }
 0x17f   :  { %9937 = vmatprep.subr.bf16.mxu0 %v12866_v19  ;;  %v12942_v19 = vld [vmem:[#allocation2 + $0x1af0] ss:$8 sps:$4 sm:$0xff]  }
 0x180   :  { %v13015_v11 = vld [vmem:[#allocation2 + $0x1bb0] ss:$8 sps:$4 sm:$0xff]  }
 0x181   :  { %9077 = vmatpush1.bf16.msra.mxu1 %v12861_v2  ;;  %v12947_v2 = vld [vmem:[#allocation2 + $0x604] ss:$8 sps:$4 sm:$0xff]  }
 0x182   :  { %9938 = vmatpush1.bf16.msra.mxu0 %v12864_v20  ;;  %9078 = vmatprep.subr.bf16.mxu1 %v12869_v22  ;;  %v12951_v20 = vld [vmem:[#allocation2 + $0x1b04] ss:$8 sps:$4 sm:$0xff]   ;;  %v1507_v22 = vcombine.high %v14736_v63, %v14736_v63 }
 0x183   :  { %9939 = vmatprep.subr.bf16.mxu0 %v12872_v23  ;;  %v1536_v23 = vcombine.high %v14721_v56, %v14721_v56  ;;  %v12955_v56 = vld [vmem:[#allocation2 + $0x1b10] ss:$8 sps:$4 sm:$0xff]  }
 0x185   :  { %9079 = vmatpush1.bf16.msra.mxu1 %v12867_v24  ;;  %v14744_v24 = vrot.slane %v14715_v5, %v14606_v51  ;;  %v12952_v5 = vld [vmem:[#allocation2 + $0x610] ss:$8 sps:$4 sm:$0xff]  }
 0x186   :  { %9940 = vmatpush1.bf16.msra.mxu0 %v12870_v25  ;;  %9080 = vmatprep.subr.bf16.mxu1 %v12875_v26  ;;  %v12945_v25 = vld [vmem:[#allocation2 + $0x600] ss:$8 sps:$4 sm:$0xff]  }
 0x187   :  { %9941 = vmatprep.subr.bf16.mxu0 %v12878_v27  ;;  %v12949_v26 = vld [vmem:[#allocation2 + $0x1b00] ss:$8 sps:$4 sm:$0xff]   ;;  %v12954_v27 = vld [vmem:[#allocation2 + $0x614] ss:$8 sps:$4 sm:$0xff]  }
 0x189   :  { %9081 = vmatpush1.bf16.msra.mxu1 %v12873_v29  ;;  %v12957_v29 = vld [vmem:[#allocation2 + $0x1b14] ss:$8 sps:$4 sm:$0xff]  }
 0x18a   :  { %9942 = vmatpush1.bf16.msra.mxu0 %v12876_v31  ;;  %9082 = vmatprep.subr.bf16.mxu1 %v12881_v32  ;;  %v14747_v31 = vrot.slane %v1507_v22, %v14606_v51  ;;  %v1784_v32 = vcombine.high %v14728_v17, %v14728_v17  ;;  %v12966_v17 = vld [vmem:[#allocation2 + $0x634] ss:$8 sps:$4 sm:$0xff]   ;;  %v13032_v22 = vld [vmem:[#allocation2 + $0x6e4] ss:$8 sps:$4 sm:$0xff]  }
 0x18b   :  { %9943 = vmatprep.subr.bf16.mxu0 %v12884_v33  ;;  %v12960_v33 = vld [vmem:[#allocation2 + $0x624] ss:$8 sps:$4 sm:$0xff]  }
 0x18d   :  { %9083 = vmatpush1.bf16.msra.mxu1 %v12879_v34  ;;  %v12963_v34 = vld [vmem:[#allocation2 + $0x1b24] ss:$8 sps:$4 sm:$0xff]  }
 0x18e   :  { %9944 = vmatpush1.bf16.msra.mxu0 %v12882_v52  ;;  %9084 = vmatprep.subr.bf16.mxu1 %v12887_v35  ;;  %v12958_v52 = vld [vmem:[#allocation2 + $0x620] ss:$8 sps:$4 sm:$0xff]  }
 0x18f   :  { %9945 = vmatprep.subr.bf16.mxu0 %v12890_v37  ;;  %v12961_v35 = vld [vmem:[#allocation2 + $0x1b20] ss:$8 sps:$4 sm:$0xff]   ;;  %v12969_v37 = vld [vmem:[#allocation2 + $0x1b34] ss:$8 sps:$4 sm:$0xff]  }
 0x191   :  { %9085 = vmatpush1.bf16.msra.mxu1 %v12885_v39  ;;  %v12964_v39 = vld [vmem:[#allocation2 + $0x630] ss:$8 sps:$4 sm:$0xff]  }
 0x192   :  { %9946 = vmatpush1.bf16.msra.mxu0 %v12888_v40  ;;  %9086 = vmatprep.subr.bf16.mxu1 %v12893_v42  ;;  %v12967_v40 = vld [vmem:[#allocation2 + $0x1b30] ss:$8 sps:$4 sm:$0xff]   ;;  %v12972_v42 = vld [vmem:[#allocation2 + $0x644] ss:$8 sps:$4 sm:$0xff]  }
 0x193   :  { %9947 = vmatprep.subr.bf16.mxu0 %v12896_v21  ;;  %v12975_v21 = vld [vmem:[#allocation2 + $0x1b44] ss:$8 sps:$4 sm:$0xff]  }
 0x195   :  { %9087 = vmatpush1.bf16.msra.mxu1 %v12891_v43  ;;  %v12970_v43 = vld [vmem:[#allocation2 + $0x640] ss:$8 sps:$4 sm:$0xff]  }
 0x196   :  { %9948 = vmatpush1.bf16.msra.mxu0 %v12894_v44  ;;  %9088 = vmatprep.subr.bf16.mxu1 %v12899_v45  ;;  %v12973_v44 = vld [vmem:[#allocation2 + $0x1b40] ss:$8 sps:$4 sm:$0xff]   ;;  %v12978_v45 = vld [vmem:[#allocation2 + $0x654] ss:$8 sps:$4 sm:$0xff]  }
 0x197   :  { %9949 = vmatprep.subr.bf16.mxu0 %v12902_v47  ;;  %v12981_v47 = vld [vmem:[#allocation2 + $0x1b54] ss:$8 sps:$4 sm:$0xff]  }
 0x199   :  { %9089 = vmatpush1.bf16.msra.mxu1 %v12897_v28  ;;  %v12976_v28 = vld [vmem:[#allocation2 + $0x650] ss:$8 sps:$4 sm:$0xff]  }
 0x19a   :  { %9950 = vmatpush1.bf16.msra.mxu0 %v12900_v49  ;;  %9090 = vmatprep.subr.bf16.mxu1 %v12905_v50  ;;  %v12979_v49 = vld [vmem:[#allocation2 + $0x1b50] ss:$8 sps:$4 sm:$0xff]   ;;  %v12984_v50 = vld [vmem:[#allocation2 + $0x664] ss:$8 sps:$4 sm:$0xff]  }
 0x19b   :  { %9951 = vmatprep.subr.bf16.mxu0 %v12908_v53  ;;  %v12987_v53 = vld [vmem:[#allocation2 + $0x1b64] ss:$8 sps:$4 sm:$0xff]  }
 0x19d   :  { %9091 = vmatpush1.bf16.msra.mxu1 %v12903_v55  ;;  %v12982_v55 = vld [vmem:[#allocation2 + $0x660] ss:$8 sps:$4 sm:$0xff]  }
 0x19e   :  { %9952 = vmatpush1.bf16.msra.mxu0 %v12906_v30  ;;  %9092 = vmatprep.subr.bf16.mxu1 %v12911_v36  ;;  %v12985_v30 = vld [vmem:[#allocation2 + $0x1b60] ss:$8 sps:$4 sm:$0xff]   ;;  %v12990_v36 = vld [vmem:[#allocation2 + $0x674] ss:$8 sps:$4 sm:$0xff]  }
 0x19f   :  { %9953 = vmatprep.subr.bf16.mxu0 %v12914_v57  ;;  %v12993_v57 = vld [vmem:[#allocation2 + $0x1b74] ss:$8 sps:$4 sm:$0xff]  }
 0x1a1   :  { %9093 = vmatpush1.bf16.msra.mxu1 %v12909_v58  ;;  %v12988_v58 = vld [vmem:[#allocation2 + $0x670] ss:$8 sps:$4 sm:$0xff]  }
 0x1a2   :  { %9954 = vmatpush1.bf16.msra.mxu0 %v12912_v59  ;;  %9094 = vmatprep.subr.bf16.mxu1 %v12917_v41  ;;  %v12991_v59 = vld [vmem:[#allocation2 + $0x1b70] ss:$8 sps:$4 sm:$0xff]   ;;  %v12996_v41 = vld [vmem:[#allocation2 + $0x684] ss:$8 sps:$4 sm:$0xff]  }
 0x1a3   :  { %9955 = vmatprep.subr.bf16.mxu0 %v12920_v60  ;;  %v12999_v60 = vld [vmem:[#allocation2 + $0x1b84] ss:$8 sps:$4 sm:$0xff]  }
 0x1a5   :  { %9095 = vmatpush1.bf16.msra.mxu1 %v12915_v61  ;;  %v12994_v61 = vld [vmem:[#allocation2 + $0x680] ss:$8 sps:$4 sm:$0xff]  }
 0x1a6   :  { %9956 = vmatpush1.bf16.msra.mxu0 %v12918_v62  ;;  %9096 = vmatprep.subr.bf16.mxu1 %v12923_v0  ;;  %v12997_v62 = vld [vmem:[#allocation2 + $0x1b80] ss:$8 sps:$4 sm:$0xff]   ;;  %v13002_v0 = vld [vmem:[#allocation2 + $0x694] ss:$8 sps:$4 sm:$0xff]  }
 0x1a7   :  { %9957 = vmatprep.subr.bf16.mxu0 %v12926_v1  ;;  %v13005_v1 = vld [vmem:[#allocation2 + $0x1b94] ss:$8 sps:$4 sm:$0xff]  }
 0x1a9   :  { %9097 = vmatpush1.bf16.msra.mxu1 %v12921_v4  ;;  %v13000_v4 = vld [vmem:[#allocation2 + $0x690] ss:$8 sps:$4 sm:$0xff]  }
 0x1aa   :  { %9958 = vmatpush1.bf16.msra.mxu0 %v12924_v48  ;;  %9098 = vmatprep.subr.bf16.mxu1 %v12929_v14  ;;  %v13003_v48 = vld [vmem:[#allocation2 + $0x1b90] ss:$8 sps:$4 sm:$0xff]   ;;  %v13008_v14 = vld [vmem:[#allocation2 + $0x6a4] ss:$8 sps:$4 sm:$0xff]  }
 0x1ab   :  { %9959 = vmatprep.subr.bf16.mxu0 %v12932_v6  ;;  %v13011_v6 = vld [vmem:[#allocation2 + $0x1ba4] ss:$8 sps:$4 sm:$0xff]  }
 0x1ad   :  { %9099 = vmatpush1.bf16.msra.mxu1 %v12927_v7  ;;  %v13006_v7 = vld [vmem:[#allocation2 + $0x6a0] ss:$8 sps:$4 sm:$0xff]  }
 0x1ae   :  { %9960 = vmatpush1.bf16.msra.mxu0 %v12930_v8  ;;  %9100 = vmatprep.subr.bf16.mxu1 %v12935_v38  ;;  %v13009_v8 = vld [vmem:[#allocation2 + $0x1ba0] ss:$8 sps:$4 sm:$0xff]   ;;  %v13014_v38 = vld [vmem:[#allocation2 + $0x6b4] ss:$8 sps:$4 sm:$0xff]  }
 0x1af   :  { %9961 = vmatprep.subr.bf16.mxu0 %v12938_v9  ;;  %v13017_v9 = vld [vmem:[#allocation2 + $0x1bb4] ss:$8 sps:$4 sm:$0xff]  }
 0x1b1   :  { %9101 = vmatpush1.bf16.msra.mxu1 %v12933_v12  ;;  %v13020_v12 = vld [vmem:[#allocation2 + $0x6c4] ss:$8 sps:$4 sm:$0xff]  }
 0x1b2   :  { %9962 = vmatpush1.bf16.msra.mxu0 %v12936_v13  ;;  %9102 = vmatprep.subr.bf16.mxu1 %v12941_v16  ;;  %v13023_v13 = vld [vmem:[#allocation2 + $0x1bc4] ss:$8 sps:$4 sm:$0xff]   ;;  %v13018_v16 = vld [vmem:[#allocation2 + $0x6c0] ss:$8 sps:$4 sm:$0xff]  }
 0x1b3   :  { %9963 = vmatprep.subr.bf16.mxu0 %v12944_v54  ;;  %v13021_v54 = vld [vmem:[#allocation2 + $0x1bc0] ss:$8 sps:$4 sm:$0xff]  }
 0x1b5   :  { %9103 = vmatpush1.bf16.msra.mxu1 %v12939_v18  ;;  %v13026_v18 = vld [vmem:[#allocation2 + $0x6d4] ss:$8 sps:$4 sm:$0xff]  }
 0x1b6   :  { %9964 = vmatpush1.bf16.msra.mxu0 %v12942_v19  ;;  %9113 = vmatprep.subr.bf16.mxu1 %v12947_v2  ;;  %v13029_v19 = vld [vmem:[#allocation2 + $0x1bd4] ss:$8 sps:$4 sm:$0xff]   ;;  %v13024_v2 = vld [vmem:[#allocation2 + $0x6d0] ss:$8 sps:$4 sm:$0xff]  }
 0x1b7   :  { %9974 = vmatprep.subr.bf16.mxu0 %v12951_v20  ;;  %v13027_v20 = vld [vmem:[#allocation2 + $0x1bd0] ss:$8 sps:$4 sm:$0xff]  }
 0x1b8   :  { %9105 = vmatmul.mubr.bf16.vlgmr.msra.gmra.mrb[0].mxu1 %v1536_v23  ;;  %v13035_v23 = vld [vmem:[#allocation2 + $0x1be4] ss:$8 sps:$4 sm:$0xff]  }
 0x1b9   :  { %9966 = vmatmul.mubr.bf16.vlgmr.msra.gmra.mrb[0].mxu0 %v14744_v24  ;;  %9114 = vmatpush1.bf16.msra.mxu1 %v12945_v25  ;;  %v14756_v25 = vld.sshfl [vmem:[%s15165_s0 + $0x38] sm:$0xff pattern:$0x75316420] }
 0x1ba   :  { %9975 = vmatpush1.bf16.msra.mxu0 %v12949_v26  ;;  %9115 = vmatprep.subr.bf16.mxu1 %v12954_v27  ;;  %v13030_v26 = vld [vmem:[#allocation2 + $0x6e0] ss:$8 sps:$4 sm:$0xff]  }
 0x1bb   :  { %9976 = vmatprep.subr.bf16.mxu0 %v12957_v29  ;;  %9145 = vmatprep.mubr.bf16.mxu1 %v14747_v31  ;;  %v13033_v27 = vld [vmem:[#allocation2 + $0x1be0] ss:$8 sps:$4 sm:$0xff]   ;;  %v13038_v29 = vld [vmem:[#allocation2 + $0x6f4] ss:$8 sps:$4 sm:$0xff]  }
 0x1bc   :  { %10006 = vmatprep.mubr.bf16.mxu0 %v1784_v32  ;;  %v13041_v32 = vld [vmem:[#allocation2 + $0x1bf4] ss:$8 sps:$4 sm:$0xff]  }
 0x1bd   :  { %9116 = vmatpush1.bf16.msra.mxu1 %v12952_v5  ;;  %v13036_v5 = vld [vmem:[#allocation2 + $0x6f0] ss:$8 sps:$4 sm:$0xff]  }
 0x1be   :  { %9977 = vmatpush1.bf16.msra.mxu0 %v12955_v56  ;;  %9117 = vmatprep.subr.bf16.mxu1 %v12960_v33  ;;  %v13039_v56 = vld [vmem:[#allocation2 + $0x1bf0] ss:$8 sps:$4 sm:$0xff]   ;;  %v13045_v33 = vld [vmem:[#allocation2 + $0x704] ss:$8 sps:$4 sm:$0xff]  }
 0x1bf   :  { %9978 = vmatprep.subr.bf16.mxu0 %v12963_v34  ;;  %v13048_v34 = vld [vmem:[#allocation2 + $0x1c04] ss:$8 sps:$4 sm:$0xff]  }
 0x1c1   :  { %9118 = vmatpush1.bf16.msra.mxu1 %v12958_v52  ;;  %v1800_v52 = vcombine.high %v14756_v25, %v14756_v25 }
 0x1c2   :  { %9979 = vmatpush1.bf16.msra.mxu0 %v12961_v35  ;;  %9119 = vmatprep.subr.bf16.mxu1 %v12966_v17  ;;  %v14762_v35 = vrot.slane %v14736_v63, %v14606_v51  ;;  %v1782_v17 = vcombine.high %v14744_v24, %v14744_v24  ;;  %v13049_v63 = vld [vmem:[#allocation2 + $0x710] ss:$8 sps:$4 sm:$0xff]  }
 0x1c3   :  { %9980 = vmatprep.subr.bf16.mxu0 %v12969_v37  ;;  %v13043_v37 = vld [vmem:[#allocation2 + $0x700] ss:$8 sps:$4 sm:$0xff]   ;;  %v13052_v24 = vld [vmem:[#allocation2 + $0x1c10] ss:$8 sps:$4 sm:$0xff]  }
 0x1c5   :  { %9120 = vmatpush1.bf16.msra.mxu1 %v12964_v39  ;;  %v13046_v39 = vld [vmem:[#allocation2 + $0x1c00] ss:$8 sps:$4 sm:$0xff]  }
 0x1c6   :  { %9981 = vmatpush1.bf16.msra.mxu0 %v12967_v40  ;;  %9121 = vmatprep.subr.bf16.mxu1 %v12972_v42  ;;  %v13051_v40 = vld [vmem:[#allocation2 + $0x714] ss:$8 sps:$4 sm:$0xff]  }
 0x1c7   :  { %9982 = vmatprep.subr.bf16.mxu0 %v12975_v21  ;;  %v13054_v42 = vld [vmem:[#allocation2 + $0x1c14] ss:$8 sps:$4 sm:$0xff]   ;;  %v1539_v21 = vcombine.high %v14747_v31, %v14747_v31  ;;  %v13055_v31 = vld [vmem:[#allocation2 + $0x720] ss:$8 sps:$4 sm:$0xff]  }
 0x1c9   :  { %9122 = vmatpush1.bf16.msra.mxu1 %v12970_v43  ;;  %v14769_v43 = vrot.slane %v1800_v52, %v14606_v51  ;;  %v13129_v52 = vld [vmem:[#allocation2 + $0x7e4] ss:$8 sps:$4 sm:$0xff]  }
 0x1ca   :  { %9983 = vmatpush1.bf16.msra.mxu0 %v12973_v44  ;;  %9123 = vmatprep.subr.bf16.mxu1 %v12978_v45  ;;  %v13057_v44 = vld [vmem:[#allocation2 + $0x724] ss:$8 sps:$4 sm:$0xff]  }
 0x1cb   :  { %9984 = vmatprep.subr.bf16.mxu0 %v12981_v47  ;;  %v13060_v45 = vld [vmem:[#allocation2 + $0x1c24] ss:$8 sps:$4 sm:$0xff]   ;;  %v13058_v47 = vld [vmem:[#allocation2 + $0x1c20] ss:$8 sps:$4 sm:$0xff]  }
 0x1cd   :  { %9124 = vmatpush1.bf16.msra.mxu1 %v12976_v28  ;;  %v13063_v28 = vld [vmem:[#allocation2 + $0x734] ss:$8 sps:$4 sm:$0xff]  }
 0x1ce   :  { %9985 = vmatpush1.bf16.msra.mxu0 %v12979_v49  ;;  %9125 = vmatprep.subr.bf16.mxu1 %v12984_v50  ;;  %v13066_v49 = vld [vmem:[#allocation2 + $0x1c34] ss:$8 sps:$4 sm:$0xff]   ;;  %v13061_v50 = vld [vmem:[#allocation2 + $0x730] ss:$8 sps:$4 sm:$0xff]  }
 0x1cf   :  { %9986 = vmatprep.subr.bf16.mxu0 %v12987_v53  ;;  %v13064_v53 = vld [vmem:[#allocation2 + $0x1c30] ss:$8 sps:$4 sm:$0xff]  }
 0x1d1   :  { %9126 = vmatpush1.bf16.msra.mxu1 %v12982_v55  ;;  %v13069_v55 = vld [vmem:[#allocation2 + $0x744] ss:$8 sps:$4 sm:$0xff]  }
 0x1d2   :  { %9987 = vmatpush1.bf16.msra.mxu0 %v12985_v30  ;;  %9127 = vmatprep.subr.bf16.mxu1 %v12990_v36  ;;  %v13072_v30 = vld [vmem:[#allocation2 + $0x1c44] ss:$8 sps:$4 sm:$0xff]   ;;  %v13067_v36 = vld [vmem:[#allocation2 + $0x740] ss:$8 sps:$4 sm:$0xff]  }
 0x1d3   :  { %9988 = vmatprep.subr.bf16.mxu0 %v12993_v57  ;;  %v13070_v57 = vld [vmem:[#allocation2 + $0x1c40] ss:$8 sps:$4 sm:$0xff]  }
 0x1d5   :  { %9128 = vmatpush1.bf16.msra.mxu1 %v12988_v58  ;;  %v13075_v58 = vld [vmem:[#allocation2 + $0x754] ss:$8 sps:$4 sm:$0xff]  }
 0x1d6   :  { %9989 = vmatpush1.bf16.msra.mxu0 %v12991_v59  ;;  %9129 = vmatprep.subr.bf16.mxu1 %v12996_v41  ;;  %v13078_v59 = vld [vmem:[#allocation2 + $0x1c54] ss:$8 sps:$4 sm:$0xff]   ;;  %v13073_v41 = vld [vmem:[#allocation2 + $0x750] ss:$8 sps:$4 sm:$0xff]  }
 0x1d7   :  { %9990 = vmatprep.subr.bf16.mxu0 %v12999_v60  ;;  %v13076_v60 = vld [vmem:[#allocation2 + $0x1c50] ss:$8 sps:$4 sm:$0xff]  }
 0x1d9   :  { %9130 = vmatpush1.bf16.msra.mxu1 %v12994_v61  ;;  %v13081_v61 = vld [vmem:[#allocation2 + $0x764] ss:$8 sps:$4 sm:$0xff]  }
 0x1da   :  { %9991 = vmatpush1.bf16.msra.mxu0 %v12997_v62  ;;  %9131 = vmatprep.subr.bf16.mxu1 %v13002_v0  ;;  %v13084_v62 = vld [vmem:[#allocation2 + $0x1c64] ss:$8 sps:$4 sm:$0xff]   ;;  %v13079_v0 = vld [vmem:[#allocation2 + $0x760] ss:$8 sps:$4 sm:$0xff]  }
 0x1db   :  { %9992 = vmatprep.subr.bf16.mxu0 %v13005_v1  ;;  %v13082_v1 = vld [vmem:[#allocation2 + $0x1c60] ss:$8 sps:$4 sm:$0xff]  }
 0x1dd   :  { %9132 = vmatpush1.bf16.msra.mxu1 %v13000_v4  ;;  %v13087_v4 = vld [vmem:[#allocation2 + $0x774] ss:$8 sps:$4 sm:$0xff]  }
 0x1de   :  { %9993 = vmatpush1.bf16.msra.mxu0 %v13003_v48  ;;  %9133 = vmatprep.subr.bf16.mxu1 %v13008_v14  ;;  %v13090_v48 = vld [vmem:[#allocation2 + $0x1c74] ss:$8 sps:$4 sm:$0xff]   ;;  %v13085_v14 = vld [vmem:[#allocation2 + $0x770] ss:$8 sps:$4 sm:$0xff]  }
 0x1df   :  { %9994 = vmatprep.subr.bf16.mxu0 %v13011_v6  ;;  %v13088_v6 = vld [vmem:[#allocation2 + $0x1c70] ss:$8 sps:$4 sm:$0xff]  }
 0x1e1   :  { %9134 = vmatpush1.bf16.msra.mxu1 %v13006_v7  ;;  %v13093_v7 = vld [vmem:[#allocation2 + $0x784] ss:$8 sps:$4 sm:$0xff]  }
 0x1e2   :  { %9995 = vmatpush1.bf16.msra.mxu0 %v13009_v8  ;;  %9135 = vmatprep.subr.bf16.mxu1 %v13014_v38  ;;  %v13096_v8 = vld [vmem:[#allocation2 + $0x1c84] ss:$8 sps:$4 sm:$0xff]   ;;  %v13091_v38 = vld [vmem:[#allocation2 + $0x780] ss:$8 sps:$4 sm:$0xff]  }
 0x1e3   :  { %9996 = vmatprep.subr.bf16.mxu0 %v13017_v9  ;;  %v13094_v9 = vld [vmem:[#allocation2 + $0x1c80] ss:$8 sps:$4 sm:$0xff]  }
 0x1e5   :  { %9136 = vmatpush1.bf16.msra.mxu1 %v13012_v10  ;;  %v13099_v10 = vld [vmem:[#allocation2 + $0x794] ss:$8 sps:$4 sm:$0xff]  }
 0x1e6   :  { %9997 = vmatpush1.bf16.msra.mxu0 %v13015_v11  ;;  %9137 = vmatprep.subr.bf16.mxu1 %v13020_v12  ;;  %v13102_v11 = vld [vmem:[#allocation2 + $0x1c94] ss:$8 sps:$4 sm:$0xff]   ;;  %v13097_v12 = vld [vmem:[#allocation2 + $0x790] ss:$8 sps:$4 sm:$0xff]  }
 0x1e7   :  { %9998 = vmatprep.subr.bf16.mxu0 %v13023_v13  ;;  %v13100_v13 = vld [vmem:[#allocation2 + $0x1c90] ss:$8 sps:$4 sm:$0xff]  }
 0x1e9   :  { %9138 = vmatpush1.bf16.msra.mxu1 %v13018_v16  ;;  %v13105_v16 = vld [vmem:[#allocation2 + $0x7a4] ss:$8 sps:$4 sm:$0xff]  }
 0x1ea   :  { %9999 = vmatpush1.bf16.msra.mxu0 %v13021_v54  ;;  %9139 = vmatprep.subr.bf16.mxu1 %v13026_v18  ;;  %v13108_v54 = vld [vmem:[#allocation2 + $0x1ca4] ss:$8 sps:$4 sm:$0xff]   ;;  %v13103_v18 = vld [vmem:[#allocation2 + $0x7a0] ss:$8 sps:$4 sm:$0xff]  }
 0x1eb   :  { %10000 = vmatprep.subr.bf16.mxu0 %v13029_v19  ;;  %v13106_v19 = vld [vmem:[#allocation2 + $0x1ca0] ss:$8 sps:$4 sm:$0xff]  }
 0x1ed   :  { %9140 = vmatpush1.bf16.msra.mxu1 %v13024_v2  ;;  %v13111_v2 = vld [vmem:[#allocation2 + $0x7b4] ss:$8 sps:$4 sm:$0xff]  }
 0x1ee   :  { %10001 = vmatpush1.bf16.msra.mxu0 %v13027_v20  ;;  %9141 = vmatprep.subr.bf16.mxu1 %v13032_v22  ;;  %v13114_v20 = vld [vmem:[#allocation2 + $0x1cb4] ss:$8 sps:$4 sm:$0xff]   ;;  %v13109_v22 = vld [vmem:[#allocation2 + $0x7b0] ss:$8 sps:$4 sm:$0xff]  }
 0x1ef   :  { %10002 = vmatprep.subr.bf16.mxu0 %v13035_v23  ;;  %v13112_v23 = vld [vmem:[#allocation2 + $0x1cb0] ss:$8 sps:$4 sm:$0xff]  }
 0x1f1   :  { %9142 = vmatpush1.bf16.msra.mxu1 %v13030_v26  ;;  %v13117_v26 = vld [vmem:[#allocation2 + $0x7c4] ss:$8 sps:$4 sm:$0xff]  }
 0x1f2   :  { %10003 = vmatpush1.bf16.msra.mxu0 %v13033_v27  ;;  %9143 = vmatprep.subr.bf16.mxu1 %v13038_v29  ;;  %v13120_v27 = vld [vmem:[#allocation2 + $0x1cc4] ss:$8 sps:$4 sm:$0xff]   ;;  %v13115_v29 = vld [vmem:[#allocation2 + $0x7c0] ss:$8 sps:$4 sm:$0xff]  }
 0x1f3   :  { %10004 = vmatprep.subr.bf16.mxu0 %v13041_v32  ;;  %v13118_v32 = vld [vmem:[#allocation2 + $0x1cc0] ss:$8 sps:$4 sm:$0xff]  }
 0x1f5   :  { %9144 = vmatpush1.bf16.msra.mxu1 %v13036_v5  ;;  %v13123_v5 = vld [vmem:[#allocation2 + $0x7d4] ss:$8 sps:$4 sm:$0xff]  }
 0x1f6   :  { %10005 = vmatpush1.bf16.msra.mxu0 %v13039_v56  ;;  %9154 = vmatprep.subr.bf16.mxu1 %v13045_v33  ;;  %v13126_v56 = vld [vmem:[#allocation2 + $0x1cd4] ss:$8 sps:$4 sm:$0xff]   ;;  %v13121_v33 = vld [vmem:[#allocation2 + $0x7d0] ss:$8 sps:$4 sm:$0xff]  }
 0x1f7   :  { %10015 = vmatprep.subr.bf16.mxu0 %v13048_v34  ;;  %v13124_v34 = vld [vmem:[#allocation2 + $0x1cd0] ss:$8 sps:$4 sm:$0xff]  }
 0x1f8   :  { %9146 = vmatmul.mubr.bf16.vlgmr.msra.gmra.mrb[0].mxu1 %v14762_v35 }
 0x1f9   :  { %10007 = vmatmul.mubr.bf16.vlgmr.msra.gmra.mrb[0].mxu0 %v1782_v17  ;;  %9155 = vmatpush1.bf16.msra.mxu1 %v13043_v37  ;;  %v13132_v17 = vld [vmem:[#allocation2 + $0x1ce4] ss:$8 sps:$4 sm:$0xff]   ;;  %v14776_v37 = vld.sshfl [vmem:[%s15165_s0 + $0x10] sm:$0xff pattern:$0x75316420] }
 0x1fa   :  { %10016 = vmatpush1.bf16.msra.mxu0 %v13046_v39  ;;  %9156 = vmatprep.subr.bf16.mxu1 %v13051_v40  ;;  %v13127_v39 = vld [vmem:[#allocation2 + $0x7e0] ss:$8 sps:$4 sm:$0xff]  }
 0x1fb   :  { %10017 = vmatprep.subr.bf16.mxu0 %v13054_v42  ;;  %9186 = vmatprep.mubr.bf16.mxu1 %v1539_v21  ;;  %v13130_v40 = vld [vmem:[#allocation2 + $0x1ce0] ss:$8 sps:$4 sm:$0xff]   ;;  %v13135_v42 = vld [vmem:[#allocation2 + $0x7f4] ss:$8 sps:$4 sm:$0xff]  }
 0x1fc   :  { %10047 = vmatprep.mubr.bf16.mxu0 %v14769_v43  ;;  %v13138_v21 = vld [vmem:[#allocation2 + $0x1cf4] ss:$8 sps:$4 sm:$0xff]  }
 0x1fd   :  { %9157 = vmatpush1.bf16.msra.mxu1 %v13049_v63  ;;  %v13133_v63 = vld [vmem:[#allocation2 + $0x7f0] ss:$8 sps:$4 sm:$0xff]  }
 0x1fe   :  { %10018 = vmatpush1.bf16.msra.mxu0 %v13052_v24  ;;  %9158 = vmatprep.subr.bf16.mxu1 %v13057_v44  ;;  %v13136_v24 = vld [vmem:[#allocation2 + $0x1cf0] ss:$8 sps:$4 sm:$0xff]   ;;  %v13141_v44 = vld [vmem:[#allocation2 + $0x804] ss:$8 sps:$4 sm:$0xff]  }
 0x1ff   :  { %10019 = vmatprep.subr.bf16.mxu0 %v13060_v45  ;;  %v13144_v45 = vld [vmem:[#allocation2 + $0x1d04] ss:$8 sps:$4 sm:$0xff]  }
 0x201   :  { %9159 = vmatpush1.bf16.msra.mxu1 %v13055_v31  ;;  %v1555_v31 = vcombine.high %v14776_v37, %v14776_v37 }
 0x202   :  { %10020 = vmatpush1.bf16.msra.mxu0 %v13058_v47  ;;  %9160 = vmatprep.subr.bf16.mxu1 %v13063_v28  ;;  %v1537_v47 = vcombine.high %v14762_v35, %v14762_v35  ;;  %v14784_v28 = vrot.slane %v14756_v25, %v14606_v51  ;;  %v13145_v25 = vld [vmem:[#allocation2 + $0x810] ss:$8 sps:$4 sm:$0xff]  }
 0x203   :  { %10021 = vmatprep.subr.bf16.mxu0 %v13066_v49  ;;  %v13139_v49 = vld [vmem:[#allocation2 + $0x800] ss:$8 sps:$4 sm:$0xff]   ;;  %v13148_v35 = vld [vmem:[#allocation2 + $0x1d10] ss:$8 sps:$4 sm:$0xff]  }
 0x205   :  { %9161 = vmatpush1.bf16.msra.mxu1 %v13061_v50  ;;  %v13142_v50 = vld [vmem:[#allocation2 + $0x1d00] ss:$8 sps:$4 sm:$0xff]  }
 0x206   :  { %10022 = vmatpush1.bf16.msra.mxu0 %v13064_v53  ;;  %9162 = vmatprep.subr.bf16.mxu1 %v13069_v55  ;;  %v13147_v53 = vld [vmem:[#allocation2 + $0x814] ss:$8 sps:$4 sm:$0xff]  }
 0x207   :  { %10023 = vmatprep.subr.bf16.mxu0 %v13072_v30  ;;  %v13150_v55 = vld [vmem:[#allocation2 + $0x1d14] ss:$8 sps:$4 sm:$0xff]   ;;  %v14787_v30 = vrot.slane %v1555_v31, %v14606_v51  ;;  %v13225_v31 = vld [vmem:[#allocation2 + $0x8e4] ss:$8 sps:$4 sm:$0xff]  }
 0x209   :  { %9163 = vmatpush1.bf16.msra.mxu1 %v13067_v36  ;;  %v1832_v36 = vcombine.high %v14769_v43, %v14769_v43  ;;  %v13159_v43 = vld [vmem:[#allocation2 + $0x834] ss:$8 sps:$4 sm:$0xff]  }
 0x20a   :  { %10024 = vmatpush1.bf16.msra.mxu0 %v13070_v57  ;;  %9164 = vmatprep.subr.bf16.mxu1 %v13075_v58  ;;  %v13153_v57 = vld [vmem:[#allocation2 + $0x824] ss:$8 sps:$4 sm:$0xff]  }
 0x20b   :  { %10025 = vmatprep.subr.bf16.mxu0 %v13078_v59  ;;  %v13156_v58 = vld [vmem:[#allocation2 + $0x1d24] ss:$8 sps:$4 sm:$0xff]   ;;  %v13151_v59 = vld [vmem:[#allocation2 + $0x820] ss:$8 sps:$4 sm:$0xff]  }
 0x20d   :  { %9165 = vmatpush1.bf16.msra.mxu1 %v13073_v41  ;;  %v13154_v41 = vld [vmem:[#allocation2 + $0x1d20] ss:$8 sps:$4 sm:$0xff]  }
 0x20e   :  { %10026 = vmatpush1.bf16.msra.mxu0 %v13076_v60  ;;  %9166 = vmatprep.subr.bf16.mxu1 %v13081_v61  ;;  %v13162_v60 = vld [vmem:[#allocation2 + $0x1d34] ss:$8 sps:$4 sm:$0xff]   ;;  %v13157_v61 = vld [vmem:[#allocation2 + $0x830] ss:$8 sps:$4 sm:$0xff]  }
 0x20f   :  { %10027 = vmatprep.subr.bf16.mxu0 %v13084_v62  ;;  %v13160_v62 = vld [vmem:[#allocation2 + $0x1d30] ss:$8 sps:$4 sm:$0xff]  }
 0x211   :  { %9167 = vmatpush1.bf16.msra.mxu1 %v13079_v0  ;;  %v13165_v0 = vld [vmem:[#allocation2 + $0x844] ss:$8 sps:$4 sm:$0xff]  }
 0x212   :  { %10028 = vmatpush1.bf16.msra.mxu0 %v13082_v1  ;;  %9168 = vmatprep.subr.bf16.mxu1 %v13087_v4  ;;  %v13168_v1 = vld [vmem:[#allocation2 + $0x1d44] ss:$8 sps:$4 sm:$0xff]   ;;  %v13163_v4 = vld [vmem:[#allocation2 + $0x840] ss:$8 sps:$4 sm:$0xff]  }
 0x213   :  { %10029 = vmatprep.subr.bf16.mxu0 %v13090_v48  ;;  %v13166_v48 = vld [vmem:[#allocation2 + $0x1d40] ss:$8 sps:$4 sm:$0xff]  }
 0x215   :  { %9169 = vmatpush1.bf16.msra.mxu1 %v13085_v14  ;;  %v13171_v14 = vld [vmem:[#allocation2 + $0x854] ss:$8 sps:$4 sm:$0xff]  }
 0x216   :  { %10030 = vmatpush1.bf16.msra.mxu0 %v13088_v6  ;;  %9170 = vmatprep.subr.bf16.mxu1 %v13093_v7  ;;  %v13174_v6 = vld [vmem:[#allocation2 + $0x1d54] ss:$8 sps:$4 sm:$0xff]   ;;  %v13169_v7 = vld [vmem:[#allocation2 + $0x850] ss:$8 sps:$4 sm:$0xff]  }
 0x217   :  { %10031 = vmatprep.subr.bf16.mxu0 %v13096_v8  ;;  %v13172_v8 = vld [vmem:[#allocation2 + $0x1d50] ss:$8 sps:$4 sm:$0xff]  }
 0x219   :  { %9171 = vmatpush1.bf16.msra.mxu1 %v13091_v38  ;;  %v13177_v38 = vld [vmem:[#allocation2 + $0x864] ss:$8 sps:$4 sm:$0xff]  }
 0x21a   :  { %10032 = vmatpush1.bf16.msra.mxu0 %v13094_v9  ;;  %9172 = vmatprep.subr.bf16.mxu1 %v13099_v10  ;;  %v13180_v9 = vld [vmem:[#allocation2 + $0x1d64] ss:$8 sps:$4 sm:$0xff]   ;;  %v13175_v10 = vld [vmem:[#allocation2 + $0x860] ss:$8 sps:$4 sm:$0xff]  }
 0x21b   :  { %10033 = vmatprep.subr.bf16.mxu0 %v13102_v11  ;;  %v13178_v11 = vld [vmem:[#allocation2 + $0x1d60] ss:$8 sps:$4 sm:$0xff]  }
 0x21d   :  { %9173 = vmatpush1.bf16.msra.mxu1 %v13097_v12  ;;  %v13183_v12 = vld [vmem:[#allocation2 + $0x874] ss:$8 sps:$4 sm:$0xff]  }
 0x21e   :  { %10034 = vmatpush1.bf16.msra.mxu0 %v13100_v13  ;;  %9174 = vmatprep.subr.bf16.mxu1 %v13105_v16  ;;  %v13186_v13 = vld [vmem:[#allocation2 + $0x1d74] ss:$8 sps:$4 sm:$0xff]   ;;  %v13181_v16 = vld [vmem:[#allocation2 + $0x870] ss:$8 sps:$4 sm:$0xff]  }
 0x21f   :  { %10035 = vmatprep.subr.bf16.mxu0 %v13108_v54  ;;  %v13184_v54 = vld [vmem:[#allocation2 + $0x1d70] ss:$8 sps:$4 sm:$0xff]  }
 0x221   :  { %9175 = vmatpush1.bf16.msra.mxu1 %v13103_v18  ;;  %v13189_v18 = vld [vmem:[#allocation2 + $0x884] ss:$8 sps:$4 sm:$0xff]  }
 0x222   :  { %10036 = vmatpush1.bf16.msra.mxu0 %v13106_v19  ;;  %9176 = vmatprep.subr.bf16.mxu1 %v13111_v2  ;;  %v13192_v19 = vld [vmem:[#allocation2 + $0x1d84] ss:$8 sps:$4 sm:$0xff]   ;;  %v13187_v2 = vld [vmem:[#allocation2 + $0x880] ss:$8 sps:$4 sm:$0xff]  }
 0x223   :  { %10037 = vmatprep.subr.bf16.mxu0 %v13114_v20  ;;  %v13190_v20 = vld [vmem:[#allocation2 + $0x1d80] ss:$8 sps:$4 sm:$0xff]  }
 0x225   :  { %9177 = vmatpush1.bf16.msra.mxu1 %v13109_v22  ;;  %v13195_v22 = vld [vmem:[#allocation2 + $0x894] ss:$8 sps:$4 sm:$0xff]  }
 0x226   :  { %10038 = vmatpush1.bf16.msra.mxu0 %v13112_v23  ;;  %9178 = vmatprep.subr.bf16.mxu1 %v13117_v26  ;;  %v13198_v23 = vld [vmem:[#allocation2 + $0x1d94] ss:$8 sps:$4 sm:$0xff]   ;;  %v13193_v26 = vld [vmem:[#allocation2 + $0x890] ss:$8 sps:$4 sm:$0xff]  }
 0x227   :  { %10039 = vmatprep.subr.bf16.mxu0 %v13120_v27  ;;  %v13196_v27 = vld [vmem:[#allocation2 + $0x1d90] ss:$8 sps:$4 sm:$0xff]  }
 0x229   :  { %9179 = vmatpush1.bf16.msra.mxu1 %v13115_v29  ;;  %v13201_v29 = vld [vmem:[#allocation2 + $0x8a4] ss:$8 sps:$4 sm:$0xff]  }
 0x22a   :  { %10040 = vmatpush1.bf16.msra.mxu0 %v13118_v32  ;;  %9180 = vmatprep.subr.bf16.mxu1 %v13123_v5  ;;  %v13204_v32 = vld [vmem:[#allocation2 + $0x1da4] ss:$8 sps:$4 sm:$0xff]   ;;  %v13199_v5 = vld [vmem:[#allocation2 + $0x8a0] ss:$8 sps:$4 sm:$0xff]  }
 0x22b   :  { %10041 = vmatprep.subr.bf16.mxu0 %v13126_v56  ;;  %v13202_v56 = vld [vmem:[#allocation2 + $0x1da0] ss:$8 sps:$4 sm:$0xff]  }
 0x22d   :  { %9181 = vmatpush1.bf16.msra.mxu1 %v13121_v33  ;;  %v13207_v33 = vld [vmem:[#allocation2 + $0x8b4] ss:$8 sps:$4 sm:$0xff]  }
 0x22e   :  { %10042 = vmatpush1.bf16.msra.mxu0 %v13124_v34  ;;  %9182 = vmatprep.subr.bf16.mxu1 %v13129_v52  ;;  %v13210_v34 = vld [vmem:[#allocation2 + $0x1db4] ss:$8 sps:$4 sm:$0xff]   ;;  %v13205_v52 = vld [vmem:[#allocation2 + $0x8b0] ss:$8 sps:$4 sm:$0xff]  }
 0x22f   :  { %10043 = vmatprep.subr.bf16.mxu0 %v13132_v17  ;;  %v13208_v17 = vld [vmem:[#allocation2 + $0x1db0] ss:$8 sps:$4 sm:$0xff]  }
 0x231   :  { %9183 = vmatpush1.bf16.msra.mxu1 %v13127_v39  ;;  %v13213_v39 = vld [vmem:[#allocation2 + $0x8c4] ss:$8 sps:$4 sm:$0xff]  }
 0x232   :  { %10044 = vmatpush1.bf16.msra.mxu0 %v13130_v40  ;;  %9184 = vmatprep.subr.bf16.mxu1 %v13135_v42  ;;  %v13216_v40 = vld [vmem:[#allocation2 + $0x1dc4] ss:$8 sps:$4 sm:$0xff]   ;;  %v13211_v42 = vld [vmem:[#allocation2 + $0x8c0] ss:$8 sps:$4 sm:$0xff]  }
 0x233   :  { %10045 = vmatprep.subr.bf16.mxu0 %v13138_v21  ;;  %v13214_v21 = vld [vmem:[#allocation2 + $0x1dc0] ss:$8 sps:$4 sm:$0xff]  }
 0x235   :  { %9185 = vmatpush1.bf16.msra.mxu1 %v13133_v63  ;;  %v13219_v63 = vld [vmem:[#allocation2 + $0x8d4] ss:$8 sps:$4 sm:$0xff]  }
 0x236   :  { %10046 = vmatpush1.bf16.msra.mxu0 %v13136_v24  ;;  %9195 = vmatprep.subr.bf16.mxu1 %v13141_v44  ;;  %v13222_v24 = vld [vmem:[#allocation2 + $0x1dd4] ss:$8 sps:$4 sm:$0xff]   ;;  %v13217_v44 = vld [vmem:[#allocation2 + $0x8d0] ss:$8 sps:$4 sm:$0xff]  }
 0x237   :  { %10056 = vmatprep.subr.bf16.mxu0 %v13144_v45  ;;  %v13220_v45 = vld [vmem:[#allocation2 + $0x1dd0] ss:$8 sps:$4 sm:$0xff]  }
 0x238   :  { %9187 = vmatmul.mubr.bf16.vlgmr.msra.gmra.mrb[0].mxu1 %v1537_v47  ;;  %v13228_v47 = vld [vmem:[#allocation2 + $0x1de4] ss:$8 sps:$4 sm:$0xff]  }
 0x239   :  { %10048 = vmatmul.mubr.bf16.vlgmr.msra.gmra.mrb[0].mxu0 %v14784_v28  ;;  %9196 = vmatpush1.bf16.msra.mxu1 %v13139_v49  ;;  %v14423_v49 = vld [vmem:[%s15165_s0 + $0x38] sm:$0xff] }
 0x23a   :  { %10057 = vmatpush1.bf16.msra.mxu0 %v13142_v50  ;;  %9197 = vmatprep.subr.bf16.mxu1 %v13147_v53  ;;  %v1785_v50 = vcombine.high %v14423_v49, %v14423_v49  ;;  %v13223_v53 = vld [vmem:[#allocation2 + $0x8e0] ss:$8 sps:$4 sm:$0xff]   ;;  %v13301_v49 = vld [vmem:[#allocation2 + $0x9b0] ss:$8 sps:$4 sm:$0xff]  }
 0x23b   :  { %10058 = vmatprep.subr.bf16.mxu0 %v13150_v55  ;;  %9227 = vmatprep.mubr.bf16.mxu1 %v14787_v30  ;;  %v13226_v55 = vld [vmem:[#allocation2 + $0x1de0] ss:$8 sps:$4 sm:$0xff]  }
 0x23c   :  { %10088 = vmatprep.mubr.bf16.mxu0 %v1832_v36  ;;  %v13231_v36 = vld [vmem:[#allocation2 + $0x8f4] ss:$8 sps:$4 sm:$0xff]  }
 0x23d   :  { %9198 = vmatpush1.bf16.msra.mxu1 %v13145_v25  ;;  %v13234_v25 = vld [vmem:[#allocation2 + $0x1df4] ss:$8 sps:$4 sm:$0xff]  }
 0x23e   :  { %10059 = vmatpush1.bf16.msra.mxu0 %v13148_v35  ;;  %9199 = vmatprep.subr.bf16.mxu1 %v13153_v57  ;;  %v14797_v35 = vrot.slane %v1785_v50, %v14606_v51  ;;  %v13229_v57 = vld [vmem:[#allocation2 + $0x8f0] ss:$8 sps:$4 sm:$0xff]  }
 0x23f   :  { %10060 = vmatprep.subr.bf16.mxu0 %v13156_v58  ;;  %v13232_v58 = vld [vmem:[#allocation2 + $0x1df0] ss:$8 sps:$4 sm:$0xff]  }
 0x240   :  { %v13304_v50 = vld [vmem:[#allocation2 + $0x1eb0] ss:$8 sps:$4 sm:$0xff]  }
 0x241   :  { %9200 = vmatpush1.bf16.msra.mxu1 %v13151_v59  ;;  %v13237_v59 = vld [vmem:[#allocation2 + $0x904] ss:$8 sps:$4 sm:$0xff]  }
 0x242   :  { %10061 = vmatpush1.bf16.msra.mxu0 %v13154_v41  ;;  %9201 = vmatprep.subr.bf16.mxu1 %v13159_v43  ;;  %v13240_v41 = vld [vmem:[#allocation2 + $0x1e04] ss:$8 sps:$4 sm:$0xff]   ;;  %v1801_v43 = vcombine.high %v14797_v35, %v14797_v35 }
 0x243   :  { %10062 = vmatprep.subr.bf16.mxu0 %v13162_v60  ;;  %v14803_v60 = vrot.slane %v14776_v37, %v14606_v51  ;;  %v13241_v37 = vld [vmem:[#allocation2 + $0x910] ss:$8 sps:$4 sm:$0xff]  }
 0x245   :  { %9202 = vmatpush1.bf16.msra.mxu1 %v13157_v61  ;;  %v1830_v61 = vcombine.high %v14784_v28, %v14784_v28  ;;  %v13244_v28 = vld [vmem:[#allocation2 + $0x1e10] ss:$8 sps:$4 sm:$0xff]  }
 0x246   :  { %10063 = vmatpush1.bf16.msra.mxu0 %v13160_v62  ;;  %9203 = vmatprep.subr.bf16.mxu1 %v13165_v0  ;;  %v13235_v62 = vld [vmem:[#allocation2 + $0x900] ss:$8 sps:$4 sm:$0xff]  }
 0x247   :  { %10064 = vmatprep.subr.bf16.mxu0 %v13168_v1  ;;  %v13238_v0 = vld [vmem:[#allocation2 + $0x1e00] ss:$8 sps:$4 sm:$0xff]   ;;  %v13243_v1 = vld [vmem:[#allocation2 + $0x914] ss:$8 sps:$4 sm:$0xff]  }
 0x249   :  { %9204 = vmatpush1.bf16.msra.mxu1 %v13163_v4  ;;  %v13246_v4 = vld [vmem:[#allocation2 + $0x1e14] ss:$8 sps:$4 sm:$0xff]  }
 0x24a   :  { %10065 = vmatpush1.bf16.msra.mxu0 %v13166_v48  ;;  %9205 = vmatprep.subr.bf16.mxu1 %v13171_v14  ;;  %v1587_v48 = vcombine.high %v14787_v30, %v14787_v30  ;;  %v14810_v14 = vrot.slane %v1801_v43, %v14606_v51  ;;  %v13247_v30 = vld [vmem:[#allocation2 + $0x920] ss:$8 sps:$4 sm:$0xff]   ;;  %v13321_v43 = vld [vmem:[#allocation2 + $0x9e4] ss:$8 sps:$4 sm:$0xff]  }
 0x24b   :  { %10066 = vmatprep.subr.bf16.mxu0 %v13174_v6  ;;  %v13249_v6 = vld [vmem:[#allocation2 + $0x924] ss:$8 sps:$4 sm:$0xff]  }
 0x24d   :  { %9206 = vmatpush1.bf16.msra.mxu1 %v13169_v7  ;;  %v13252_v7 = vld [vmem:[#allocation2 + $0x1e24] ss:$8 sps:$4 sm:$0xff]  }
 0x24e   :  { %10067 = vmatpush1.bf16.msra.mxu0 %v13172_v8  ;;  %9207 = vmatprep.subr.bf16.mxu1 %v13177_v38  ;;  %v13250_v8 = vld [vmem:[#allocation2 + $0x1e20] ss:$8 sps:$4 sm:$0xff]   ;;  %v13255_v38 = vld [vmem:[#allocation2 + $0x934] ss:$8 sps:$4 sm:$0xff]  }
 0x24f   :  { %10068 = vmatprep.subr.bf16.mxu0 %v13180_v9  ;;  %v13258_v9 = vld [vmem:[#allocation2 + $0x1e34] ss:$8 sps:$4 sm:$0xff]  }
 0x251   :  { %9208 = vmatpush1.bf16.msra.mxu1 %v13175_v10  ;;  %v13253_v10 = vld [vmem:[#allocation2 + $0x930] ss:$8 sps:$4 sm:$0xff]  }
 0x252   :  { %10069 = vmatpush1.bf16.msra.mxu0 %v13178_v11  ;;  %9209 = vmatprep.subr.bf16.mxu1 %v13183_v12  ;;  %v13256_v11 = vld [vmem:[#allocation2 + $0x1e30] ss:$8 sps:$4 sm:$0xff]   ;;  %v13261_v12 = vld [vmem:[#allocation2 + $0x944] ss:$8 sps:$4 sm:$0xff]  }
 0x253   :  { %10070 = vmatprep.subr.bf16.mxu0 %v13186_v13  ;;  %v13264_v13 = vld [vmem:[#allocation2 + $0x1e44] ss:$8 sps:$4 sm:$0xff]  }
 0x255   :  { %9210 = vmatpush1.bf16.msra.mxu1 %v13181_v16  ;;  %v13259_v16 = vld [vmem:[#allocation2 + $0x940] ss:$8 sps:$4 sm:$0xff]  }
 0x256   :  { %10071 = vmatpush1.bf16.msra.mxu0 %v13184_v54  ;;  %9211 = vmatprep.subr.bf16.mxu1 %v13189_v18  ;;  %v13262_v54 = vld [vmem:[#allocation2 + $0x1e40] ss:$8 sps:$4 sm:$0xff]   ;;  %v13267_v18 = vld [vmem:[#allocation2 + $0x954] ss:$8 sps:$4 sm:$0xff]  }
 0x257   :  { %10072 = vmatprep.subr.bf16.mxu0 %v13192_v19  ;;  %v13270_v19 = vld [vmem:[#allocation2 + $0x1e54] ss:$8 sps:$4 sm:$0xff]  }
 0x259   :  { %9212 = vmatpush1.bf16.msra.mxu1 %v13187_v2  ;;  %v13265_v2 = vld [vmem:[#allocation2 + $0x950] ss:$8 sps:$4 sm:$0xff]  }
 0x25a   :  { %10073 = vmatpush1.bf16.msra.mxu0 %v13190_v20  ;;  %9213 = vmatprep.subr.bf16.mxu1 %v13195_v22  ;;  %v13268_v20 = vld [vmem:[#allocation2 + $0x1e50] ss:$8 sps:$4 sm:$0xff]   ;;  %v13273_v22 = vld [vmem:[#allocation2 + $0x964] ss:$8 sps:$4 sm:$0xff]  }
 0x25b   :  { %10074 = vmatprep.subr.bf16.mxu0 %v13198_v23  ;;  %v13276_v23 = vld [vmem:[#allocation2 + $0x1e64] ss:$8 sps:$4 sm:$0xff]  }
 0x25d   :  { %9214 = vmatpush1.bf16.msra.mxu1 %v13193_v26  ;;  %v13271_v26 = vld [vmem:[#allocation2 + $0x960] ss:$8 sps:$4 sm:$0xff]  }
 0x25e   :  { %10075 = vmatpush1.bf16.msra.mxu0 %v13196_v27  ;;  %9215 = vmatprep.subr.bf16.mxu1 %v13201_v29  ;;  %v13274_v27 = vld [vmem:[#allocation2 + $0x1e60] ss:$8 sps:$4 sm:$0xff]   ;;  %v13279_v29 = vld [vmem:[#allocation2 + $0x974] ss:$8 sps:$4 sm:$0xff]  }
 0x25f   :  { %10076 = vmatprep.subr.bf16.mxu0 %v13204_v32  ;;  %v13282_v32 = vld [vmem:[#allocation2 + $0x1e74] ss:$8 sps:$4 sm:$0xff]  }
 0x261   :  { %9216 = vmatpush1.bf16.msra.mxu1 %v13199_v5  ;;  %v13277_v5 = vld [vmem:[#allocation2 + $0x970] ss:$8 sps:$4 sm:$0xff]  }
 0x262   :  { %10077 = vmatpush1.bf16.msra.mxu0 %v13202_v56  ;;  %9217 = vmatprep.subr.bf16.mxu1 %v13207_v33  ;;  %v13280_v56 = vld [vmem:[#allocation2 + $0x1e70] ss:$8 sps:$4 sm:$0xff]   ;;  %v13285_v33 = vld [vmem:[#allocation2 + $0x984] ss:$8 sps:$4 sm:$0xff]  }
 0x263   :  { %10078 = vmatprep.subr.bf16.mxu0 %v13210_v34  ;;  %v13288_v34 = vld [vmem:[#allocation2 + $0x1e84] ss:$8 sps:$4 sm:$0xff]  }
 0x265   :  { %9218 = vmatpush1.bf16.msra.mxu1 %v13205_v52  ;;  %v13283_v52 = vld [vmem:[#allocation2 + $0x980] ss:$8 sps:$4 sm:$0xff]  }
 0x266   :  { %10079 = vmatpush1.bf16.msra.mxu0 %v13208_v17  ;;  %9219 = vmatprep.subr.bf16.mxu1 %v13213_v39  ;;  %v13286_v17 = vld [vmem:[#allocation2 + $0x1e80] ss:$8 sps:$4 sm:$0xff]   ;;  %v13291_v39 = vld [vmem:[#allocation2 + $0x994] ss:$8 sps:$4 sm:$0xff]  }
 0x267   :  { %10080 = vmatprep.subr.bf16.mxu0 %v13216_v40  ;;  %v13294_v40 = vld [vmem:[#allocation2 + $0x1e94] ss:$8 sps:$4 sm:$0xff]  }
 0x269   :  { %9220 = vmatpush1.bf16.msra.mxu1 %v13211_v42  ;;  %v13289_v42 = vld [vmem:[#allocation2 + $0x990] ss:$8 sps:$4 sm:$0xff]  }
 0x26a   :  { %10081 = vmatpush1.bf16.msra.mxu0 %v13214_v21  ;;  %9221 = vmatprep.subr.bf16.mxu1 %v13219_v63  ;;  %v13292_v21 = vld [vmem:[#allocation2 + $0x1e90] ss:$8 sps:$4 sm:$0xff]   ;;  %v13297_v63 = vld [vmem:[#allocation2 + $0x9a4] ss:$8 sps:$4 sm:$0xff]  }
 0x26b   :  { %10082 = vmatprep.subr.bf16.mxu0 %v13222_v24  ;;  %v13300_v24 = vld [vmem:[#allocation2 + $0x1ea4] ss:$8 sps:$4 sm:$0xff]  }
 0x26d   :  { %9222 = vmatpush1.bf16.msra.mxu1 %v13217_v44  ;;  %v13295_v44 = vld [vmem:[#allocation2 + $0x9a0] ss:$8 sps:$4 sm:$0xff]  }
 0x26e   :  { %10083 = vmatpush1.bf16.msra.mxu0 %v13220_v45  ;;  %9223 = vmatprep.subr.bf16.mxu1 %v13225_v31  ;;  %v13298_v45 = vld [vmem:[#allocation2 + $0x1ea0] ss:$8 sps:$4 sm:$0xff]   ;;  %v13303_v31 = vld [vmem:[#allocation2 + $0x9b4] ss:$8 sps:$4 sm:$0xff]  }
 0x26f   :  { %10084 = vmatprep.subr.bf16.mxu0 %v13228_v47  ;;  %v13306_v47 = vld [vmem:[#allocation2 + $0x1eb4] ss:$8 sps:$4 sm:$0xff]  }
 0x271   :  { %9224 = vmatpush1.bf16.msra.mxu1 %v13223_v53  ;;  %v13309_v53 = vld [vmem:[#allocation2 + $0x9c4] ss:$8 sps:$4 sm:$0xff]  }
 0x272   :  { %10085 = vmatpush1.bf16.msra.mxu0 %v13226_v55  ;;  %9225 = vmatprep.subr.bf16.mxu1 %v13231_v36  ;;  %v13312_v55 = vld [vmem:[#allocation2 + $0x1ec4] ss:$8 sps:$4 sm:$0xff]   ;;  %v13307_v36 = vld [vmem:[#allocation2 + $0x9c0] ss:$8 sps:$4 sm:$0xff]  }
 0x273   :  { %10086 = vmatprep.subr.bf16.mxu0 %v13234_v25  ;;  %v13310_v25 = vld [vmem:[#allocation2 + $0x1ec0] ss:$8 sps:$4 sm:$0xff]  }
 0x275   :  { %9226 = vmatpush1.bf16.msra.mxu1 %v13229_v57  ;;  %v13315_v57 = vld [vmem:[#allocation2 + $0x9d4] ss:$8 sps:$4 sm:$0xff]  }
 0x276   :  { %10087 = vmatpush1.bf16.msra.mxu0 %v13232_v58  ;;  %9236 = vmatprep.subr.bf16.mxu1 %v13237_v59  ;;  %v13318_v58 = vld [vmem:[#allocation2 + $0x1ed4] ss:$8 sps:$4 sm:$0xff]   ;;  %v13313_v59 = vld [vmem:[#allocation2 + $0x9d0] ss:$8 sps:$4 sm:$0xff]  }
 0x277   :  { %10097 = vmatprep.subr.bf16.mxu0 %v13240_v41  ;;  %v13316_v41 = vld [vmem:[#allocation2 + $0x1ed0] ss:$8 sps:$4 sm:$0xff]  }
 0x278   :  { %9228 = vmatmul.mubr.bf16.vlgmr.msra.gmra.mrb[0].mxu1 %v14803_v60 }
 0x279   :  { %10089 = vmatmul.mubr.bf16.vlgmr.msra.gmra.mrb[0].mxu0 %v1830_v61  ;;  %9237 = vmatpush1.bf16.msra.mxu1 %v13235_v62  ;;  %v13324_v61 = vld [vmem:[#allocation2 + $0x1ee4] ss:$8 sps:$4 sm:$0xff]   ;;  %v14424_v62 = vld [vmem:[%s15165_s0 + $0x10] sm:$0xff] }
 0x27a   :  { %10098 = vmatpush1.bf16.msra.mxu0 %v13238_v0  ;;  %9238 = vmatprep.subr.bf16.mxu1 %v13243_v1  ;;  %v1540_v0 = vcombine.high %v14424_v62, %v14424_v62  ;;  %v13319_v1 = vld [vmem:[#allocation2 + $0x9e0] ss:$8 sps:$4 sm:$0xff]   ;;  %v13398_v62 = vld [vmem:[#allocation2 + $0xab0] ss:$8 sps:$4 sm:$0xff]  }
 0x27b   :  { %10099 = vmatprep.subr.bf16.mxu0 %v13246_v4  ;;  %9268 = vmatprep.mubr.bf16.mxu1 %v1587_v48  ;;  %v13322_v4 = vld [vmem:[#allocation2 + $0x1ee0] ss:$8 sps:$4 sm:$0xff]   ;;  %v13327_v48 = vld [vmem:[#allocation2 + $0x9f4] ss:$8 sps:$4 sm:$0xff]  }
 0x27c   :  { %10129 = vmatprep.mubr.bf16.mxu0 %v14810_v14 }
 0x27d   :  { %9239 = vmatpush1.bf16.msra.mxu1 %v13241_v37  ;;  %v13330_v37 = vld [vmem:[#allocation2 + $0x1ef4] ss:$8 sps:$4 sm:$0xff]  }
 0x27e   :  { %10100 = vmatpush1.bf16.msra.mxu0 %v13244_v28  ;;  %9240 = vmatprep.subr.bf16.mxu1 %v13249_v6  ;;  %v14818_v28 = vrot.slane %v1540_v0, %v14606_v51  ;;  %v13325_v6 = vld [vmem:[#allocation2 + $0x9f0] ss:$8 sps:$4 sm:$0xff]  }
 0x27f   :  { %10101 = vmatprep.subr.bf16.mxu0 %v13252_v7  ;;  %v13328_v7 = vld [vmem:[#allocation2 + $0x1ef0] ss:$8 sps:$4 sm:$0xff]  }
 0x280   :  { %v13401_v0 = vld [vmem:[#allocation2 + $0x1fb0] ss:$8 sps:$4 sm:$0xff]  }
 0x281   :  { %9241 = vmatpush1.bf16.msra.mxu1 %v13247_v30  ;;  %v13333_v30 = vld [vmem:[#allocation2 + $0xa04] ss:$8 sps:$4 sm:$0xff]  }
 0x282   :  { %10102 = vmatpush1.bf16.msra.mxu0 %v13250_v8  ;;  %9242 = vmatprep.subr.bf16.mxu1 %v13255_v38  ;;  %v13337_v8 = vld [vmem:[#allocation2 + $0x1f04] ss:$8 sps:$4 sm:$0xff]   ;;  %v1556_v38 = vcombine.high %v14818_v28, %v14818_v28 }
 0x283   :  { %10103 = vmatprep.subr.bf16.mxu0 %v13258_v9  ;;  %v1585_v9 = vcombine.high %v14803_v60, %v14803_v60  ;;  %v13341_v60 = vld [vmem:[#allocation2 + $0x1f10] ss:$8 sps:$4 sm:$0xff]  }
 0x285   :  { %9243 = vmatpush1.bf16.msra.mxu1 %v13253_v10  ;;  %v14826_v10 = vrot.slane %v14797_v35, %v14606_v51  ;;  %v13338_v35 = vld [vmem:[#allocation2 + $0xa10] ss:$8 sps:$4 sm:$0xff]  }
 0x286   :  { %10104 = vmatpush1.bf16.msra.mxu0 %v13256_v11  ;;  %9244 = vmatprep.subr.bf16.mxu1 %v13261_v12  ;;  %v13331_v11 = vld [vmem:[#allocation2 + $0xa00] ss:$8 sps:$4 sm:$0xff]  }
 0x287   :  { %10105 = vmatprep.subr.bf16.mxu0 %v13264_v13  ;;  %v13335_v12 = vld [vmem:[#allocation2 + $0x1f00] ss:$8 sps:$4 sm:$0xff]   ;;  %v13340_v13 = vld [vmem:[#allocation2 + $0xa14] ss:$8 sps:$4 sm:$0xff]  }
 0x289   :  { %9245 = vmatpush1.bf16.msra.mxu1 %v13259_v16  ;;  %v13343_v16 = vld [vmem:[#allocation2 + $0x1f14] ss:$8 sps:$4 sm:$0xff]  }
 0x28a   :  { %10106 = vmatpush1.bf16.msra.mxu0 %v13262_v54  ;;  %9246 = vmatprep.subr.bf16.mxu1 %v13267_v18  ;;  %v14829_v54 = vrot.slane %v1556_v38, %v14606_v51  ;;  %v1833_v18 = vcombine.high %v14810_v14, %v14810_v14  ;;  %v13352_v14 = vld [vmem:[#allocation2 + $0xa34] ss:$8 sps:$4 sm:$0xff]   ;;  %v13418_v38 = vld [vmem:[#allocation2 + $0xae4] ss:$8 sps:$4 sm:$0xff]  }
 0x28b   :  { %10107 = vmatprep.subr.bf16.mxu0 %v13270_v19  ;;  %v13346_v19 = vld [vmem:[#allocation2 + $0xa24] ss:$8 sps:$4 sm:$0xff]  }
 0x28d   :  { %9247 = vmatpush1.bf16.msra.mxu1 %v13265_v2  ;;  %v13349_v2 = vld [vmem:[#allocation2 + $0x1f24] ss:$8 sps:$4 sm:$0xff]  }
 0x28e   :  { %10108 = vmatpush1.bf16.msra.mxu0 %v13268_v20  ;;  %9248 = vmatprep.subr.bf16.mxu1 %v13273_v22  ;;  %v13344_v20 = vld [vmem:[#allocation2 + $0xa20] ss:$8 sps:$4 sm:$0xff]  }
 0x28f   :  { %10109 = vmatprep.subr.bf16.mxu0 %v13276_v23  ;;  %v13347_v22 = vld [vmem:[#allocation2 + $0x1f20] ss:$8 sps:$4 sm:$0xff]   ;;  %v13355_v23 = vld [vmem:[#allocation2 + $0x1f34] ss:$8 sps:$4 sm:$0xff]  }
 0x291   :  { %9249 = vmatpush1.bf16.msra.mxu1 %v13271_v26  ;;  %v13350_v26 = vld [vmem:[#allocation2 + $0xa30] ss:$8 sps:$4 sm:$0xff]  }
 0x292   :  { %10110 = vmatpush1.bf16.msra.mxu0 %v13274_v27  ;;  %9250 = vmatprep.subr.bf16.mxu1 %v13279_v29  ;;  %v13353_v27 = vld [vmem:[#allocation2 + $0x1f30] ss:$8 sps:$4 sm:$0xff]   ;;  %v13358_v29 = vld [vmem:[#allocation2 + $0xa44] ss:$8 sps:$4 sm:$0xff]  }
 0x293   :  { %10111 = vmatprep.subr.bf16.mxu0 %v13282_v32  ;;  %v13361_v32 = vld [vmem:[#allocation2 + $0x1f44] ss:$8 sps:$4 sm:$0xff]  }
 0x295   :  { %9251 = vmatpush1.bf16.msra.mxu1 %v13277_v5  ;;  %v13356_v5 = vld [vmem:[#allocation2 + $0xa40] ss:$8 sps:$4 sm:$0xff]  }
 0x296   :  { %10112 = vmatpush1.bf16.msra.mxu0 %v13280_v56  ;;  %9252 = vmatprep.subr.bf16.mxu1 %v13285_v33  ;;  %v13359_v56 = vld [vmem:[#allocation2 + $0x1f40] ss:$8 sps:$4 sm:$0xff]   ;;  %v13364_v33 = vld [vmem:[#allocation2 + $0xa54] ss:$8 sps:$4 sm:$0xff]  }
 0x297   :  { %10113 = vmatprep.subr.bf16.mxu0 %v13288_v34  ;;  %v13367_v34 = vld [vmem:[#allocation2 + $0x1f54] ss:$8 sps:$4 sm:$0xff]  }
 0x299   :  { %9253 = vmatpush1.bf16.msra.mxu1 %v13283_v52  ;;  %v13362_v52 = vld [vmem:[#allocation2 + $0xa50] ss:$8 sps:$4 sm:$0xff]  }
 0x29a   :  { %10114 = vmatpush1.bf16.msra.mxu0 %v13286_v17  ;;  %9254 = vmatprep.subr.bf16.mxu1 %v13291_v39  ;;  %v13365_v17 = vld [vmem:[#allocation2 + $0x1f50] ss:$8 sps:$4 sm:$0xff]   ;;  %v13370_v39 = vld [vmem:[#allocation2 + $0xa64] ss:$8 sps:$4 sm:$0xff]  }
 0x29b   :  { %10115 = vmatprep.subr.bf16.mxu0 %v13294_v40  ;;  %v13373_v40 = vld [vmem:[#allocation2 + $0x1f64] ss:$8 sps:$4 sm:$0xff]  }
 0x29d   :  { %9255 = vmatpush1.bf16.msra.mxu1 %v13289_v42  ;;  %v13368_v42 = vld [vmem:[#allocation2 + $0xa60] ss:$8 sps:$4 sm:$0xff]  }
 0x29e   :  { %10116 = vmatpush1.bf16.msra.mxu0 %v13292_v21  ;;  %9256 = vmatprep.subr.bf16.mxu1 %v13297_v63  ;;  %v13371_v21 = vld [vmem:[#allocation2 + $0x1f60] ss:$8 sps:$4 sm:$0xff]   ;;  %v13376_v63 = vld [vmem:[#allocation2 + $0xa74] ss:$8 sps:$4 sm:$0xff]  }
 0x29f   :  { %10117 = vmatprep.subr.bf16.mxu0 %v13300_v24  ;;  %v13379_v24 = vld [vmem:[#allocation2 + $0x1f74] ss:$8 sps:$4 sm:$0xff]  }
 0x2a1   :  { %9257 = vmatpush1.bf16.msra.mxu1 %v13295_v44  ;;  %v13374_v44 = vld [vmem:[#allocation2 + $0xa70] ss:$8 sps:$4 sm:$0xff]  }
 0x2a2   :  { %10118 = vmatpush1.bf16.msra.mxu0 %v13298_v45  ;;  %9258 = vmatprep.subr.bf16.mxu1 %v13303_v31  ;;  %v13377_v45 = vld [vmem:[#allocation2 + $0x1f70] ss:$8 sps:$4 sm:$0xff]   ;;  %v13382_v31 = vld [vmem:[#allocation2 + $0xa84] ss:$8 sps:$4 sm:$0xff]  }
 0x2a3   :  { %10119 = vmatprep.subr.bf16.mxu0 %v13306_v47  ;;  %v13385_v47 = vld [vmem:[#allocation2 + $0x1f84] ss:$8 sps:$4 sm:$0xff]  }
 0x2a5   :  { %9259 = vmatpush1.bf16.msra.mxu1 %v13301_v49  ;;  %v13380_v49 = vld [vmem:[#allocation2 + $0xa80] ss:$8 sps:$4 sm:$0xff]  }
 0x2a6   :  { %10120 = vmatpush1.bf16.msra.mxu0 %v13304_v50  ;;  %9260 = vmatprep.subr.bf16.mxu1 %v13309_v53  ;;  %v13383_v50 = vld [vmem:[#allocation2 + $0x1f80] ss:$8 sps:$4 sm:$0xff]   ;;  %v13388_v53 = vld [vmem:[#allocation2 + $0xa94] ss:$8 sps:$4 sm:$0xff]  }
 0x2a7   :  { %10121 = vmatprep.subr.bf16.mxu0 %v13312_v55  ;;  %v13391_v55 = vld [vmem:[#allocation2 + $0x1f94] ss:$8 sps:$4 sm:$0xff]  }
 0x2a9   :  { %9261 = vmatpush1.bf16.msra.mxu1 %v13307_v36  ;;  %v13386_v36 = vld [vmem:[#allocation2 + $0xa90] ss:$8 sps:$4 sm:$0xff]  }
 0x2aa   :  { %10122 = vmatpush1.bf16.msra.mxu0 %v13310_v25  ;;  %9262 = vmatprep.subr.bf16.mxu1 %v13315_v57  ;;  %v13389_v25 = vld [vmem:[#allocation2 + $0x1f90] ss:$8 sps:$4 sm:$0xff]   ;;  %v13394_v57 = vld [vmem:[#allocation2 + $0xaa4] ss:$8 sps:$4 sm:$0xff]  }
 0x2ab   :  { %10123 = vmatprep.subr.bf16.mxu0 %v13318_v58  ;;  %v13397_v58 = vld [vmem:[#allocation2 + $0x1fa4] ss:$8 sps:$4 sm:$0xff]  }
 0x2ad   :  { %9263 = vmatpush1.bf16.msra.mxu1 %v13313_v59  ;;  %v13392_v59 = vld [vmem:[#allocation2 + $0xaa0] ss:$8 sps:$4 sm:$0xff]  }
 0x2ae   :  { %10124 = vmatpush1.bf16.msra.mxu0 %v13316_v41  ;;  %9264 = vmatprep.subr.bf16.mxu1 %v13321_v43  ;;  %v13395_v41 = vld [vmem:[#allocation2 + $0x1fa0] ss:$8 sps:$4 sm:$0xff]   ;;  %v13400_v43 = vld [vmem:[#allocation2 + $0xab4] ss:$8 sps:$4 sm:$0xff]  }
 0x2af   :  { %10125 = vmatprep.subr.bf16.mxu0 %v13324_v61  ;;  %v13403_v61 = vld [vmem:[#allocation2 + $0x1fb4] ss:$8 sps:$4 sm:$0xff]  }
 0x2b1   :  { %9265 = vmatpush1.bf16.msra.mxu1 %v13319_v1  ;;  %v13406_v1 = vld [vmem:[#allocation2 + $0xac4] ss:$8 sps:$4 sm:$0xff]  }
 0x2b2   :  { %10126 = vmatpush1.bf16.msra.mxu0 %v13322_v4  ;;  %9266 = vmatprep.subr.bf16.mxu1 %v13327_v48  ;;  %v13409_v4 = vld [vmem:[#allocation2 + $0x1fc4] ss:$8 sps:$4 sm:$0xff]   ;;  %v13404_v48 = vld [vmem:[#allocation2 + $0xac0] ss:$8 sps:$4 sm:$0xff]  }
 0x2b3   :  { %10127 = vmatprep.subr.bf16.mxu0 %v13330_v37  ;;  %v13407_v37 = vld [vmem:[#allocation2 + $0x1fc0] ss:$8 sps:$4 sm:$0xff]  }
 0x2b5   :  { %9267 = vmatpush1.bf16.msra.mxu1 %v13325_v6  ;;  %v13412_v6 = vld [vmem:[#allocation2 + $0xad4] ss:$8 sps:$4 sm:$0xff]  }
 0x2b6   :  { %10128 = vmatpush1.bf16.msra.mxu0 %v13328_v7  ;;  %9277 = vmatprep.subr.bf16.mxu1 %v13333_v30  ;;  %v13415_v7 = vld [vmem:[#allocation2 + $0x1fd4] ss:$8 sps:$4 sm:$0xff]   ;;  %v13410_v30 = vld [vmem:[#allocation2 + $0xad0] ss:$8 sps:$4 sm:$0xff]  }
 0x2b7   :  { %10138 = vmatprep.subr.bf16.mxu0 %v13337_v8  ;;  %v13413_v8 = vld [vmem:[#allocation2 + $0x1fd0] ss:$8 sps:$4 sm:$0xff]  }
 0x2b8   :  { %9269 = vmatmul.mubr.bf16.vlgmr.msra.gmra.mrb[0].mxu1 %v1585_v9  ;;  %v13421_v9 = vld [vmem:[#allocation2 + $0x1fe4] ss:$8 sps:$4 sm:$0xff]  }
 0x2b9   :  { %10130 = vmatmul.mubr.bf16.vlgmr.msra.gmra.mrb[0].mxu0 %v14826_v10  ;;  %9278 = vmatpush1.bf16.msra.mxu1 %v13331_v11  ;;  %v14838_v11 = vld [vmem:[%s15165_s0 + $0x40] sm:$0xff] }
 0x2ba   :  { %10139 = vmatpush1.bf16.msra.mxu0 %v13335_v12  ;;  %9279 = vmatprep.subr.bf16.mxu1 %v13340_v13  ;;  %v13416_v12 = vld [vmem:[#allocation2 + $0xae0] ss:$8 sps:$4 sm:$0xff]  }
 0x2bb   :  { %10140 = vmatprep.subr.bf16.mxu0 %v13343_v16  ;;  %9309 = vmatprep.mubr.bf16.mxu1 %v14829_v54  ;;  %v13419_v13 = vld [vmem:[#allocation2 + $0x1fe0] ss:$8 sps:$4 sm:$0xff]   ;;  %v13424_v16 = vld [vmem:[#allocation2 + $0xaf4] ss:$8 sps:$4 sm:$0xff]  }
 0x2bc   :  { %10170 = vmatprep.mubr.bf16.mxu0 %v1833_v18  ;;  %v13427_v18 = vld [vmem:[#allocation2 + $0x1ff4] ss:$8 sps:$4 sm:$0xff]  }
 0x2bd   :  { %9280 = vmatpush1.bf16.msra.mxu1 %v13338_v35  ;;  %v14842_v35 = vrot.slane %v14838_v11, %v14606_v51 }
 0x2be   :  { %10141 = vmatpush1.bf16.msra.mxu0 %v13341_v60  ;;  %9281 = vmatprep.subr.bf16.mxu1 %v13346_v19  ;;  %v13422_v60 = vld [vmem:[#allocation2 + $0xaf0] ss:$8 sps:$4 sm:$0xff]  }
 0x2bf   :  { %10142 = vmatprep.subr.bf16.mxu0 %v13349_v2  ;;  %v13425_v19 = vld [vmem:[#allocation2 + $0x1ff0] ss:$8 sps:$4 sm:$0xff]   ;;  %v13431_v2 = vld [vmem:[#allocation2 + $0xb04] ss:$8 sps:$4 sm:$0xff]  }
 0x2c1   :  { %9282 = vmatpush1.bf16.msra.mxu1 %v13344_v20  ;;  %v13434_v20 = vld [vmem:[#allocation2 + $0x2004] ss:$8 sps:$4 sm:$0xff]  }
 0x2c2   :  { %10143 = vmatpush1.bf16.msra.mxu0 %v13347_v22  ;;  %9283 = vmatprep.subr.bf16.mxu1 %v13352_v14  ;;  %v1849_v22 = vcombine.high %v14842_v35, %v14842_v35  ;;  %v14848_v14 = vrot.slane %v14818_v28, %v14606_v51  ;;  %v13435_v28 = vld [vmem:[#allocation2 + $0xb10] ss:$8 sps:$4 sm:$0xff]  }
 0x2c3   :  { %10144 = vmatprep.subr.bf16.mxu0 %v13355_v23  ;;  %v1831_v23 = vcombine.high %v14826_v10, %v14826_v10  ;;  %v13438_v10 = vld [vmem:[#allocation2 + $0x2010] ss:$8 sps:$4 sm:$0xff]  }
 0x2c5   :  { %9284 = vmatpush1.bf16.msra.mxu1 %v13350_v26  ;;  %v13429_v26 = vld [vmem:[#allocation2 + $0xb00] ss:$8 sps:$4 sm:$0xff]  }
 0x2c6   :  { %10145 = vmatpush1.bf16.msra.mxu0 %v13353_v27  ;;  %9285 = vmatprep.subr.bf16.mxu1 %v13358_v29  ;;  %v13432_v27 = vld [vmem:[#allocation2 + $0x2000] ss:$8 sps:$4 sm:$0xff]   ;;  %v13437_v29 = vld [vmem:[#allocation2 + $0xb14] ss:$8 sps:$4 sm:$0xff]  }
 0x2c7   :  { %10146 = vmatprep.subr.bf16.mxu0 %v13361_v32  ;;  %v13440_v32 = vld [vmem:[#allocation2 + $0x2014] ss:$8 sps:$4 sm:$0xff]  }
 0x2c9   :  { %9286 = vmatpush1.bf16.msra.mxu1 %v13356_v5  ;;  %v1588_v5 = vcombine.high %v14829_v54, %v14829_v54  ;;  %v13441_v54 = vld [vmem:[#allocation2 + $0xb20] ss:$8 sps:$4 sm:$0xff]  }
 0x2ca   :  { %10147 = vmatpush1.bf16.msra.mxu0 %v13359_v56  ;;  %9287 = vmatprep.subr.bf16.mxu1 %v13364_v33  ;;  %v14855_v56 = vrot.slane %v1849_v22, %v14606_v51  ;;  %v13443_v33 = vld [vmem:[#allocation2 + $0xb24] ss:$8 sps:$4 sm:$0xff]   ;;  %v13510_v22 = vld [vmem:[#allocation2 + $0x20d0] ss:$8 sps:$4 sm:$0xff]  }
 0x2cb   :  { %10148 = vmatprep.subr.bf16.mxu0 %v13367_v34  ;;  %v13446_v34 = vld [vmem:[#allocation2 + $0x2024] ss:$8 sps:$4 sm:$0xff]  }
 0x2cd   :  { %9288 = vmatpush1.bf16.msra.mxu1 %v13362_v52  ;;  %v13444_v52 = vld [vmem:[#allocation2 + $0x2020] ss:$8 sps:$4 sm:$0xff]  }
 0x2ce   :  { %10149 = vmatpush1.bf16.msra.mxu0 %v13365_v17  ;;  %9289 = vmatprep.subr.bf16.mxu1 %v13370_v39  ;;  %v13449_v17 = vld [vmem:[#allocation2 + $0xb34] ss:$8 sps:$4 sm:$0xff]  }
 0x2cf   :  { %10150 = vmatprep.subr.bf16.mxu0 %v13373_v40  ;;  %v13452_v39 = vld [vmem:[#allocation2 + $0x2034] ss:$8 sps:$4 sm:$0xff]   ;;  %v13447_v40 = vld [vmem:[#allocation2 + $0xb30] ss:$8 sps:$4 sm:$0xff]  }
 0x2d1   :  { %9290 = vmatpush1.bf16.msra.mxu1 %v13368_v42  ;;  %v13450_v42 = vld [vmem:[#allocation2 + $0x2030] ss:$8 sps:$4 sm:$0xff]  }
 0x2d2   :  { %10151 = vmatpush1.bf16.msra.mxu0 %v13371_v21  ;;  %9291 = vmatprep.subr.bf16.mxu1 %v13376_v63  ;;  %v13455_v21 = vld [vmem:[#allocation2 + $0xb44] ss:$8 sps:$4 sm:$0xff]  }
 0x2d3   :  { %10152 = vmatprep.subr.bf16.mxu0 %v13379_v24  ;;  %v13458_v63 = vld [vmem:[#allocation2 + $0x2044] ss:$8 sps:$4 sm:$0xff]   ;;  %v13453_v24 = vld [vmem:[#allocation2 + $0xb40] ss:$8 sps:$4 sm:$0xff]  }
 0x2d5   :  { %9292 = vmatpush1.bf16.msra.mxu1 %v13374_v44  ;;  %v13456_v44 = vld [vmem:[#allocation2 + $0x2040] ss:$8 sps:$4 sm:$0xff]  }
 0x2d6   :  { %10153 = vmatpush1.bf16.msra.mxu0 %v13377_v45  ;;  %9293 = vmatprep.subr.bf16.mxu1 %v13382_v31  ;;  %v13461_v45 = vld [vmem:[#allocation2 + $0xb54] ss:$8 sps:$4 sm:$0xff]  }
 0x2d7   :  { %10154 = vmatprep.subr.bf16.mxu0 %v13385_v47  ;;  %v13464_v31 = vld [vmem:[#allocation2 + $0x2054] ss:$8 sps:$4 sm:$0xff]   ;;  %v13459_v47 = vld [vmem:[#allocation2 + $0xb50] ss:$8 sps:$4 sm:$0xff]  }
 0x2d9   :  { %9294 = vmatpush1.bf16.msra.mxu1 %v13380_v49  ;;  %v13462_v49 = vld [vmem:[#allocation2 + $0x2050] ss:$8 sps:$4 sm:$0xff]  }
 0x2da   :  { %10155 = vmatpush1.bf16.msra.mxu0 %v13383_v50  ;;  %9295 = vmatprep.subr.bf16.mxu1 %v13388_v53  ;;  %v13467_v50 = vld [vmem:[#allocation2 + $0xb64] ss:$8 sps:$4 sm:$0xff]  }
 0x2db   :  { %10156 = vmatprep.subr.bf16.mxu0 %v13391_v55  ;;  %v13470_v53 = vld [vmem:[#allocation2 + $0x2064] ss:$8 sps:$4 sm:$0xff]   ;;  %v13465_v55 = vld [vmem:[#allocation2 + $0xb60] ss:$8 sps:$4 sm:$0xff]  }
 0x2dd   :  { %9296 = vmatpush1.bf16.msra.mxu1 %v13386_v36  ;;  %v13468_v36 = vld [vmem:[#allocation2 + $0x2060] ss:$8 sps:$4 sm:$0xff]  }
 0x2de   :  { %10157 = vmatpush1.bf16.msra.mxu0 %v13389_v25  ;;  %9297 = vmatprep.subr.bf16.mxu1 %v13394_v57  ;;  %v13473_v25 = vld [vmem:[#allocation2 + $0xb74] ss:$8 sps:$4 sm:$0xff]  }
 0x2df   :  { %10158 = vmatprep.subr.bf16.mxu0 %v13397_v58  ;;  %v13476_v57 = vld [vmem:[#allocation2 + $0x2074] ss:$8 sps:$4 sm:$0xff]   ;;  %v13471_v58 = vld [vmem:[#allocation2 + $0xb70] ss:$8 sps:$4 sm:$0xff]  }
 0x2e1   :  { %9298 = vmatpush1.bf16.msra.mxu1 %v13392_v59  ;;  %v13474_v59 = vld [vmem:[#allocation2 + $0x2070] ss:$8 sps:$4 sm:$0xff]  }
 0x2e2   :  { %10159 = vmatpush1.bf16.msra.mxu0 %v13395_v41  ;;  %9299 = vmatprep.subr.bf16.mxu1 %v13400_v43  ;;  %v13479_v41 = vld [vmem:[#allocation2 + $0xb84] ss:$8 sps:$4 sm:$0xff]  }
 0x2e3   :  { %10160 = vmatprep.subr.bf16.mxu0 %v13403_v61  ;;  %v13482_v43 = vld [vmem:[#allocation2 + $0x2084] ss:$8 sps:$4 sm:$0xff]   ;;  %v13477_v61 = vld [vmem:[#allocation2 + $0xb80] ss:$8 sps:$4 sm:$0xff]  }
 0x2e5   :  { %9300 = vmatpush1.bf16.msra.mxu1 %v13398_v62  ;;  %v13480_v62 = vld [vmem:[#allocation2 + $0x2080] ss:$8 sps:$4 sm:$0xff]  }
 0x2e6   :  { %10161 = vmatpush1.bf16.msra.mxu0 %v13401_v0  ;;  %9301 = vmatprep.subr.bf16.mxu1 %v13406_v1  ;;  %v13485_v0 = vld [vmem:[#allocation2 + $0xb94] ss:$8 sps:$4 sm:$0xff]  }
 0x2e7   :  { %10162 = vmatprep.subr.bf16.mxu0 %v13409_v4  ;;  %v13488_v1 = vld [vmem:[#allocation2 + $0x2094] ss:$8 sps:$4 sm:$0xff]   ;;  %v13483_v4 = vld [vmem:[#allocation2 + $0xb90] ss:$8 sps:$4 sm:$0xff]  }
 0x2e9   :  { %9302 = vmatpush1.bf16.msra.mxu1 %v13404_v48  ;;  %v13486_v48 = vld [vmem:[#allocation2 + $0x2090] ss:$8 sps:$4 sm:$0xff]  }
 0x2ea   :  { %10163 = vmatpush1.bf16.msra.mxu0 %v13407_v37  ;;  %9303 = vmatprep.subr.bf16.mxu1 %v13412_v6  ;;  %v13491_v37 = vld [vmem:[#allocation2 + $0xba4] ss:$8 sps:$4 sm:$0xff]  }
 0x2eb   :  { %10164 = vmatprep.subr.bf16.mxu0 %v13415_v7  ;;  %v13494_v6 = vld [vmem:[#allocation2 + $0x20a4] ss:$8 sps:$4 sm:$0xff]   ;;  %v13489_v7 = vld [vmem:[#allocation2 + $0xba0] ss:$8 sps:$4 sm:$0xff]  }
 0x2ed   :  { %9304 = vmatpush1.bf16.msra.mxu1 %v13410_v30  ;;  %v13492_v30 = vld [vmem:[#allocation2 + $0x20a0] ss:$8 sps:$4 sm:$0xff]  }
 0x2ee   :  { %10165 = vmatpush1.bf16.msra.mxu0 %v13413_v8  ;;  %9305 = vmatprep.subr.bf16.mxu1 %v13418_v38  ;;  %v13497_v8 = vld [vmem:[#allocation2 + $0xbb4] ss:$8 sps:$4 sm:$0xff]  }
 0x2ef   :  { %10166 = vmatprep.subr.bf16.mxu0 %v13421_v9  ;;  %v13500_v38 = vld [vmem:[#allocation2 + $0x20b4] ss:$8 sps:$4 sm:$0xff]   ;;  %v13495_v9 = vld [vmem:[#allocation2 + $0xbb0] ss:$8 sps:$4 sm:$0xff]  }
 0x2f1   :  { %9306 = vmatpush1.bf16.msra.mxu1 %v13416_v12  ;;  %v13498_v12 = vld [vmem:[#allocation2 + $0x20b0] ss:$8 sps:$4 sm:$0xff]  }
 0x2f2   :  { %10167 = vmatpush1.bf16.msra.mxu0 %v13419_v13  ;;  %9307 = vmatprep.subr.bf16.mxu1 %v13424_v16  ;;  %v13503_v13 = vld [vmem:[#allocation2 + $0xbc4] ss:$8 sps:$4 sm:$0xff]  }
 0x2f3   :  { %10168 = vmatprep.subr.bf16.mxu0 %v13427_v18  ;;  %v13506_v16 = vld [vmem:[#allocation2 + $0x20c4] ss:$8 sps:$4 sm:$0xff]   ;;  %v13501_v18 = vld [vmem:[#allocation2 + $0xbc0] ss:$8 sps:$4 sm:$0xff]  }
 0x2f5   :  { %9308 = vmatpush1.bf16.msra.mxu1 %v13422_v60  ;;  %v13504_v60 = vld [vmem:[#allocation2 + $0x20c0] ss:$8 sps:$4 sm:$0xff]  }
 0x2f6   :  { %10169 = vmatpush1.bf16.msra.mxu0 %v13425_v19  ;;  %9318 = vmatprep.subr.bf16.mxu1 %v13431_v2  ;;  %v13509_v19 = vld [vmem:[#allocation2 + $0xbd4] ss:$8 sps:$4 sm:$0xff]  }
 0x2f7   :  { %10179 = vmatprep.subr.bf16.mxu0 %v13434_v20  ;;  %v13512_v2 = vld [vmem:[#allocation2 + $0x20d4] ss:$8 sps:$4 sm:$0xff]   ;;  %v13507_v20 = vld [vmem:[#allocation2 + $0xbd0] ss:$8 sps:$4 sm:$0xff]  }
 0x2f8   :  { %9310 = vmatmul.mubr.bf16.vlgmr.msra.gmra.mrb[0].mxu1 %v14848_v14 }
 0x2f9   :  { %10171 = vmatmul.mubr.bf16.vlgmr.msra.gmra.mrb[0].mxu0 %v1831_v23  ;;  %9319 = vmatpush1.bf16.msra.mxu1 %v13429_v26  ;;  %v13515_v23 = vld [vmem:[#allocation2 + $0xbe4] ss:$8 sps:$4 sm:$0xff]  }
 0x2fa   :  { %10180 = vmatpush1.bf16.msra.mxu0 %v13432_v27  ;;  %9320 = vmatprep.subr.bf16.mxu1 %v13437_v29  ;;  %v13518_v26 = vld [vmem:[#allocation2 + $0x20e4] ss:$8 sps:$4 sm:$0xff]   ;;  %v14862_v27 = vld [vmem:[%s15165_s0 + $0x18] sm:$0xff]  ;;  %v13513_v29 = vld [vmem:[#allocation2 + $0xbe0] ss:$8 sps:$4 sm:$0xff]  }
 0x2fb   :  { %10181 = vmatprep.subr.bf16.mxu0 %v13440_v32  ;;  %9350 = vmatprep.mubr.bf16.mxu1 %v1588_v5  ;;  %v13516_v32 = vld [vmem:[#allocation2 + $0x20e0] ss:$8 sps:$4 sm:$0xff]   ;;  %v13521_v5 = vld [vmem:[#allocation2 + $0xbf4] ss:$8 sps:$4 sm:$0xff]  }
 0x2fc   :  { %10211 = vmatprep.mubr.bf16.mxu0 %v14855_v56 }
 0x2fd   :  { %9321 = vmatpush1.bf16.msra.mxu1 %v13435_v28  ;;  %v13524_v28 = vld [vmem:[#allocation2 + $0x20f4] ss:$8 sps:$4 sm:$0xff]  }
 0x2fe   :  { %10182 = vmatpush1.bf16.msra.mxu0 %v13438_v10  ;;  %9322 = vmatprep.subr.bf16.mxu1 %v13443_v33  ;;  %v14866_v10 = vrot.slane %v14862_v27, %v14606_v51  ;;  %v13519_v33 = vld [vmem:[#allocation2 + $0xbf0] ss:$8 sps:$4 sm:$0xff]  }
 0x2ff   :  { %10183 = vmatprep.subr.bf16.mxu0 %v13446_v34  ;;  %v13522_v34 = vld [vmem:[#allocation2 + $0x20f0] ss:$8 sps:$4 sm:$0xff]  }
 0x301   :  { %9323 = vmatpush1.bf16.msra.mxu1 %v13441_v54  ;;  %v13527_v54 = vld [vmem:[#allocation2 + $0xc04] ss:$8 sps:$4 sm:$0xff]  }
 0x302   :  { %10184 = vmatpush1.bf16.msra.mxu0 %v13444_v52  ;;  %9324 = vmatprep.subr.bf16.mxu1 %v13449_v17  ;;  %v13530_v52 = vld [vmem:[#allocation2 + $0x2104] ss:$8 sps:$4 sm:$0xff]   ;;  %v1604_v17 = vcombine.high %v14866_v10, %v14866_v10 }
 0x303   :  { %10185 = vmatprep.subr.bf16.mxu0 %v13452_v39  ;;  %v1586_v39 = vcombine.high %v14848_v14, %v14848_v14  ;;  %v13534_v14 = vld [vmem:[#allocation2 + $0x2110] ss:$8 sps:$4 sm:$0xff]  }
 0x305   :  { %9325 = vmatpush1.bf16.msra.mxu1 %v13447_v40  ;;  %v14874_v40 = vrot.slane %v14842_v35, %v14606_v51  ;;  %v13531_v35 = vld [vmem:[#allocation2 + $0xc10] ss:$8 sps:$4 sm:$0xff]  }
 0x306   :  { %10186 = vmatpush1.bf16.msra.mxu0 %v13450_v42  ;;  %9326 = vmatprep.subr.bf16.mxu1 %v13455_v21  ;;  %v13525_v42 = vld [vmem:[#allocation2 + $0xc00] ss:$8 sps:$4 sm:$0xff]  }
 0x307   :  { %10187 = vmatprep.subr.bf16.mxu0 %v13458_v63  ;;  %v13528_v21 = vld [vmem:[#allocation2 + $0x2100] ss:$8 sps:$4 sm:$0xff]   ;;  %v13533_v63 = vld [vmem:[#allocation2 + $0xc14] ss:$8 sps:$4 sm:$0xff]  }
 0x309   :  { %9327 = vmatpush1.bf16.msra.mxu1 %v13453_v24  ;;  %v13536_v24 = vld [vmem:[#allocation2 + $0x2114] ss:$8 sps:$4 sm:$0xff]  }
 0x30a   :  { %10188 = vmatpush1.bf16.msra.mxu0 %v13456_v44  ;;  %9328 = vmatprep.subr.bf16.mxu1 %v13461_v45  ;;  %v14877_v44 = vrot.slane %v1604_v17, %v14606_v51  ;;  %v1881_v45 = vcombine.high %v14855_v56, %v14855_v56  ;;  %v13545_v56 = vld [vmem:[#allocation2 + $0xc34] ss:$8 sps:$4 sm:$0xff]   ;;  %v13603_v17 = vld [vmem:[#allocation2 + $0xcd0] ss:$8 sps:$4 sm:$0xff]  }
 0x30b   :  { %10189 = vmatprep.subr.bf16.mxu0 %v13464_v31  ;;  %v13539_v31 = vld [vmem:[#allocation2 + $0xc24] ss:$8 sps:$4 sm:$0xff]  }
 0x30d   :  { %9329 = vmatpush1.bf16.msra.mxu1 %v13459_v47  ;;  %v13542_v47 = vld [vmem:[#allocation2 + $0x2124] ss:$8 sps:$4 sm:$0xff]  }
 0x30e   :  { %10190 = vmatpush1.bf16.msra.mxu0 %v13462_v49  ;;  %9330 = vmatprep.subr.bf16.mxu1 %v13467_v50  ;;  %v13537_v49 = vld [vmem:[#allocation2 + $0xc20] ss:$8 sps:$4 sm:$0xff]  }
 0x30f   :  { %10191 = vmatprep.subr.bf16.mxu0 %v13470_v53  ;;  %v13540_v50 = vld [vmem:[#allocation2 + $0x2120] ss:$8 sps:$4 sm:$0xff]   ;;  %v13548_v53 = vld [vmem:[#allocation2 + $0x2134] ss:$8 sps:$4 sm:$0xff]  }
 0x311   :  { %9331 = vmatpush1.bf16.msra.mxu1 %v13465_v55  ;;  %v13543_v55 = vld [vmem:[#allocation2 + $0xc30] ss:$8 sps:$4 sm:$0xff]  }
 0x312   :  { %10192 = vmatpush1.bf16.msra.mxu0 %v13468_v36  ;;  %9332 = vmatprep.subr.bf16.mxu1 %v13473_v25  ;;  %v13546_v36 = vld [vmem:[#allocation2 + $0x2130] ss:$8 sps:$4 sm:$0xff]   ;;  %v13551_v25 = vld [vmem:[#allocation2 + $0xc44] ss:$8 sps:$4 sm:$0xff]  }
 0x313   :  { %10193 = vmatprep.subr.bf16.mxu0 %v13476_v57  ;;  %v13554_v57 = vld [vmem:[#allocation2 + $0x2144] ss:$8 sps:$4 sm:$0xff]  }
 0x315   :  { %9333 = vmatpush1.bf16.msra.mxu1 %v13471_v58  ;;  %v13549_v58 = vld [vmem:[#allocation2 + $0xc40] ss:$8 sps:$4 sm:$0xff]  }
 0x316   :  { %10194 = vmatpush1.bf16.msra.mxu0 %v13474_v59  ;;  %9334 = vmatprep.subr.bf16.mxu1 %v13479_v41  ;;  %v13552_v59 = vld [vmem:[#allocation2 + $0x2140] ss:$8 sps:$4 sm:$0xff]   ;;  %v13557_v41 = vld [vmem:[#allocation2 + $0xc54] ss:$8 sps:$4 sm:$0xff]  }
 0x317   :  { %10195 = vmatprep.subr.bf16.mxu0 %v13482_v43  ;;  %v13560_v43 = vld [vmem:[#allocation2 + $0x2154] ss:$8 sps:$4 sm:$0xff]  }
 0x319   :  { %9335 = vmatpush1.bf16.msra.mxu1 %v13477_v61  ;;  %v13555_v61 = vld [vmem:[#allocation2 + $0xc50] ss:$8 sps:$4 sm:$0xff]  }
 0x31a   :  { %10196 = vmatpush1.bf16.msra.mxu0 %v13480_v62  ;;  %9336 = vmatprep.subr.bf16.mxu1 %v13485_v0  ;;  %v13558_v62 = vld [vmem:[#allocation2 + $0x2150] ss:$8 sps:$4 sm:$0xff]   ;;  %v13563_v0 = vld [vmem:[#allocation2 + $0xc64] ss:$8 sps:$4 sm:$0xff]  }
 0x31b   :  { %10197 = vmatprep.subr.bf16.mxu0 %v13488_v1  ;;  %v13566_v1 = vld [vmem:[#allocation2 + $0x2164] ss:$8 sps:$4 sm:$0xff]  }
 0x31d   :  { %9337 = vmatpush1.bf16.msra.mxu1 %v13483_v4  ;;  %v13561_v4 = vld [vmem:[#allocation2 + $0xc60] ss:$8 sps:$4 sm:$0xff]  }
 0x31e   :  { %10198 = vmatpush1.bf16.msra.mxu0 %v13486_v48  ;;  %9338 = vmatprep.subr.bf16.mxu1 %v13491_v37  ;;  %v13564_v48 = vld [vmem:[#allocation2 + $0x2160] ss:$8 sps:$4 sm:$0xff]   ;;  %v13569_v37 = vld [vmem:[#allocation2 + $0xc74] ss:$8 sps:$4 sm:$0xff]  }
 0x31f   :  { %10199 = vmatprep.subr.bf16.mxu0 %v13494_v6  ;;  %v13572_v6 = vld [vmem:[#allocation2 + $0x2174] ss:$8 sps:$4 sm:$0xff]  }
 0x321   :  { %9339 = vmatpush1.bf16.msra.mxu1 %v13489_v7  ;;  %v13567_v7 = vld [vmem:[#allocation2 + $0xc70] ss:$8 sps:$4 sm:$0xff]  }
 0x322   :  { %10200 = vmatpush1.bf16.msra.mxu0 %v13492_v30  ;;  %9340 = vmatprep.subr.bf16.mxu1 %v13497_v8  ;;  %v13570_v30 = vld [vmem:[#allocation2 + $0x2170] ss:$8 sps:$4 sm:$0xff]   ;;  %v13575_v8 = vld [vmem:[#allocation2 + $0xc84] ss:$8 sps:$4 sm:$0xff]  }
 0x323   :  { %10201 = vmatprep.subr.bf16.mxu0 %v13500_v38  ;;  %v13578_v38 = vld [vmem:[#allocation2 + $0x2184] ss:$8 sps:$4 sm:$0xff]  }
 0x325   :  { %9341 = vmatpush1.bf16.msra.mxu1 %v13495_v9  ;;  %v13573_v9 = vld [vmem:[#allocation2 + $0xc80] ss:$8 sps:$4 sm:$0xff]  }
 0x326   :  { %10202 = vmatpush1.bf16.msra.mxu0 %v13498_v12  ;;  %9342 = vmatprep.subr.bf16.mxu1 %v13503_v13  ;;  %v13576_v12 = vld [vmem:[#allocation2 + $0x2180] ss:$8 sps:$4 sm:$0xff]   ;;  %v13581_v13 = vld [vmem:[#allocation2 + $0xc94] ss:$8 sps:$4 sm:$0xff]  }
 0x327   :  { %10203 = vmatprep.subr.bf16.mxu0 %v13506_v16  ;;  %v13584_v16 = vld [vmem:[#allocation2 + $0x2194] ss:$8 sps:$4 sm:$0xff]  }
 0x329   :  { %9343 = vmatpush1.bf16.msra.mxu1 %v13501_v18  ;;  %v13579_v18 = vld [vmem:[#allocation2 + $0xc90] ss:$8 sps:$4 sm:$0xff]  }
 0x32a   :  { %10204 = vmatpush1.bf16.msra.mxu0 %v13504_v60  ;;  %9344 = vmatprep.subr.bf16.mxu1 %v13509_v19  ;;  %v13582_v60 = vld [vmem:[#allocation2 + $0x2190] ss:$8 sps:$4 sm:$0xff]   ;;  %v13587_v19 = vld [vmem:[#allocation2 + $0xca4] ss:$8 sps:$4 sm:$0xff]  }
 0x32b   :  { %10205 = vmatprep.subr.bf16.mxu0 %v13512_v2  ;;  %v13590_v2 = vld [vmem:[#allocation2 + $0x21a4] ss:$8 sps:$4 sm:$0xff]  }
 0x32d   :  { %9345 = vmatpush1.bf16.msra.mxu1 %v13507_v20  ;;  %v13585_v20 = vld [vmem:[#allocation2 + $0xca0] ss:$8 sps:$4 sm:$0xff]  }
 0x32e   :  { %10206 = vmatpush1.bf16.msra.mxu0 %v13510_v22  ;;  %9346 = vmatprep.subr.bf16.mxu1 %v13515_v23  ;;  %v13588_v22 = vld [vmem:[#allocation2 + $0x21a0] ss:$8 sps:$4 sm:$0xff]   ;;  %v13593_v23 = vld [vmem:[#allocation2 + $0xcb4] ss:$8 sps:$4 sm:$0xff]  }
 0x32f   :  { %10207 = vmatprep.subr.bf16.mxu0 %v13518_v26  ;;  %v13596_v26 = vld [vmem:[#allocation2 + $0x21b4] ss:$8 sps:$4 sm:$0xff]  }
 0x331   :  { %9347 = vmatpush1.bf16.msra.mxu1 %v13513_v29  ;;  %v13591_v29 = vld [vmem:[#allocation2 + $0xcb0] ss:$8 sps:$4 sm:$0xff]  }
 0x332   :  { %10208 = vmatpush1.bf16.msra.mxu0 %v13516_v32  ;;  %9348 = vmatprep.subr.bf16.mxu1 %v13521_v5  ;;  %v13594_v32 = vld [vmem:[#allocation2 + $0x21b0] ss:$8 sps:$4 sm:$0xff]   ;;  %v13599_v5 = vld [vmem:[#allocation2 + $0xcc4] ss:$8 sps:$4 sm:$0xff]  }
 0x333   :  { %10209 = vmatprep.subr.bf16.mxu0 %v13524_v28  ;;  %v13602_v28 = vld [vmem:[#allocation2 + $0x21c4] ss:$8 sps:$4 sm:$0xff]  }
 0x335   :  { %9349 = vmatpush1.bf16.msra.mxu1 %v13519_v33  ;;  %v13597_v33 = vld [vmem:[#allocation2 + $0xcc0] ss:$8 sps:$4 sm:$0xff]  }
 0x336   :  { %10210 = vmatpush1.bf16.msra.mxu0 %v13522_v34  ;;  %9359 = vmatprep.subr.bf16.mxu1 %v13527_v54  ;;  %v13600_v34 = vld [vmem:[#allocation2 + $0x21c0] ss:$8 sps:$4 sm:$0xff]   ;;  %v13605_v54 = vld [vmem:[#allocation2 + $0xcd4] ss:$8 sps:$4 sm:$0xff]  }
 0x337   :  { %10220 = vmatprep.subr.bf16.mxu0 %v13530_v52  ;;  %v13608_v52 = vld [vmem:[#allocation2 + $0x21d4] ss:$8 sps:$4 sm:$0xff]  }
 0x338   :  { %9351 = vmatmul.mubr.bf16.vlgmr.msra.gmra.mrb[0].mxu1 %v1586_v39  ;;  %v13606_v39 = vld [vmem:[#allocation2 + $0x21d0] ss:$8 sps:$4 sm:$0xff]  }
 0x339   :  { %10212 = vmatmul.mubr.bf16.vlgmr.msra.gmra.mrb[0].mxu0 %v14874_v40  ;;  %9360 = vmatpush1.bf16.msra.mxu1 %v13525_v42  ;;  %v13611_v42 = vld [vmem:[#allocation2 + $0xce4] ss:$8 sps:$4 sm:$0xff]  }
 0x33a   :  { %10221 = vmatpush1.bf16.msra.mxu0 %v13528_v21  ;;  %9361 = vmatprep.subr.bf16.mxu1 %v13533_v63  ;;  %v13614_v21 = vld [vmem:[#allocation2 + $0x21e4] ss:$8 sps:$4 sm:$0xff]   ;;  %v1834_v63 = vcombine.high %v14838_v11, %v14838_v11 }
 0x33b   :  { %10222 = vmatprep.subr.bf16.mxu0 %v13536_v24  ;;  %9391 = vmatprep.mubr.bf16.mxu1 %v14877_v44  ;;  %v13609_v24 = vld [vmem:[#allocation2 + $0xce0] ss:$8 sps:$4 sm:$0xff]  }
 0x33c   :  { %10252 = vmatprep.mubr.bf16.mxu0 %v1881_v45  ;;  %v13612_v45 = vld [vmem:[#allocation2 + $0x21e0] ss:$8 sps:$4 sm:$0xff]  }
 0x33d   :  { %9362 = vmatpush1.bf16.msra.mxu1 %v13531_v35  ;;  %v13617_v35 = vld [vmem:[#allocation2 + $0xcf4] ss:$8 sps:$4 sm:$0xff]  }
 0x33e   :  { %10223 = vmatpush1.bf16.msra.mxu0 %v13534_v14  ;;  %9363 = vmatprep.subr.bf16.mxu1 %v13539_v31  ;;  %v13620_v14 = vld [vmem:[#allocation2 + $0x21f4] ss:$8 sps:$4 sm:$0xff]   ;;  %v14886_v31 = vrot.slane %v1834_v63, %v14606_v51  ;;  %v13687_v63 = vld [vmem:[#allocation2 + $0xdb0] ss:$8 sps:$4 sm:$0xff]  }
 0x33f   :  { %10224 = vmatprep.subr.bf16.mxu0 %v13542_v47  ;;  %v13615_v47 = vld [vmem:[#allocation2 + $0xcf0] ss:$8 sps:$4 sm:$0xff]  }
 0x340   :  { %v1850_v11 = vcombine.high %v14886_v31, %v14886_v31 }
 0x341   :  { %9364 = vmatpush1.bf16.msra.mxu1 %v13537_v49  ;;  %v13618_v49 = vld [vmem:[#allocation2 + $0x21f0] ss:$8 sps:$4 sm:$0xff]  }
 0x342   :  { %10225 = vmatpush1.bf16.msra.mxu0 %v13540_v50  ;;  %9365 = vmatprep.subr.bf16.mxu1 %v13545_v56  ;;  %v13623_v50 = vld [vmem:[#allocation2 + $0xd04] ss:$8 sps:$4 sm:$0xff]  }
 0x343   :  { %10226 = vmatprep.subr.bf16.mxu0 %v13548_v53  ;;  %v13626_v56 = vld [vmem:[#allocation2 + $0x2204] ss:$8 sps:$4 sm:$0xff]   ;;  %v14892_v53 = vrot.slane %v14866_v10, %v14606_v51  ;;  %v13627_v10 = vld [vmem:[#allocation2 + $0xd10] ss:$8 sps:$4 sm:$0xff]  }
 0x345   :  { %9366 = vmatpush1.bf16.msra.mxu1 %v13543_v55  ;;  %v1879_v55 = vcombine.high %v14874_v40, %v14874_v40  ;;  %v13630_v40 = vld [vmem:[#allocation2 + $0x2210] ss:$8 sps:$4 sm:$0xff]  }
 0x346   :  { %10227 = vmatpush1.bf16.msra.mxu0 %v13546_v36  ;;  %9367 = vmatprep.subr.bf16.mxu1 %v13551_v25  ;;  %v13621_v36 = vld [vmem:[#allocation2 + $0xd00] ss:$8 sps:$4 sm:$0xff]  }
 0x347   :  { %10228 = vmatprep.subr.bf16.mxu0 %v13554_v57  ;;  %v13624_v25 = vld [vmem:[#allocation2 + $0x2200] ss:$8 sps:$4 sm:$0xff]   ;;  %v13629_v57 = vld [vmem:[#allocation2 + $0xd14] ss:$8 sps:$4 sm:$0xff]  }
 0x349   :  { %9368 = vmatpush1.bf16.msra.mxu1 %v13549_v58  ;;  %v13632_v58 = vld [vmem:[#allocation2 + $0x2214] ss:$8 sps:$4 sm:$0xff]  }
 0x34a   :  { %10229 = vmatpush1.bf16.msra.mxu0 %v13552_v59  ;;  %9369 = vmatprep.subr.bf16.mxu1 %v13557_v41  ;;  %v1636_v59 = vcombine.high %v14877_v44, %v14877_v44  ;;  %v14899_v41 = vrot.slane %v1850_v11, %v14606_v51  ;;  %v13633_v44 = vld [vmem:[#allocation2 + $0xd20] ss:$8 sps:$4 sm:$0xff]   ;;  %v13702_v11 = vld [vmem:[#allocation2 + $0x22d0] ss:$8 sps:$4 sm:$0xff]  }
 0x34b   :  { %10230 = vmatprep.subr.bf16.mxu0 %v13560_v43  ;;  %v13635_v43 = vld [vmem:[#allocation2 + $0xd24] ss:$8 sps:$4 sm:$0xff]  }
 0x34d   :  { %9370 = vmatpush1.bf16.msra.mxu1 %v13555_v61  ;;  %v13638_v61 = vld [vmem:[#allocation2 + $0x2224] ss:$8 sps:$4 sm:$0xff]  }
 0x34e   :  { %10231 = vmatpush1.bf16.msra.mxu0 %v13558_v62  ;;  %9371 = vmatprep.subr.bf16.mxu1 %v13563_v0  ;;  %v13636_v62 = vld [vmem:[#allocation2 + $0x2220] ss:$8 sps:$4 sm:$0xff]   ;;  %v13641_v0 = vld [vmem:[#allocation2 + $0xd34] ss:$8 sps:$4 sm:$0xff]  }
 0x34f   :  { %10232 = vmatprep.subr.bf16.mxu0 %v13566_v1  ;;  %v13644_v1 = vld [vmem:[#allocation2 + $0x2234] ss:$8 sps:$4 sm:$0xff]  }
 0x351   :  { %9372 = vmatpush1.bf16.msra.mxu1 %v13561_v4  ;;  %v13639_v4 = vld [vmem:[#allocation2 + $0xd30] ss:$8 sps:$4 sm:$0xff]  }
 0x352   :  { %10233 = vmatpush1.bf16.msra.mxu0 %v13564_v48  ;;  %9373 = vmatprep.subr.bf16.mxu1 %v13569_v37  ;;  %v13642_v48 = vld [vmem:[#allocation2 + $0x2230] ss:$8 sps:$4 sm:$0xff]   ;;  %v13647_v37 = vld [vmem:[#allocation2 + $0xd44] ss:$8 sps:$4 sm:$0xff]  }
 0x353   :  { %10234 = vmatprep.subr.bf16.mxu0 %v13572_v6  ;;  %v13650_v6 = vld [vmem:[#allocation2 + $0x2244] ss:$8 sps:$4 sm:$0xff]  }
 0x355   :  { %9374 = vmatpush1.bf16.msra.mxu1 %v13567_v7  ;;  %v13645_v7 = vld [vmem:[#allocation2 + $0xd40] ss:$8 sps:$4 sm:$0xff]  }
 0x356   :  { %10235 = vmatpush1.bf16.msra.mxu0 %v13570_v30  ;;  %9375 = vmatprep.subr.bf16.mxu1 %v13575_v8  ;;  %v13648_v30 = vld [vmem:[#allocation2 + $0x2240] ss:$8 sps:$4 sm:$0xff]   ;;  %v13653_v8 = vld [vmem:[#allocation2 + $0xd54] ss:$8 sps:$4 sm:$0xff]  }
 0x357   :  { %10236 = vmatprep.subr.bf16.mxu0 %v13578_v38  ;;  %v13656_v38 = vld [vmem:[#allocation2 + $0x2254] ss:$8 sps:$4 sm:$0xff]  }
 0x359   :  { %9376 = vmatpush1.bf16.msra.mxu1 %v13573_v9  ;;  %v13651_v9 = vld [vmem:[#allocation2 + $0xd50] ss:$8 sps:$4 sm:$0xff]  }
 0x35a   :  { %10237 = vmatpush1.bf16.msra.mxu0 %v13576_v12  ;;  %9377 = vmatprep.subr.bf16.mxu1 %v13581_v13  ;;  %v13654_v12 = vld [vmem:[#allocation2 + $0x2250] ss:$8 sps:$4 sm:$0xff]   ;;  %v13659_v13 = vld [vmem:[#allocation2 + $0xd64] ss:$8 sps:$4 sm:$0xff]  }
 0x35b   :  { %10238 = vmatprep.subr.bf16.mxu0 %v13584_v16  ;;  %v13662_v16 = vld [vmem:[#allocation2 + $0x2264] ss:$8 sps:$4 sm:$0xff]  }
 0x35d   :  { %9378 = vmatpush1.bf16.msra.mxu1 %v13579_v18  ;;  %v13657_v18 = vld [vmem:[#allocation2 + $0xd60] ss:$8 sps:$4 sm:$0xff]  }
 0x35e   :  { %10239 = vmatpush1.bf16.msra.mxu0 %v13582_v60  ;;  %9379 = vmatprep.subr.bf16.mxu1 %v13587_v19  ;;  %v13660_v60 = vld [vmem:[#allocation2 + $0x2260] ss:$8 sps:$4 sm:$0xff]   ;;  %v13665_v19 = vld [vmem:[#allocation2 + $0xd74] ss:$8 sps:$4 sm:$0xff]  }
 0x35f   :  { %10240 = vmatprep.subr.bf16.mxu0 %v13590_v2  ;;  %v13668_v2 = vld [vmem:[#allocation2 + $0x2274] ss:$8 sps:$4 sm:$0xff]  }
 0x361   :  { %9380 = vmatpush1.bf16.msra.mxu1 %v13585_v20  ;;  %v13663_v20 = vld [vmem:[#allocation2 + $0xd70] ss:$8 sps:$4 sm:$0xff]  }
 0x362   :  { %10241 = vmatpush1.bf16.msra.mxu0 %v13588_v22  ;;  %9381 = vmatprep.subr.bf16.mxu1 %v13593_v23  ;;  %v13666_v22 = vld [vmem:[#allocation2 + $0x2270] ss:$8 sps:$4 sm:$0xff]   ;;  %v13671_v23 = vld [vmem:[#allocation2 + $0xd84] ss:$8 sps:$4 sm:$0xff]  }
 0x363   :  { %10242 = vmatprep.subr.bf16.mxu0 %v13596_v26  ;;  %v13674_v26 = vld [vmem:[#allocation2 + $0x2284] ss:$8 sps:$4 sm:$0xff]  }
 0x365   :  { %9382 = vmatpush1.bf16.msra.mxu1 %v13591_v29  ;;  %v13669_v29 = vld [vmem:[#allocation2 + $0xd80] ss:$8 sps:$4 sm:$0xff]  }
 0x366   :  { %10243 = vmatpush1.bf16.msra.mxu0 %v13594_v32  ;;  %9383 = vmatprep.subr.bf16.mxu1 %v13599_v5  ;;  %v13672_v32 = vld [vmem:[#allocation2 + $0x2280] ss:$8 sps:$4 sm:$0xff]   ;;  %v13677_v5 = vld [vmem:[#allocation2 + $0xd94] ss:$8 sps:$4 sm:$0xff]  }
 0x367   :  { %10244 = vmatprep.subr.bf16.mxu0 %v13602_v28  ;;  %v13680_v28 = vld [vmem:[#allocation2 + $0x2294] ss:$8 sps:$4 sm:$0xff]  }
 0x369   :  { %9384 = vmatpush1.bf16.msra.mxu1 %v13597_v33  ;;  %v13675_v33 = vld [vmem:[#allocation2 + $0xd90] ss:$8 sps:$4 sm:$0xff]  }
 0x36a   :  { %10245 = vmatpush1.bf16.msra.mxu0 %v13600_v34  ;;  %9385 = vmatprep.subr.bf16.mxu1 %v13605_v54  ;;  %v13678_v34 = vld [vmem:[#allocation2 + $0x2290] ss:$8 sps:$4 sm:$0xff]   ;;  %v13683_v54 = vld [vmem:[#allocation2 + $0xda4] ss:$8 sps:$4 sm:$0xff]  }
 0x36b   :  { %10246 = vmatprep.subr.bf16.mxu0 %v13608_v52  ;;  %v13686_v52 = vld [vmem:[#allocation2 + $0x22a4] ss:$8 sps:$4 sm:$0xff]  }
 0x36d   :  { %9386 = vmatpush1.bf16.msra.mxu1 %v13603_v17  ;;  %v13681_v17 = vld [vmem:[#allocation2 + $0xda0] ss:$8 sps:$4 sm:$0xff]  }
 0x36e   :  { %10247 = vmatpush1.bf16.msra.mxu0 %v13606_v39  ;;  %9387 = vmatprep.subr.bf16.mxu1 %v13611_v42  ;;  %v13684_v39 = vld [vmem:[#allocation2 + $0x22a0] ss:$8 sps:$4 sm:$0xff]   ;;  %v13689_v42 = vld [vmem:[#allocation2 + $0xdb4] ss:$8 sps:$4 sm:$0xff]  }
 0x36f   :  { %10248 = vmatprep.subr.bf16.mxu0 %v13614_v21  ;;  %v13692_v21 = vld [vmem:[#allocation2 + $0x22b4] ss:$8 sps:$4 sm:$0xff]  }
 0x371   :  { %9388 = vmatpush1.bf16.msra.mxu1 %v13609_v24  ;;  %v13690_v24 = vld [vmem:[#allocation2 + $0x22b0] ss:$8 sps:$4 sm:$0xff]  }
 0x372   :  { %10249 = vmatpush1.bf16.msra.mxu0 %v13612_v45  ;;  %9389 = vmatprep.subr.bf16.mxu1 %v13617_v35  ;;  %v13695_v45 = vld [vmem:[#allocation2 + $0xdc4] ss:$8 sps:$4 sm:$0xff]  }
 0x373   :  { %10250 = vmatprep.subr.bf16.mxu0 %v13620_v14  ;;  %v13698_v35 = vld [vmem:[#allocation2 + $0x22c4] ss:$8 sps:$4 sm:$0xff]   ;;  %v13693_v14 = vld [vmem:[#allocation2 + $0xdc0] ss:$8 sps:$4 sm:$0xff]  }
 0x375   :  { %9390 = vmatpush1.bf16.msra.mxu1 %v13615_v47  ;;  %v13696_v47 = vld [vmem:[#allocation2 + $0x22c0] ss:$8 sps:$4 sm:$0xff]  }
 0x376   :  { %10251 = vmatpush1.bf16.msra.mxu0 %v13618_v49  ;;  %9400 = vmatprep.subr.bf16.mxu1 %v13623_v50  ;;  %v13701_v49 = vld [vmem:[#allocation2 + $0xdd4] ss:$8 sps:$4 sm:$0xff]  }
 0x377   :  { %10261 = vmatprep.subr.bf16.mxu0 %v13626_v56  ;;  %v13704_v50 = vld [vmem:[#allocation2 + $0x22d4] ss:$8 sps:$4 sm:$0xff]   ;;  %v13699_v56 = vld [vmem:[#allocation2 + $0xdd0] ss:$8 sps:$4 sm:$0xff]  }
 0x378   :  { %9392 = vmatmul.mubr.bf16.vlgmr.msra.gmra.mrb[0].mxu1 %v14892_v53 }
 0x379   :  { %10253 = vmatmul.mubr.bf16.vlgmr.msra.gmra.mrb[0].mxu0 %v1879_v55  ;;  %9401 = vmatpush1.bf16.msra.mxu1 %v13621_v36  ;;  %v13707_v55 = vld [vmem:[#allocation2 + $0xde4] ss:$8 sps:$4 sm:$0xff]  }
 0x37a   :  { %10262 = vmatpush1.bf16.msra.mxu0 %v13624_v25  ;;  %9402 = vmatprep.subr.bf16.mxu1 %v13629_v57  ;;  %v13710_v36 = vld [vmem:[#allocation2 + $0x22e4] ss:$8 sps:$4 sm:$0xff]   ;;  %v1589_v25 = vcombine.high %v14862_v27, %v14862_v27  ;;  %v13705_v57 = vld [vmem:[#allocation2 + $0xde0] ss:$8 sps:$4 sm:$0xff]  }
 0x37b   :  { %10263 = vmatprep.subr.bf16.mxu0 %v13632_v58  ;;  %9432 = vmatprep.mubr.bf16.mxu1 %v1636_v59  ;;  %v13708_v58 = vld [vmem:[#allocation2 + $0x22e0] ss:$8 sps:$4 sm:$0xff]   ;;  %v13713_v59 = vld [vmem:[#allocation2 + $0xdf4] ss:$8 sps:$4 sm:$0xff]  }
 0x37c   :  { %10293 = vmatprep.mubr.bf16.mxu0 %v14899_v41 }
 0x37d   :  { %9403 = vmatpush1.bf16.msra.mxu1 %v13627_v10  ;;  %v13716_v10 = vld [vmem:[#allocation2 + $0x22f4] ss:$8 sps:$4 sm:$0xff]  }
 0x37e   :  { %10264 = vmatpush1.bf16.msra.mxu0 %v13630_v40  ;;  %9404 = vmatprep.subr.bf16.mxu1 %v13635_v43  ;;  %v14906_v40 = vrot.slane %v1589_v25, %v14606_v51  ;;  %v13711_v43 = vld [vmem:[#allocation2 + $0xdf0] ss:$8 sps:$4 sm:$0xff]  }
 0x37f   :  { %10265 = vmatprep.subr.bf16.mxu0 %v13638_v61  ;;  %v13714_v61 = vld [vmem:[#allocation2 + $0x22f0] ss:$8 sps:$4 sm:$0xff]  }
 0x380   :  { %v1605_v27 = vcombine.high %v14906_v40, %v14906_v40  ;;  %v13787_v25 = vld [vmem:[#allocation2 + $0x23b0] ss:$8 sps:$4 sm:$0xff]  }
 0x381   :  { %9405 = vmatpush1.bf16.msra.mxu1 %v13633_v44  ;;  %v13719_v44 = vld [vmem:[#allocation2 + $0xe04] ss:$8 sps:$4 sm:$0xff]  }
 0x382   :  { %10266 = vmatpush1.bf16.msra.mxu0 %v13636_v62  ;;  %9406 = vmatprep.subr.bf16.mxu1 %v13641_v0  ;;  %v13723_v62 = vld [vmem:[#allocation2 + $0x2304] ss:$8 sps:$4 sm:$0xff]   ;;  %v1634_v0 = vcombine.high %v14892_v53, %v14892_v53  ;;  %v13727_v53 = vld [vmem:[#allocation2 + $0x2310] ss:$8 sps:$4 sm:$0xff]  }
 0x383   :  { %10267 = vmatprep.subr.bf16.mxu0 %v13644_v1  ;;  %v14914_v1 = vrot.slane %v14886_v31, %v14606_v51  ;;  %v13724_v31 = vld [vmem:[#allocation2 + $0xe10] ss:$8 sps:$4 sm:$0xff]  }
 0x385   :  { %9407 = vmatpush1.bf16.msra.mxu1 %v13639_v4  ;;  %v13717_v4 = vld [vmem:[#allocation2 + $0xe00] ss:$8 sps:$4 sm:$0xff]  }
 0x386   :  { %10268 = vmatpush1.bf16.msra.mxu0 %v13642_v48  ;;  %9408 = vmatprep.subr.bf16.mxu1 %v13647_v37  ;;  %v13721_v48 = vld [vmem:[#allocation2 + $0x2300] ss:$8 sps:$4 sm:$0xff]   ;;  %v13726_v37 = vld [vmem:[#allocation2 + $0xe14] ss:$8 sps:$4 sm:$0xff]  }
 0x387   :  { %10269 = vmatprep.subr.bf16.mxu0 %v13650_v6  ;;  %v13729_v6 = vld [vmem:[#allocation2 + $0x2314] ss:$8 sps:$4 sm:$0xff]  }
 0x389   :  { %9409 = vmatpush1.bf16.msra.mxu1 %v13645_v7  ;;  %v14917_v7 = vrot.slane %v1605_v27, %v14606_v51  ;;  %v13804_v27 = vld [vmem:[#allocation2 + $0xee4] ss:$8 sps:$4 sm:$0xff]  }
 0x38a   :  { %10270 = vmatpush1.bf16.msra.mxu0 %v13648_v30  ;;  %9410 = vmatprep.subr.bf16.mxu1 %v13653_v8  ;;  %v1882_v30 = vcombine.high %v14899_v41, %v14899_v41  ;;  %v13732_v8 = vld [vmem:[#allocation2 + $0xe24] ss:$8 sps:$4 sm:$0xff]   ;;  %v13738_v41 = vld [vmem:[#allocation2 + $0xe34] ss:$8 sps:$4 sm:$0xff]  }
 0x38b   :  { %10271 = vmatprep.subr.bf16.mxu0 %v13656_v38  ;;  %v13735_v38 = vld [vmem:[#allocation2 + $0x2324] ss:$8 sps:$4 sm:$0xff]  }
 0x38d   :  { %9411 = vmatpush1.bf16.msra.mxu1 %v13651_v9  ;;  %v13730_v9 = vld [vmem:[#allocation2 + $0xe20] ss:$8 sps:$4 sm:$0xff]  }
 0x38e   :  { %10272 = vmatpush1.bf16.msra.mxu0 %v13654_v12  ;;  %9412 = vmatprep.subr.bf16.mxu1 %v13659_v13  ;;  %v13733_v12 = vld [vmem:[#allocation2 + $0x2320] ss:$8 sps:$4 sm:$0xff]   ;;  %v13741_v13 = vld [vmem:[#allocation2 + $0x2334] ss:$8 sps:$4 sm:$0xff]  }
 0x38f   :  { %10273 = vmatprep.subr.bf16.mxu0 %v13662_v16  ;;  %v13736_v16 = vld [vmem:[#allocation2 + $0xe30] ss:$8 sps:$4 sm:$0xff]  }
 0x391   :  { %9413 = vmatpush1.bf16.msra.mxu1 %v13657_v18  ;;  %v13739_v18 = vld [vmem:[#allocation2 + $0x2330] ss:$8 sps:$4 sm:$0xff]  }
 0x392   :  { %10274 = vmatpush1.bf16.msra.mxu0 %v13660_v60  ;;  %9414 = vmatprep.subr.bf16.mxu1 %v13665_v19  ;;  %v13744_v60 = vld [vmem:[#allocation2 + $0xe44] ss:$8 sps:$4 sm:$0xff]  }
 0x393   :  { %10275 = vmatprep.subr.bf16.mxu0 %v13668_v2  ;;  %v13747_v19 = vld [vmem:[#allocation2 + $0x2344] ss:$8 sps:$4 sm:$0xff]   ;;  %v13742_v2 = vld [vmem:[#allocation2 + $0xe40] ss:$8 sps:$4 sm:$0xff]  }
 0x395   :  { %9415 = vmatpush1.bf16.msra.mxu1 %v13663_v20  ;;  %v13745_v20 = vld [vmem:[#allocation2 + $0x2340] ss:$8 sps:$4 sm:$0xff]  }
 0x396   :  { %10276 = vmatpush1.bf16.msra.mxu0 %v13666_v22  ;;  %9416 = vmatprep.subr.bf16.mxu1 %v13671_v23  ;;  %v13750_v22 = vld [vmem:[#allocation2 + $0xe54] ss:$8 sps:$4 sm:$0xff]  }
 0x397   :  { %10277 = vmatprep.subr.bf16.mxu0 %v13674_v26  ;;  %v13753_v23 = vld [vmem:[#allocation2 + $0x2354] ss:$8 sps:$4 sm:$0xff]   ;;  %v13748_v26 = vld [vmem:[#allocation2 + $0xe50] ss:$8 sps:$4 sm:$0xff]  }
 0x399   :  { %9417 = vmatpush1.bf16.msra.mxu1 %v13669_v29  ;;  %v13751_v29 = vld [vmem:[#allocation2 + $0x2350] ss:$8 sps:$4 sm:$0xff]  }
 0x39a   :  { %10278 = vmatpush1.bf16.msra.mxu0 %v13672_v32  ;;  %9418 = vmatprep.subr.bf16.mxu1 %v13677_v5  ;;  %v13756_v32 = vld [vmem:[#allocation2 + $0xe64] ss:$8 sps:$4 sm:$0xff]  }
 0x39b   :  { %10279 = vmatprep.subr.bf16.mxu0 %v13680_v28  ;;  %v13759_v5 = vld [vmem:[#allocation2 + $0x2364] ss:$8 sps:$4 sm:$0xff]   ;;  %v13754_v28 = vld [vmem:[#allocation2 + $0xe60] ss:$8 sps:$4 sm:$0xff]  }
 0x39d   :  { %9419 = vmatpush1.bf16.msra.mxu1 %v13675_v33  ;;  %v13757_v33 = vld [vmem:[#allocation2 + $0x2360] ss:$8 sps:$4 sm:$0xff]  }
 0x39e   :  { %10280 = vmatpush1.bf16.msra.mxu0 %v13678_v34  ;;  %9420 = vmatprep.subr.bf16.mxu1 %v13683_v54  ;;  %v13762_v34 = vld [vmem:[#allocation2 + $0xe74] ss:$8 sps:$4 sm:$0xff]  }
 0x39f   :  { %10281 = vmatprep.subr.bf16.mxu0 %v13686_v52  ;;  %v13765_v54 = vld [vmem:[#allocation2 + $0x2374] ss:$8 sps:$4 sm:$0xff]   ;;  %v13760_v52 = vld [vmem:[#allocation2 + $0xe70] ss:$8 sps:$4 sm:$0xff]  }
 0x3a1   :  { %9421 = vmatpush1.bf16.msra.mxu1 %v13681_v17  ;;  %v13763_v17 = vld [vmem:[#allocation2 + $0x2370] ss:$8 sps:$4 sm:$0xff]  }
 0x3a2   :  { %10282 = vmatpush1.bf16.msra.mxu0 %v13684_v39  ;;  %9422 = vmatprep.subr.bf16.mxu1 %v13689_v42  ;;  %v13768_v39 = vld [vmem:[#allocation2 + $0xe84] ss:$8 sps:$4 sm:$0xff]  }
 0x3a3   :  { %10283 = vmatprep.subr.bf16.mxu0 %v13692_v21  ;;  %v13771_v42 = vld [vmem:[#allocation2 + $0x2384] ss:$8 sps:$4 sm:$0xff]   ;;  %v13766_v21 = vld [vmem:[#allocation2 + $0xe80] ss:$8 sps:$4 sm:$0xff]  }
 0x3a5   :  { %9423 = vmatpush1.bf16.msra.mxu1 %v13687_v63  ;;  %v13769_v63 = vld [vmem:[#allocation2 + $0x2380] ss:$8 sps:$4 sm:$0xff]  }
 0x3a6   :  { %10284 = vmatpush1.bf16.msra.mxu0 %v13690_v24  ;;  %9424 = vmatprep.subr.bf16.mxu1 %v13695_v45  ;;  %v13774_v24 = vld [vmem:[#allocation2 + $0xe94] ss:$8 sps:$4 sm:$0xff]  }
 0x3a7   :  { %10285 = vmatprep.subr.bf16.mxu0 %v13698_v35  ;;  %v13777_v45 = vld [vmem:[#allocation2 + $0x2394] ss:$8 sps:$4 sm:$0xff]   ;;  %v13772_v35 = vld [vmem:[#allocation2 + $0xe90] ss:$8 sps:$4 sm:$0xff]  }
 0x3a9   :  { %9425 = vmatpush1.bf16.msra.mxu1 %v13693_v14  ;;  %v13775_v14 = vld [vmem:[#allocation2 + $0x2390] ss:$8 sps:$4 sm:$0xff]  }
 0x3aa   :  { %10286 = vmatpush1.bf16.msra.mxu0 %v13696_v47  ;;  %9426 = vmatprep.subr.bf16.mxu1 %v13701_v49  ;;  %v13780_v47 = vld [vmem:[#allocation2 + $0xea4] ss:$8 sps:$4 sm:$0xff]  }
 0x3ab   :  { %10287 = vmatprep.subr.bf16.mxu0 %v13704_v50  ;;  %v13783_v49 = vld [vmem:[#allocation2 + $0x23a4] ss:$8 sps:$4 sm:$0xff]   ;;  %v13778_v50 = vld [vmem:[#allocation2 + $0xea0] ss:$8 sps:$4 sm:$0xff]  }
 0x3ad   :  { %9427 = vmatpush1.bf16.msra.mxu1 %v13699_v56  ;;  %v13781_v56 = vld [vmem:[#allocation2 + $0x23a0] ss:$8 sps:$4 sm:$0xff]  }
 0x3ae   :  { %10288 = vmatpush1.bf16.msra.mxu0 %v13702_v11  ;;  %9428 = vmatprep.subr.bf16.mxu1 %v13707_v55  ;;  %v13786_v11 = vld [vmem:[#allocation2 + $0xeb4] ss:$8 sps:$4 sm:$0xff]  }
 0x3af   :  { %10289 = vmatprep.subr.bf16.mxu0 %v13710_v36  ;;  %v13789_v55 = vld [vmem:[#allocation2 + $0x23b4] ss:$8 sps:$4 sm:$0xff]   ;;  %v13784_v36 = vld [vmem:[#allocation2 + $0xeb0] ss:$8 sps:$4 sm:$0xff]  }
 0x3b1   :  { %9429 = vmatpush1.bf16.msra.mxu1 %v13705_v57  ;;  %v13792_v57 = vld [vmem:[#allocation2 + $0xec4] ss:$8 sps:$4 sm:$0xff]  }
 0x3b2   :  { %10290 = vmatpush1.bf16.msra.mxu0 %v13708_v58  ;;  %9430 = vmatprep.subr.bf16.mxu1 %v13713_v59  ;;  %v13795_v58 = vld [vmem:[#allocation2 + $0x23c4] ss:$8 sps:$4 sm:$0xff]   ;;  %v13790_v59 = vld [vmem:[#allocation2 + $0xec0] ss:$8 sps:$4 sm:$0xff]  }
 0x3b3   :  { %10291 = vmatprep.subr.bf16.mxu0 %v13716_v10  ;;  %v13793_v10 = vld [vmem:[#allocation2 + $0x23c0] ss:$8 sps:$4 sm:$0xff]  }
 0x3b5   :  { %9431 = vmatpush1.bf16.msra.mxu1 %v13711_v43  ;;  %v13798_v43 = vld [vmem:[#allocation2 + $0xed4] ss:$8 sps:$4 sm:$0xff]  }
 0x3b6   :  { %10292 = vmatpush1.bf16.msra.mxu0 %v13714_v61  ;;  %9441 = vmatprep.subr.bf16.mxu1 %v13719_v44  ;;  %v13801_v61 = vld [vmem:[#allocation2 + $0x23d4] ss:$8 sps:$4 sm:$0xff]   ;;  %v13796_v44 = vld [vmem:[#allocation2 + $0xed0] ss:$8 sps:$4 sm:$0xff]  }
 0x3b7   :  { %10302 = vmatprep.subr.bf16.mxu0 %v13723_v62  ;;  %v13799_v62 = vld [vmem:[#allocation2 + $0x23d0] ss:$8 sps:$4 sm:$0xff]  }
 0x3b8   :  { %9433 = vmatmul.mubr.bf16.vlgmr.msra.gmra.mrb[0].mxu1 %v1634_v0  ;;  %v13807_v0 = vld [vmem:[#allocation2 + $0x23e4] ss:$8 sps:$4 sm:$0xff]  }
 0x3b9   :  { %10294 = vmatmul.mubr.bf16.vlgmr.msra.gmra.mrb[0].mxu0 %v14914_v1  ;;  %9442 = vmatpush1.bf16.msra.mxu1 %v13717_v4  ;;  %v14926_v4 = vld [vmem:[%s15165_s0 + $0x48] sm:$0xff] }
 0x3ba   :  { %10303 = vmatpush1.bf16.msra.mxu0 %v13721_v48  ;;  %9443 = vmatprep.subr.bf16.mxu1 %v13726_v37  ;;  %v13802_v48 = vld [vmem:[#allocation2 + $0xee0] ss:$8 sps:$4 sm:$0xff]  }
 0x3bb   :  { %10304 = vmatprep.subr.bf16.mxu0 %v13729_v6  ;;  %9473 = vmatprep.mubr.bf16.mxu1 %v14917_v7  ;;  %v13805_v37 = vld [vmem:[#allocation2 + $0x23e0] ss:$8 sps:$4 sm:$0xff]   ;;  %v13810_v6 = vld [vmem:[#allocation2 + $0xef4] ss:$8 sps:$4 sm:$0xff]  }
 0x3bc   :  { %10334 = vmatprep.mubr.bf16.mxu0 %v1882_v30  ;;  %v13813_v30 = vld [vmem:[#allocation2 + $0x23f4] ss:$8 sps:$4 sm:$0xff]  }
 0x3bd   :  { %9444 = vmatpush1.bf16.msra.mxu1 %v13724_v31  ;;  %v14930_v31 = vrot.slane %v14926_v4, %v14606_v51 }
 0x3be   :  { %10305 = vmatpush1.bf16.msra.mxu0 %v13727_v53  ;;  %9445 = vmatprep.subr.bf16.mxu1 %v13732_v8  ;;  %v13808_v53 = vld [vmem:[#allocation2 + $0xef0] ss:$8 sps:$4 sm:$0xff]  }
 0x3bf   :  { %10306 = vmatprep.subr.bf16.mxu0 %v13735_v38  ;;  %v13811_v8 = vld [vmem:[#allocation2 + $0x23f0] ss:$8 sps:$4 sm:$0xff]   ;;  %v13817_v38 = vld [vmem:[#allocation2 + $0xf04] ss:$8 sps:$4 sm:$0xff]  }
 0x3c1   :  { %9446 = vmatpush1.bf16.msra.mxu1 %v13730_v9  ;;  %v13820_v9 = vld [vmem:[#allocation2 + $0x2404] ss:$8 sps:$4 sm:$0xff]  }
 0x3c2   :  { %10307 = vmatpush1.bf16.msra.mxu0 %v13733_v12  ;;  %9447 = vmatprep.subr.bf16.mxu1 %v13738_v41  ;;  %v1898_v12 = vcombine.high %v14930_v31, %v14930_v31  ;;  %v14936_v41 = vrot.slane %v14906_v40, %v14606_v51  ;;  %v13821_v40 = vld [vmem:[#allocation2 + $0xf10] ss:$8 sps:$4 sm:$0xff]  }
 0x3c3   :  { %10308 = vmatprep.subr.bf16.mxu0 %v13741_v13  ;;  %v1880_v13 = vcombine.high %v14914_v1, %v14914_v1  ;;  %v13824_v1 = vld [vmem:[#allocation2 + $0x2410] ss:$8 sps:$4 sm:$0xff]  }
 0x3c5   :  { %9448 = vmatpush1.bf16.msra.mxu1 %v13736_v16  ;;  %v13815_v16 = vld [vmem:[#allocation2 + $0xf00] ss:$8 sps:$4 sm:$0xff]  }
 0x3c6   :  { %10309 = vmatpush1.bf16.msra.mxu0 %v13739_v18  ;;  %9449 = vmatprep.subr.bf16.mxu1 %v13744_v60  ;;  %v13818_v18 = vld [vmem:[#allocation2 + $0x2400] ss:$8 sps:$4 sm:$0xff]   ;;  %v13823_v60 = vld [vmem:[#allocation2 + $0xf14] ss:$8 sps:$4 sm:$0xff]  }
 0x3c7   :  { %10310 = vmatprep.subr.bf16.mxu0 %v13747_v19  ;;  %v13826_v19 = vld [vmem:[#allocation2 + $0x2414] ss:$8 sps:$4 sm:$0xff]  }
 0x3c9   :  { %9450 = vmatpush1.bf16.msra.mxu1 %v13742_v2  ;;  %v1637_v2 = vcombine.high %v14917_v7, %v14917_v7  ;;  %v13827_v7 = vld [vmem:[#allocation2 + $0xf20] ss:$8 sps:$4 sm:$0xff]  }
 0x3ca   :  { %10311 = vmatpush1.bf16.msra.mxu0 %v13745_v20  ;;  %9451 = vmatprep.subr.bf16.mxu1 %v13750_v22  ;;  %v14943_v20 = vrot.slane %v1898_v12, %v14606_v51  ;;  %v13829_v22 = vld [vmem:[#allocation2 + $0xf24] ss:$8 sps:$4 sm:$0xff]   ;;  %v13896_v12 = vld [vmem:[#allocation2 + $0x24d0] ss:$8 sps:$4 sm:$0xff]  }
 0x3cb   :  { %10312 = vmatprep.subr.bf16.mxu0 %v13753_v23  ;;  %v13832_v23 = vld [vmem:[#allocation2 + $0x2424] ss:$8 sps:$4 sm:$0xff]  }
 0x3cd   :  { %9452 = vmatpush1.bf16.msra.mxu1 %v13748_v26  ;;  %v13830_v26 = vld [vmem:[#allocation2 + $0x2420] ss:$8 sps:$4 sm:$0xff]  }
 0x3ce   :  { %10313 = vmatpush1.bf16.msra.mxu0 %v13751_v29  ;;  %9453 = vmatprep.subr.bf16.mxu1 %v13756_v32  ;;  %v13835_v29 = vld [vmem:[#allocation2 + $0xf34] ss:$8 sps:$4 sm:$0xff]  }
 0x3cf   :  { %10314 = vmatprep.subr.bf16.mxu0 %v13759_v5  ;;  %v13838_v32 = vld [vmem:[#allocation2 + $0x2434] ss:$8 sps:$4 sm:$0xff]   ;;  %v13833_v5 = vld [vmem:[#allocation2 + $0xf30] ss:$8 sps:$4 sm:$0xff]  }
 0x3d1   :  { %9454 = vmatpush1.bf16.msra.mxu1 %v13754_v28  ;;  %v13836_v28 = vld [vmem:[#allocation2 + $0x2430] ss:$8 sps:$4 sm:$0xff]  }
 0x3d2   :  { %10315 = vmatpush1.bf16.msra.mxu0 %v13757_v33  ;;  %9455 = vmatprep.subr.bf16.mxu1 %v13762_v34  ;;  %v13841_v33 = vld [vmem:[#allocation2 + $0xf44] ss:$8 sps:$4 sm:$0xff]  }
 0x3d3   :  { %10316 = vmatprep.subr.bf16.mxu0 %v13765_v54  ;;  %v13844_v34 = vld [vmem:[#allocation2 + $0x2444] ss:$8 sps:$4 sm:$0xff]   ;;  %v13839_v54 = vld [vmem:[#allocation2 + $0xf40] ss:$8 sps:$4 sm:$0xff]  }
 0x3d5   :  { %9456 = vmatpush1.bf16.msra.mxu1 %v13760_v52  ;;  %v13842_v52 = vld [vmem:[#allocation2 + $0x2440] ss:$8 sps:$4 sm:$0xff]  }
 0x3d6   :  { %10317 = vmatpush1.bf16.msra.mxu0 %v13763_v17  ;;  %9457 = vmatprep.subr.bf16.mxu1 %v13768_v39  ;;  %v13847_v17 = vld [vmem:[#allocation2 + $0xf54] ss:$8 sps:$4 sm:$0xff]  }
 0x3d7   :  { %10318 = vmatprep.subr.bf16.mxu0 %v13771_v42  ;;  %v13850_v39 = vld [vmem:[#allocation2 + $0x2454] ss:$8 sps:$4 sm:$0xff]   ;;  %v13845_v42 = vld [vmem:[#allocation2 + $0xf50] ss:$8 sps:$4 sm:$0xff]  }
 0x3d9   :  { %9458 = vmatpush1.bf16.msra.mxu1 %v13766_v21  ;;  %v13848_v21 = vld [vmem:[#allocation2 + $0x2450] ss:$8 sps:$4 sm:$0xff]  }
 0x3da   :  { %10319 = vmatpush1.bf16.msra.mxu0 %v13769_v63  ;;  %9459 = vmatprep.subr.bf16.mxu1 %v13774_v24  ;;  %v13853_v63 = vld [vmem:[#allocation2 + $0xf64] ss:$8 sps:$4 sm:$0xff]  }
 0x3db   :  { %10320 = vmatprep.subr.bf16.mxu0 %v13777_v45  ;;  %v13856_v24 = vld [vmem:[#allocation2 + $0x2464] ss:$8 sps:$4 sm:$0xff]   ;;  %v13851_v45 = vld [vmem:[#allocation2 + $0xf60] ss:$8 sps:$4 sm:$0xff]  }
 0x3dd   :  { %9460 = vmatpush1.bf16.msra.mxu1 %v13772_v35  ;;  %v13854_v35 = vld [vmem:[#allocation2 + $0x2460] ss:$8 sps:$4 sm:$0xff]  }
 0x3de   :  { %10321 = vmatpush1.bf16.msra.mxu0 %v13775_v14  ;;  %9461 = vmatprep.subr.bf16.mxu1 %v13780_v47  ;;  %v13859_v14 = vld [vmem:[#allocation2 + $0xf74] ss:$8 sps:$4 sm:$0xff]  }
 0x3df   :  { %10322 = vmatprep.subr.bf16.mxu0 %v13783_v49  ;;  %v13862_v47 = vld [vmem:[#allocation2 + $0x2474] ss:$8 sps:$4 sm:$0xff]   ;;  %v13857_v49 = vld [vmem:[#allocation2 + $0xf70] ss:$8 sps:$4 sm:$0xff]  }
 0x3e1   :  { %9462 = vmatpush1.bf16.msra.mxu1 %v13778_v50  ;;  %v13860_v50 = vld [vmem:[#allocation2 + $0x2470] ss:$8 sps:$4 sm:$0xff]  }
 0x3e2   :  { %10323 = vmatpush1.bf16.msra.mxu0 %v13781_v56  ;;  %9463 = vmatprep.subr.bf16.mxu1 %v13786_v11  ;;  %v13865_v56 = vld [vmem:[#allocation2 + $0xf84] ss:$8 sps:$4 sm:$0xff]  }
 0x3e3   :  { %10324 = vmatprep.subr.bf16.mxu0 %v13789_v55  ;;  %v13868_v11 = vld [vmem:[#allocation2 + $0x2484] ss:$8 sps:$4 sm:$0xff]   ;;  %v13863_v55 = vld [vmem:[#allocation2 + $0xf80] ss:$8 sps:$4 sm:$0xff]  }
 0x3e5   :  { %9464 = vmatpush1.bf16.msra.mxu1 %v13784_v36  ;;  %v13866_v36 = vld [vmem:[#allocation2 + $0x2480] ss:$8 sps:$4 sm:$0xff]  }
 0x3e6   :  { %10325 = vmatpush1.bf16.msra.mxu0 %v13787_v25  ;;  %9465 = vmatprep.subr.bf16.mxu1 %v13792_v57  ;;  %v13871_v25 = vld [vmem:[#allocation2 + $0xf94] ss:$8 sps:$4 sm:$0xff]  }
 0x3e7   :  { %10326 = vmatprep.subr.bf16.mxu0 %v13795_v58  ;;  %v13874_v57 = vld [vmem:[#allocation2 + $0x2494] ss:$8 sps:$4 sm:$0xff]   ;;  %v13869_v58 = vld [vmem:[#allocation2 + $0xf90] ss:$8 sps:$4 sm:$0xff]  }
 0x3e9   :  { %9466 = vmatpush1.bf16.msra.mxu1 %v13790_v59  ;;  %v13872_v59 = vld [vmem:[#allocation2 + $0x2490] ss:$8 sps:$4 sm:$0xff]  }
 0x3ea   :  { %10327 = vmatpush1.bf16.msra.mxu0 %v13793_v10  ;;  %9467 = vmatprep.subr.bf16.mxu1 %v13798_v43  ;;  %v13877_v10 = vld [vmem:[#allocation2 + $0xfa4] ss:$8 sps:$4 sm:$0xff]  }
 0x3eb   :  { %10328 = vmatprep.subr.bf16.mxu0 %v13801_v61  ;;  %v13880_v43 = vld [vmem:[#allocation2 + $0x24a4] ss:$8 sps:$4 sm:$0xff]   ;;  %v13875_v61 = vld [vmem:[#allocation2 + $0xfa0] ss:$8 sps:$4 sm:$0xff]  }
 0x3ed   :  { %9468 = vmatpush1.bf16.msra.mxu1 %v13796_v44  ;;  %v13878_v44 = vld [vmem:[#allocation2 + $0x24a0] ss:$8 sps:$4 sm:$0xff]  }
 0x3ee   :  { %10329 = vmatpush1.bf16.msra.mxu0 %v13799_v62  ;;  %9469 = vmatprep.subr.bf16.mxu1 %v13804_v27  ;;  %v13883_v62 = vld [vmem:[#allocation2 + $0xfb4] ss:$8 sps:$4 sm:$0xff]  }
 0x3ef   :  { %10330 = vmatprep.subr.bf16.mxu0 %v13807_v0  ;;  %v13886_v27 = vld [vmem:[#allocation2 + $0x24b4] ss:$8 sps:$4 sm:$0xff]   ;;  %v13881_v0 = vld [vmem:[#allocation2 + $0xfb0] ss:$8 sps:$4 sm:$0xff]  }
 0x3f1   :  { %9470 = vmatpush1.bf16.msra.mxu1 %v13802_v48  ;;  %v13884_v48 = vld [vmem:[#allocation2 + $0x24b0] ss:$8 sps:$4 sm:$0xff]  }
 0x3f2   :  { %10331 = vmatpush1.bf16.msra.mxu0 %v13805_v37  ;;  %9471 = vmatprep.subr.bf16.mxu1 %v13810_v6  ;;  %v13889_v37 = vld [vmem:[#allocation2 + $0xfc4] ss:$8 sps:$4 sm:$0xff]  }
 0x3f3   :  { %10332 = vmatprep.subr.bf16.mxu0 %v13813_v30  ;;  %v13892_v6 = vld [vmem:[#allocation2 + $0x24c4] ss:$8 sps:$4 sm:$0xff]   ;;  %v13887_v30 = vld [vmem:[#allocation2 + $0xfc0] ss:$8 sps:$4 sm:$0xff]  }
 0x3f5   :  { %9472 = vmatpush1.bf16.msra.mxu1 %v13808_v53  ;;  %v13890_v53 = vld [vmem:[#allocation2 + $0x24c0] ss:$8 sps:$4 sm:$0xff]  }
 0x3f6   :  { %10333 = vmatpush1.bf16.msra.mxu0 %v13811_v8  ;;  %9482 = vmatprep.subr.bf16.mxu1 %v13817_v38  ;;  %v13895_v8 = vld [vmem:[#allocation2 + $0xfd4] ss:$8 sps:$4 sm:$0xff]  }
 0x3f7   :  { %10343 = vmatprep.subr.bf16.mxu0 %v13820_v9  ;;  %v13898_v38 = vld [vmem:[#allocation2 + $0x24d4] ss:$8 sps:$4 sm:$0xff]   ;;  %v13893_v9 = vld [vmem:[#allocation2 + $0xfd0] ss:$8 sps:$4 sm:$0xff]  }
 0x3f8   :  { %9474 = vmatmul.mubr.bf16.vlgmr.msra.gmra.mrb[0].mxu1 %v14936_v41 }
 0x3f9   :  { %10335 = vmatmul.mubr.bf16.vlgmr.msra.gmra.mrb[0].mxu0 %v1880_v13  ;;  %9483 = vmatpush1.bf16.msra.mxu1 %v13815_v16  ;;  %v13901_v13 = vld [vmem:[#allocation2 + $0xfe4] ss:$8 sps:$4 sm:$0xff]  }
 0x3fa   :  { %10344 = vmatpush1.bf16.msra.mxu0 %v13818_v18  ;;  %9484 = vmatprep.subr.bf16.mxu1 %v13823_v60  ;;  %v13904_v16 = vld [vmem:[#allocation2 + $0x24e4] ss:$8 sps:$4 sm:$0xff]   ;;  %v13899_v60 = vld [vmem:[#allocation2 + $0xfe0] ss:$8 sps:$4 sm:$0xff]  }
 0x3fb   :  { %10345 = vmatprep.subr.bf16.mxu0 %v13826_v19  ;;  %9514 = vmatprep.mubr.bf16.mxu1 %v1637_v2  ;;  %v14950_v18 = vld [vmem:[%s15165_s0 + $0x20] sm:$0xff]  ;;  %v13907_v2 = vld [vmem:[#allocation2 + $0xff4] ss:$8 sps:$4 sm:$0xff]  }
 0x3fc   :  { %10375 = vmatprep.mubr.bf16.mxu0 %v14943_v20  ;;  %v13902_v19 = vld [vmem:[#allocation2 + $0x24e0] ss:$8 sps:$4 sm:$0xff]  }
 0x3fd   :  { %9485 = vmatpush1.bf16.msra.mxu1 %v13821_v40  ;;  %v13910_v40 = vld [vmem:[#allocation2 + $0x24f4] ss:$8 sps:$4 sm:$0xff]  }
 0x3fe   :  { %10346 = vmatpush1.bf16.msra.mxu0 %v13824_v1  ;;  %9486 = vmatprep.subr.bf16.mxu1 %v13829_v22  ;;  %v14954_v1 = vrot.slane %v14950_v18, %v14606_v51  ;;  %v13905_v22 = vld [vmem:[#allocation2 + $0xff0] ss:$8 sps:$4 sm:$0xff]  }
 0x3ff   :  { %10347 = vmatprep.subr.bf16.mxu0 %v13832_v23  ;;  %v13908_v23 = vld [vmem:[#allocation2 + $0x24f0] ss:$8 sps:$4 sm:$0xff]  }
 0x401   :  { %9487 = vmatpush1.bf16.msra.mxu1 %v13827_v7  ;;  %v13913_v7 = vld [vmem:[#allocation2 + $0x1004] ss:$8 sps:$4 sm:$0xff]  }
 0x402   :  { %10348 = vmatpush1.bf16.msra.mxu0 %v13830_v26  ;;  %9488 = vmatprep.subr.bf16.mxu1 %v13835_v29  ;;  %v13916_v26 = vld [vmem:[#allocation2 + $0x2504] ss:$8 sps:$4 sm:$0xff]   ;;  %v1653_v29 = vcombine.high %v14954_v1, %v14954_v1 }
 0x403   :  { %10349 = vmatprep.subr.bf16.mxu0 %v13838_v32  ;;  %v1635_v32 = vcombine.high %v14936_v41, %v14936_v41  ;;  %v13920_v41 = vld [vmem:[#allocation2 + $0x2510] ss:$8 sps:$4 sm:$0xff]  }
 0x405   :  { %9489 = vmatpush1.bf16.msra.mxu1 %v13833_v5  ;;  %v14962_v5 = vrot.slane %v14930_v31, %v14606_v51  ;;  %v13917_v31 = vld [vmem:[#allocation2 + $0x1010] ss:$8 sps:$4 sm:$0xff]  }
 0x406   :  { %10350 = vmatpush1.bf16.msra.mxu0 %v13836_v28  ;;  %9490 = vmatprep.subr.bf16.mxu1 %v13841_v33  ;;  %v13911_v28 = vld [vmem:[#allocation2 + $0x1000] ss:$8 sps:$4 sm:$0xff]  }
 0x407   :  { %10351 = vmatprep.subr.bf16.mxu0 %v13844_v34  ;;  %v13914_v33 = vld [vmem:[#allocation2 + $0x2500] ss:$8 sps:$4 sm:$0xff]   ;;  %v13919_v34 = vld [vmem:[#allocation2 + $0x1014] ss:$8 sps:$4 sm:$0xff]  }
 0x409   :  { %9491 = vmatpush1.bf16.msra.mxu1 %v13839_v54  ;;  %v13922_v54 = vld [vmem:[#allocation2 + $0x2514] ss:$8 sps:$4 sm:$0xff]  }
 0x40a   :  { %10352 = vmatpush1.bf16.msra.mxu0 %v13842_v52  ;;  %9492 = vmatprep.subr.bf16.mxu1 %v13847_v17  ;;  %v14965_v52 = vrot.slane %v1653_v29, %v14606_v51  ;;  %v1930_v17 = vcombine.high %v14943_v20, %v14943_v20  ;;  %v13931_v20 = vld [vmem:[#allocation2 + $0x1034] ss:$8 sps:$4 sm:$0xff]   ;;  %v13989_v29 = vld [vmem:[#allocation2 + $0x10d0] ss:$8 sps:$4 sm:$0xff]  }
 0x40b   :  { %10353 = vmatprep.subr.bf16.mxu0 %v13850_v39  ;;  %v13925_v39 = vld [vmem:[#allocation2 + $0x1024] ss:$8 sps:$4 sm:$0xff]  }
 0x40d   :  { %9493 = vmatpush1.bf16.msra.mxu1 %v13845_v42  ;;  %v13928_v42 = vld [vmem:[#allocation2 + $0x2524] ss:$8 sps:$4 sm:$0xff]  }
 0x40e   :  { %10354 = vmatpush1.bf16.msra.mxu0 %v13848_v21  ;;  %9494 = vmatprep.subr.bf16.mxu1 %v13853_v63  ;;  %v13923_v21 = vld [vmem:[#allocation2 + $0x1020] ss:$8 sps:$4 sm:$0xff]  }
 0x40f   :  { %10355 = vmatprep.subr.bf16.mxu0 %v13856_v24  ;;  %v13926_v63 = vld [vmem:[#allocation2 + $0x2520] ss:$8 sps:$4 sm:$0xff]   ;;  %v13934_v24 = vld [vmem:[#allocation2 + $0x2534] ss:$8 sps:$4 sm:$0xff]  }
 0x411   :  { %9495 = vmatpush1.bf16.msra.mxu1 %v13851_v45  ;;  %v13929_v45 = vld [vmem:[#allocation2 + $0x1030] ss:$8 sps:$4 sm:$0xff]  }
 0x412   :  { %10356 = vmatpush1.bf16.msra.mxu0 %v13854_v35  ;;  %9496 = vmatprep.subr.bf16.mxu1 %v13859_v14  ;;  %v13932_v35 = vld [vmem:[#allocation2 + $0x2530] ss:$8 sps:$4 sm:$0xff]   ;;  %v13937_v14 = vld [vmem:[#allocation2 + $0x1044] ss:$8 sps:$4 sm:$0xff]  }
 0x413   :  { %10357 = vmatprep.subr.bf16.mxu0 %v13862_v47  ;;  %v13940_v47 = vld [vmem:[#allocation2 + $0x2544] ss:$8 sps:$4 sm:$0xff]  }
 0x415   :  { %9497 = vmatpush1.bf16.msra.mxu1 %v13857_v49  ;;  %v13935_v49 = vld [vmem:[#allocation2 + $0x1040] ss:$8 sps:$4 sm:$0xff]  }
 0x416   :  { %10358 = vmatpush1.bf16.msra.mxu0 %v13860_v50  ;;  %9498 = vmatprep.subr.bf16.mxu1 %v13865_v56  ;;  %v13938_v50 = vld [vmem:[#allocation2 + $0x2540] ss:$8 sps:$4 sm:$0xff]   ;;  %v13943_v56 = vld [vmem:[#allocation2 + $0x1054] ss:$8 sps:$4 sm:$0xff]  }
 0x417   :  { %10359 = vmatprep.subr.bf16.mxu0 %v13868_v11  ;;  %v13946_v11 = vld [vmem:[#allocation2 + $0x2554] ss:$8 sps:$4 sm:$0xff]  }
 0x419   :  { %9499 = vmatpush1.bf16.msra.mxu1 %v13863_v55  ;;  %v13941_v55 = vld [vmem:[#allocation2 + $0x1050] ss:$8 sps:$4 sm:$0xff]  }
 0x41a   :  { %10360 = vmatpush1.bf16.msra.mxu0 %v13866_v36  ;;  %9500 = vmatprep.subr.bf16.mxu1 %v13871_v25  ;;  %v13944_v36 = vld [vmem:[#allocation2 + $0x2550] ss:$8 sps:$4 sm:$0xff]   ;;  %v13949_v25 = vld [vmem:[#allocation2 + $0x1064] ss:$8 sps:$4 sm:$0xff]  }
 0x41b   :  { %10361 = vmatprep.subr.bf16.mxu0 %v13874_v57  ;;  %v13952_v57 = vld [vmem:[#allocation2 + $0x2564] ss:$8 sps:$4 sm:$0xff]  }
 0x41d   :  { %9501 = vmatpush1.bf16.msra.mxu1 %v13869_v58  ;;  %v13947_v58 = vld [vmem:[#allocation2 + $0x1060] ss:$8 sps:$4 sm:$0xff]  }
 0x41e   :  { %10362 = vmatpush1.bf16.msra.mxu0 %v13872_v59  ;;  %9502 = vmatprep.subr.bf16.mxu1 %v13877_v10  ;;  %v13950_v59 = vld [vmem:[#allocation2 + $0x2560] ss:$8 sps:$4 sm:$0xff]   ;;  %v13955_v10 = vld [vmem:[#allocation2 + $0x1074] ss:$8 sps:$4 sm:$0xff]  }
 0x41f   :  { %10363 = vmatprep.subr.bf16.mxu0 %v13880_v43  ;;  %v13958_v43 = vld [vmem:[#allocation2 + $0x2574] ss:$8 sps:$4 sm:$0xff]  }
 0x421   :  { %9503 = vmatpush1.bf16.msra.mxu1 %v13875_v61  ;;  %v13953_v61 = vld [vmem:[#allocation2 + $0x1070] ss:$8 sps:$4 sm:$0xff]  }
 0x422   :  { %10364 = vmatpush1.bf16.msra.mxu0 %v13878_v44  ;;  %9504 = vmatprep.subr.bf16.mxu1 %v13883_v62  ;;  %v13956_v44 = vld [vmem:[#allocation2 + $0x2570] ss:$8 sps:$4 sm:$0xff]   ;;  %v13961_v62 = vld [vmem:[#allocation2 + $0x1084] ss:$8 sps:$4 sm:$0xff]  }
 0x423   :  { %10365 = vmatprep.subr.bf16.mxu0 %v13886_v27  ;;  %v13964_v27 = vld [vmem:[#allocation2 + $0x2584] ss:$8 sps:$4 sm:$0xff]  }
 0x425   :  { %9505 = vmatpush1.bf16.msra.mxu1 %v13881_v0  ;;  %v13959_v0 = vld [vmem:[#allocation2 + $0x1080] ss:$8 sps:$4 sm:$0xff]  }
 0x426   :  { %10366 = vmatpush1.bf16.msra.mxu0 %v13884_v48  ;;  %9506 = vmatprep.subr.bf16.mxu1 %v13889_v37  ;;  %v13962_v48 = vld [vmem:[#allocation2 + $0x2580] ss:$8 sps:$4 sm:$0xff]   ;;  %v13967_v37 = vld [vmem:[#allocation2 + $0x1094] ss:$8 sps:$4 sm:$0xff]  }
 0x427   :  { %10367 = vmatprep.subr.bf16.mxu0 %v13892_v6  ;;  %v13970_v6 = vld [vmem:[#allocation2 + $0x2594] ss:$8 sps:$4 sm:$0xff]  }
 0x429   :  { %9507 = vmatpush1.bf16.msra.mxu1 %v13887_v30  ;;  %v13965_v30 = vld [vmem:[#allocation2 + $0x1090] ss:$8 sps:$4 sm:$0xff]  }
 0x42a   :  { %10368 = vmatpush1.bf16.msra.mxu0 %v13890_v53  ;;  %9508 = vmatprep.subr.bf16.mxu1 %v13895_v8  ;;  %v13968_v53 = vld [vmem:[#allocation2 + $0x2590] ss:$8 sps:$4 sm:$0xff]   ;;  %v13973_v8 = vld [vmem:[#allocation2 + $0x10a4] ss:$8 sps:$4 sm:$0xff]  }
 0x42b   :  { %10369 = vmatprep.subr.bf16.mxu0 %v13898_v38  ;;  %v13976_v38 = vld [vmem:[#allocation2 + $0x25a4] ss:$8 sps:$4 sm:$0xff]  }
 0x42d   :  { %9509 = vmatpush1.bf16.msra.mxu1 %v13893_v9  ;;  %v13971_v9 = vld [vmem:[#allocation2 + $0x10a0] ss:$8 sps:$4 sm:$0xff]  }
 0x42e   :  { %10370 = vmatpush1.bf16.msra.mxu0 %v13896_v12  ;;  %9510 = vmatprep.subr.bf16.mxu1 %v13901_v13  ;;  %v13974_v12 = vld [vmem:[#allocation2 + $0x25a0] ss:$8 sps:$4 sm:$0xff]   ;;  %v13979_v13 = vld [vmem:[#allocation2 + $0x10b4] ss:$8 sps:$4 sm:$0xff]  }
 0x42f   :  { %10371 = vmatprep.subr.bf16.mxu0 %v13904_v16  ;;  %v13982_v16 = vld [vmem:[#allocation2 + $0x25b4] ss:$8 sps:$4 sm:$0xff]  }
 0x431   :  { %9511 = vmatpush1.bf16.msra.mxu1 %v13899_v60  ;;  %v13977_v60 = vld [vmem:[#allocation2 + $0x10b0] ss:$8 sps:$4 sm:$0xff]  }
 0x432   :  { %10372 = vmatpush1.bf16.msra.mxu0 %v13902_v19  ;;  %9512 = vmatprep.subr.bf16.mxu1 %v13907_v2  ;;  %v13980_v19 = vld [vmem:[#allocation2 + $0x25b0] ss:$8 sps:$4 sm:$0xff]   ;;  %v13985_v2 = vld [vmem:[#allocation2 + $0x10c4] ss:$8 sps:$4 sm:$0xff]  }
 0x433   :  { %10373 = vmatprep.subr.bf16.mxu0 %v13910_v40  ;;  %v13988_v40 = vld [vmem:[#allocation2 + $0x25c4] ss:$8 sps:$4 sm:$0xff]  }
 0x435   :  { %9513 = vmatpush1.bf16.msra.mxu1 %v13905_v22  ;;  %v13983_v22 = vld [vmem:[#allocation2 + $0x10c0] ss:$8 sps:$4 sm:$0xff]  }
 0x436   :  { %10374 = vmatpush1.bf16.msra.mxu0 %v13908_v23  ;;  %9523 = vmatprep.subr.bf16.mxu1 %v13913_v7  ;;  %v13986_v23 = vld [vmem:[#allocation2 + $0x25c0] ss:$8 sps:$4 sm:$0xff]   ;;  %v13991_v7 = vld [vmem:[#allocation2 + $0x10d4] ss:$8 sps:$4 sm:$0xff]  }
 0x437   :  { %10384 = vmatprep.subr.bf16.mxu0 %v13916_v26  ;;  %v13994_v26 = vld [vmem:[#allocation2 + $0x25d4] ss:$8 sps:$4 sm:$0xff]  }
 0x438   :  { %9515 = vmatmul.mubr.bf16.vlgmr.msra.gmra.mrb[0].mxu1 %v1635_v32  ;;  %v13992_v32 = vld [vmem:[#allocation2 + $0x25d0] ss:$8 sps:$4 sm:$0xff]  }
 0x439   :  { %10376 = vmatmul.mubr.bf16.vlgmr.msra.gmra.mrb[0].mxu0 %v14962_v5  ;;  %9524 = vmatpush1.bf16.msra.mxu1 %v13911_v28  ;;  %v13997_v28 = vld [vmem:[#allocation2 + $0x10e4] ss:$8 sps:$4 sm:$0xff]  }
 0x43a   :  { %10385 = vmatpush1.bf16.msra.mxu0 %v13914_v33  ;;  %9525 = vmatprep.subr.bf16.mxu1 %v13919_v34  ;;  %v14000_v33 = vld [vmem:[#allocation2 + $0x25e4] ss:$8 sps:$4 sm:$0xff]   ;;  %v1883_v34 = vcombine.high %v14926_v4, %v14926_v4 }
 0x43b   :  { %10386 = vmatprep.subr.bf16.mxu0 %v13922_v54  ;;  %9555 = vmatprep.mubr.bf16.mxu1 %v14965_v52  ;;  %v13995_v54 = vld [vmem:[#allocation2 + $0x10e0] ss:$8 sps:$4 sm:$0xff]  }
 0x43c   :  { %10416 = vmatprep.mubr.bf16.mxu0 %v1930_v17  ;;  %v13998_v17 = vld [vmem:[#allocation2 + $0x25e0] ss:$8 sps:$4 sm:$0xff]  }
 0x43d   :  { %9526 = vmatpush1.bf16.msra.mxu1 %v13917_v31  ;;  %v14003_v31 = vld [vmem:[#allocation2 + $0x10f4] ss:$8 sps:$4 sm:$0xff]  }
 0x43e   :  { %10387 = vmatpush1.bf16.msra.mxu0 %v13920_v41  ;;  %9527 = vmatprep.subr.bf16.mxu1 %v13925_v39  ;;  %v14006_v41 = vld [vmem:[#allocation2 + $0x25f4] ss:$8 sps:$4 sm:$0xff]   ;;  %v14974_v39 = vrot.slane %v1883_v34, %v14606_v51  ;;  %v14073_v34 = vld [vmem:[#allocation2 + $0x11b0] ss:$8 sps:$4 sm:$0xff]  }
 0x43f   :  { %10388 = vmatprep.subr.bf16.mxu0 %v13928_v42  ;;  %v14001_v42 = vld [vmem:[#allocation2 + $0x10f0] ss:$8 sps:$4 sm:$0xff]  }
 0x440   :  { %v1899_v4 = vcombine.high %v14974_v39, %v14974_v39 }
 0x441   :  { %9528 = vmatpush1.bf16.msra.mxu1 %v13923_v21  ;;  %v14004_v21 = vld [vmem:[#allocation2 + $0x25f0] ss:$8 sps:$4 sm:$0xff]  }
 0x442   :  { %10389 = vmatpush1.bf16.msra.mxu0 %v13926_v63  ;;  %9529 = vmatprep.subr.bf16.mxu1 %v13931_v20  ;;  %v14009_v63 = vld [vmem:[#allocation2 + $0x1104] ss:$8 sps:$4 sm:$0xff]  }
 0x443   :  { %10390 = vmatprep.subr.bf16.mxu0 %v13934_v24  ;;  %v14012_v20 = vld [vmem:[#allocation2 + $0x2604] ss:$8 sps:$4 sm:$0xff]   ;;  %v14980_v24 = vrot.slane %v14954_v1, %v14606_v51  ;;  %v14013_v1 = vld [vmem:[#allocation2 + $0x1110] ss:$8 sps:$4 sm:$0xff]  }
 0x445   :  { %9530 = vmatpush1.bf16.msra.mxu1 %v13929_v45  ;;  %v1928_v45 = vcombine.high %v14962_v5, %v14962_v5  ;;  %v14016_v5 = vld [vmem:[#allocation2 + $0x2610] ss:$8 sps:$4 sm:$0xff]  }
 0x446   :  { %10391 = vmatpush1.bf16.msra.mxu0 %v13932_v35  ;;  %9531 = vmatprep.subr.bf16.mxu1 %v13937_v14  ;;  %v14007_v35 = vld [vmem:[#allocation2 + $0x1100] ss:$8 sps:$4 sm:$0xff]  }
 0x447   :  { %10392 = vmatprep.subr.bf16.mxu0 %v13940_v47  ;;  %v14010_v14 = vld [vmem:[#allocation2 + $0x2600] ss:$8 sps:$4 sm:$0xff]   ;;  %v14015_v47 = vld [vmem:[#allocation2 + $0x1114] ss:$8 sps:$4 sm:$0xff]  }
 0x449   :  { %9532 = vmatpush1.bf16.msra.mxu1 %v13935_v49  ;;  %v14018_v49 = vld [vmem:[#allocation2 + $0x2614] ss:$8 sps:$4 sm:$0xff]  }
 0x44a   :  { %10393 = vmatpush1.bf16.msra.mxu0 %v13938_v50  ;;  %9533 = vmatprep.subr.bf16.mxu1 %v13943_v56  ;;  %v1685_v50 = vcombine.high %v14965_v52, %v14965_v52  ;;  %v14987_v56 = vrot.slane %v1899_v4, %v14606_v51  ;;  %v14019_v52 = vld [vmem:[#allocation2 + $0x1120] ss:$8 sps:$4 sm:$0xff]   ;;  %v14088_v4 = vld [vmem:[#allocation2 + $0x26d0] ss:$8 sps:$4 sm:$0xff]  }
 0x44b   :  { %10394 = vmatprep.subr.bf16.mxu0 %v13946_v11  ;;  %v14021_v11 = vld [vmem:[#allocation2 + $0x1124] ss:$8 sps:$4 sm:$0xff]  }
 0x44d   :  { %9534 = vmatpush1.bf16.msra.mxu1 %v13941_v55  ;;  %v14024_v55 = vld [vmem:[#allocation2 + $0x2624] ss:$8 sps:$4 sm:$0xff]  }
 0x44e   :  { %10395 = vmatpush1.bf16.msra.mxu0 %v13944_v36  ;;  %9535 = vmatprep.subr.bf16.mxu1 %v13949_v25  ;;  %v14022_v36 = vld [vmem:[#allocation2 + $0x2620] ss:$8 sps:$4 sm:$0xff]   ;;  %v14027_v25 = vld [vmem:[#allocation2 + $0x1134] ss:$8 sps:$4 sm:$0xff]  }
 0x44f   :  { %10396 = vmatprep.subr.bf16.mxu0 %v13952_v57  ;;  %v14030_v57 = vld [vmem:[#allocation2 + $0x2634] ss:$8 sps:$4 sm:$0xff]  }
 0x451   :  { %9536 = vmatpush1.bf16.msra.mxu1 %v13947_v58  ;;  %v14025_v58 = vld [vmem:[#allocation2 + $0x1130] ss:$8 sps:$4 sm:$0xff]  }
 0x452   :  { %10397 = vmatpush1.bf16.msra.mxu0 %v13950_v59  ;;  %9537 = vmatprep.subr.bf16.mxu1 %v13955_v10  ;;  %v14028_v59 = vld [vmem:[#allocation2 + $0x2630] ss:$8 sps:$4 sm:$0xff]   ;;  %v14033_v10 = vld [vmem:[#allocation2 + $0x1144] ss:$8 sps:$4 sm:$0xff]  }
 0x453   :  { %10398 = vmatprep.subr.bf16.mxu0 %v13958_v43  ;;  %v14036_v43 = vld [vmem:[#allocation2 + $0x2644] ss:$8 sps:$4 sm:$0xff]  }
 0x455   :  { %9538 = vmatpush1.bf16.msra.mxu1 %v13953_v61  ;;  %v14031_v61 = vld [vmem:[#allocation2 + $0x1140] ss:$8 sps:$4 sm:$0xff]  }
 0x456   :  { %10399 = vmatpush1.bf16.msra.mxu0 %v13956_v44  ;;  %9539 = vmatprep.subr.bf16.mxu1 %v13961_v62  ;;  %v14034_v44 = vld [vmem:[#allocation2 + $0x2640] ss:$8 sps:$4 sm:$0xff]   ;;  %v14039_v62 = vld [vmem:[#allocation2 + $0x1154] ss:$8 sps:$4 sm:$0xff]  }
 0x457   :  { %10400 = vmatprep.subr.bf16.mxu0 %v13964_v27  ;;  %v14042_v27 = vld [vmem:[#allocation2 + $0x2654] ss:$8 sps:$4 sm:$0xff]  }
 0x459   :  { %9540 = vmatpush1.bf16.msra.mxu1 %v13959_v0  ;;  %v14037_v0 = vld [vmem:[#allocation2 + $0x1150] ss:$8 sps:$4 sm:$0xff]  }
 0x45a   :  { %10401 = vmatpush1.bf16.msra.mxu0 %v13962_v48  ;;  %9541 = vmatprep.subr.bf16.mxu1 %v13967_v37  ;;  %v14040_v48 = vld [vmem:[#allocation2 + $0x2650] ss:$8 sps:$4 sm:$0xff]   ;;  %v14045_v37 = vld [vmem:[#allocation2 + $0x1164] ss:$8 sps:$4 sm:$0xff]  }
 0x45b   :  { %10402 = vmatprep.subr.bf16.mxu0 %v13970_v6  ;;  %v14048_v6 = vld [vmem:[#allocation2 + $0x2664] ss:$8 sps:$4 sm:$0xff]  }
 0x45d   :  { %9542 = vmatpush1.bf16.msra.mxu1 %v13965_v30  ;;  %v14043_v30 = vld [vmem:[#allocation2 + $0x1160] ss:$8 sps:$4 sm:$0xff]  }
 0x45e   :  { %10403 = vmatpush1.bf16.msra.mxu0 %v13968_v53  ;;  %9543 = vmatprep.subr.bf16.mxu1 %v13973_v8  ;;  %v14046_v53 = vld [vmem:[#allocation2 + $0x2660] ss:$8 sps:$4 sm:$0xff]   ;;  %v14051_v8 = vld [vmem:[#allocation2 + $0x1174] ss:$8 sps:$4 sm:$0xff]  }
 0x45f   :  { %10404 = vmatprep.subr.bf16.mxu0 %v13976_v38  ;;  %v14054_v38 = vld [vmem:[#allocation2 + $0x2674] ss:$8 sps:$4 sm:$0xff]  }
 0x461   :  { %9544 = vmatpush1.bf16.msra.mxu1 %v13971_v9  ;;  %v14049_v9 = vld [vmem:[#allocation2 + $0x1170] ss:$8 sps:$4 sm:$0xff]  }
 0x462   :  { %10405 = vmatpush1.bf16.msra.mxu0 %v13974_v12  ;;  %9545 = vmatprep.subr.bf16.mxu1 %v13979_v13  ;;  %v14052_v12 = vld [vmem:[#allocation2 + $0x2670] ss:$8 sps:$4 sm:$0xff]   ;;  %v14057_v13 = vld [vmem:[#allocation2 + $0x1184] ss:$8 sps:$4 sm:$0xff]  }
 0x463   :  { %10406 = vmatprep.subr.bf16.mxu0 %v13982_v16  ;;  %v14060_v16 = vld [vmem:[#allocation2 + $0x2684] ss:$8 sps:$4 sm:$0xff]  }
 0x465   :  { %9546 = vmatpush1.bf16.msra.mxu1 %v13977_v60  ;;  %v14055_v60 = vld [vmem:[#allocation2 + $0x1180] ss:$8 sps:$4 sm:$0xff]  }
 0x466   :  { %10407 = vmatpush1.bf16.msra.mxu0 %v13980_v19  ;;  %9547 = vmatprep.subr.bf16.mxu1 %v13985_v2  ;;  %v14058_v19 = vld [vmem:[#allocation2 + $0x2680] ss:$8 sps:$4 sm:$0xff]   ;;  %v14063_v2 = vld [vmem:[#allocation2 + $0x1194] ss:$8 sps:$4 sm:$0xff]  }
 0x467   :  { %10408 = vmatprep.subr.bf16.mxu0 %v13988_v40  ;;  %v14066_v40 = vld [vmem:[#allocation2 + $0x2694] ss:$8 sps:$4 sm:$0xff]  }
 0x469   :  { %9548 = vmatpush1.bf16.msra.mxu1 %v13983_v22  ;;  %v14061_v22 = vld [vmem:[#allocation2 + $0x1190] ss:$8 sps:$4 sm:$0xff]  }
 0x46a   :  { %10409 = vmatpush1.bf16.msra.mxu0 %v13986_v23  ;;  %9549 = vmatprep.subr.bf16.mxu1 %v13991_v7  ;;  %v14064_v23 = vld [vmem:[#allocation2 + $0x2690] ss:$8 sps:$4 sm:$0xff]   ;;  %v14069_v7 = vld [vmem:[#allocation2 + $0x11a4] ss:$8 sps:$4 sm:$0xff]  }
 0x46b   :  { %10410 = vmatprep.subr.bf16.mxu0 %v13994_v26  ;;  %v14072_v26 = vld [vmem:[#allocation2 + $0x26a4] ss:$8 sps:$4 sm:$0xff]  }
 0x46d   :  { %9550 = vmatpush1.bf16.msra.mxu1 %v13989_v29  ;;  %v14067_v29 = vld [vmem:[#allocation2 + $0x11a0] ss:$8 sps:$4 sm:$0xff]  }
 0x46e   :  { %10411 = vmatpush1.bf16.msra.mxu0 %v13992_v32  ;;  %9551 = vmatprep.subr.bf16.mxu1 %v13997_v28  ;;  %v14070_v32 = vld [vmem:[#allocation2 + $0x26a0] ss:$8 sps:$4 sm:$0xff]   ;;  %v14075_v28 = vld [vmem:[#allocation2 + $0x11b4] ss:$8 sps:$4 sm:$0xff]  }
 0x46f   :  { %10412 = vmatprep.subr.bf16.mxu0 %v14000_v33  ;;  %v14078_v33 = vld [vmem:[#allocation2 + $0x26b4] ss:$8 sps:$4 sm:$0xff]  }
 0x471   :  { %9552 = vmatpush1.bf16.msra.mxu1 %v13995_v54  ;;  %v14076_v54 = vld [vmem:[#allocation2 + $0x26b0] ss:$8 sps:$4 sm:$0xff]  }
 0x472   :  { %10413 = vmatpush1.bf16.msra.mxu0 %v13998_v17  ;;  %9553 = vmatprep.subr.bf16.mxu1 %v14003_v31  ;;  %v14081_v17 = vld [vmem:[#allocation2 + $0x11c4] ss:$8 sps:$4 sm:$0xff]  }
 0x473   :  { %10414 = vmatprep.subr.bf16.mxu0 %v14006_v41  ;;  %v14084_v31 = vld [vmem:[#allocation2 + $0x26c4] ss:$8 sps:$4 sm:$0xff]   ;;  %v14079_v41 = vld [vmem:[#allocation2 + $0x11c0] ss:$8 sps:$4 sm:$0xff]  }
 0x475   :  { %9554 = vmatpush1.bf16.msra.mxu1 %v14001_v42  ;;  %v14082_v42 = vld [vmem:[#allocation2 + $0x26c0] ss:$8 sps:$4 sm:$0xff]  }
 0x476   :  { %10415 = vmatpush1.bf16.msra.mxu0 %v14004_v21  ;;  %9564 = vmatprep.subr.bf16.mxu1 %v14009_v63  ;;  %v14087_v21 = vld [vmem:[#allocation2 + $0x11d4] ss:$8 sps:$4 sm:$0xff]  }
 0x477   :  { %10425 = vmatprep.subr.bf16.mxu0 %v14012_v20  ;;  %v14090_v63 = vld [vmem:[#allocation2 + $0x26d4] ss:$8 sps:$4 sm:$0xff]   ;;  %v14085_v20 = vld [vmem:[#allocation2 + $0x11d0] ss:$8 sps:$4 sm:$0xff]  }
 0x478   :  { %9556 = vmatmul.mubr.bf16.vlgmr.msra.gmra.mrb[0].mxu1 %v14980_v24 }
 0x479   :  { %10417 = vmatmul.mubr.bf16.vlgmr.msra.gmra.mrb[0].mxu0 %v1928_v45  ;;  %9565 = vmatpush1.bf16.msra.mxu1 %v14007_v35  ;;  %v14093_v45 = vld [vmem:[#allocation2 + $0x11e4] ss:$8 sps:$4 sm:$0xff]  }
 0x47a   :  { %10426 = vmatpush1.bf16.msra.mxu0 %v14010_v14  ;;  %9566 = vmatprep.subr.bf16.mxu1 %v14015_v47  ;;  %v14096_v35 = vld [vmem:[#allocation2 + $0x26e4] ss:$8 sps:$4 sm:$0xff]   ;;  %v1638_v14 = vcombine.high %v14950_v18, %v14950_v18  ;;  %v14091_v47 = vld [vmem:[#allocation2 + $0x11e0] ss:$8 sps:$4 sm:$0xff]  }
 0x47b   :  { %10427 = vmatprep.subr.bf16.mxu0 %v14018_v49  ;;  %9596 = vmatprep.mubr.bf16.mxu1 %v1685_v50  ;;  %v14094_v49 = vld [vmem:[#allocation2 + $0x26e0] ss:$8 sps:$4 sm:$0xff]   ;;  %v14099_v50 = vld [vmem:[#allocation2 + $0x11f4] ss:$8 sps:$4 sm:$0xff]  }
 0x47c   :  { %10457 = vmatprep.mubr.bf16.mxu0 %v14987_v56 }
 0x47d   :  { %9567 = vmatpush1.bf16.msra.mxu1 %v14013_v1  ;;  %v14102_v1 = vld [vmem:[#allocation2 + $0x26f4] ss:$8 sps:$4 sm:$0xff]  }
 0x47e   :  { %10428 = vmatpush1.bf16.msra.mxu0 %v14016_v5  ;;  %9568 = vmatprep.subr.bf16.mxu1 %v14021_v11  ;;  %v14994_v5 = vrot.slane %v1638_v14, %v14606_v51  ;;  %v14097_v11 = vld [vmem:[#allocation2 + $0x11f0] ss:$8 sps:$4 sm:$0xff]  }
 0x47f   :  { %10429 = vmatprep.subr.bf16.mxu0 %v14024_v55  ;;  %v14100_v55 = vld [vmem:[#allocation2 + $0x26f0] ss:$8 sps:$4 sm:$0xff]  }
 0x480   :  { %v1654_v18 = vcombine.high %v14994_v5, %v14994_v5  ;;  %v14173_v14 = vld [vmem:[#allocation2 + $0x27b0] ss:$8 sps:$4 sm:$0xff]  }
 0x481   :  { %9569 = vmatpush1.bf16.msra.mxu1 %v14019_v52  ;;  %v14105_v52 = vld [vmem:[#allocation2 + $0x1204] ss:$8 sps:$4 sm:$0xff]  }
 0x482   :  { %10430 = vmatpush1.bf16.msra.mxu0 %v14022_v36  ;;  %9570 = vmatprep.subr.bf16.mxu1 %v14027_v25  ;;  %v14109_v36 = vld [vmem:[#allocation2 + $0x2704] ss:$8 sps:$4 sm:$0xff]   ;;  %v1683_v25 = vcombine.high %v14980_v24, %v14980_v24  ;;  %v14113_v24 = vld [vmem:[#allocation2 + $0x2710] ss:$8 sps:$4 sm:$0xff]  }
 0x483   :  { %10431 = vmatprep.subr.bf16.mxu0 %v14030_v57  ;;  %v15002_v57 = vrot.slane %v14974_v39, %v14606_v51  ;;  %v14110_v39 = vld [vmem:[#allocation2 + $0x1210] ss:$8 sps:$4 sm:$0xff]  }
 0x485   :  { %9571 = vmatpush1.bf16.msra.mxu1 %v14025_v58  ;;  %v14103_v58 = vld [vmem:[#allocation2 + $0x1200] ss:$8 sps:$4 sm:$0xff]  }
 0x486   :  { %10432 = vmatpush1.bf16.msra.mxu0 %v14028_v59  ;;  %9572 = vmatprep.subr.bf16.mxu1 %v14033_v10  ;;  %v14107_v59 = vld [vmem:[#allocation2 + $0x2700] ss:$8 sps:$4 sm:$0xff]   ;;  %v14112_v10 = vld [vmem:[#allocation2 + $0x1214] ss:$8 sps:$4 sm:$0xff]  }
 0x487   :  { %10433 = vmatprep.subr.bf16.mxu0 %v14036_v43  ;;  %v14115_v43 = vld [vmem:[#allocation2 + $0x2714] ss:$8 sps:$4 sm:$0xff]  }
 0x489   :  { %9573 = vmatpush1.bf16.msra.mxu1 %v14031_v61  ;;  %v15005_v61 = vrot.slane %v1654_v18, %v14606_v51  ;;  %v14190_v18 = vld [vmem:[#allocation2 + $0x12e4] ss:$8 sps:$4 sm:$0xff]  }
 0x48a   :  { %10434 = vmatpush1.bf16.msra.mxu0 %v14034_v44  ;;  %9574 = vmatprep.subr.bf16.mxu1 %v14039_v62  ;;  %v1931_v44 = vcombine.high %v14987_v56, %v14987_v56  ;;  %v14118_v62 = vld [vmem:[#allocation2 + $0x1224] ss:$8 sps:$4 sm:$0xff]   ;;  %v14124_v56 = vld [vmem:[#allocation2 + $0x1234] ss:$8 sps:$4 sm:$0xff]  }
 0x48b   :  { %10435 = vmatprep.subr.bf16.mxu0 %v14042_v27  ;;  %v14121_v27 = vld [vmem:[#allocation2 + $0x2724] ss:$8 sps:$4 sm:$0xff]  }
 0x48d   :  { %9575 = vmatpush1.bf16.msra.mxu1 %v14037_v0  ;;  %v14116_v0 = vld [vmem:[#allocation2 + $0x1220] ss:$8 sps:$4 sm:$0xff]  }
 0x48e   :  { %10436 = vmatpush1.bf16.msra.mxu0 %v14040_v48  ;;  %9576 = vmatprep.subr.bf16.mxu1 %v14045_v37  ;;  %v14119_v48 = vld [vmem:[#allocation2 + $0x2720] ss:$8 sps:$4 sm:$0xff]   ;;  %v14127_v37 = vld [vmem:[#allocation2 + $0x2734] ss:$8 sps:$4 sm:$0xff]  }
 0x48f   :  { %10437 = vmatprep.subr.bf16.mxu0 %v14048_v6  ;;  %v14122_v6 = vld [vmem:[#allocation2 + $0x1230] ss:$8 sps:$4 sm:$0xff]  }
 0x491   :  { %9577 = vmatpush1.bf16.msra.mxu1 %v14043_v30  ;;  %v14125_v30 = vld [vmem:[#allocation2 + $0x2730] ss:$8 sps:$4 sm:$0xff]  }
 0x492   :  { %10438 = vmatpush1.bf16.msra.mxu0 %v14046_v53  ;;  %9578 = vmatprep.subr.bf16.mxu1 %v14051_v8  ;;  %v14130_v53 = vld [vmem:[#allocation2 + $0x1244] ss:$8 sps:$4 sm:$0xff]  }
 0x493   :  { %10439 = vmatprep.subr.bf16.mxu0 %v14054_v38  ;;  %v14133_v8 = vld [vmem:[#allocation2 + $0x2744] ss:$8 sps:$4 sm:$0xff]   ;;  %v14128_v38 = vld [vmem:[#allocation2 + $0x1240] ss:$8 sps:$4 sm:$0xff]  }
 0x495   :  { %9579 = vmatpush1.bf16.msra.mxu1 %v14049_v9  ;;  %v14131_v9 = vld [vmem:[#allocation2 + $0x2740] ss:$8 sps:$4 sm:$0xff]  }
 0x496   :  { %10440 = vmatpush1.bf16.msra.mxu0 %v14052_v12  ;;  %9580 = vmatprep.subr.bf16.mxu1 %v14057_v13  ;;  %v14136_v12 = vld [vmem:[#allocation2 + $0x1254] ss:$8 sps:$4 sm:$0xff]  }
 0x497   :  { %10441 = vmatprep.subr.bf16.mxu0 %v14060_v16  ;;  %v14139_v13 = vld [vmem:[#allocation2 + $0x2754] ss:$8 sps:$4 sm:$0xff]   ;;  %v14134_v16 = vld [vmem:[#allocation2 + $0x1250] ss:$8 sps:$4 sm:$0xff]  }
 0x499   :  { %9581 = vmatpush1.bf16.msra.mxu1 %v14055_v60  ;;  %v14137_v60 = vld [vmem:[#allocation2 + $0x2750] ss:$8 sps:$4 sm:$0xff]  }
 0x49a   :  { %10442 = vmatpush1.bf16.msra.mxu0 %v14058_v19  ;;  %9582 = vmatprep.subr.bf16.mxu1 %v14063_v2  ;;  %v14142_v19 = vld [vmem:[#allocation2 + $0x1264] ss:$8 sps:$4 sm:$0xff]  }
 0x49b   :  { %10443 = vmatprep.subr.bf16.mxu0 %v14066_v40  ;;  %v14145_v2 = vld [vmem:[#allocation2 + $0x2764] ss:$8 sps:$4 sm:$0xff]   ;;  %v14140_v40 = vld [vmem:[#allocation2 + $0x1260] ss:$8 sps:$4 sm:$0xff]  }
 0x49d   :  { %9583 = vmatpush1.bf16.msra.mxu1 %v14061_v22  ;;  %v14143_v22 = vld [vmem:[#allocation2 + $0x2760] ss:$8 sps:$4 sm:$0xff]  }
 0x49e   :  { %10444 = vmatpush1.bf16.msra.mxu0 %v14064_v23  ;;  %9584 = vmatprep.subr.bf16.mxu1 %v14069_v7  ;;  %v14148_v23 = vld [vmem:[#allocation2 + $0x1274] ss:$8 sps:$4 sm:$0xff]  }
 0x49f   :  { %10445 = vmatprep.subr.bf16.mxu0 %v14072_v26  ;;  %v14151_v7 = vld [vmem:[#allocation2 + $0x2774] ss:$8 sps:$4 sm:$0xff]   ;;  %v14146_v26 = vld [vmem:[#allocation2 + $0x1270] ss:$8 sps:$4 sm:$0xff]  }
 0x4a1   :  { %9585 = vmatpush1.bf16.msra.mxu1 %v14067_v29  ;;  %v14149_v29 = vld [vmem:[#allocation2 + $0x2770] ss:$8 sps:$4 sm:$0xff]  }
 0x4a2   :  { %10446 = vmatpush1.bf16.msra.mxu0 %v14070_v32  ;;  %9586 = vmatprep.subr.bf16.mxu1 %v14075_v28  ;;  %v14154_v32 = vld [vmem:[#allocation2 + $0x1284] ss:$8 sps:$4 sm:$0xff]  }
 0x4a3   :  { %10447 = vmatprep.subr.bf16.mxu0 %v14078_v33  ;;  %v14157_v28 = vld [vmem:[#allocation2 + $0x2784] ss:$8 sps:$4 sm:$0xff]   ;;  %v14152_v33 = vld [vmem:[#allocation2 + $0x1280] ss:$8 sps:$4 sm:$0xff]  }
 0x4a5   :  { %9587 = vmatpush1.bf16.msra.mxu1 %v14073_v34  ;;  %v14155_v34 = vld [vmem:[#allocation2 + $0x2780] ss:$8 sps:$4 sm:$0xff]  }
 0x4a6   :  { %10448 = vmatpush1.bf16.msra.mxu0 %v14076_v54  ;;  %9588 = vmatprep.subr.bf16.mxu1 %v14081_v17  ;;  %v14160_v54 = vld [vmem:[#allocation2 + $0x1294] ss:$8 sps:$4 sm:$0xff]  }
 0x4a7   :  { %10449 = vmatprep.subr.bf16.mxu0 %v14084_v31  ;;  %v14163_v17 = vld [vmem:[#allocation2 + $0x2794] ss:$8 sps:$4 sm:$0xff]   ;;  %v14158_v31 = vld [vmem:[#allocation2 + $0x1290] ss:$8 sps:$4 sm:$0xff]  }
 0x4a9   :  { %9589 = vmatpush1.bf16.msra.mxu1 %v14079_v41  ;;  %v14161_v41 = vld [vmem:[#allocation2 + $0x2790] ss:$8 sps:$4 sm:$0xff]  }
 0x4aa   :  { %10450 = vmatpush1.bf16.msra.mxu0 %v14082_v42  ;;  %9590 = vmatprep.subr.bf16.mxu1 %v14087_v21  ;;  %v14166_v42 = vld [vmem:[#allocation2 + $0x12a4] ss:$8 sps:$4 sm:$0xff]  }
 0x4ab   :  { %10451 = vmatprep.subr.bf16.mxu0 %v14090_v63  ;;  %v14169_v21 = vld [vmem:[#allocation2 + $0x27a4] ss:$8 sps:$4 sm:$0xff]   ;;  %v14164_v63 = vld [vmem:[#allocation2 + $0x12a0] ss:$8 sps:$4 sm:$0xff]  }
 0x4ad   :  { %9591 = vmatpush1.bf16.msra.mxu1 %v14085_v20  ;;  %v14167_v20 = vld [vmem:[#allocation2 + $0x27a0] ss:$8 sps:$4 sm:$0xff]  }
 0x4ae   :  { %10452 = vmatpush1.bf16.msra.mxu0 %v14088_v4  ;;  %9592 = vmatprep.subr.bf16.mxu1 %v14093_v45  ;;  %v14172_v4 = vld [vmem:[#allocation2 + $0x12b4] ss:$8 sps:$4 sm:$0xff]  }
 0x4af   :  { %10453 = vmatprep.subr.bf16.mxu0 %v14096_v35  ;;  %v14175_v45 = vld [vmem:[#allocation2 + $0x27b4] ss:$8 sps:$4 sm:$0xff]   ;;  %v14170_v35 = vld [vmem:[#allocation2 + $0x12b0] ss:$8 sps:$4 sm:$0xff]  }
 0x4b1   :  { %9593 = vmatpush1.bf16.msra.mxu1 %v14091_v47  ;;  %v14178_v47 = vld [vmem:[#allocation2 + $0x12c4] ss:$8 sps:$4 sm:$0xff]  }
 0x4b2   :  { %10454 = vmatpush1.bf16.msra.mxu0 %v14094_v49  ;;  %9594 = vmatprep.subr.bf16.mxu1 %v14099_v50  ;;  %v14181_v49 = vld [vmem:[#allocation2 + $0x27c4] ss:$8 sps:$4 sm:$0xff]   ;;  %v14176_v50 = vld [vmem:[#allocation2 + $0x12c0] ss:$8 sps:$4 sm:$0xff]  }
 0x4b3   :  { %10455 = vmatprep.subr.bf16.mxu0 %v14102_v1  ;;  %v14179_v1 = vld [vmem:[#allocation2 + $0x27c0] ss:$8 sps:$4 sm:$0xff]  }
 0x4b5   :  { %9595 = vmatpush1.bf16.msra.mxu1 %v14097_v11  ;;  %v14184_v11 = vld [vmem:[#allocation2 + $0x12d4] ss:$8 sps:$4 sm:$0xff]  }
 0x4b6   :  { %10456 = vmatpush1.bf16.msra.mxu0 %v14100_v55  ;;  %9605 = vmatprep.subr.bf16.mxu1 %v14105_v52  ;;  %v14187_v55 = vld [vmem:[#allocation2 + $0x27d4] ss:$8 sps:$4 sm:$0xff]   ;;  %v14182_v52 = vld [vmem:[#allocation2 + $0x12d0] ss:$8 sps:$4 sm:$0xff]  }
 0x4b7   :  { %10466 = vmatprep.subr.bf16.mxu0 %v14109_v36  ;;  %v14185_v36 = vld [vmem:[#allocation2 + $0x27d0] ss:$8 sps:$4 sm:$0xff]  }
 0x4b8   :  { %9597 = vmatmul.mubr.bf16.vlgmr.msra.gmra.mrb[0].mxu1 %v1683_v25  ;;  %v14193_v25 = vld [vmem:[#allocation2 + $0x27e4] ss:$8 sps:$4 sm:$0xff]  }
 0x4b9   :  { %10458 = vmatmul.mubr.bf16.vlgmr.msra.gmra.mrb[0].mxu0 %v15002_v57  ;;  %9606 = vmatpush1.bf16.msra.mxu1 %v14103_v58  ;;  %v15014_v58 = vld [vmem:[%s15165_s0 + $0x50] sm:$0x1f] }
 0x4ba   :  { %10467 = vmatpush1.bf16.msra.mxu0 %v14107_v59  ;;  %9607 = vmatprep.subr.bf16.mxu1 %v14112_v10  ;;  %v14188_v59 = vld [vmem:[#allocation2 + $0x12e0] ss:$8 sps:$4 sm:$0xff]  }
 0x4bb   :  { %10468 = vmatprep.subr.bf16.mxu0 %v14115_v43  ;;  %9637 = vmatprep.mubr.bf16.mxu1 %v15005_v61  ;;  %v14191_v10 = vld [vmem:[#allocation2 + $0x27e0] ss:$8 sps:$4 sm:$0xff]   ;;  %v14196_v43 = vld [vmem:[#allocation2 + $0x12f4] ss:$8 sps:$4 sm:$0xff]  }
 0x4bc   :  { %10498 = vmatprep.mubr.bf16.mxu0 %v1931_v44  ;;  %v14199_v44 = vld [vmem:[#allocation2 + $0x27f4] ss:$8 sps:$4 sm:$0xff]  }
 0x4bd   :  { %9608 = vmatpush1.bf16.msra.mxu1 %v14110_v39  ;;  %v15018_v39 = vrot.slane %v15014_v58, %v14606_v51 }
 0x4be   :  { %10469 = vmatpush1.bf16.msra.mxu0 %v14113_v24  ;;  %9609 = vmatprep.subr.bf16.mxu1 %v14118_v62  ;;  %v14194_v24 = vld [vmem:[#allocation2 + $0x12f0] ss:$8 sps:$4 sm:$0xff]  }
 0x4bf   :  { %10470 = vmatprep.subr.bf16.mxu0 %v14121_v27  ;;  %v14197_v62 = vld [vmem:[#allocation2 + $0x27f0] ss:$8 sps:$4 sm:$0xff]   ;;  %v14203_v27 = vld [vmem:[#allocation2 + $0x1304] ss:$8 sps:$4 sm:$0xff]  }
 0x4c1   :  { %9610 = vmatpush1.bf16.msra.mxu1 %v14116_v0  ;;  %v14206_v0 = vld [vmem:[#allocation2 + $0x2804] ss:$8 sps:$4 sm:$0xff]  }
 0x4c2   :  { %10471 = vmatpush1.bf16.msra.mxu0 %v14119_v48  ;;  %9611 = vmatprep.subr.bf16.mxu1 %v14124_v56  ;;  %v1947_v48 = vcombine.high %v15018_v39, %v15018_v39  ;;  %v15024_v56 = vrot.slane %v14994_v5, %v14606_v51  ;;  %v14207_v5 = vld [vmem:[#allocation2 + $0x1310] ss:$8 sps:$4 sm:$0xff]  }
 0x4c3   :  { %10472 = vmatprep.subr.bf16.mxu0 %v14127_v37  ;;  %v1929_v37 = vcombine.high %v15002_v57, %v15002_v57  ;;  %v14210_v57 = vld [vmem:[#allocation2 + $0x2810] ss:$8 sps:$4 sm:$0xff]  }
 0x4c5   :  { %9612 = vmatpush1.bf16.msra.mxu1 %v14122_v6  ;;  %v14201_v6 = vld [vmem:[#allocation2 + $0x1300] ss:$8 sps:$4 sm:$0xff]  }
 0x4c6   :  { %10473 = vmatpush1.bf16.msra.mxu0 %v14125_v30  ;;  %9613 = vmatprep.subr.bf16.mxu1 %v14130_v53  ;;  %v14204_v30 = vld [vmem:[#allocation2 + $0x2800] ss:$8 sps:$4 sm:$0xff]   ;;  %v14209_v53 = vld [vmem:[#allocation2 + $0x1314] ss:$8 sps:$4 sm:$0xff]  }
 0x4c7   :  { %10474 = vmatprep.subr.bf16.mxu0 %v14133_v8  ;;  %v14212_v8 = vld [vmem:[#allocation2 + $0x2814] ss:$8 sps:$4 sm:$0xff]  }
 0x4c9   :  { %9614 = vmatpush1.bf16.msra.mxu1 %v14128_v38  ;;  %v1686_v38 = vcombine.high %v15005_v61, %v15005_v61  ;;  %v14213_v61 = vld [vmem:[#allocation2 + $0x1320] ss:$8 sps:$4 sm:$0xff]  }
 0x4ca   :  { %10475 = vmatpush1.bf16.msra.mxu0 %v14131_v9  ;;  %9615 = vmatprep.subr.bf16.mxu1 %v14136_v12  ;;  %v15031_v9 = vrot.slane %v1947_v48, %v14606_v51  ;;  %v14215_v12 = vld [vmem:[#allocation2 + $0x1324] ss:$8 sps:$4 sm:$0xff]   ;;  %v14282_v48 = vld [vmem:[#allocation2 + $0x28d0] ss:$8 sps:$4 sm:$0xff]  }
 0x4cb   :  { %10476 = vmatprep.subr.bf16.mxu0 %v14139_v13  ;;  %v14218_v13 = vld [vmem:[#allocation2 + $0x2824] ss:$8 sps:$4 sm:$0xff]  }
 0x4cd   :  { %9616 = vmatpush1.bf16.msra.mxu1 %v14134_v16  ;;  %v14216_v16 = vld [vmem:[#allocation2 + $0x2820] ss:$8 sps:$4 sm:$0xff]  }
 0x4ce   :  { %10477 = vmatpush1.bf16.msra.mxu0 %v14137_v60  ;;  %9617 = vmatprep.subr.bf16.mxu1 %v14142_v19  ;;  %v14221_v60 = vld [vmem:[#allocation2 + $0x1334] ss:$8 sps:$4 sm:$0xff]  }
 0x4cf   :  { %10478 = vmatprep.subr.bf16.mxu0 %v14145_v2  ;;  %v14224_v19 = vld [vmem:[#allocation2 + $0x2834] ss:$8 sps:$4 sm:$0xff]   ;;  %v14219_v2 = vld [vmem:[#allocation2 + $0x1330] ss:$8 sps:$4 sm:$0xff]  }
 0x4d1   :  { %9618 = vmatpush1.bf16.msra.mxu1 %v14140_v40  ;;  %v14222_v40 = vld [vmem:[#allocation2 + $0x2830] ss:$8 sps:$4 sm:$0xff]  }
 0x4d2   :  { %10479 = vmatpush1.bf16.msra.mxu0 %v14143_v22  ;;  %9619 = vmatprep.subr.bf16.mxu1 %v14148_v23  ;;  %v14227_v22 = vld [vmem:[#allocation2 + $0x1344] ss:$8 sps:$4 sm:$0xff]  }
 0x4d3   :  { %10480 = vmatprep.subr.bf16.mxu0 %v14151_v7  ;;  %v14230_v23 = vld [vmem:[#allocation2 + $0x2844] ss:$8 sps:$4 sm:$0xff]   ;;  %v14225_v7 = vld [vmem:[#allocation2 + $0x1340] ss:$8 sps:$4 sm:$0xff]  }
 0x4d5   :  { %9620 = vmatpush1.bf16.msra.mxu1 %v14146_v26  ;;  %v14228_v26 = vld [vmem:[#allocation2 + $0x2840] ss:$8 sps:$4 sm:$0xff]  }
 0x4d6   :  { %10481 = vmatpush1.bf16.msra.mxu0 %v14149_v29  ;;  %9621 = vmatprep.subr.bf16.mxu1 %v14154_v32  ;;  %v14233_v29 = vld [vmem:[#allocation2 + $0x1354] ss:$8 sps:$4 sm:$0xff]  }
 0x4d7   :  { %10482 = vmatprep.subr.bf16.mxu0 %v14157_v28  ;;  %v14236_v32 = vld [vmem:[#allocation2 + $0x2854] ss:$8 sps:$4 sm:$0xff]   ;;  %v14231_v28 = vld [vmem:[#allocation2 + $0x1350] ss:$8 sps:$4 sm:$0xff]  }
 0x4d9   :  { %9622 = vmatpush1.bf16.msra.mxu1 %v14152_v33  ;;  %v14234_v33 = vld [vmem:[#allocation2 + $0x2850] ss:$8 sps:$4 sm:$0xff]  }
 0x4da   :  { %10483 = vmatpush1.bf16.msra.mxu0 %v14155_v34  ;;  %9623 = vmatprep.subr.bf16.mxu1 %v14160_v54  ;;  %v14239_v34 = vld [vmem:[#allocation2 + $0x1364] ss:$8 sps:$4 sm:$0xff]  }
 0x4db   :  { %10484 = vmatprep.subr.bf16.mxu0 %v14163_v17  ;;  %v14242_v54 = vld [vmem:[#allocation2 + $0x2864] ss:$8 sps:$4 sm:$0xff]   ;;  %v14237_v17 = vld [vmem:[#allocation2 + $0x1360] ss:$8 sps:$4 sm:$0xff]  }
 0x4dd   :  { %9624 = vmatpush1.bf16.msra.mxu1 %v14158_v31  ;;  %v14240_v31 = vld [vmem:[#allocation2 + $0x2860] ss:$8 sps:$4 sm:$0xff]  }
 0x4de   :  { %10485 = vmatpush1.bf16.msra.mxu0 %v14161_v41  ;;  %9625 = vmatprep.subr.bf16.mxu1 %v14166_v42  ;;  %v14245_v41 = vld [vmem:[#allocation2 + $0x1374] ss:$8 sps:$4 sm:$0xff]  }
 0x4df   :  { %10486 = vmatprep.subr.bf16.mxu0 %v14169_v21  ;;  %v14248_v42 = vld [vmem:[#allocation2 + $0x2874] ss:$8 sps:$4 sm:$0xff]   ;;  %v14243_v21 = vld [vmem:[#allocation2 + $0x1370] ss:$8 sps:$4 sm:$0xff]  }
 0x4e1   :  { %9626 = vmatpush1.bf16.msra.mxu1 %v14164_v63  ;;  %v14246_v63 = vld [vmem:[#allocation2 + $0x2870] ss:$8 sps:$4 sm:$0xff]  }
 0x4e2   :  { %10487 = vmatpush1.bf16.msra.mxu0 %v14167_v20  ;;  %9627 = vmatprep.subr.bf16.mxu1 %v14172_v4  ;;  %v14251_v20 = vld [vmem:[#allocation2 + $0x1384] ss:$8 sps:$4 sm:$0xff]  }
 0x4e3   :  { %10488 = vmatprep.subr.bf16.mxu0 %v14175_v45  ;;  %v14254_v4 = vld [vmem:[#allocation2 + $0x2884] ss:$8 sps:$4 sm:$0xff]   ;;  %v14249_v45 = vld [vmem:[#allocation2 + $0x1380] ss:$8 sps:$4 sm:$0xff]  }
 0x4e5   :  { %9628 = vmatpush1.bf16.msra.mxu1 %v14170_v35  ;;  %v14252_v35 = vld [vmem:[#allocation2 + $0x2880] ss:$8 sps:$4 sm:$0xff]  }
 0x4e6   :  { %10489 = vmatpush1.bf16.msra.mxu0 %v14173_v14  ;;  %9629 = vmatprep.subr.bf16.mxu1 %v14178_v47  ;;  %v14257_v14 = vld [vmem:[#allocation2 + $0x1394] ss:$8 sps:$4 sm:$0xff]  }
 0x4e7   :  { %10490 = vmatprep.subr.bf16.mxu0 %v14181_v49  ;;  %v14260_v47 = vld [vmem:[#allocation2 + $0x2894] ss:$8 sps:$4 sm:$0xff]   ;;  %v14255_v49 = vld [vmem:[#allocation2 + $0x1390] ss:$8 sps:$4 sm:$0xff]  }
 0x4e9   :  { %9630 = vmatpush1.bf16.msra.mxu1 %v14176_v50  ;;  %v14258_v50 = vld [vmem:[#allocation2 + $0x2890] ss:$8 sps:$4 sm:$0xff]  }
 0x4ea   :  { %10491 = vmatpush1.bf16.msra.mxu0 %v14179_v1  ;;  %9631 = vmatprep.subr.bf16.mxu1 %v14184_v11  ;;  %v14263_v1 = vld [vmem:[#allocation2 + $0x13a4] ss:$8 sps:$4 sm:$0xff]  }
 0x4eb   :  { %10492 = vmatprep.subr.bf16.mxu0 %v14187_v55  ;;  %v14266_v11 = vld [vmem:[#allocation2 + $0x28a4] ss:$8 sps:$4 sm:$0xff]   ;;  %v14261_v55 = vld [vmem:[#allocation2 + $0x13a0] ss:$8 sps:$4 sm:$0xff]  }
 0x4ed   :  { %9632 = vmatpush1.bf16.msra.mxu1 %v14182_v52  ;;  %v14264_v52 = vld [vmem:[#allocation2 + $0x28a0] ss:$8 sps:$4 sm:$0xff]  }
 0x4ee   :  { %10493 = vmatpush1.bf16.msra.mxu0 %v14185_v36  ;;  %9633 = vmatprep.subr.bf16.mxu1 %v14190_v18  ;;  %v14269_v36 = vld [vmem:[#allocation2 + $0x13b4] ss:$8 sps:$4 sm:$0xff]  }
 0x4ef   :  { %10494 = vmatprep.subr.bf16.mxu0 %v14193_v25  ;;  %v14272_v18 = vld [vmem:[#allocation2 + $0x28b4] ss:$8 sps:$4 sm:$0xff]   ;;  %v14267_v25 = vld [vmem:[#allocation2 + $0x13b0] ss:$8 sps:$4 sm:$0xff]  }
 0x4f1   :  { %9634 = vmatpush1.bf16.msra.mxu1 %v14188_v59  ;;  %v14270_v59 = vld [vmem:[#allocation2 + $0x28b0] ss:$8 sps:$4 sm:$0xff]  }
 0x4f2   :  { %10495 = vmatpush1.bf16.msra.mxu0 %v14191_v10  ;;  %9635 = vmatprep.subr.bf16.mxu1 %v14196_v43  ;;  %v14275_v10 = vld [vmem:[#allocation2 + $0x13c4] ss:$8 sps:$4 sm:$0xff]  }
 0x4f3   :  { %10496 = vmatprep.subr.bf16.mxu0 %v14199_v44  ;;  %v14278_v43 = vld [vmem:[#allocation2 + $0x28c4] ss:$8 sps:$4 sm:$0xff]   ;;  %v14273_v44 = vld [vmem:[#allocation2 + $0x13c0] ss:$8 sps:$4 sm:$0xff]  }
 0x4f5   :  { %9636 = vmatpush1.bf16.msra.mxu1 %v14194_v24  ;;  %v14276_v24 = vld [vmem:[#allocation2 + $0x28c0] ss:$8 sps:$4 sm:$0xff]  }
 0x4f6   :  { %10497 = vmatpush1.bf16.msra.mxu0 %v14197_v62  ;;  %9646 = vmatprep.subr.bf16.mxu1 %v14203_v27  ;;  %v14281_v62 = vld [vmem:[#allocation2 + $0x13d4] ss:$8 sps:$4 sm:$0xff]  }
 0x4f7   :  { %10507 = vmatprep.subr.bf16.mxu0 %v14206_v0  ;;  %v14284_v27 = vld [vmem:[#allocation2 + $0x28d4] ss:$8 sps:$4 sm:$0xff]   ;;  %v14279_v0 = vld [vmem:[#allocation2 + $0x13d0] ss:$8 sps:$4 sm:$0xff]  }
 0x4f8   :  { %9638 = vmatmul.mubr.bf16.vlgmr.msra.gmra.mrb[0].mxu1 %v15024_v56 }
 0x4f9   :  { %10499 = vmatmul.mubr.bf16.vlgmr.msra.gmra.mrb[0].mxu0 %v1929_v37  ;;  %9647 = vmatpush1.bf16.msra.mxu1 %v14201_v6  ;;  %v14287_v37 = vld [vmem:[#allocation2 + $0x13e4] ss:$8 sps:$4 sm:$0xff]  }
 0x4fa   :  { %10508 = vmatpush1.bf16.msra.mxu0 %v14204_v30  ;;  %9648 = vmatprep.subr.bf16.mxu1 %v14209_v53  ;;  %v14290_v6 = vld [vmem:[#allocation2 + $0x28e4] ss:$8 sps:$4 sm:$0xff]   ;;  %v14285_v30 = vld [vmem:[#allocation2 + $0x13e0] ss:$8 sps:$4 sm:$0xff]  }
 0x4fb   :  { %10509 = vmatprep.subr.bf16.mxu0 %v14212_v8  ;;  %9678 = vmatprep.mubr.bf16.mxu1 %v1686_v38  ;;  %v14288_v53 = vld [vmem:[#allocation2 + $0x28e0] ss:$8 sps:$4 sm:$0xff]   ;;  %v14293_v8 = vld [vmem:[#allocation2 + $0x13f4] ss:$8 sps:$4 sm:$0xff]  }
 0x4fc   :  { %10539 = vmatprep.mubr.bf16.mxu0 %v15031_v9  ;;  %v14296_v38 = vld [vmem:[#allocation2 + $0x28f4] ss:$8 sps:$4 sm:$0xff]  }
 0x4fd   :  { %9649 = vmatpush1.bf16.msra.mxu1 %v14207_v5  ;;  %v14291_v5 = vld [vmem:[#allocation2 + $0x13f0] ss:$8 sps:$4 sm:$0xff]  }
 0x4fe   :  { %10510 = vmatpush1.bf16.msra.mxu0 %v14210_v57  ;;  %9650 = vmatprep.subr.bf16.mxu1 %v14215_v12  ;;  %v14294_v57 = vld [vmem:[#allocation2 + $0x28f0] ss:$8 sps:$4 sm:$0xff]   ;;  %v14299_v12 = vld [vmem:[#allocation2 + $0x1404] ss:$8 sps:$4 sm:$0xff]  }
 0x4ff   :  { %10511 = vmatprep.subr.bf16.mxu0 %v14218_v13  ;;  %v14303_v13 = vld [vmem:[#allocation2 + $0x2904] ss:$8 sps:$4 sm:$0xff]  }
 0x501   :  { %9651 = vmatpush1.bf16.msra.mxu1 %v14213_v61  ;;  %v1684_v61 = vcombine.high %v15024_v56, %v15024_v56  ;;  %v14304_v56 = vld [vmem:[#allocation2 + $0x1410] ss:$8 sps:$4 sm:$0xff]  }
 0x502   :  { %10512 = vmatpush1.bf16.msra.mxu0 %v14216_v16  ;;  %9652 = vmatprep.subr.bf16.mxu1 %v14221_v60  ;;  %v15039_v16 = vrot.slane %v15018_v39, %v14606_v51  ;;  %v14297_v60 = vld [vmem:[#allocation2 + $0x1400] ss:$8 sps:$4 sm:$0xff]   ;;  %v14312_v39 = vld [vmem:[#allocation2 + $0x1424] ss:$8 sps:$4 sm:$0xff]  }
 0x503   :  { %10513 = vmatprep.subr.bf16.mxu0 %v14224_v19  ;;  %v14301_v19 = vld [vmem:[#allocation2 + $0x2900] ss:$8 sps:$4 sm:$0xff]  }
 0x505   :  { %9653 = vmatpush1.bf16.msra.mxu1 %v14219_v2  ;;  %v14306_v2 = vld [vmem:[#allocation2 + $0x1414] ss:$8 sps:$4 sm:$0xff]  }
 0x506   :  { %10514 = vmatpush1.bf16.msra.mxu0 %v14222_v40  ;;  %9654 = vmatprep.subr.bf16.mxu1 %v14227_v22  ;;  %v14309_v40 = vld [vmem:[#allocation2 + $0x2914] ss:$8 sps:$4 sm:$0xff]   ;;  %v1970_v22 = vcombine.high %v15031_v9, %v15031_v9 }
 0x507   :  { %10515 = vmatprep.subr.bf16.mxu0 %v14230_v23  ;;  %v14307_v23 = vld [vmem:[#allocation2 + $0x2910] ss:$8 sps:$4 sm:$0xff]   ;;  %v14318_v9 = vld [vmem:[#allocation2 + $0x1434] ss:$8 sps:$4 sm:$0xff]  }
 0x509   :  { %9655 = vmatpush1.bf16.msra.mxu1 %v14225_v7  ;;  %v14315_v7 = vld [vmem:[#allocation2 + $0x2924] ss:$8 sps:$4 sm:$0xff]  }
 0x50a   :  { %10516 = vmatpush1.bf16.msra.mxu0 %v14228_v26  ;;  %9656 = vmatprep.subr.bf16.mxu1 %v14233_v29  ;;  %v14310_v26 = vld [vmem:[#allocation2 + $0x1420] ss:$8 sps:$4 sm:$0xff]  }
 0x50b   :  { %10517 = vmatprep.subr.bf16.mxu0 %v14236_v32  ;;  %v14313_v29 = vld [vmem:[#allocation2 + $0x2920] ss:$8 sps:$4 sm:$0xff]   ;;  %v14321_v32 = vld [vmem:[#allocation2 + $0x2934] ss:$8 sps:$4 sm:$0xff]  }
 0x50d   :  { %9657 = vmatpush1.bf16.msra.mxu1 %v14231_v28  ;;  %v14316_v28 = vld [vmem:[#allocation2 + $0x1430] ss:$8 sps:$4 sm:$0xff]  }
 0x50e   :  { %10518 = vmatpush1.bf16.msra.mxu0 %v14234_v33  ;;  %9658 = vmatprep.subr.bf16.mxu1 %v14239_v34  ;;  %v14319_v33 = vld [vmem:[#allocation2 + $0x2930] ss:$8 sps:$4 sm:$0xff]   ;;  %v14324_v34 = vld [vmem:[#allocation2 + $0x1444] ss:$8 sps:$4 sm:$0xff]  }
 0x50f   :  { %10519 = vmatprep.subr.bf16.mxu0 %v14242_v54  ;;  %v14327_v54 = vld [vmem:[#allocation2 + $0x2944] ss:$8 sps:$4 sm:$0xff]  }
 0x511   :  { %9659 = vmatpush1.bf16.msra.mxu1 %v14237_v17  ;;  %v14325_v17 = vld [vmem:[#allocation2 + $0x2940] ss:$8 sps:$4 sm:$0xff]  }
 0x512   :  { %10520 = vmatpush1.bf16.msra.mxu0 %v14240_v31  ;;  %9660 = vmatprep.subr.bf16.mxu1 %v14245_v41  ;;  %v14330_v31 = vld [vmem:[#allocation2 + $0x1454] ss:$8 sps:$4 sm:$0xff]  }
 0x513   :  { %10521 = vmatprep.subr.bf16.mxu0 %v14248_v42  ;;  %v14333_v41 = vld [vmem:[#allocation2 + $0x2954] ss:$8 sps:$4 sm:$0xff]   ;;  %v14328_v42 = vld [vmem:[#allocation2 + $0x1450] ss:$8 sps:$4 sm:$0xff]  }
 0x515   :  { %9661 = vmatpush1.bf16.msra.mxu1 %v14243_v21  ;;  %v14331_v21 = vld [vmem:[#allocation2 + $0x2950] ss:$8 sps:$4 sm:$0xff]  }
 0x516   :  { %10522 = vmatpush1.bf16.msra.mxu0 %v14246_v63  ;;  %9662 = vmatprep.subr.bf16.mxu1 %v14251_v20  ;;  %v14336_v63 = vld [vmem:[#allocation2 + $0x1464] ss:$8 sps:$4 sm:$0xff]  }
 0x517   :  { %10523 = vmatprep.subr.bf16.mxu0 %v14254_v4  ;;  %v14339_v20 = vld [vmem:[#allocation2 + $0x2964] ss:$8 sps:$4 sm:$0xff]   ;;  %v14334_v4 = vld [vmem:[#allocation2 + $0x1460] ss:$8 sps:$4 sm:$0xff]  }
 0x519   :  { %9663 = vmatpush1.bf16.msra.mxu1 %v14249_v45  ;;  %v14337_v45 = vld [vmem:[#allocation2 + $0x2960] ss:$8 sps:$4 sm:$0xff]  }
 0x51a   :  { %10524 = vmatpush1.bf16.msra.mxu0 %v14252_v35  ;;  %9664 = vmatprep.subr.bf16.mxu1 %v14257_v14  ;;  %v14342_v35 = vld [vmem:[#allocation2 + $0x1474] ss:$8 sps:$4 sm:$0xff]  }
 0x51b   :  { %10525 = vmatprep.subr.bf16.mxu0 %v14260_v47  ;;  %v14345_v14 = vld [vmem:[#allocation2 + $0x2974] ss:$8 sps:$4 sm:$0xff]   ;;  %v14340_v47 = vld [vmem:[#allocation2 + $0x1470] ss:$8 sps:$4 sm:$0xff]  }
 0x51d   :  { %9665 = vmatpush1.bf16.msra.mxu1 %v14255_v49  ;;  %v14343_v49 = vld [vmem:[#allocation2 + $0x2970] ss:$8 sps:$4 sm:$0xff]  }
 0x51e   :  { %10526 = vmatpush1.bf16.msra.mxu0 %v14258_v50  ;;  %9666 = vmatprep.subr.bf16.mxu1 %v14263_v1  ;;  %v14348_v50 = vld [vmem:[#allocation2 + $0x1484] ss:$8 sps:$4 sm:$0xff]  }
 0x51f   :  { %10527 = vmatprep.subr.bf16.mxu0 %v14266_v11  ;;  %v14351_v1 = vld [vmem:[#allocation2 + $0x2984] ss:$8 sps:$4 sm:$0xff]   ;;  %v14346_v11 = vld [vmem:[#allocation2 + $0x1480] ss:$8 sps:$4 sm:$0xff]  }
 0x521   :  { %9667 = vmatpush1.bf16.msra.mxu1 %v14261_v55  ;;  %v14349_v55 = vld [vmem:[#allocation2 + $0x2980] ss:$8 sps:$4 sm:$0xff]  }
 0x522   :  { %10528 = vmatpush1.bf16.msra.mxu0 %v14264_v52  ;;  %9668 = vmatprep.subr.bf16.mxu1 %v14269_v36  ;;  %v14354_v52 = vld [vmem:[#allocation2 + $0x1494] ss:$8 sps:$4 sm:$0xff]  }
 0x523   :  { %10529 = vmatprep.subr.bf16.mxu0 %v14272_v18  ;;  %v14357_v36 = vld [vmem:[#allocation2 + $0x2994] ss:$8 sps:$4 sm:$0xff]   ;;  %v14352_v18 = vld [vmem:[#allocation2 + $0x1490] ss:$8 sps:$4 sm:$0xff]  }
 0x525   :  { %9669 = vmatpush1.bf16.msra.mxu1 %v14267_v25  ;;  %v14355_v25 = vld [vmem:[#allocation2 + $0x2990] ss:$8 sps:$4 sm:$0xff]  }
 0x526   :  { %10530 = vmatpush1.bf16.msra.mxu0 %v14270_v59  ;;  %9670 = vmatprep.subr.bf16.mxu1 %v14275_v10  ;;  %v14360_v59 = vld [vmem:[#allocation2 + $0x14a4] ss:$8 sps:$4 sm:$0xff]  }
 0x527   :  { %10531 = vmatprep.subr.bf16.mxu0 %v14278_v43  ;;  %v14363_v10 = vld [vmem:[#allocation2 + $0x29a4] ss:$8 sps:$4 sm:$0xff]   ;;  %v14358_v43 = vld [vmem:[#allocation2 + $0x14a0] ss:$8 sps:$4 sm:$0xff]  }
 0x529   :  { %9671 = vmatpush1.bf16.msra.mxu1 %v14273_v44  ;;  %v14361_v44 = vld [vmem:[#allocation2 + $0x29a0] ss:$8 sps:$4 sm:$0xff]  }
 0x52a   :  { %10532 = vmatpush1.bf16.msra.mxu0 %v14276_v24  ;;  %9672 = vmatprep.subr.bf16.mxu1 %v14281_v62  ;;  %v14366_v24 = vld [vmem:[#allocation2 + $0x14b4] ss:$8 sps:$4 sm:$0xff]  }
 0x52b   :  { %10533 = vmatprep.subr.bf16.mxu0 %v14284_v27  ;;  %v14369_v62 = vld [vmem:[#allocation2 + $0x29b4] ss:$8 sps:$4 sm:$0xff]   ;;  %v14364_v27 = vld [vmem:[#allocation2 + $0x14b0] ss:$8 sps:$4 sm:$0xff]  }
 0x52d   :  { %9673 = vmatpush1.bf16.msra.mxu1 %v14279_v0  ;;  %v14367_v0 = vld [vmem:[#allocation2 + $0x29b0] ss:$8 sps:$4 sm:$0xff]  }
 0x52e   :  { %10534 = vmatpush1.bf16.msra.mxu0 %v14282_v48  ;;  %9674 = vmatprep.subr.bf16.mxu1 %v14287_v37  ;;  %v14372_v48 = vld [vmem:[#allocation2 + $0x14c4] ss:$8 sps:$4 sm:$0xff]  }
 0x52f   :  { %10535 = vmatprep.subr.bf16.mxu0 %v14290_v6  ;;  %v14375_v37 = vld [vmem:[#allocation2 + $0x29c4] ss:$8 sps:$4 sm:$0xff]   ;;  %v14370_v6 = vld [vmem:[#allocation2 + $0x14c0] ss:$8 sps:$4 sm:$0xff]  }
 0x531   :  { %9675 = vmatpush1.bf16.msra.mxu1 %v14285_v30  ;;  %v14373_v30 = vld [vmem:[#allocation2 + $0x29c0] ss:$8 sps:$4 sm:$0xff]  }
 0x532   :  { %10536 = vmatpush1.bf16.msra.mxu0 %v14288_v53  ;;  %9676 = vmatprep.subr.bf16.mxu1 %v14293_v8  ;;  %v14378_v53 = vld [vmem:[#allocation2 + $0x14d4] ss:$8 sps:$4 sm:$0xff]  }
 0x533   :  { %10537 = vmatprep.subr.bf16.mxu0 %v14296_v38  ;;  %v14381_v8 = vld [vmem:[#allocation2 + $0x29d4] ss:$8 sps:$4 sm:$0xff]   ;;  %v14376_v38 = vld [vmem:[#allocation2 + $0x14d0] ss:$8 sps:$4 sm:$0xff]  }
 0x535   :  { %9677 = vmatpush1.bf16.msra.mxu1 %v14291_v5  ;;  %v14379_v5 = vld [vmem:[#allocation2 + $0x29d0] ss:$8 sps:$4 sm:$0xff]  }
 0x536   :  { %10538 = vmatpush1.bf16.msra.mxu0 %v14294_v57  ;;  %9687 = vmatprep.subr.bf16.mxu1 %v14299_v12  ;;  %v14384_v57 = vld [vmem:[#allocation2 + $0x14e4] ss:$8 sps:$4 sm:$0xff]  }
 0x537   :  { %10548 = vmatprep.subr.bf16.mxu0 %v14303_v13  ;;  %v14387_v12 = vld [vmem:[#allocation2 + $0x29e4] ss:$8 sps:$4 sm:$0xff]   ;;  %v14382_v13 = vld [vmem:[#allocation2 + $0x14e0] ss:$8 sps:$4 sm:$0xff]  }
 0x538   :  { %9679 = vmatmul.mubr.bf16.vlgmr.msra.gmra.mrb[0].mxu1 %v1684_v61  ;;  %v14385_v61 = vld [vmem:[#allocation2 + $0x29e0] ss:$8 sps:$4 sm:$0xff]  }
 0x539   :  { %10540 = vmatmul.mubr.bf16.vlgmr.msra.gmra.mrb[0].mxu0 %v15039_v16  ;;  %9688 = vmatpush1.bf16.msra.mxu1 %v14297_v60  ;;  %v14390_v60 = vld [vmem:[#allocation2 + $0x14f4] ss:$8 sps:$4 sm:$0xff]  }
 0x53a   :  { %10549 = vmatpush1.bf16.msra.mxu0 %v14301_v19  ;;  %9689 = vmatprep.subr.bf16.mxu1 %v14306_v2  ;;  %v14393_v19 = vld [vmem:[#allocation2 + $0x29f4] ss:$8 sps:$4 sm:$0xff]   ;;  %v14388_v2 = vld [vmem:[#allocation2 + $0x14f0] ss:$8 sps:$4 sm:$0xff]  }
 0x53b   :  { %10550 = vmatprep.subr.bf16.mxu0 %v14309_v40  ;;  %9719 = vmatprep.mubr.bf16.mxu1 %v14623_v3  ;;  %v14322_v3 = vld [vmem:[#allocation2 + $0x1440] ss:$8 sps:$4 sm:$0xff]   ;;  %v14391_v40 = vld [vmem:[#allocation2 + $0x29f0] ss:$8 sps:$4 sm:$0xff]  }
 0x53c   :  { %10580 = vmatprep.mubr.bf16.mxu0 %v1970_v22  ;;  %v14396_v22 = vld [vmem:[#allocation2 + $0x2a04] ss:$8 sps:$4 sm:$0xff]  }
 0x53d   :  { %9690 = vmatpush1.bf16.msra.mxu1 %v14304_v56  ;;  %v1969_v56 = vcombine.high %v15039_v16, %v15039_v16  ;;  %v14403_v16 = vld [vmem:[#allocation2 + $0x2a30] ss:$8 sps:$4 sm:$0xff]  }
 0x53e   :  { %10551 = vmatpush1.bf16.msra.mxu0 %v14307_v23  ;;  %9691 = vmatprep.subr.bf16.mxu1 %v14312_v39  ;;  %v14394_v23 = vld [vmem:[#allocation2 + $0x2a00] ss:$8 sps:$4 sm:$0xff]   ;;  %v14399_v39 = vld [vmem:[#allocation2 + $0x2a14] ss:$8 sps:$4 sm:$0xff]  }
 0x53f   :  { %10552 = vmatprep.subr.bf16.mxu0 %v14315_v7  ;;  %v14397_v7 = vld [vmem:[#allocation2 + $0x2a10] ss:$8 sps:$4 sm:$0xff]  }
 0x541   :  { %9692 = vmatpush1.bf16.msra.mxu1 %v14310_v26  ;;  %v14528_v26 = vmov 0  }
 0x542   :  { %10553 = vmatpush1.bf16.msra.mxu0 %v14313_v29  ;;  %9693 = vmatprep.subr.bf16.mxu1 %v14318_v9  ;;  %v14402_v29 = vld [vmem:[#allocation2 + $0x2a24] ss:$8 sps:$4 sm:$0xff]   ;;  %v14400_v9 = vld [vmem:[#allocation2 + $0x2a20] ss:$8 sps:$4 sm:$0xff]  }
 0x543   :  { %10554 = vmatprep.subr.bf16.mxu0 %v14321_v32  ;;  %v14405_v32 = vld [vmem:[#allocation2 + $0x2a34] ss:$8 sps:$4 sm:$0xff]  }
 0x545   :  { %9694 = vmatpush1.bf16.msra.mxu1 %v14316_v28  ;;  %v14408_v28 = vld [vmem:[#allocation2 + $0x2a44] ss:$8 sps:$4 sm:$0xff]  }
 0x546   :  { %10555 = vmatpush1.bf16.msra.mxu0 %v14319_v33  ;;  %9695 = vmatprep.subr.bf16.mxu1 %v14324_v34  ;;  %v14406_v33 = vld [vmem:[#allocation2 + $0x2a40] ss:$8 sps:$4 sm:$0xff]   ;;  %v14411_v34 = vld [vmem:[#allocation2 + $0x2a54] ss:$8 sps:$4 sm:$0xff]  }
 0x547   :  { %10556 = vmatprep.subr.bf16.mxu0 %v14327_v54  ;;  %v14414_v54 = vld [vmem:[#allocation2 + $0x2a64] ss:$8 sps:$4 sm:$0xff]  }
 0x549   :  { %9696 = vmatpush1.bf16.msra.mxu1 %v14322_v3  ;;  %v1932_v3 = vcombine.high %v15014_v58, %v15014_v58  ;;  %v10649_v58 = vld [vmem:[%s15168_s3 + $0x88] sm:$0xff] }
 0x54a   :  { %10557 = vmatpush1.bf16.msra.mxu0 %v14325_v17  ;;  %9697 = vmatprep.subr.bf16.mxu1 %v14330_v31  ;;  %v14412_v17 = vld [vmem:[#allocation2 + $0x2a60] ss:$8 sps:$4 sm:$0xff]   ;;  %v14417_v31 = vld [vmem:[#allocation2 + $0x2a74] ss:$8 sps:$4 sm:$0xff]  }
 0x54b   :  { %10558 = vmatprep.subr.bf16.mxu0 %v14333_v41  ;;  %v1946_v41 = vrot.slane %v1932_v3, %v14606_v51 }
 0x54d   :  { %9698 = vmatpush1.bf16.msra.mxu1 %v14328_v42  ;;  %v14415_v42 = vld [vmem:[#allocation2 + $0x2a70] ss:$8 sps:$4 sm:$0xff]  }
 0x54e   :  { %10559 = vmatpush1.bf16.msra.mxu0 %v14331_v21  ;;  %9699 = vmatprep.subr.bf16.mxu1 %v14336_v63  ;;  %v1961_v21 = vrot.slane %v1946_v41, %v14606_v51  ;;  %v10648_v63 = vld [vmem:[%s15168_s3 + $0x80] sm:$0xff]  ;;  %v10650_v51 = vld [vmem:[%s15168_s3 + $0x90] sm:$0xff] }
 0x54f   :  { %10560 = vmatprep.subr.bf16.mxu0 %v14339_v20  ;;  %v10632_v20 = vld [vmem:[%s15168_s3] sm:$0xff] }
 0x551   :  { %9700 = vmatpush1.bf16.msra.mxu1 %v14334_v4  ;;  %v12159_v4 = vpack.c.bf16 %v10649_v58, %v10648_v63 }
 0x552   :  { %10561 = vmatpush1.bf16.msra.mxu0 %v14337_v45  ;;  %9701 = vmatprep.subr.bf16.mxu1 %v14342_v35  ;;  %v10633_v45 = vld [vmem:[%s15168_s3 + $0x8] sm:$0xff]  ;;  %v10651_v35 = vld [vmem:[%s15168_s3 + $0x98] sm:$0xff] }
 0x553   :  { %10562 = vmatprep.subr.bf16.mxu0 %v14345_v14  ;;  %v12161_v14 = vpack.c.bf16 %v10633_v45, %v10632_v20 }
 0x555   :  { %9702 = vmatpush1.bf16.msra.mxu1 %v14340_v47  ;;  %v12163_v47 = vpack.c.bf16 %v10651_v35, %v10650_v51  ;;  %v10664_v35 = vld [vmem:[#allocation7] sm:$0x1] }
 0x556   :  { %10563 = vmatpush1.bf16.msra.mxu0 %v14343_v49  ;;  %9703 = vmatprep.subr.bf16.mxu1 %v14348_v50  ;;  %v10634_v49 = vld [vmem:[%s15168_s3 + $0x10] sm:$0xff]  ;;  %v10635_v50 = vld [vmem:[%s15168_s3 + $0x18] sm:$0xff] }
 0x557   :  { %10564 = vmatprep.subr.bf16.mxu0 %v14351_v1  ;;  %v10652_v1 = vld [vmem:[%s15168_s3 + $0xa0] sm:$0xff] }
 0x559   :  { %9704 = vmatpush1.bf16.msra.mxu1 %v14346_v11  ;;  %v10653_v11 = vld [vmem:[%s15168_s3 + $0xa8] sm:$0xff] }
 0x55a   :  { %10565 = vmatpush1.bf16.msra.mxu0 %v14349_v55  ;;  %9705 = vmatprep.subr.bf16.mxu1 %v14354_v52  ;;  %v12165_v55 = vpack.c.bf16 %v10635_v50, %v10634_v49  ;;  %v12167_v52 = vpack.c.bf16 %v10653_v11, %v10652_v1 }
 0x55b   :  { %10566 = vmatprep.subr.bf16.mxu0 %v14357_v36  ;;  %v10636_v36 = vld [vmem:[%s15168_s3 + $0x20] sm:$0xff] }
 0x55d   :  { %9706 = vmatpush1.bf16.msra.mxu1 %v14352_v18  ;;  %v10637_v18 = vld [vmem:[%s15168_s3 + $0x28] sm:$0xff] }
 0x55e   :  { %10567 = vmatpush1.bf16.msra.mxu0 %v14355_v25  ;;  %9707 = vmatprep.subr.bf16.mxu1 %v14360_v59  ;;  %v10654_v25 = vld [vmem:[%s15168_s3 + $0xb0] sm:$0xff]  ;;  %v10655_v59 = vld [vmem:[%s15168_s3 + $0xb8] sm:$0xff] }
 0x55f   :  { %10568 = vmatprep.subr.bf16.mxu0 %v14363_v10  ;;  %v12169_v10 = vpack.c.bf16 %v10637_v18, %v10636_v36 }
 0x561   :  { %9708 = vmatpush1.bf16.msra.mxu1 %v14358_v43  ;;  %v12171_v43 = vpack.c.bf16 %v10655_v59, %v10654_v25 }
 0x562   :  { %10569 = vmatpush1.bf16.msra.mxu0 %v14361_v44  ;;  %9709 = vmatprep.subr.bf16.mxu1 %v14366_v24  ;;  %v10638_v44 = vld [vmem:[%s15168_s3 + $0x30] sm:$0xff]  ;;  %v10639_v24 = vld [vmem:[%s15168_s3 + $0x38] sm:$0xff] }
 0x563   :  { %10570 = vmatprep.subr.bf16.mxu0 %v14369_v62  ;;  %v10656_v62 = vld [vmem:[%s15168_s3 + $0xc0] sm:$0xff] }
 0x565   :  { %9710 = vmatpush1.bf16.msra.mxu1 %v14364_v27  ;;  %v10657_v27 = vld [vmem:[%s15168_s3 + $0xc8] sm:$0xff] }
 0x566   :  { %10571 = vmatpush1.bf16.msra.mxu0 %v14367_v0  ;;  %9711 = vmatprep.subr.bf16.mxu1 %v14372_v48  ;;  %v12173_v0 = vpack.c.bf16 %v10639_v24, %v10638_v44  ;;  %v12175_v48 = vpack.c.bf16 %v10657_v27, %v10656_v62 }
 0x567   :  { %10572 = vmatprep.subr.bf16.mxu0 %v14375_v37  ;;  %v10640_v37 = vld [vmem:[%s15168_s3 + $0x40] sm:$0xff] }
 0x569   :  { %9712 = vmatpush1.bf16.msra.mxu1 %v14370_v6  ;;  %v10641_v6 = vld [vmem:[%s15168_s3 + $0x48] sm:$0xff] }
 0x56a   :  { %10573 = vmatpush1.bf16.msra.mxu0 %v14373_v30  ;;  %9713 = vmatprep.subr.bf16.mxu1 %v14378_v53  ;;  %v10658_v30 = vld [vmem:[%s15168_s3 + $0xd0] sm:$0xff]  ;;  %v10659_v53 = vld [vmem:[%s15168_s3 + $0xd8] sm:$0xff] }
 0x56b   :  { %10574 = vmatprep.subr.bf16.mxu0 %v14381_v8  ;;  %v12177_v8 = vpack.c.bf16 %v10641_v6, %v10640_v37 }
 0x56d   :  { %9714 = vmatpush1.bf16.msra.mxu1 %v14376_v38  ;;  %v12179_v38 = vpack.c.bf16 %v10659_v53, %v10658_v30 }
 0x56e   :  { %10575 = vmatpush1.bf16.msra.mxu0 %v14379_v5  ;;  %9715 = vmatprep.subr.bf16.mxu1 %v14384_v57  ;;  %v10642_v5 = vld [vmem:[%s15168_s3 + $0x50] sm:$0xff]  ;;  %v10643_v57 = vld [vmem:[%s15168_s3 + $0x58] sm:$0xff] }
 0x56f   :  { %10576 = vmatprep.subr.bf16.mxu0 %v14387_v12  ;;  %v10660_v12 = vld [vmem:[%s15168_s3 + $0xe0] sm:$0xff] }
 0x571   :  { %9716 = vmatpush1.bf16.msra.mxu1 %v14382_v13  ;;  %v10661_v13 = vld [vmem:[%s15168_s3 + $0xe8] sm:$0xff] }
 0x572   :  { %10577 = vmatpush1.bf16.msra.mxu0 %v14385_v61  ;;  %9717 = vmatprep.subr.bf16.mxu1 %v14390_v60  ;;  %v12181_v61 = vpack.c.bf16 %v10643_v57, %v10642_v5  ;;  %v12183_v60 = vpack.c.bf16 %v10661_v13, %v10660_v12 }
 0x573   :  { %10578 = vmatprep.subr.bf16.mxu0 %v14393_v19  ;;  %v10644_v19 = vld [vmem:[%s15168_s3 + $0x60] sm:$0xff] }
 0x575   :  { %9718 = vmatpush1.bf16.msra.mxu1 %v14388_v2  ;;  %v10645_v2 = vld [vmem:[%s15168_s3 + $0x68] sm:$0xff] }
 0x576   :  { %10579 = vmatpush1.bf16.msra.mxu0 %v14391_v40  ;;  %12160 = vmatprep.subr.bf16.mxu1 %v12159_v4  ;;  %v12185_v40 = vpack.c.bf16 %v10645_v2, %v10644_v19 }
 0x577   :  { %10589 = vmatprep.subr.bf16.mxu0 %v14396_v22  ;;  %v10662_v22 = vld [vmem:[%s15168_s3 + $0xf0] sm:$0xff] }
 0x578   :  { %9720 = vmatmul.mubr.bf16.vlgmr.msra.gmra.mrb[0].mxu1 %v14632_v15  ;;  %v14409_v15 = vld [vmem:[#allocation2 + $0x2a50] ss:$8 sps:$4 sm:$0xff]  }
 0x579   :  { %10581 = vmatmul.mubr.bf16.vlgmr.msra.gmra.mrb[0].mxu0 %v1969_v56  ;;  %12162 = vmatpush3.bf16.msra.mxu1 %v12161_v14  ;;  %v10663_v56 = vld [vmem:[%s15168_s3 + $0xf8] sm:$0xff] }
 0x57a   :  { %10590 = vmatpush1.bf16.msra.mxu0 %v14394_v23  ;;  %10621 = vmatprep.mubr.bf16.mxu0 %v14528_v26  ;;  %v12187_v23 = vpack.c.bf16 %v10663_v56, %v10662_v22 }
 0x57b   :  { %10591 = vmatprep.subr.bf16.mxu0 %v14399_v39  ;;  %12164 = vmatprep.subr.bf16.mxu1 %v12163_v47  ;;  %v10646_v39 = vld [vmem:[%s15168_s3 + $0x70] sm:$0xff] }
 0x57d   :  { %12166 = vmatpush3.bf16.msra.mxu1 %v12165_v55 }
 0x57e   :  { %10592 = vmatpush1.bf16.msra.mxu0 %v14397_v7  ;;  %12168 = vmatprep.subr.bf16.mxu1 %v12167_v52  ;;  %v10647_v7 = vld [vmem:[%s15168_s3 + $0x78] sm:$0xff]  ;;  %s14529_s3 = smov [#allocation8]  }
 0x57f   :  { %10593 = vmatprep.subr.bf16.mxu0 %v14402_v29  ;;  %v12189_v26 = vpack.c.bf16 %v10647_v7, %v10646_v39  ;;  %s10754_s9 = sshll.u32 %s14529_s3, 4  ;;  %s10755_s9 = int_to_ptr.vmem [resolvable:$true] %s10754_s9 }
 0x580   :  { %s14494_s10 = scalar_lea.vmem %s10755_s9, 16  ;;  %s14498_s11 = scalar_lea.vmem %s10755_s9, 32 }
 0x581   :  { %12170 = vmatpush3.bf16.msra.mxu1 %v12169_v10  ;;  %p14495_p10 = scmp.ne.s32.totalorder %s10755_s9, %s14494_s10  ;;  %p14499_p11 = scmp.lt.s32.totalorder %s10755_s9, %s10755_s9 }
 0x582   :  { %10594 = vmatpush1.bf16.msra.mxu0 %v14400_v9  ;;  %12172 = vmatprep.subr.bf16.mxu1 %v12171_v43  ;;  %p14500_p12 = scmp.lt.s32.totalorder %s14498_s11, %s14494_s10 }
 0x583   :  { %10595 = vmatprep.subr.bf16.mxu0 %v14405_v32 }
 0x584   :  { %p14501_p13 = por %p14500_p12, %p14499_p11 }
 0x585   :  { %12174 = vmatpush3.bf16.msra.mxu1 %v12173_v0 }
 0x586   :  { %10596 = vmatpush1.bf16.msra.mxu0 %v14403_v16  ;;  %12176 = vmatprep.subr.bf16.mxu1 %v12175_v48  ;;  %p14502_p0 = pnand %p14501_p13, %p14495_p10 }
 0x587   :  { %10597 = vmatprep.subr.bf16.mxu0 %v14408_v28  ;;  %v8859_v28 = vsub.s32 0, %v14603_v46 }
 0x589   :  { %12178 = vmatpush3.bf16.msra.mxu1 %v12177_v8 }
 0x58a   :  { %10598 = vmatpush1.bf16.msra.mxu0 %v14406_v33  ;;  %12180 = vmatprep.subr.bf16.mxu1 %v12179_v38  ;;  %v1430_v33 = vld [vmem:[#allocation5] sm:$0x3] }
 0x58b   :  { %10599 = vmatprep.subr.bf16.mxu0 %v14411_v34  ;;  %v8863_v34 = vsub.s32 1, %v14603_v46 }
 0x58d   :  { %12182 = vmatpush3.bf16.msra.mxu1 %v12181_v61 }
 0x58e   :  { %10600 = vmatpush1.bf16.msra.mxu0 %v14409_v15  ;;  %12184 = vmatprep.subr.bf16.mxu1 %v12183_v60  ;;  %v8860_v15 = vrot.slane %v1430_v33, %v8859_v28 }
 0x58f   :  { %10601 = vmatprep.subr.bf16.mxu0 %v14414_v54  ;;  %v8864_v54 = vrot.slane %v1430_v33, %v8863_v34 }
 0x591   :  { %12186 = vmatpush3.bf16.msra.mxu1 %v12185_v40 }
 0x592   :  { %10602 = vmatpush1.bf16.msra.mxu0 %v14412_v17  ;;  %12188 = vmatprep.subr.bf16.mxu1 %v12187_v23 }
 0x593   :  { %10603 = vmatprep.subr.bf16.mxu0 %v14417_v31 }
 0x595   :  { %12190 = vmatpush3.bf16.msra.mxu1 %v12189_v26 }
 0x596   :  { %10604 = vmatpush1.bf16.msra.mxu0 %v14415_v42 }
 0x599   :  { %10622 = vmatmul.mubr.bf16.vlgmr.msra.gmra.mrb[0].mxu0 %v1961_v21 }
 0x64b   :  { %v9721_v29 = vpop.f32.mrb[0].mxu1 }
 0x64c   :  { %v9723_v9 = vpop.f32.mrb[1].mxu1  ;;  %v12191_v3 = vadd.f32 %v9721_v29, %v8860_v15 }
 0x64d   :  { %v9725_v32 = vpop.f32.mrb[2].mxu1  ;;  %v12193_v17 = vadd.f32 %v9723_v9, %v8864_v54 }
 0x64e   :  { %v9726_v16 = vpop.f32.mrb[3].mxu1 }
 0x66c   :  { %v10623_v31 = vpop.f32.mrb[0].mxu0 }
 0x66d   :  { %v12192_v41 = vadd.f32 %v12191_v3, %v10623_v31  ;;  %v10625_v42 = vpop.f32.mrb[1].mxu0 }
 0x66e   :  { %v12194_v21 = vadd.f32 %v12193_v17, %v10625_v42  ;;  %v10627_v63 = vpop.f32.mrb[2].mxu0 }
 0x66f   :  { %v10628_v58 = vpop.f32.mrb[3].mxu0  ;;  %v10630_v4 = vmax.f32 %v12192_v41, 0.0 }
 0x670   :  { %v10631_v20 = vmax.f32 %v12194_v21, 0.0 }
 0x672   :  { %10729 = vmatprep.mubr.f32.mxu1 %v10631_v20 }
 0x673   :  { %10730 = vmatmul.mubr.f32.vlgmr.msra.gmra.mrb[4].mxu1 %v10630_v4 }
 0x746   :  { %v12156_v45 = vpop.f32.mrb[4].mxu1 }
 0x747   :  { %v12157_v51 = vpop.f32.mrb[5].mxu1 }
 0x748   :  { %v12158_v14 = vadd.f32 %v12157_v51, %v12156_v45 }
 0x74a   :  { %v10732_v46 = vadd.f32 %v12158_v14, %v10664_v35 }
 0x74c   :  { %v10736_v47 = vsel %vm10735_vm0, %v10732_v46, -inf }
 0x74d   :  { %10737 = vmax.xlane.f32.xlu0 %v10736_v47 }
 0x7da   :  { %v10738_v49 = vpop.xlane.xlu0 %10737 }
 0x7db   :  { %v10739_v50 = vsub.f32 %v10732_v46, %v10738_v49 }
 0x7dd   :  { %v10740_v1 = vmul.f32 1.442695, %v10739_v50 }
 0x7df   :  { %14418 = vpow2.f32 %v10740_v1 }
 0x7e9   :  { %v14419_v11 = vpop.eup %14418 }
 0x7ea   :  { %v10742_v55 = vsel %vm10735_vm0, %v14419_v11, 0.0 }
 0x7eb   :  { %10743 = vadd.xlane.f32.xlu0 %v10742_v55 }
 0x878   :  { %v10744_v52 = vpop.xlane.xlu0 %10743 }
 0x879   :  { %14420 = vrcp.f32 %v10744_v52 }
 0x883   :  { %v14421_v36 = vpop.eup %14420 }
 0x884   :  { %v10746_v18 = vmul.f32 %v14421_v36, %v14419_v11 }
 0x886   :  { %10747 = vst.msk [vmem:[#allocation8] sm:$0x1] %vm10735_vm0, %v10746_v18 }
 0x887   :  { %14505 = shalt.err (!%p14502_p0)
}
 0x888   :  { %s14506_s14 = scalar_lea.hbm %s15170_s5, 16 }
 0x889   :  { %p14507_p1 = scmp.ne.s32.totalorder %s15170_s5, %s14506_s14  ;;  %p14510_p2 = scmp.lt.u32.totalorder %s14506_s14, %s15170_s5 }
 0x88b   :  { %p14512_p3 = pnand %p14510_p2, %p14507_p1 }
 0x88d   :  { %14515 = shalt.err (!%p14512_p3)
}
 0x88e   :  { %10757 = dma.vmem_to_hbm [thread:$0]  %s10755_s9, 16, %s15170_s5, [#allocation4]  }
 0x88f   :  { %14520 = dma.done.wait [#allocation4], 16  }
 0x890   :  { %14521 = vsyncadd [#allocation4], 4294967280 }
 0x891   :  { %10761 = vsyncpa [#allocation3], 1 }
 0x892   :  { %10762 = vsyncpa [#allocation6], 1 }
 0x893   :  { %10763 = vsyncpa [#allocation4], 1 }

</bundles_post_ra>
